<compile_context>
chip_gen: v6e
topology: v6e:2x2x1
jax: 0.10.0
libtpu: 0.0.40
codegen_flags: <defaults>
</compile_context>

<pallas_src>
import functools

import jax
import jax.numpy as jnp
import numpy as np
from jax.experimental import pallas as pl
from jax.experimental.pallas import tpu as pltpu

# bf16 storage / MXU inputs, f32 accumulation + epilogue.
COMPUTE_DTYPE = jnp.bfloat16


# ---------------------------------------------------------------------------
# Pallas kernels
# ---------------------------------------------------------------------------

def _make_conv1x1_kernel(n_pieces):
    """Pointwise conv (+ fused channel-concat of the inputs) + BN affine + SiLU."""
    def kernel(*refs):
        xs = refs[:n_pieces]
        ws = refs[n_pieces:2 * n_pieces]
        s_ref, b_ref, o_ref = refs[2 * n_pieces:]
        acc = jnp.dot(xs[0][...], ws[0][...], preferred_element_type=jnp.float32)
        for i in range(1, n_pieces):
            acc = acc + jnp.dot(xs[i][...], ws[i][...],
                                preferred_element_type=jnp.float32)
        y = acc * s_ref[...] + b_ref[...]
        y = y * jax.nn.sigmoid(y)
        o_ref[...] = y.astype(o_ref.dtype)
    return kernel


def _shift_up(y):
    """result[j] = y[j + 1]; the wrapped row only lands on masked positions."""
    return jnp.concatenate([y[1:], y[:1]], axis=0)


def _shift_down(y):
    """result[j] = y[j - 1]; the wrapped row only lands on masked positions."""
    return jnp.concatenate([y[-1:], y[:-1]], axis=0)


def _make_conv3x3_kernel(th, W, with_res):
    """3x3 conv (stride 1, pad 1, groups=1) + BN affine + SiLU (+ residual).

    Works on one (batch, row-band) tile: the main band (th*W rows) plus a
    2-row halo below it.  Row taps are accumulated dots into a VMEM scratch;
    column taps are +/-1 flat-row shifts with width-edge masks.
    """
    n_rows = th * W

    def kernel(xa_ref, xb_ref, w_ref, s_ref, b_ref, ml_ref, mr_ref, *rest):
        if with_res:
            res_ref, o_ref, acc_ref = rest
        else:
            o_ref, acc_ref = rest

        # band[j, c] = padded-input row (band_row_offset + j // W), column j % W
        band = jnp.concatenate([xa_ref[0], xb_ref[0]], axis=0)   # ((th+2)*W, C)
        rows = (band[0:n_rows],                                  # row tap dy = 0
                band[W:W + n_rows],                              # row tap dy = 1
                band[2 * W:2 * W + n_rows])                      # row tap dy = 2

        def col_tap(dx):
            # Sum of the three row taps for one column offset (K-folding of the
            # row taps into a single 3*Cin dot is the production path; kept as
            # three accumulated MXU dots here because Cin is tiny in the demo).
            y = jnp.dot(rows[0], w_ref[0 * 3 + dx],
                        preferred_element_type=jnp.float32)
            y = y + jnp.dot(rows[1], w_ref[1 * 3 + dx],
                            preferred_element_type=jnp.float32)
            y = y + jnp.dot(rows[2], w_ref[2 * 3 + dx],
                            preferred_element_type=jnp.float32)
            return y                                             # (th*W, Cout) f32

        # centre column (dx = 1): aligned, no mask
        acc_ref[...] = col_tap(1)
        # left column (dx = 0): out[j] += y[j - 1], first image column masked
        acc_ref[...] += _shift_down(col_tap(0)) * ml_ref[...]
        # right column (dx = 2): out[j] += y[j + 1], last image column masked
        acc_ref[...] += _shift_up(col_tap(2)) * mr_ref[...]

        y = acc_ref[...] * s_ref[...] + b_ref[...]
        y = y * jax.nn.sigmoid(y)
        if with_res:
            y = y + res_ref[0].astype(jnp.float32)
        o_ref[0] = y.astype(o_ref.dtype)

    return kernel


# ---------------------------------------------------------------------------
# Pallas wrappers
# ---------------------------------------------------------------------------

def conv1x1_bn_silu(xs, p):
    """1x1 conv + BN + SiLU.  `xs` may be a list of NHWC tensors whose channels
    are (implicitly) concatenated - the concat is fused into the matmul."""
    if not isinstance(xs, (list, tuple)):
        xs = [xs]
    xs = [x.astype(COMPUTE_DTYPE) for x in xs]
    B, H, W, _ = xs[0].shape
    M = B * H * W
    cins = [int(x.shape[-1]) for x in xs]
    Cout = int(p['w'].shape[1])

    # split the weight along its input-channel axis to match the input pieces
    w = p['w'].astype(COMPUTE_DTYPE)
    offs = np.cumsum([0] + cins)
    ws = [w[int(offs[i]):int(offs[i + 1])] for i in range(len(xs))]
    x2ds = [x.reshape(M, c) for x, c in zip(xs, cins)]

    # 512-row tiles with a cdiv grid (no whole-array fallback); Pallas masks the
    # partial last block if M is not a multiple of tm.
    tm = min(512, M)
    grid = (pl.cdiv(M, tm),)

    in_specs = ([pl.BlockSpec((tm, c), lambda i: (i, 0)) for c in cins] +
                [pl.BlockSpec((c, Cout), lambda i: (0, 0)) for c in cins] +
                [pl.BlockSpec((1, Cout), lambda i: (0, 0)),
                 pl.BlockSpec((1, Cout), lambda i: (0, 0))])

    out = pl.pallas_call(
        _make_conv1x1_kernel(len(xs)),
        out_shape=jax.ShapeDtypeStruct((M, Cout), COMPUTE_DTYPE),
        grid=grid,
        in_specs=in_specs,
        out_specs=pl.BlockSpec((tm, Cout), lambda i: (i, 0)),
        compiler_params=pltpu.CompilerParams(
            dimension_semantics=("parallel",)),
    )(*x2ds, *ws, p['scale'].reshape(1, Cout), p['bias'].reshape(1, Cout))
    return out.reshape(B, H, W, Cout)


def conv3x3_bn_silu(x_nhwc, p, res=None):
    """3x3 conv, stride 1, pad 1 (keep dims), groups=1, + BN + SiLU (+ residual)."""
    B, H, W, Cin = x_nhwc.shape
    Cout = int(p['w'].shape[2])
    x = x_nhwc.astype(COMPUTE_DTYPE)

    # Row-band tiling: grid = (B, H // th).  th must be even so the 2-row halo
    # below each band is addressable with blocked indexing.
    th = H
    for t in (64, 32, 16, 8, 4, 2):
        if H % t == 0 and t < H:
            th = t
            break
    if th % 2 != 0:
        raise NotImplementedError(
            "odd spatial height not supported")  # TODO(synk)
    n_h = H // th
    n_rows = th * W
    assert n_rows % 16 == 0, "row-band (th*W) must be a multiple of 16"

    # Pad rows only (1x copy); column taps are handled in-kernel, so there is
    # no width padding and no im2col materialization.
    xp = jnp.pad(x, ((0, 0), (1, 1), (0, 0), (0, 0)))       # (B, H+2, W, Cin)
    xf = xp.reshape(B, (H + 2) * W, Cin)                     # flat rows

    w9 = p['w'].astype(COMPUTE_DTYPE)                        # (9, Cin, Cout)

    # Width-edge masks (same for every band; depend only on j mod W).
    col = np.arange(n_rows) % W
    mask_l = jnp.asarray((col != 0).astype(np.float32).reshape(n_rows, 1))
    mask_r = jnp.asarray((col != W - 1).astype(np.float32).reshape(n_rows, 1))

    with_res = res is not None
    kernel = _make_conv3x3_kernel(th, W, with_res)

    in_specs = [
        # main band: th rows of the padded image, flattened
        pl.BlockSpec((1, n_rows, Cin), lambda b, h: (b, h, 0)),
        # 2-row halo directly below the band (same HBM array, second spec)
        pl.BlockSpec((1, 2 * W, Cin),
                     lambda b, h: (b, (h + 1) * (th // 2), 0)),
        pl.BlockSpec((9, Cin, Cout), lambda b, h: (0, 0, 0)),
        pl.BlockSpec((1, Cout), lambda b, h: (0, 0)),
        pl.BlockSpec((1, Cout), lambda b, h: (0, 0)),
        pl.BlockSpec((n_rows, 1), lambda b, h: (0, 0)),
        pl.BlockSpec((n_rows, 1), lambda b, h: (0, 0)),
    ]
    args = [xf, xf, w9,
            p['scale'].reshape(1, Cout), p['bias'].reshape(1, Cout),
            mask_l, mask_r]
    if with_res:
        in_specs.append(pl.BlockSpec((1, n_rows, Cout), lambda b, h: (b, h, 0)))
        args.append(res.astype(COMPUTE_DTYPE).reshape(B, H * W, Cout))

    out = pl.pallas_call(
        kernel,
        out_shape=jax.ShapeDtypeStruct((B, H * W, Cout), COMPUTE_DTYPE),
        grid=(B, n_h),
        in_specs=in_specs,
        out_specs=pl.BlockSpec((1, n_rows, Cout), lambda b, h: (b, h, 0)),
        scratch_shapes=[pltpu.VMEM((n_rows, Cout), jnp.float32)],
        compiler_params=pltpu.CompilerParams(
            dimension_semantics=("parallel", "parallel")),
    )(*args)
    return out.reshape(B, H, W, Cout)


# ---------------------------------------------------------------------------
# Model structure (mirrors the PyTorch module exactly, including the
# positional-arg quirk: ResidualBlock(hc, hc, 1, shortcut, groups) means
# num_repeats = hc and hidden_ch_scale = 1)
# ---------------------------------------------------------------------------

def make_divisible(x, divisor, min_value=None):
    if min_value is None:
        min_value = divisor
    new_value = max(min_value, int(x + divisor / 2) // divisor * divisor)
    return round(new_value)


def _residual_block(x, reps, skip, conv1x1, conv3x3):
    for rp in reps:
        h = conv1x1(x, rp['cv1'])
        x = conv3x3(h, rp['cv2'], res=x if skip else None)
    return x


def _csp_c3_block(x, p, skip, conv1x1, conv3x3):
    y = conv1x1(x, p['cv_pre'])
    hc = y.shape[-1] // 2
    sk, deep = y[..., :hc], y[..., hc:]
    for rb in p['rblocks']:
        deep = _residual_block(deep, rb, skip, conv1x1, conv3x3)
    # torch.cat([skip, deep]) -> cv_out fused as two accumulated matmuls
    return conv1x1([sk, deep], p['cv_out'])


def gelan_forward(x_nchw, params, skip=True,
                  conv1x1=conv1x1_bn_silu, conv3x3=conv3x3_bn_silu):
    x = jnp.transpose(x_nchw, (0, 2, 3, 1)).astype(COMPUTE_DTYPE)  # NCHW->NHWC
    y = conv1x1(x, params['cv_pre'])
    hc = y.shape[-1] // 2
    outs = [y[..., :hc], y[..., hc:]]
    for layer_p in params['m']:
        outs.append(_csp_c3_block(outs[-1], layer_p, skip, conv1x1, conv3x3))
    # torch.cat(y) -> cv_out fused as (2+n) accumulated matmuls
    out = conv1x1(outs, params['cv_out'])
    return jnp.transpose(out.astype(jnp.float32), (0, 3, 1, 2))   # NHWC->NCHW


# ---------------------------------------------------------------------------
# Deterministic parameter initialization (conv weight + folded eval-mode BN)
# ---------------------------------------------------------------------------

def init_conv_bn(key, cin, cout, k):
    kw, kbn = jax.random.split(key)
    if k == 1:
        w = jax.random.normal(kw, (cin, cout), jnp.float32) / np.sqrt(cin)
    else:
        w = jax.random.normal(kw, (9, cin, cout), jnp.float32) / np.sqrt(9 * cin)
    kg, kb, km, kv = jax.random.split(kbn, 4)
    gamma = 1.0 + 0.1 * jax.random.normal(kg, (cout,), jnp.float32)
    beta = 0.1 * jax.random.normal(kb, (cout,), jnp.float32)
    mean = 0.1 * jax.random.normal(km, (cout,), jnp.float32)
    var = 1.0 + 0.1 * jax.random.uniform(kv, (cout,), jnp.float32)
    eps = 1e-5
    scale = gamma / jnp.sqrt(var + eps)
    bias = beta - mean * scale
    return {'w': w, 'scale': scale, 'bias': bias}


def init_csp_params(key, in_ch, out_ch, n_inner):
    hc = int(out_ch * 0.5)
    keys = jax.random.split(key, 2 + n_inner)
    p = {'cv_pre': init_conv_bn(keys[0], in_ch, 2 * hc, 1),
         'cv_out': init_conv_bn(keys[1], 2 * hc, out_ch, 1),
         'rblocks': []}
    rb_hidden = make_divisible(int(1.0 * hc), 4)  # hidden_ch_scale = 1 (quirk)
    for i in range(n_inner):
        reps = []
        rkeys = jax.random.split(keys[2 + i], hc)  # num_repeats = hc (quirk)
        for r in range(hc):
            k1, k2 = jax.random.split(rkeys[r])
            reps.append({'cv1': init_conv_bn(k1, hc, rb_hidden, 1),
                         'cv2': init_conv_bn(k2, rb_hidden, hc, 3)})
        p['rblocks'].append(reps)
    return p


def init_gelan_params(key, in_ch, out_ch, n):
    hidden_ch = int(out_ch * 0.5)
    keys = jax.random.split(key, 2 + n)
    params = {'cv_pre': init_conv_bn(keys[0], in_ch, 2 * hidden_ch, 1),
              'cv_out': init_conv_bn(keys[1], (2 + n) * hidden_ch, out_ch, 1),
              'm': [init_csp_params(keys[2 + i], hidden_ch, hidden_ch, 2)
                    for i in range(n)]}
    return params


# ---------------------------------------------------------------------------
# Pure-JAX reference (independent of the Pallas tap/halo decomposition, but
# using the same bf16-in / f32-accumulate numerics)
# ---------------------------------------------------------------------------

def _ref_conv1x1(xs, p):
    if not isinstance(xs, (list, tuple)):
        xs = [xs]
    x = jnp.concatenate([v.astype(COMPUTE_DTYPE) for v in xs], axis=-1)
    y = jnp.einsum('bhwc,co->bhwo', x, p['w'].astype(COMPUTE_DTYPE),
                   preferred_element_type=jnp.float32)
    y = y * p['scale'] + p['bias']
    y = y * jax.nn.sigmoid(y)
    return y.astype(COMPUTE_DTYPE)


def _ref_conv3x3(x, p, res=None):
    cin, cout = p['w'].shape[1], p['w'].shape[2]
    w = p['w'].reshape(3, 3, cin, cout).astype(COMPUTE_DTYPE)
    y = jax.lax.conv_general_dilated(
        x.astype(COMPUTE_DTYPE), w, window_strides=(1, 1), padding='SAME',
        dimension_numbers=('NHWC', 'HWIO', 'NHWC'),
        preferred_element_type=jnp.float32)
    y = y * p['scale'] + p['bias']
    y = y * jax.nn.sigmoid(y)
    if res is not None:
        y = y + res.astype(jnp.float32)
    return y.astype(COMPUTE_DTYPE)


# ---------------------------------------------------------------------------

if __name__ == "__main__":
    in_ch, out_ch, n = 4, 8, 2
    B, H, W = 2, 16, 16

    key = jax.random.PRNGKey(0)
    kx, kp = jax.random.split(key)
    x = jax.random.normal(kx, (B, in_ch, H, W), jnp.float32)  # NCHW like PyTorch
    params = init_gelan_params(kp, in_ch, out_ch, n)

    fwd = jax.jit(functools.partial(gelan_forward, skip=True))
    out = fwd(x, params)
    out = jax.block_until_ready(out)
    assert out.shape == (B, out_ch, H, W)

    ref = gelan_forward(x, params, skip=True,
                        conv1x1=_ref_conv1x1, conv3x3=_ref_conv3x3)
    np.testing.assert_allclose(np.asarray(out), np.asarray(ref),
                               rtol=2e-2, atol=2e-2)

    print("KERNEL_OK")
</pallas_src>

<mosaic_0001>
module attributes {stable_mosaic.version = 11 : i64} {
  func.func @kernel(%arg0: i32, %arg1: memref<512x4xbf16, #tpu.memory_space<vmem>>, %arg2: memref<4x8xbf16, #tpu.memory_space<vmem>>, %arg3: memref<1x8xf32, #tpu.memory_space<vmem>>, %arg4: memref<1x8xf32, #tpu.memory_space<vmem>>, %arg5: memref<512x8xbf16, #tpu.memory_space<vmem>>) attributes {dimension_semantics = [#tpu.dimension_semantics<parallel>], iteration_bounds = array<i64: 1>, scalar_prefetch = 0 : i64, scratch_operands = 0 : i64, tpu.core_type = #tpu.core_type<tc>, window_params = [{transform_indices = @transform_0, window_bounds = array<i64: 512, 4>}, {pipeline_mode = #tpu.pipeline_mode<synchronous>, transform_indices = @transform_1, window_bounds = array<i64: 4, 8>}, {pipeline_mode = #tpu.pipeline_mode<synchronous>, transform_indices = @transform_2, window_bounds = array<i64: 1, 8>}, {pipeline_mode = #tpu.pipeline_mode<synchronous>, transform_indices = @transform_3, window_bounds = array<i64: 1, 8>}, {transform_indices = @transform_4, window_bounds = array<i64: 512, 8>}]} {
    %c0 = arith.constant 0 : index
    %c0_0 = arith.constant 0 : index
    %0 = vector.load %arg1[%c0, %c0_0] : memref<512x4xbf16, #tpu.memory_space<vmem>>, vector<512x4xbf16>
    %c0_1 = arith.constant 0 : index
    %c0_2 = arith.constant 0 : index
    %1 = vector.load %arg2[%c0_1, %c0_2] : memref<4x8xbf16, #tpu.memory_space<vmem>>, vector<4x8xbf16>
    %cst = arith.constant dense<0.000000e+00> : vector<512x8xf32>
    %2 = tpu.matmul %0, %1, %cst {dimension_numbers = #tpu.dot_dimension_numbers<[1], [0], [0], [1], [0, 0, 1, 1], [], []>} : vector<512x4xbf16>, vector<4x8xbf16>, vector<512x8xf32> -> vector<512x8xf32>
    %c0_3 = arith.constant 0 : index
    %c0_4 = arith.constant 0 : index
    %3 = vector.load %arg3[%c0_3, %c0_4] : memref<1x8xf32, #tpu.memory_space<vmem>>, vector<1x8xf32>
    %4 = vector.broadcast %3 : vector<1x8xf32> to vector<512x8xf32>
    %5 = arith.mulf %2, %4 : vector<512x8xf32>
    %c0_5 = arith.constant 0 : index
    %c0_6 = arith.constant 0 : index
    %6 = vector.load %arg4[%c0_5, %c0_6] : memref<1x8xf32, #tpu.memory_space<vmem>>, vector<1x8xf32>
    %7 = vector.broadcast %6 : vector<1x8xf32> to vector<512x8xf32>
    %8 = arith.addf %5, %7 : vector<512x8xf32>
    %9 = arith.negf %8 : vector<512x8xf32>
    %10 = math.exp %9 : vector<512x8xf32>
    %cst_7 = arith.constant 1.000000e+00 : f32
    %11 = vector.broadcast %cst_7 : f32 to vector<512x8xf32>
    %12 = arith.addf %11, %10 : vector<512x8xf32>
    %13 = arith.divf %11, %12 : vector<512x8xf32>
    %14 = arith.mulf %8, %13 : vector<512x8xf32>
    %15 = arith.truncf %14 : vector<512x8xf32> to vector<512x8xbf16>
    %c0_8 = arith.constant 0 : index
    %c0_9 = arith.constant 0 : index
    %16 = vector.load %arg5[%c0_8, %c0_9] : memref<512x8xbf16, #tpu.memory_space<vmem>>, vector<512x8xbf16>
    tpu.vector_store %arg5[%c0_8, %c0_9], %15 {strides = array<i32>} : memref<512x8xbf16, #tpu.memory_space<vmem>>, vector<512x8xbf16>,
    return
  }
  func.func @transform_0(%arg0: i32) -> (i32, i32) {
    %c0_i32 = arith.constant 0 : i32
    %c0_i32_0 = arith.constant 0 : i32
    return %arg0, %c0_i32 : i32, i32
  }
  func.func @transform_1(%arg0: i32) -> (i32, i32) {
    %c0_i32 = arith.constant 0 : i32
    %c0_i32_0 = arith.constant 0 : i32
    %c0_i32_1 = arith.constant 0 : i32
    return %c0_i32, %c0_i32_0 : i32, i32
  }
  func.func @transform_2(%arg0: i32) -> (i32, i32) {
    %c0_i32 = arith.constant 0 : i32
    %c0_i32_0 = arith.constant 0 : i32
    %c0_i32_1 = arith.constant 0 : i32
    return %c0_i32, %c0_i32_0 : i32, i32
  }
  func.func @transform_3(%arg0: i32) -> (i32, i32) {
    %c0_i32 = arith.constant 0 : i32
    %c0_i32_0 = arith.constant 0 : i32
    %c0_i32_1 = arith.constant 0 : i32
    return %c0_i32, %c0_i32_0 : i32, i32
  }
  func.func @transform_4(%arg0: i32) -> (i32, i32) {
    %c0_i32 = arith.constant 0 : i32
    %c0_i32_0 = arith.constant 0 : i32
    return %arg0, %c0_i32 : i32, i32
  }
}

module attributes {stable_mosaic.version = 11 : i64} {
  func.func @kernel(%arg0: i32, %arg1: memref<512x4xbf16, #tpu.memory_space<vmem>>, %arg2: memref<4x4xbf16, #tpu.memory_space<vmem>>, %arg3: memref<1x4xf32, #tpu.memory_space<vmem>>, %arg4: memref<1x4xf32, #tpu.memory_space<vmem>>, %arg5: memref<512x4xbf16, #tpu.memory_space<vmem>>) attributes {dimension_semantics = [#tpu.dimension_semantics<parallel>], iteration_bounds = array<i64: 1>, scalar_prefetch = 0 : i64, scratch_operands = 0 : i64, tpu.core_type = #tpu.core_type<tc>, window_params = [{transform_indices = @transform_0, window_bounds = array<i64: 512, 4>}, {pipeline_mode = #tpu.pipeline_mode<synchronous>, transform_indices = @transform_1, window_bounds = array<i64: 4, 4>}, {pipeline_mode = #tpu.pipeline_mode<synchronous>, transform_indices = @transform_2, window_bounds = array<i64: 1, 4>}, {pipeline_mode = #tpu.pipeline_mode<synchronous>, transform_indices = @transform_3, window_bounds = array<i64: 1, 4>}, {transform_indices = @transform_4, window_bounds = array<i64: 512, 4>}]} {
    %c0 = arith.constant 0 : index
    %c0_0 = arith.constant 0 : index
    %0 = vector.load %arg1[%c0, %c0_0] : memref<512x4xbf16, #tpu.memory_space<vmem>>, vector<512x4xbf16>
    %c0_1 = arith.constant 0 : index
    %c0_2 = arith.constant 0 : index
    %1 = vector.load %arg2[%c0_1, %c0_2] : memref<4x4xbf16, #tpu.memory_space<vmem>>, vector<4x4xbf16>
    %cst = arith.constant dense<0.000000e+00> : vector<512x4xf32>
    %2 = tpu.matmul %0, %1, %cst {dimension_numbers = #tpu.dot_dimension_numbers<[1], [0], [0], [1], [0, 0, 1, 1], [], []>} : vector<512x4xbf16>, vector<4x4xbf16>, vector<512x4xf32> -> vector<512x4xf32>
    %c0_3 = arith.constant 0 : index
    %c0_4 = arith.constant 0 : index
    %3 = vector.load %arg3[%c0_3, %c0_4] : memref<1x4xf32, #tpu.memory_space<vmem>>, vector<1x4xf32>
    %4 = vector.broadcast %3 : vector<1x4xf32> to vector<512x4xf32>
    %5 = arith.mulf %2, %4 : vector<512x4xf32>
    %c0_5 = arith.constant 0 : index
    %c0_6 = arith.constant 0 : index
    %6 = vector.load %arg4[%c0_5, %c0_6] : memref<1x4xf32, #tpu.memory_space<vmem>>, vector<1x4xf32>
    %7 = vector.broadcast %6 : vector<1x4xf32> to vector<512x4xf32>
    %8 = arith.addf %5, %7 : vector<512x4xf32>
    %9 = arith.negf %8 : vector<512x4xf32>
    %10 = math.exp %9 : vector<512x4xf32>
    %cst_7 = arith.constant 1.000000e+00 : f32
    %11 = vector.broadcast %cst_7 : f32 to vector<512x4xf32>
    %12 = arith.addf %11, %10 : vector<512x4xf32>
    %13 = arith.divf %11, %12 : vector<512x4xf32>
    %14 = arith.mulf %8, %13 : vector<512x4xf32>
    %15 = arith.truncf %14 : vector<512x4xf32> to vector<512x4xbf16>
    %c0_8 = arith.constant 0 : index
    %c0_9 = arith.constant 0 : index
    %16 = vector.load %arg5[%c0_8, %c0_9] : memref<512x4xbf16, #tpu.memory_space<vmem>>, vector<512x4xbf16>
    tpu.vector_store %arg5[%c0_8, %c0_9], %15 {strides = array<i32>} : memref<512x4xbf16, #tpu.memory_space<vmem>>, vector<512x4xbf16>,
    return
  }
  func.func @transform_0(%arg0: i32) -> (i32, i32) {
    %c0_i32 = arith.constant 0 : i32
    %c0_i32_0 = arith.constant 0 : i32
    return %arg0, %c0_i32 : i32, i32
  }
  func.func @transform_1(%arg0: i32) -> (i32, i32) {
    %c0_i32 = arith.constant 0 : i32
    %c0_i32_0 = arith.constant 0 : i32
    %c0_i32_1 = arith.constant 0 : i32
    return %c0_i32, %c0_i32_0 : i32, i32
  }
  func.func @transform_2(%arg0: i32) -> (i32, i32) {
    %c0_i32 = arith.constant 0 : i32
    %c0_i32_0 = arith.constant 0 : i32
    %c0_i32_1 = arith.constant 0 : i32
    return %c0_i32, %c0_i32_0 : i32, i32
  }
  func.func @transform_3(%arg0: i32) -> (i32, i32) {
    %c0_i32 = arith.constant 0 : i32
    %c0_i32_0 = arith.constant 0 : i32
    %c0_i32_1 = arith.constant 0 : i32
    return %c0_i32, %c0_i32_0 : i32, i32
  }
  func.func @transform_4(%arg0: i32) -> (i32, i32) {
    %c0_i32 = arith.constant 0 : i32
    %c0_i32_0 = arith.constant 0 : i32
    return %arg0, %c0_i32 : i32, i32
  }
}

module attributes {stable_mosaic.version = 11 : i64} {
  func.func @kernel(%arg0: i32, %arg1: memref<512x2xbf16, #tpu.memory_space<vmem>>, %arg2: memref<2x4xbf16, #tpu.memory_space<vmem>>, %arg3: memref<1x4xf32, #tpu.memory_space<vmem>>, %arg4: memref<1x4xf32, #tpu.memory_space<vmem>>, %arg5: memref<512x4xbf16, #tpu.memory_space<vmem>>) attributes {dimension_semantics = [#tpu.dimension_semantics<parallel>], iteration_bounds = array<i64: 1>, scalar_prefetch = 0 : i64, scratch_operands = 0 : i64, tpu.core_type = #tpu.core_type<tc>, window_params = [{transform_indices = @transform_0, window_bounds = array<i64: 512, 2>}, {pipeline_mode = #tpu.pipeline_mode<synchronous>, transform_indices = @transform_1, window_bounds = array<i64: 2, 4>}, {pipeline_mode = #tpu.pipeline_mode<synchronous>, transform_indices = @transform_2, window_bounds = array<i64: 1, 4>}, {pipeline_mode = #tpu.pipeline_mode<synchronous>, transform_indices = @transform_3, window_bounds = array<i64: 1, 4>}, {transform_indices = @transform_4, window_bounds = array<i64: 512, 4>}]} {
    %c0 = arith.constant 0 : index
    %c0_0 = arith.constant 0 : index
    %0 = vector.load %arg1[%c0, %c0_0] : memref<512x2xbf16, #tpu.memory_space<vmem>>, vector<512x2xbf16>
    %c0_1 = arith.constant 0 : index
    %c0_2 = arith.constant 0 : index
    %1 = vector.load %arg2[%c0_1, %c0_2] : memref<2x4xbf16, #tpu.memory_space<vmem>>, vector<2x4xbf16>
    %cst = arith.constant dense<0.000000e+00> : vector<512x4xf32>
    %2 = tpu.matmul %0, %1, %cst {dimension_numbers = #tpu.dot_dimension_numbers<[1], [0], [0], [1], [0, 0, 1, 1], [], []>} : vector<512x2xbf16>, vector<2x4xbf16>, vector<512x4xf32> -> vector<512x4xf32>
    %c0_3 = arith.constant 0 : index
    %c0_4 = arith.constant 0 : index
    %3 = vector.load %arg3[%c0_3, %c0_4] : memref<1x4xf32, #tpu.memory_space<vmem>>, vector<1x4xf32>
    %4 = vector.broadcast %3 : vector<1x4xf32> to vector<512x4xf32>
    %5 = arith.mulf %2, %4 : vector<512x4xf32>
    %c0_5 = arith.constant 0 : index
    %c0_6 = arith.constant 0 : index
    %6 = vector.load %arg4[%c0_5, %c0_6] : memref<1x4xf32, #tpu.memory_space<vmem>>, vector<1x4xf32>
    %7 = vector.broadcast %6 : vector<1x4xf32> to vector<512x4xf32>
    %8 = arith.addf %5, %7 : vector<512x4xf32>
    %9 = arith.negf %8 : vector<512x4xf32>
    %10 = math.exp %9 : vector<512x4xf32>
    %cst_7 = arith.constant 1.000000e+00 : f32
    %11 = vector.broadcast %cst_7 : f32 to vector<512x4xf32>
    %12 = arith.addf %11, %10 : vector<512x4xf32>
    %13 = arith.divf %11, %12 : vector<512x4xf32>
    %14 = arith.mulf %8, %13 : vector<512x4xf32>
    %15 = arith.truncf %14 : vector<512x4xf32> to vector<512x4xbf16>
    %c0_8 = arith.constant 0 : index
    %c0_9 = arith.constant 0 : index
    %16 = vector.load %arg5[%c0_8, %c0_9] : memref<512x4xbf16, #tpu.memory_space<vmem>>, vector<512x4xbf16>
    tpu.vector_store %arg5[%c0_8, %c0_9], %15 {strides = array<i32>} : memref<512x4xbf16, #tpu.memory_space<vmem>>, vector<512x4xbf16>,
    return
  }
  func.func @transform_0(%arg0: i32) -> (i32, i32) {
    %c0_i32 = arith.constant 0 : i32
    %c0_i32_0 = arith.constant 0 : i32
    return %arg0, %c0_i32 : i32, i32
  }
  func.func @transform_1(%arg0: i32) -> (i32, i32) {
    %c0_i32 = arith.constant 0 : i32
    %c0_i32_0 = arith.constant 0 : i32
    %c0_i32_1 = arith.constant 0 : i32
    return %c0_i32, %c0_i32_0 : i32, i32
  }
  func.func @transform_2(%arg0: i32) -> (i32, i32) {
    %c0_i32 = arith.constant 0 : i32
    %c0_i32_0 = arith.constant 0 : i32
    %c0_i32_1 = arith.constant 0 : i32
    return %c0_i32, %c0_i32_0 : i32, i32
  }
  func.func @transform_3(%arg0: i32) -> (i32, i32) {
    %c0_i32 = arith.constant 0 : i32
    %c0_i32_0 = arith.constant 0 : i32
    %c0_i32_1 = arith.constant 0 : i32
    return %c0_i32, %c0_i32_0 : i32, i32
  }
  func.func @transform_4(%arg0: i32) -> (i32, i32) {
    %c0_i32 = arith.constant 0 : i32
    %c0_i32_0 = arith.constant 0 : i32
    return %arg0, %c0_i32 : i32, i32
  }
}

module attributes {stable_mosaic.version = 11 : i64} {
  func.func @kernel(%arg0: i32, %arg1: i32, %arg2: memref<1x128x4xbf16, #tpu.memory_space<vmem>>, %arg3: memref<1x32x4xbf16, #tpu.memory_space<vmem>>, %arg4: memref<9x4x2xbf16, #tpu.memory_space<vmem>>, %arg5: memref<1x2xf32, #tpu.memory_space<vmem>>, %arg6: memref<1x2xf32, #tpu.memory_space<vmem>>, %arg7: memref<128x1xf32, #tpu.memory_space<vmem>>, %arg8: memref<128x1xf32, #tpu.memory_space<vmem>>, %arg9: memref<1x128x2xbf16, #tpu.memory_space<vmem>>, %arg10: memref<1x128x2xbf16, #tpu.memory_space<vmem>>, %arg11: memref<128x2xf32, #tpu.memory_space<vmem>>) attributes {dimension_semantics = [#tpu.dimension_semantics<parallel>, #tpu.dimension_semantics<parallel>], iteration_bounds = array<i64: 2, 2>, scalar_prefetch = 0 : i64, scratch_operands = 1 : i64, tpu.core_type = #tpu.core_type<tc>, window_params = [{transform_indices = @transform_0, window_bounds = array<i64: 1, 128, 4>}, {transform_indices = @transform_1, window_bounds = array<i64: 1, 32, 4>}, {pipeline_mode = #tpu.pipeline_mode<synchronous>, transform_indices = @transform_2, window_bounds = array<i64: 9, 4, 2>}, {pipeline_mode = #tpu.pipeline_mode<synchronous>, transform_indices = @transform_3, window_bounds = array<i64: 1, 2>}, {pipeline_mode = #tpu.pipeline_mode<synchronous>, transform_indices = @transform_4, window_bounds = array<i64: 1, 2>}, {pipeline_mode = #tpu.pipeline_mode<synchronous>, transform_indices = @transform_5, window_bounds = array<i64: 128, 1>}, {pipeline_mode = #tpu.pipeline_mode<synchronous>, transform_indices = @transform_6, window_bounds = array<i64: 128, 1>}, {transform_indices = @transform_7, window_bounds = array<i64: 1, 128, 2>}, {transform_indices = @transform_8, window_bounds = array<i64: 1, 128, 2>}]} {
    %c0 = arith.constant 0 : index
    %c0_0 = arith.constant 0 : index
    %c0_1 = arith.constant 0 : index
    %0 = vector.load %arg2[%c0, %c0_0, %c0_1] : memref<1x128x4xbf16, #tpu.memory_space<vmem>>, vector<1x128x4xbf16>
    %1 = vector.shape_cast %0 : vector<1x128x4xbf16> to vector<128x4xbf16>
    %c0_2 = arith.constant 0 : index
    %c0_3 = arith.constant 0 : index
    %c0_4 = arith.constant 0 : index
    %2 = vector.load %arg3[%c0_2, %c0_3, %c0_4] : memref<1x32x4xbf16, #tpu.memory_space<vmem>>, vector<1x32x4xbf16>
    %3 = vector.shape_cast %2 : vector<1x32x4xbf16> to vector<32x4xbf16>
    %4 = tpu.concatenate %1, %3 in 0 : vector<128x4xbf16>, vector<32x4xbf16> -> vector<160x4xbf16>
    %5 = vector.extract_strided_slice %4 {offsets = [0, 0], sizes = [128, 4], strides = [1, 1]} : vector<160x4xbf16> to vector<128x4xbf16>
    %6 = vector.extract_strided_slice %4 {offsets = [16, 0], sizes = [128, 4], strides = [1, 1]} : vector<160x4xbf16> to vector<128x4xbf16>
    %7 = vector.extract_strided_slice %4 {offsets = [32, 0], sizes = [128, 4], strides = [1, 1]} : vector<160x4xbf16> to vector<128x4xbf16>
    %c1 = arith.constant 1 : index
    %c0_5 = arith.constant 0 : index
    %c0_6 = arith.constant 0 : index
    %8 = vector.load %arg4[%c1, %c0_5, %c0_6] : memref<9x4x2xbf16, #tpu.memory_space<vmem>>, vector<1x4x2xbf16>
    %9 = vector.shape_cast %8 : vector<1x4x2xbf16> to vector<4x2xbf16>
    %cst = arith.constant dense<0.000000e+00> : vector<128x2xf32>
    %10 = tpu.matmul %5, %9, %cst {dimension_numbers = #tpu.dot_dimension_numbers<[1], [0], [0], [1], [0, 0, 1, 1], [], []>} : vector<128x4xbf16>, vector<4x2xbf16>, vector<128x2xf32> -> vector<128x2xf32>
    %c4 = arith.constant 4 : index
    %c0_7 = arith.constant 0 : index
    %c0_8 = arith.constant 0 : index
    %11 = vector.load %arg4[%c4, %c0_7, %c0_8] : memref<9x4x2xbf16, #tpu.memory_space<vmem>>, vector<1x4x2xbf16>
    %12 = vector.shape_cast %11 : vector<1x4x2xbf16> to vector<4x2xbf16>
    %cst_9 = arith.constant dense<0.000000e+00> : vector<128x2xf32>
    %13 = tpu.matmul %6, %12, %cst_9 {dimension_numbers = #tpu.dot_dimension_numbers<[1], [0], [0], [1], [0, 0, 1, 1], [], []>} : vector<128x4xbf16>, vector<4x2xbf16>, vector<128x2xf32> -> vector<128x2xf32>
    %14 = arith.addf %10, %13 : vector<128x2xf32>
    %c7 = arith.constant 7 : index
    %c0_10 = arith.constant 0 : index
    %c0_11 = arith.constant 0 : index
    %15 = vector.load %arg4[%c7, %c0_10, %c0_11] : memref<9x4x2xbf16, #tpu.memory_space<vmem>>, vector<1x4x2xbf16>
    %16 = vector.shape_cast %15 : vector<1x4x2xbf16> to vector<4x2xbf16>
    %cst_12 = arith.constant dense<0.000000e+00> : vector<128x2xf32>
    %17 = tpu.matmul %7, %16, %cst_12 {dimension_numbers = #tpu.dot_dimension_numbers<[1], [0], [0], [1], [0, 0, 1, 1], [], []>} : vector<128x4xbf16>, vector<4x2xbf16>, vector<128x2xf32> -> vector<128x2xf32>
    %18 = arith.addf %14, %17 : vector<128x2xf32>
    %c0_13 = arith.constant 0 : index
    %c0_14 = arith.constant 0 : index
    %19 = vector.load %arg11[%c0_13, %c0_14] : memref<128x2xf32, #tpu.memory_space<vmem>>, vector<128x2xf32>
    tpu.vector_store %arg11[%c0_13, %c0_14], %18 {strides = array<i32>} : memref<128x2xf32, #tpu.memory_space<vmem>>, vector<128x2xf32>,
    %c0_15 = arith.constant 0 : index
    %c0_16 = arith.constant 0 : index
    %20 = vector.load %arg11[%c0_15, %c0_16] : memref<128x2xf32, #tpu.memory_space<vmem>>, vector<128x2xf32>
    %c0_17 = arith.constant 0 : index
    %c0_18 = arith.constant 0 : index
    %c0_19 = arith.constant 0 : index
    %21 = vector.load %arg4[%c0_17, %c0_18, %c0_19] : memref<9x4x2xbf16, #tpu.memory_space<vmem>>, vector<1x4x2xbf16>
    %22 = vector.shape_cast %21 : vector<1x4x2xbf16> to vector<4x2xbf16>
    %cst_20 = arith.constant dense<0.000000e+00> : vector<128x2xf32>
    %23 = tpu.matmul %5, %22, %cst_20 {dimension_numbers = #tpu.dot_dimension_numbers<[1], [0], [0], [1], [0, 0, 1, 1], [], []>} : vector<128x4xbf16>, vector<4x2xbf16>, vector<128x2xf32> -> vector<128x2xf32>
    %c3 = arith.constant 3 : index
    %c0_21 = arith.constant 0 : index
    %c0_22 = arith.constant 0 : index
    %24 = vector.load %arg4[%c3, %c0_21, %c0_22] : memref<9x4x2xbf16, #tpu.memory_space<vmem>>, vector<1x4x2xbf16>
    %25 = vector.shape_cast %24 : vector<1x4x2xbf16> to vector<4x2xbf16>
    %cst_23 = arith.constant dense<0.000000e+00> : vector<128x2xf32>
    %26 = tpu.matmul %6, %25, %cst_23 {dimension_numbers = #tpu.dot_dimension_numbers<[1], [0], [0], [1], [0, 0, 1, 1], [], []>} : vector<128x4xbf16>, vector<4x2xbf16>, vector<128x2xf32> -> vector<128x2xf32>
    %27 = arith.addf %23, %26 : vector<128x2xf32>
    %c6 = arith.constant 6 : index
    %c0_24 = arith.constant 0 : index
    %c0_25 = arith.constant 0 : index
    %28 = vector.load %arg4[%c6, %c0_24, %c0_25] : memref<9x4x2xbf16, #tpu.memory_space<vmem>>, vector<1x4x2xbf16>
    %29 = vector.shape_cast %28 : vector<1x4x2xbf16> to vector<4x2xbf16>
    %cst_26 = arith.constant dense<0.000000e+00> : vector<128x2xf32>
    %30 = tpu.matmul %7, %29, %cst_26 {dimension_numbers = #tpu.dot_dimension_numbers<[1], [0], [0], [1], [0, 0, 1, 1], [], []>} : vector<128x4xbf16>, vector<4x2xbf16>, vector<128x2xf32> -> vector<128x2xf32>
    %31 = arith.addf %27, %30 : vector<128x2xf32>
    %32 = vector.extract_strided_slice %31 {offsets = [127, 0], sizes = [1, 2], strides = [1, 1]} : vector<128x2xf32> to vector<1x2xf32>
    %33 = vector.extract_strided_slice %31 {offsets = [0, 0], sizes = [127, 2], strides = [1, 1]} : vector<128x2xf32> to vector<127x2xf32>
    %34 = tpu.concatenate %32, %33 in 0 : vector<1x2xf32>, vector<127x2xf32> -> vector<128x2xf32>
    %c0_27 = arith.constant 0 : index
    %c0_28 = arith.constant 0 : index
    %35 = vector.load %arg7[%c0_27, %c0_28] : memref<128x1xf32, #tpu.memory_space<vmem>>, vector<128x1xf32>
    %36 = vector.broadcast %35 : vector<128x1xf32> to vector<128x2xf32>
    %37 = arith.mulf %34, %36 : vector<128x2xf32>
    %38 = arith.addf %20, %37 : vector<128x2xf32>
    %c0_29 = arith.constant 0 : index
    %c0_30 = arith.constant 0 : index
    %39 = vector.load %arg11[%c0_29, %c0_30] : memref<128x2xf32, #tpu.memory_space<vmem>>, vector<128x2xf32>
    tpu.vector_store %arg11[%c0_29, %c0_30], %38 {strides = array<i32>} : memref<128x2xf32, #tpu.memory_space<vmem>>, vector<128x2xf32>,
    %c0_31 = arith.constant 0 : index
    %c0_32 = arith.constant 0 : index
    %40 = vector.load %arg11[%c0_31, %c0_32] : memref<128x2xf32, #tpu.memory_space<vmem>>, vector<128x2xf32>
    %c2 = arith.constant 2 : index
    %c0_33 = arith.constant 0 : index
    %c0_34 = arith.constant 0 : index
    %41 = vector.load %arg4[%c2, %c0_33, %c0_34] : memref<9x4x2xbf16, #tpu.memory_space<vmem>>, vector<1x4x2xbf16>
    %42 = vector.shape_cast %41 : vector<1x4x2xbf16> to vector<4x2xbf16>
    %cst_35 = arith.constant dense<0.000000e+00> : vector<128x2xf32>
    %43 = tpu.matmul %5, %42, %cst_35 {dimension_numbers = #tpu.dot_dimension_numbers<[1], [0], [0], [1], [0, 0, 1, 1], [], []>} : vector<128x4xbf16>, vector<4x2xbf16>, vector<128x2xf32> -> vector<128x2xf32>
    %c5 = arith.constant 5 : index
    %c0_36 = arith.constant 0 : index
    %c0_37 = arith.constant 0 : index
    %44 = vector.load %arg4[%c5, %c0_36, %c0_37] : memref<9x4x2xbf16, #tpu.memory_space<vmem>>, vector<1x4x2xbf16>
    %45 = vector.shape_cast %44 : vector<1x4x2xbf16> to vector<4x2xbf16>
    %cst_38 = arith.constant dense<0.000000e+00> : vector<128x2xf32>
    %46 = tpu.matmul %6, %45, %cst_38 {dimension_numbers = #tpu.dot_dimension_numbers<[1], [0], [0], [1], [0, 0, 1, 1], [], []>} : vector<128x4xbf16>, vector<4x2xbf16>, vector<128x2xf32> -> vector<128x2xf32>
    %47 = arith.addf %43, %46 : vector<128x2xf32>
    %c8 = arith.constant 8 : index
    %c0_39 = arith.constant 0 : index
    %c0_40 = arith.constant 0 : index
    %48 = vector.load %arg4[%c8, %c0_39, %c0_40] : memref<9x4x2xbf16, #tpu.memory_space<vmem>>, vector<1x4x2xbf16>
    %49 = vector.shape_cast %48 : vector<1x4x2xbf16> to vector<4x2xbf16>
    %cst_41 = arith.constant dense<0.000000e+00> : vector<128x2xf32>
    %50 = tpu.matmul %7, %49, %cst_41 {dimension_numbers = #tpu.dot_dimension_numbers<[1], [0], [0], [1], [0, 0, 1, 1], [], []>} : vector<128x4xbf16>, vector<4x2xbf16>, vector<128x2xf32> -> vector<128x2xf32>
    %51 = arith.addf %47, %50 : vector<128x2xf32>
    %52 = vector.extract_strided_slice %51 {offsets = [1, 0], sizes = [127, 2], strides = [1, 1]} : vector<128x2xf32> to vector<127x2xf32>
    %53 = vector.extract_strided_slice %51 {offsets = [0, 0], sizes = [1, 2], strides = [1, 1]} : vector<128x2xf32> to vector<1x2xf32>
    %54 = tpu.concatenate %52, %53 in 0 : vector<127x2xf32>, vector<1x2xf32> -> vector<128x2xf32>
    %c0_42 = arith.constant 0 : index
    %c0_43 = arith.constant 0 : index
    %55 = vector.load %arg8[%c0_42, %c0_43] : memref<128x1xf32, #tpu.memory_space<vmem>>, vector<128x1xf32>
    %56 = vector.broadcast %55 : vector<128x1xf32> to vector<128x2xf32>
    %57 = arith.mulf %54, %56 : vector<128x2xf32>
    %58 = arith.addf %40, %57 : vector<128x2xf32>
    %c0_44 = arith.constant 0 : index
    %c0_45 = arith.constant 0 : index
    %59 = vector.load %arg11[%c0_44, %c0_45] : memref<128x2xf32, #tpu.memory_space<vmem>>, vector<128x2xf32>
    tpu.vector_store %arg11[%c0_44, %c0_45], %58 {strides = array<i32>} : memref<128x2xf32, #tpu.memory_space<vmem>>, vector<128x2xf32>,
    %c0_46 = arith.constant 0 : index
    %c0_47 = arith.constant 0 : index
    %60 = vector.load %arg11[%c0_46, %c0_47] : memref<128x2xf32, #tpu.memory_space<vmem>>, vector<128x2xf32>
    %c0_48 = arith.constant 0 : index
    %c0_49 = arith.constant 0 : index
    %61 = vector.load %arg5[%c0_48, %c0_49] : memref<1x2xf32, #tpu.memory_space<vmem>>, vector<1x2xf32>
    %62 = vector.broadcast %61 : vector<1x2xf32> to vector<128x2xf32>
    %63 = arith.mulf %60, %62 : vector<128x2xf32>
    %c0_50 = arith.constant 0 : index
    %c0_51 = arith.constant 0 : index
    %64 = vector.load %arg6[%c0_50, %c0_51] : memref<1x2xf32, #tpu.memory_space<vmem>>, vector<1x2xf32>
    %65 = vector.broadcast %64 : vector<1x2xf32> to vector<128x2xf32>
    %66 = arith.addf %63, %65 : vector<128x2xf32>
    %67 = arith.negf %66 : vector<128x2xf32>
    %68 = math.exp %67 : vector<128x2xf32>
    %cst_52 = arith.constant 1.000000e+00 : f32
    %69 = vector.broadcast %cst_52 : f32 to vector<128x2xf32>
    %70 = arith.addf %69, %68 : vector<128x2xf32>
    %71 = arith.divf %69, %70 : vector<128x2xf32>
    %72 = arith.mulf %66, %71 : vector<128x2xf32>
    %c0_53 = arith.constant 0 : index
    %c0_54 = arith.constant 0 : index
    %c0_55 = arith.constant 0 : index
    %73 = vector.load %arg9[%c0_53, %c0_54, %c0_55] : memref<1x128x2xbf16, #tpu.memory_space<vmem>>, vector<1x128x2xbf16>
    %74 = vector.shape_cast %73 : vector<1x128x2xbf16> to vector<128x2xbf16>
    %75 = arith.extf %74 : vector<128x2xbf16> to vector<128x2xf32>
    %76 = arith.addf %72, %75 : vector<128x2xf32>
    %77 = arith.truncf %76 : vector<128x2xf32> to vector<128x2xbf16>
    %c0_56 = arith.constant 0 : index
    %c0_57 = arith.constant 0 : index
    %c0_58 = arith.constant 0 : index
    %78 = vector.load %arg10[%c0_56, %c0_57, %c0_58] : memref<1x128x2xbf16, #tpu.memory_space<vmem>>, vector<1x128x2xbf16>
    %79 = vector.shape_cast %78 : vector<1x128x2xbf16> to vector<128x2xbf16>
    %80 = vector.shape_cast %77 : vector<128x2xbf16> to vector<1x128x2xbf16>
    tpu.vector_store %arg10[%c0_56, %c0_57, %c0_58], %80 {strides = array<i32>} : memref<1x128x2xbf16, #tpu.memory_space<vmem>>, vector<1x128x2xbf16>,
    return
  }
  func.func @transform_0(%arg0: i32, %arg1: i32) -> (i32, i32, i32) {
    %c0_i32 = arith.constant 0 : i32
    %c0_i32_0 = arith.constant 0 : i32
    return %arg0, %arg1, %c0_i32 : i32, i32, i32
  }
  func.func @transform_1(%arg0: i32, %arg1: i32) -> (i32, i32, i32) {
    %c1_i32 = arith.constant 1 : i32
    %0 = arith.addi %arg1, %c1_i32 : i32
    %c4_i32 = arith.constant 4 : i32
    %1 = arith.muli %0, %c4_i32 : i32
    %c0_i32 = arith.constant 0 : i32
    %c0_i32_0 = arith.constant 0 : i32
    return %arg0, %1, %c0_i32 : i32, i32, i32
  }
  func.func @transform_2(%arg0: i32, %arg1: i32) -> (i32, i32, i32) {
    %c0_i32 = arith.constant 0 : i32
    %c0_i32_0 = arith.constant 0 : i32
    %c0_i32_1 = arith.constant 0 : i32
    %c0_i32_2 = arith.constant 0 : i32
    return %c0_i32, %c0_i32_0, %c0_i32_1 : i32, i32, i32
  }
  func.func @transform_3(%arg0: i32, %arg1: i32) -> (i32, i32) {
    %c0_i32 = arith.constant 0 : i32
    %c0_i32_0 = arith.constant 0 : i32
    %c0_i32_1 = arith.constant 0 : i32
    return %c0_i32, %c0_i32_0 : i32, i32
  }
  func.func @transform_4(%arg0: i32, %arg1: i32) -> (i32, i32) {
    %c0_i32 = arith.constant 0 : i32
    %c0_i32_0 = arith.constant 0 : i32
    %c0_i32_1 = arith.constant 0 : i32
    return %c0_i32, %c0_i32_0 : i32, i32
  }
  func.func @transform_5(%arg0: i32, %arg1: i32) -> (i32, i32) {
    %c0_i32 = arith.constant 0 : i32
    %c0_i32_0 = arith.constant 0 : i32
    %c0_i32_1 = arith.constant 0 : i32
    return %c0_i32, %c0_i32_0 : i32, i32
  }
  func.func @transform_6(%arg0: i32, %arg1: i32) -> (i32, i32) {
    %c0_i32 = arith.constant 0 : i32
    %c0_i32_0 = arith.constant 0 : i32
    %c0_i32_1 = arith.constant 0 : i32
    return %c0_i32, %c0_i32_0 : i32, i32
  }
  func.func @transform_7(%arg0: i32, %arg1: i32) -> (i32, i32, i32) {
    %c0_i32 = arith.constant 0 : i32
    %c0_i32_0 = arith.constant 0 : i32
    return %arg0, %arg1, %c0_i32 : i32, i32, i32
  }
  func.func @transform_8(%arg0: i32, %arg1: i32) -> (i32, i32, i32) {
    %c0_i32 = arith.constant 0 : i32
    %c0_i32_0 = arith.constant 0 : i32
    return %arg0, %arg1, %c0_i32 : i32, i32, i32
  }
}

module attributes {stable_mosaic.version = 11 : i64} {
  func.func @kernel(%arg0: i32, %arg1: memref<512x2xbf16, #tpu.memory_space<vmem>>, %arg2: memref<512x2xbf16, #tpu.memory_space<vmem>>, %arg3: memref<2x4xbf16, #tpu.memory_space<vmem>>, %arg4: memref<2x4xbf16, #tpu.memory_space<vmem>>, %arg5: memref<1x4xf32, #tpu.memory_space<vmem>>, %arg6: memref<1x4xf32, #tpu.memory_space<vmem>>, %arg7: memref<512x4xbf16, #tpu.memory_space<vmem>>) attributes {dimension_semantics = [#tpu.dimension_semantics<parallel>], iteration_bounds = array<i64: 1>, scalar_prefetch = 0 : i64, scratch_operands = 0 : i64, tpu.core_type = #tpu.core_type<tc>, window_params = [{transform_indices = @transform_0, window_bounds = array<i64: 512, 2>}, {transform_indices = @transform_1, window_bounds = array<i64: 512, 2>}, {pipeline_mode = #tpu.pipeline_mode<synchronous>, transform_indices = @transform_2, window_bounds = array<i64: 2, 4>}, {pipeline_mode = #tpu.pipeline_mode<synchronous>, transform_indices = @transform_3, window_bounds = array<i64: 2, 4>}, {pipeline_mode = #tpu.pipeline_mode<synchronous>, transform_indices = @transform_4, window_bounds = array<i64: 1, 4>}, {pipeline_mode = #tpu.pipeline_mode<synchronous>, transform_indices = @transform_5, window_bounds = array<i64: 1, 4>}, {transform_indices = @transform_6, window_bounds = array<i64: 512, 4>}]} {
    %c0 = arith.constant 0 : index
    %c0_0 = arith.constant 0 : index
    %0 = vector.load %arg1[%c0, %c0_0] : memref<512x2xbf16, #tpu.memory_space<vmem>>, vector<512x2xbf16>
    %c0_1 = arith.constant 0 : index
    %c0_2 = arith.constant 0 : index
    %1 = vector.load %arg3[%c0_1, %c0_2] : memref<2x4xbf16, #tpu.memory_space<vmem>>, vector<2x4xbf16>
    %cst = arith.constant dense<0.000000e+00> : vector<512x4xf32>
    %2 = tpu.matmul %0, %1, %cst {dimension_numbers = #tpu.dot_dimension_numbers<[1], [0], [0], [1], [0, 0, 1, 1], [], []>} : vector<512x2xbf16>, vector<2x4xbf16>, vector<512x4xf32> -> vector<512x4xf32>
    %c0_3 = arith.constant 0 : index
    %c0_4 = arith.constant 0 : index
    %3 = vector.load %arg2[%c0_3, %c0_4] : memref<512x2xbf16, #tpu.memory_space<vmem>>, vector<512x2xbf16>
    %c0_5 = arith.constant 0 : index
    %c0_6 = arith.constant 0 : index
    %4 = vector.load %arg4[%c0_5, %c0_6] : memref<2x4xbf16, #tpu.memory_space<vmem>>, vector<2x4xbf16>
    %cst_7 = arith.constant dense<0.000000e+00> : vector<512x4xf32>
    %5 = tpu.matmul %3, %4, %cst_7 {dimension_numbers = #tpu.dot_dimension_numbers<[1], [0], [0], [1], [0, 0, 1, 1], [], []>} : vector<512x2xbf16>, vector<2x4xbf16>, vector<512x4xf32> -> vector<512x4xf32>
    %6 = arith.addf %2, %5 : vector<512x4xf32>
    %c0_8 = arith.constant 0 : index
    %c0_9 = arith.constant 0 : index
    %7 = vector.load %arg5[%c0_8, %c0_9] : memref<1x4xf32, #tpu.memory_space<vmem>>, vector<1x4xf32>
    %8 = vector.broadcast %7 : vector<1x4xf32> to vector<512x4xf32>
    %9 = arith.mulf %6, %8 : vector<512x4xf32>
    %c0_10 = arith.constant 0 : index
    %c0_11 = arith.constant 0 : index
    %10 = vector.load %arg6[%c0_10, %c0_11] : memref<1x4xf32, #tpu.memory_space<vmem>>, vector<1x4xf32>
    %11 = vector.broadcast %10 : vector<1x4xf32> to vector<512x4xf32>
    %12 = arith.addf %9, %11 : vector<512x4xf32>
    %13 = arith.negf %12 : vector<512x4xf32>
    %14 = math.exp %13 : vector<512x4xf32>
    %cst_12 = arith.constant 1.000000e+00 : f32
    %15 = vector.broadcast %cst_12 : f32 to vector<512x4xf32>
    %16 = arith.addf %15, %14 : vector<512x4xf32>
    %17 = arith.divf %15, %16 : vector<512x4xf32>
    %18 = arith.mulf %12, %17 : vector<512x4xf32>
    %19 = arith.truncf %18 : vector<512x4xf32> to vector<512x4xbf16>
    %c0_13 = arith.constant 0 : index
    %c0_14 = arith.constant 0 : index
    %20 = vector.load %arg7[%c0_13, %c0_14] : memref<512x4xbf16, #tpu.memory_space<vmem>>, vector<512x4xbf16>
    tpu.vector_store %arg7[%c0_13, %c0_14], %19 {strides = array<i32>} : memref<512x4xbf16, #tpu.memory_space<vmem>>, vector<512x4xbf16>,
    return
  }
  func.func @transform_0(%arg0: i32) -> (i32, i32) {
    %c0_i32 = arith.constant 0 : i32
    %c0_i32_0 = arith.constant 0 : i32
    return %arg0, %c0_i32 : i32, i32
  }
  func.func @transform_1(%arg0: i32) -> (i32, i32) {
    %c0_i32 = arith.constant 0 : i32
    %c0_i32_0 = arith.constant 0 : i32
    return %arg0, %c0_i32 : i32, i32
  }
  func.func @transform_2(%arg0: i32) -> (i32, i32) {
    %c0_i32 = arith.constant 0 : i32
    %c0_i32_0 = arith.constant 0 : i32
    %c0_i32_1 = arith.constant 0 : i32
    return %c0_i32, %c0_i32_0 : i32, i32
  }
  func.func @transform_3(%arg0: i32) -> (i32, i32) {
    %c0_i32 = arith.constant 0 : i32
    %c0_i32_0 = arith.constant 0 : i32
    %c0_i32_1 = arith.constant 0 : i32
    return %c0_i32, %c0_i32_0 : i32, i32
  }
  func.func @transform_4(%arg0: i32) -> (i32, i32) {
    %c0_i32 = arith.constant 0 : i32
    %c0_i32_0 = arith.constant 0 : i32
    %c0_i32_1 = arith.constant 0 : i32
    return %c0_i32, %c0_i32_0 : i32, i32
  }
  func.func @transform_5(%arg0: i32) -> (i32, i32) {
    %c0_i32 = arith.constant 0 : i32
    %c0_i32_0 = arith.constant 0 : i32
    %c0_i32_1 = arith.constant 0 : i32
    return %c0_i32, %c0_i32_0 : i32, i32
  }
  func.func @transform_6(%arg0: i32) -> (i32, i32) {
    %c0_i32 = arith.constant 0 : i32
    %c0_i32_0 = arith.constant 0 : i32
    return %arg0, %c0_i32 : i32, i32
  }
}

module attributes {stable_mosaic.version = 11 : i64} {
  func.func @kernel(%arg0: i32, %arg1: memref<512x4xbf16, #tpu.memory_space<vmem>>, %arg2: memref<512x4xbf16, #tpu.memory_space<vmem>>, %arg3: memref<512x4xbf16, #tpu.memory_space<vmem>>, %arg4: memref<512x4xbf16, #tpu.memory_space<vmem>>, %arg5: memref<4x8xbf16, #tpu.memory_space<vmem>>, %arg6: memref<4x8xbf16, #tpu.memory_space<vmem>>, %arg7: memref<4x8xbf16, #tpu.memory_space<vmem>>, %arg8: memref<4x8xbf16, #tpu.memory_space<vmem>>, %arg9: memref<1x8xf32, #tpu.memory_space<vmem>>, %arg10: memref<1x8xf32, #tpu.memory_space<vmem>>, %arg11: memref<512x8xbf16, #tpu.memory_space<vmem>>) attributes {dimension_semantics = [#tpu.dimension_semantics<parallel>], iteration_bounds = array<i64: 1>, scalar_prefetch = 0 : i64, scratch_operands = 0 : i64, tpu.core_type = #tpu.core_type<tc>, window_params = [{transform_indices = @transform_0, window_bounds = array<i64: 512, 4>}, {transform_indices = @transform_1, window_bounds = array<i64: 512, 4>}, {transform_indices = @transform_2, window_bounds = array<i64: 512, 4>}, {transform_indices = @transform_3, window_bounds = array<i64: 512, 4>}, {pipeline_mode = #tpu.pipeline_mode<synchronous>, transform_indices = @transform_4, window_bounds = array<i64: 4, 8>}, {pipeline_mode = #tpu.pipeline_mode<synchronous>, transform_indices = @transform_5, window_bounds = array<i64: 4, 8>}, {pipeline_mode = #tpu.pipeline_mode<synchronous>, transform_indices = @transform_6, window_bounds = array<i64: 4, 8>}, {pipeline_mode = #tpu.pipeline_mode<synchronous>, transform_indices = @transform_7, window_bounds = array<i64: 4, 8>}, {pipeline_mode = #tpu.pipeline_mode<synchronous>, transform_indices = @transform_8, window_bounds = array<i64: 1, 8>}, {pipeline_mode = #tpu.pipeline_mode<synchronous>, transform_indices = @transform_9, window_bounds = array<i64: 1, 8>}, {transform_indices = @transform_10, window_bounds = array<i64: 512, 8>}]} {
    %c0 = arith.constant 0 : index
    %c0_0 = arith.constant 0 : index
    %0 = vector.load %arg1[%c0, %c0_0] : memref<512x4xbf16, #tpu.memory_space<vmem>>, vector<512x4xbf16>
    %c0_1 = arith.constant 0 : index
    %c0_2 = arith.constant 0 : index
    %1 = vector.load %arg5[%c0_1, %c0_2] : memref<4x8xbf16, #tpu.memory_space<vmem>>, vector<4x8xbf16>
    %cst = arith.constant dense<0.000000e+00> : vector<512x8xf32>
    %2 = tpu.matmul %0, %1, %cst {dimension_numbers = #tpu.dot_dimension_numbers<[1], [0], [0], [1], [0, 0, 1, 1], [], []>} : vector<512x4xbf16>, vector<4x8xbf16>, vector<512x8xf32> -> vector<512x8xf32>
    %c0_3 = arith.constant 0 : index
    %c0_4 = arith.constant 0 : index
    %3 = vector.load %arg2[%c0_3, %c0_4] : memref<512x4xbf16, #tpu.memory_space<vmem>>, vector<512x4xbf16>
    %c0_5 = arith.constant 0 : index
    %c0_6 = arith.constant 0 : index
    %4 = vector.load %arg6[%c0_5, %c0_6] : memref<4x8xbf16, #tpu.memory_space<vmem>>, vector<4x8xbf16>
    %cst_7 = arith.constant dense<0.000000e+00> : vector<512x8xf32>
    %5 = tpu.matmul %3, %4, %cst_7 {dimension_numbers = #tpu.dot_dimension_numbers<[1], [0], [0], [1], [0, 0, 1, 1], [], []>} : vector<512x4xbf16>, vector<4x8xbf16>, vector<512x8xf32> -> vector<512x8xf32>
    %6 = arith.addf %2, %5 : vector<512x8xf32>
    %c0_8 = arith.constant 0 : index
    %c0_9 = arith.constant 0 : index
    %7 = vector.load %arg3[%c0_8, %c0_9] : memref<512x4xbf16, #tpu.memory_space<vmem>>, vector<512x4xbf16>
    %c0_10 = arith.constant 0 : index
    %c0_11 = arith.constant 0 : index
    %8 = vector.load %arg7[%c0_10, %c0_11] : memref<4x8xbf16, #tpu.memory_space<vmem>>, vector<4x8xbf16>
    %cst_12 = arith.constant dense<0.000000e+00> : vector<512x8xf32>
    %9 = tpu.matmul %7, %8, %cst_12 {dimension_numbers = #tpu.dot_dimension_numbers<[1], [0], [0], [1], [0, 0, 1, 1], [], []>} : vector<512x4xbf16>, vector<4x8xbf16>, vector<512x8xf32> -> vector<512x8xf32>
    %10 = arith.addf %6, %9 : vector<512x8xf32>
    %c0_13 = arith.constant 0 : index
    %c0_14 = arith.constant 0 : index
    %11 = vector.load %arg4[%c0_13, %c0_14] : memref<512x4xbf16, #tpu.memory_space<vmem>>, vector<512x4xbf16>
    %c0_15 = arith.constant 0 : index
    %c0_16 = arith.constant 0 : index
    %12 = vector.load %arg8[%c0_15, %c0_16] : memref<4x8xbf16, #tpu.memory_space<vmem>>, vector<4x8xbf16>
    %cst_17 = arith.constant dense<0.000000e+00> : vector<512x8xf32>
    %13 = tpu.matmul %11, %12, %cst_17 {dimension_numbers = #tpu.dot_dimension_numbers<[1], [0], [0], [1], [0, 0, 1, 1], [], []>} : vector<512x4xbf16>, vector<4x8xbf16>, vector<512x8xf32> -> vector<512x8xf32>
    %14 = arith.addf %10, %13 : vector<512x8xf32>
    %c0_18 = arith.constant 0 : index
    %c0_19 = arith.constant 0 : index
    %15 = vector.load %arg9[%c0_18, %c0_19] : memref<1x8xf32, #tpu.memory_space<vmem>>, vector<1x8xf32>
    %16 = vector.broadcast %15 : vector<1x8xf32> to vector<512x8xf32>
    %17 = arith.mulf %14, %16 : vector<512x8xf32>
    %c0_20 = arith.constant 0 : index
    %c0_21 = arith.constant 0 : index
    %18 = vector.load %arg10[%c0_20, %c0_21] : memref<1x8xf32, #tpu.memory_space<vmem>>, vector<1x8xf32>
    %19 = vector.broadcast %18 : vector<1x8xf32> to vector<512x8xf32>
    %20 = arith.addf %17, %19 : vector<512x8xf32>
    %21 = arith.negf %20 : vector<512x8xf32>
    %22 = math.exp %21 : vector<512x8xf32>
    %cst_22 = arith.constant 1.000000e+00 : f32
    %23 = vector.broadcast %cst_22 : f32 to vector<512x8xf32>
    %24 = arith.addf %23, %22 : vector<512x8xf32>
    %25 = arith.divf %23, %24 : vector<512x8xf32>
    %26 = arith.mulf %20, %25 : vector<512x8xf32>
    %27 = arith.truncf %26 : vector<512x8xf32> to vector<512x8xbf16>
    %c0_23 = arith.constant 0 : index
    %c0_24 = arith.constant 0 : index
    %28 = vector.load %arg11[%c0_23, %c0_24] : memref<512x8xbf16, #tpu.memory_space<vmem>>, vector<512x8xbf16>
    tpu.vector_store %arg11[%c0_23, %c0_24], %27 {strides = array<i32>} : memref<512x8xbf16, #tpu.memory_space<vmem>>, vector<512x8xbf16>,
    return
  }
  func.func @transform_0(%arg0: i32) -> (i32, i32) {
    %c0_i32 = arith.constant 0 : i32
    %c0_i32_0 = arith.constant 0 : i32
    return %arg0, %c0_i32 : i32, i32
  }
  func.func @transform_1(%arg0: i32) -> (i32, i32) {
    %c0_i32 = arith.constant 0 : i32
    %c0_i32_0 = arith.constant 0 : i32
    return %arg0, %c0_i32 : i32, i32
  }
  func.func @transform_2(%arg0: i32) -> (i32, i32) {
    %c0_i32 = arith.constant 0 : i32
    %c0_i32_0 = arith.constant 0 : i32
    return %arg0, %c0_i32 : i32, i32
  }
  func.func @transform_3(%arg0: i32) -> (i32, i32) {
    %c0_i32 = arith.constant 0 : i32
    %c0_i32_0 = arith.constant 0 : i32
    return %arg0, %c0_i32 : i32, i32
  }
  func.func @transform_4(%arg0: i32) -> (i32, i32) {
    %c0_i32 = arith.constant 0 : i32
    %c0_i32_0 = arith.constant 0 : i32
    %c0_i32_1 = arith.constant 0 : i32
    return %c0_i32, %c0_i32_0 : i32, i32
  }
  func.func @transform_5(%arg0: i32) -> (i32, i32) {
    %c0_i32 = arith.constant 0 : i32
    %c0_i32_0 = arith.constant 0 : i32
    %c0_i32_1 = arith.constant 0 : i32
    return %c0_i32, %c0_i32_0 : i32, i32
  }
  func.func @transform_6(%arg0: i32) -> (i32, i32) {
    %c0_i32 = arith.constant 0 : i32
    %c0_i32_0 = arith.constant 0 : i32
    %c0_i32_1 = arith.constant 0 : i32
    return %c0_i32, %c0_i32_0 : i32, i32
  }
  func.func @transform_7(%arg0: i32) -> (i32, i32) {
    %c0_i32 = arith.constant 0 : i32
    %c0_i32_0 = arith.constant 0 : i32
    %c0_i32_1 = arith.constant 0 : i32
    return %c0_i32, %c0_i32_0 : i32, i32
  }
  func.func @transform_8(%arg0: i32) -> (i32, i32) {
    %c0_i32 = arith.constant 0 : i32
    %c0_i32_0 = arith.constant 0 : i32
    %c0_i32_1 = arith.constant 0 : i32
    return %c0_i32, %c0_i32_0 : i32, i32
  }
  func.func @transform_9(%arg0: i32) -> (i32, i32) {
    %c0_i32 = arith.constant 0 : i32
    %c0_i32_0 = arith.constant 0 : i32
    %c0_i32_1 = arith.constant 0 : i32
    return %c0_i32, %c0_i32_0 : i32, i32
  }
  func.func @transform_10(%arg0: i32) -> (i32, i32) {
    %c0_i32 = arith.constant 0 : i32
    %c0_i32_0 = arith.constant 0 : i32
    return %arg0, %c0_i32 : i32, i32
  }
}

</mosaic_0001>

<bundles_post_ra>
// kernel: gelan_forward.22
= control target key start
LH: loop header
LB: loop body
LE: loop exit
PB: predicated region body
PF: predicated region fallthrough
CT: control target
= control target key end

     0   :  { %vm340_vm0 = vcmask 1041408   ;;  %vm243_vm1 = vcmask 31744   ;;  %vm1479_vm2 = vcmask 60416   ;;  %s3090_s1 = inlined_call_operand.vmem [shape: bf16[4,8], index: 1, kind: input, shape index: {}]   ;;  %s3091_s0 = inlined_call_operand.vmem [shape: bf16[512,4], index: 0, kind: input, shape index: {}]   ;;  %s3092_s2 = inlined_call_operand.vmem [shape: f32[1,8], index: 2, kind: input, shape index: {}]   ;;  %s3093_s3 = inlined_call_operand.vmem [shape: f32[1,8], index: 3, kind: input, shape index: {}]   ;;  %s3094_s4 = inlined_call_operand.vmem [shape: bf16[512,8], index: 4, kind: output, shape index: {}]  }
   0x1   :  { %v82_v0 = vld [vmem:[%s3090_s1] sm:$0x3]  ;;  %v1911_v4 = vld [vmem:[%s3091_s0 + $0x8] sm:$0xff]   ;;  %v1913_v6 = vld [vmem:[%s3091_s0 + $0x10] sm:$0xff]  }
   0x2   :  { %1907 = vmatprep.subr.msk.bf16.mxu0 %vm340_vm0, %v82_v0  ;;  %1908 = vmatprep.subr.msk.bf16.mxu1 %vm340_vm0, %v82_v0  ;;  %v342_v1 = vsel %vm340_vm0, %v82_v0, 0  ;;  %v1909_v2 = vld [vmem:[%s3091_s0] sm:$0xff]   ;;  %v1912_v5 = vld [vmem:[%s3091_s0 + $0x88] sm:$0xff]   ;;  %v1914_v7 = vld [vmem:[%s3091_s0 + $0x90] sm:$0xff]  }
   0x3   :  { %1840 = vmatpush3.bf16.msra.mxu0 %v342_v1  ;;  %1906 = vmatpush3.bf16.msra.mxu1 %v342_v1  ;;  %v1910_v3 = vld [vmem:[%s3091_s0 + $0x80] sm:$0xff]   ;;  %v1915_v8 = vld [vmem:[%s3091_s0 + $0x18] sm:$0xff]   ;;  %v1919_v12 = vld [vmem:[%s3091_s0 + $0x28] sm:$0xff]  }
   0x4   :  { %1841 = vmatprep.mubr.msk.bf16.mxu0 %vm243_vm1, %v1909_v2  ;;  %1873 = vmatprep.mubr.msk.bf16.mxu1 %vm243_vm1, %v1910_v3  ;;  %v1916_v9 = vld [vmem:[%s3091_s0 + $0x98] sm:$0xff]   ;;  %v1917_v10 = vld [vmem:[%s3091_s0 + $0x20] sm:$0xff]   ;;  %v1920_v13 = vld [vmem:[%s3091_s0 + $0xa8] sm:$0xff]  }
   0x5   :  { %v1918_v11 = vld [vmem:[%s3091_s0 + $0xa0] sm:$0xff]   ;;  %v1921_v14 = vld [vmem:[%s3091_s0 + $0x30] sm:$0xff]   ;;  %v1923_v16 = vld [vmem:[%s3091_s0 + $0x38] sm:$0xff]  }
   0x6   :  { %1842 = vmatmul.mubr.msk.bf16.vlgmr.msra.gmra.mxu0 %vm243_vm1, %v1911_v4  ;;  %1874 = vmatmul.mubr.msk.bf16.vlgmr.msra.gmra.mxu1 %vm243_vm1, %v1912_v5  ;;  %v1922_v15 = vld [vmem:[%s3091_s0 + $0xb0] sm:$0xff]   ;;  %v1924_v17 = vld [vmem:[%s3091_s0 + $0xb8] sm:$0xff]   ;;  %v1925_v18 = vld [vmem:[%s3091_s0 + $0x40] sm:$0xff]  }
   0x7   :  { %1845 = vmatprep.mubr.msk.bf16.mxu0 %vm243_vm1, %v1913_v6  ;;  %1877 = vmatprep.mubr.msk.bf16.mxu1 %vm243_vm1, %v1914_v7  ;;  %v1926_v19 = vld [vmem:[%s3091_s0 + $0xc0] sm:$0xff]   ;;  %v1927_v20 = vld [vmem:[%s3091_s0 + $0x48] sm:$0xff]   ;;  %v1929_v22 = vld [vmem:[%s3091_s0 + $0x50] sm:$0xff]  }
   0x8   :  { %v1928_v21 = vld [vmem:[%s3091_s0 + $0xc8] sm:$0xff]   ;;  %v1930_v23 = vld [vmem:[%s3091_s0 + $0xd0] sm:$0xff]   ;;  %v1931_v24 = vld [vmem:[%s3091_s0 + $0x58] sm:$0xff]  }
   0x9   :  { %v1932_v25 = vld [vmem:[%s3091_s0 + $0xd8] sm:$0xff]   ;;  %v1933_v26 = vld [vmem:[%s3091_s0 + $0x60] sm:$0xff]   ;;  %v1935_v28 = vld [vmem:[%s3091_s0 + $0x68] sm:$0xff]  }
   0xa   :  { %v1934_v27 = vld [vmem:[%s3091_s0 + $0xe0] sm:$0xff]   ;;  %v1936_v29 = vld [vmem:[%s3091_s0 + $0xe8] sm:$0xff]   ;;  %v1937_v30 = vld [vmem:[%s3091_s0 + $0x70] sm:$0xff]  }
   0xb   :  { %v1938_v31 = vld [vmem:[%s3091_s0 + $0xf0] sm:$0xff]   ;;  %v1939_v32 = vld [vmem:[%s3091_s0 + $0x78] sm:$0xff]   ;;  %v2358_v34 = vld [vmem:[%s3092_s2] ss:$0 sm:$0xff] }
   0xc   :  { %v1940_v33 = vld [vmem:[%s3091_s0 + $0xf8] sm:$0xff]   ;;  %v2363_v36 = vld [vmem:[%s3093_s3] ss:$0 sm:$0xff] }
   0xe   :  { %1846 = vmatmul.mubr.msk.bf16.gmra.mxu0 %vm243_vm1, %v1915_v8  ;;  %1878 = vmatmul.mubr.msk.bf16.gmra.mxu1 %vm243_vm1, %v1916_v9 }
   0xf   :  { %1849 = vmatprep.mubr.msk.bf16.mxu0 %vm243_vm1, %v1917_v10  ;;  %1881 = vmatprep.mubr.msk.bf16.mxu1 %vm243_vm1, %v1918_v11 }
  0x16   :  { %1850 = vmatmul.mubr.msk.bf16.gmra.mxu0 %vm243_vm1, %v1919_v12  ;;  %1882 = vmatmul.mubr.msk.bf16.gmra.mxu1 %vm243_vm1, %v1920_v13 }
  0x17   :  { %1853 = vmatprep.mubr.msk.bf16.mxu0 %vm243_vm1, %v1921_v14  ;;  %1885 = vmatprep.mubr.msk.bf16.mxu1 %vm243_vm1, %v1922_v15 }
  0x1e   :  { %1854 = vmatmul.mubr.msk.bf16.gmra.mxu0 %vm243_vm1, %v1923_v16  ;;  %1886 = vmatmul.mubr.msk.bf16.gmra.mxu1 %vm243_vm1, %v1924_v17 }
  0x1f   :  { %1857 = vmatprep.mubr.msk.bf16.mxu0 %vm243_vm1, %v1925_v18  ;;  %1889 = vmatprep.mubr.msk.bf16.mxu1 %vm243_vm1, %v1926_v19 }
  0x26   :  { %1858 = vmatmul.mubr.msk.bf16.gmra.mxu0 %vm243_vm1, %v1927_v20  ;;  %1890 = vmatmul.mubr.msk.bf16.gmra.mxu1 %vm243_vm1, %v1928_v21 }
  0x27   :  { %1861 = vmatprep.mubr.msk.bf16.mxu0 %vm243_vm1, %v1929_v22  ;;  %1893 = vmatprep.mubr.msk.bf16.mxu1 %vm243_vm1, %v1930_v23 }
  0x2e   :  { %1862 = vmatmul.mubr.msk.bf16.gmra.mxu0 %vm243_vm1, %v1931_v24  ;;  %1894 = vmatmul.mubr.msk.bf16.gmra.mxu1 %vm243_vm1, %v1932_v25 }
  0x2f   :  { %1865 = vmatprep.mubr.msk.bf16.mxu0 %vm243_vm1, %v1933_v26  ;;  %1897 = vmatprep.mubr.msk.bf16.mxu1 %vm243_vm1, %v1934_v27 }
  0x36   :  { %1866 = vmatmul.mubr.msk.bf16.gmra.mxu0 %vm243_vm1, %v1935_v28  ;;  %1898 = vmatmul.mubr.msk.bf16.gmra.mxu1 %vm243_vm1, %v1936_v29 }
  0x37   :  { %1869 = vmatprep.mubr.msk.bf16.mxu0 %vm243_vm1, %v1937_v30  ;;  %1901 = vmatprep.mubr.msk.bf16.mxu1 %vm243_vm1, %v1938_v31 }
  0x3e   :  { %1870 = vmatmul.mubr.msk.bf16.gmra.mxu0 %vm243_vm1, %v1939_v32  ;;  %1902 = vmatmul.mubr.msk.bf16.gmra.mxu1 %vm243_vm1, %v1940_v33 }
  0xc6   :  { %v1843_v35 = vpop.f32.mrf.mxu0  ;;  %v1875_v38 = vpop.f32.mrf.mxu1 }
  0xc7   :  { %v642_v37 = vmul.f32 %v1843_v35, %v2358_v34  ;;  %v674_v39 = vmul.f32 %v1875_v38, %v2358_v34 }
  0xc8   :  { %v378_v40 = vpop.f32.mrf.mxu0  ;;  %v506_v43 = vpop.f32.mrf.mxu1 }
  0xc9   :  { %v2368_v41 = vadd.f32 %v2363_v36, %v642_v37  ;;  %v640_v42 = vmul.f32 %v2358_v34, %v378_v40  ;;  %v2372_v44 = vadd.f32 %v2363_v36, %v674_v39  ;;  %v672_v45 = vmul.f32 %v2358_v34, %v506_v43 }
  0xca   :  { %v1844_v46 = vpop.f32.mrf.mxu0  ;;  %v1876_v50 = vpop.f32.mrf.mxu1 }
  0xcb   :  { %v1616_v47 = vmul.f32 -1.442695, %v2368_v41  ;;  %v2377_v48 = vadd.f32 %v2363_v36, %v640_v42  ;;  %v643_v49 = vmul.f32 %v1844_v46, %v2358_v34  ;;  %v1648_v51 = vmul.f32 -1.442695, %v2372_v44 }
  0xcc   :  { %v2382_v52 = vadd.f32 %v2363_v36, %v672_v45  ;;  %v675_v53 = vmul.f32 %v1876_v50, %v2358_v34  ;;  %v381_v54 = vpop.f32.mrf.mxu0  ;;  %v509_v58 = vpop.f32.mrf.mxu1 }
  0xcd   :  { %1941 = vpow2.f32 %v1616_v47  ;;  %v1614_v55 = vmul.f32 -1.442695, %v2377_v48  ;;  %v2387_v56 = vadd.f32 %v2363_v36, %v643_v49  ;;  %v641_v57 = vmul.f32 %v2358_v34, %v381_v54 }
  0xce   :  { %1943 = vpow2.f32 %v1648_v51  ;;  %v1646_v59 = vmul.f32 -1.442695, %v2382_v52  ;;  %v2392_v60 = vadd.f32 %v2363_v36, %v675_v53  ;;  %v673_v61 = vmul.f32 %v2358_v34, %v509_v58  ;;  %v1847_v62 = vpop.f32.mrf.mxu0  ;;  %v1879_v2 = vpop.f32.mrf.mxu1 }
  0xcf   :  { %1945 = vpow2.f32 %v1614_v55  ;;  %v1617_v63 = vmul.f32 -1.442695, %v2387_v56  ;;  %v2397_v0 = vadd.f32 %v2363_v36, %v641_v57  ;;  %v646_v1 = vmul.f32 %v1847_v62, %v2358_v34 }
  0xd0   :  { %1947 = vpow2.f32 %v1646_v59  ;;  %v1649_v3 = vmul.f32 -1.442695, %v2392_v60  ;;  %v2402_v4 = vadd.f32 %v2363_v36, %v673_v61  ;;  %v678_v5 = vmul.f32 %v1879_v2, %v2358_v34  ;;  %v394_v6 = vpop.f32.mrf.mxu0  ;;  %v522_v10 = vpop.f32.mrf.mxu1 }
  0xd1   :  { %1949 = vpow2.f32 %v1617_v63  ;;  %v1615_v7 = vmul.f32 -1.442695, %v2397_v0  ;;  %v2407_v8 = vadd.f32 %v2363_v36, %v646_v1  ;;  %v644_v9 = vmul.f32 %v2358_v34, %v394_v6 }
  0xd2   :  { %1951 = vpow2.f32 %v1649_v3  ;;  %v1647_v11 = vmul.f32 -1.442695, %v2402_v4  ;;  %v2412_v12 = vadd.f32 %v2363_v36, %v678_v5  ;;  %v676_v13 = vmul.f32 %v2358_v34, %v522_v10  ;;  %v1848_v14 = vpop.f32.mrf.mxu0  ;;  %v1880_v18 = vpop.f32.mrf.mxu1 }
  0xd3   :  { %1953 = vpow2.f32 %v1615_v7  ;;  %v1620_v15 = vmul.f32 -1.442695, %v2407_v8  ;;  %v2417_v16 = vadd.f32 %v2363_v36, %v644_v9  ;;  %v647_v17 = vmul.f32 %v1848_v14, %v2358_v34 }
  0xd4   :  { %1955 = vpow2.f32 %v1647_v11  ;;  %v1652_v19 = vmul.f32 -1.442695, %v2412_v12  ;;  %v2422_v20 = vadd.f32 %v2363_v36, %v676_v13  ;;  %v679_v21 = vmul.f32 %v1880_v18, %v2358_v34  ;;  %v397_v22 = vpop.f32.mrf.mxu0  ;;  %v525_v26 = vpop.f32.mrf.mxu1 }
  0xd5   :  { %1957 = vpow2.f32 %v1620_v15  ;;  %v1618_v23 = vmul.f32 -1.442695, %v2417_v16  ;;  %v2427_v24 = vadd.f32 %v2363_v36, %v647_v17  ;;  %v645_v25 = vmul.f32 %v2358_v34, %v397_v22 }
  0xd6   :  { %1959 = vpow2.f32 %v1652_v19  ;;  %v1650_v27 = vmul.f32 -1.442695, %v2422_v20  ;;  %v2432_v28 = vadd.f32 %v2363_v36, %v679_v21  ;;  %v677_v29 = vmul.f32 %v2358_v34, %v525_v26  ;;  %v1851_v30 = vpop.f32.mrf.mxu0  ;;  %v1883_v35 = vpop.f32.mrf.mxu1 }
  0xd7   :  { %1961 = vpow2.f32 %v1618_v23  ;;  %v1621_v31 = vmul.f32 -1.442695, %v2427_v24  ;;  %v2437_v32 = vadd.f32 %v2363_v36, %v645_v25  ;;  %v650_v33 = vmul.f32 %v1851_v30, %v2358_v34 }
  0xd8   :  { %1963 = vpow2.f32 %v1650_v27  ;;  %v1653_v37 = vmul.f32 -1.442695, %v2432_v28  ;;  %v2442_v38 = vadd.f32 %v2363_v36, %v677_v29  ;;  %v682_v39 = vmul.f32 %v1883_v35, %v2358_v34  ;;  %v410_v40 = vpop.f32.mrf.mxu0  ;;  %v538_v45 = vpop.f32.mrf.mxu1 }
  0xd9   :  { %1965 = vpow2.f32 %v1621_v31  ;;  %v1619_v42 = vmul.f32 -1.442695, %v2437_v32  ;;  %v648_v43 = vmul.f32 %v2358_v34, %v410_v40  ;;  %v680_v49 = vmul.f32 %v2358_v34, %v538_v45 }
  0xda   :  { %v1942_v46 = vpop.eup %1941  ;;  %1967 = vpow2.f32 %v1653_v37  ;;  %v1651_v47 = vmul.f32 -1.442695, %v2442_v38  ;;  %v1852_v50 = vpop.f32.mrf.mxu0  ;;  %v2450_v54 = vadd.f32 %v2363_v36, %v650_v33  ;;  %v2453_v59 = vadd.f32 %v2363_v36, %v682_v39 }
  0xdb   :  { %v1944_v51 = vpop.eup %1943  ;;  %v969_v53 = vadd.f32 1.0, %v1942_v46  ;;  %1969 = vpow2.f32 %v1619_v42  ;;  %v1884_v55 = vpop.f32.mrf.mxu1  ;;  %v2456_v1 = vadd.f32 %v2363_v36, %v648_v43  ;;  %v2459_v2 = vadd.f32 %v2363_v36, %v680_v49 }
  0xdc   :  { %v1946_v57 = vpop.eup %1945  ;;  %v1001_v58 = vadd.f32 1.0, %v1944_v51  ;;  %1971 = vpow2.f32 %v1651_v47  ;;  %v413_v61 = vpop.f32.mrf.mxu0  ;;  %v651_v7 = vmul.f32 %v1852_v50, %v2358_v34  ;;  %v683_v9 = vmul.f32 %v1884_v55, %v2358_v34 }
  0xdd   :  { %v1948_v62 = vpop.eup %1947  ;;  %1973 = vrcp.f32 %v969_v53  ;;  %v967_v63 = vadd.f32 1.0, %v1946_v57  ;;  %v541_v3 = vpop.f32.mrf.mxu1  ;;  %v2464_v14 = vmul.f32 -1.442695, %v2450_v54  ;;  %v649_v15 = vmul.f32 %v2358_v34, %v413_v61 }
  0xde   :  { %v1950_v5 = vpop.eup %1949  ;;  %1975 = vrcp.f32 %v1001_v58  ;;  %v999_v6 = vadd.f32 1.0, %v1948_v62  ;;  %v1855_v10 = vpop.f32.mrf.mxu0  ;;  %v2468_v21 = vmul.f32 -1.442695, %v2453_v59  ;;  %v681_v22 = vmul.f32 %v2358_v34, %v541_v3 }
  0xdf   :  { %v1952_v11 = vpop.eup %1951  ;;  %1977 = vrcp.f32 %v967_v63  ;;  %v970_v13 = vadd.f32 1.0, %v1950_v5  ;;  %v1887_v17 = vpop.f32.mrf.mxu1  ;;  %v2472_v26 = vmul.f32 -1.442695, %v2456_v1  ;;  %v2475_v27 = vmul.f32 -1.442695, %v2459_v2 }
  0xe0   :  { %v1954_v18 = vpop.eup %1953  ;;  %1979 = vrcp.f32 %v999_v6  ;;  %v1002_v19 = vadd.f32 1.0, %v1952_v11  ;;  %v2478_v31 = vadd.f32 %v2363_v36, %v651_v7  ;;  %v2481_v33 = vadd.f32 %v2363_v36, %v683_v9  ;;  %v426_v35 = vpop.f32.mrf.mxu0 }
  0xe1   :  { %v1956_v23 = vpop.eup %1955  ;;  %1981 = vrcp.f32 %v970_v13  ;;  %v968_v25 = vadd.f32 1.0, %v1954_v18  ;;  %v2484_v40 = vadd.f32 %v2363_v36, %v649_v15  ;;  %v654_v42 = vmul.f32 %v1855_v10, %v2358_v34  ;;  %v554_v43 = vpop.f32.mrf.mxu1 }
  0xe2   :  { %v1958_v29 = vpop.eup %1957  ;;  %1983 = vrcp.f32 %v1002_v19  ;;  %v1000_v30 = vadd.f32 1.0, %v1956_v23  ;;  %v2488_v47 = vadd.f32 %v2363_v36, %v681_v22  ;;  %v686_v49 = vmul.f32 %v1887_v17, %v2358_v34  ;;  %v1856_v63 = vpop.f32.mrf.mxu0 }
  0xe3   :  { %v1960_v37 = vpop.eup %1959  ;;  %1985 = vrcp.f32 %v968_v25  ;;  %v973_v39 = vadd.f32 1.0, %v1958_v29  ;;  %v2492_v53 = vadd.f32 %v2363_v36, %v654_v42  ;;  %v652_v55 = vmul.f32 %v2358_v34, %v426_v35  ;;  %v1888_v9 = vpop.f32.mrf.mxu1 }
  0xe4   :  { %v1962_v45 = vpop.eup %1961  ;;  %1987 = vrcp.f32 %v1000_v30  ;;  %v1005_v46 = vadd.f32 1.0, %v1960_v37  ;;  %v2496_v61 = vadd.f32 %v2363_v36, %v686_v49  ;;  %v684_v62 = vmul.f32 %v2358_v34, %v554_v43  ;;  %v429_v35 = vpop.f32.mrf.mxu0 }
  0xe5   :  { %v1964_v50 = vpop.eup %1963  ;;  %1989 = vrcp.f32 %v973_v39  ;;  %v971_v51 = vadd.f32 1.0, %v1962_v45  ;;  %v1625_v6 = vmul.f32 -1.442695, %v2478_v31  ;;  %v2501_v7 = vadd.f32 %v2363_v36, %v652_v55  ;;  %v557_v45 = vpop.f32.mrf.mxu1 }
  0xe6   :  { %v1966_v57 = vpop.eup %1965  ;;  %1991 = vrcp.f32 %v1005_v46  ;;  %v1003_v58 = vadd.f32 1.0, %v1964_v50  ;;  %v1657_v13 = vmul.f32 -1.442695, %v2481_v33  ;;  %v2505_v15 = vadd.f32 %v2363_v36, %v684_v62 }
  0xe7   :  { %v1968_v3 = vpop.eup %1967  ;;  %1993 = vrcp.f32 %v971_v51  ;;  %v974_v5 = vadd.f32 1.0, %v1966_v57  ;;  %v1623_v19 = vmul.f32 -1.442695, %v2484_v40  ;;  %v2509_v22 = vmul.f32 -1.442695, %v2488_v47 }
  0xe8   :  { %v1970_v10 = vpop.eup %1969  ;;  %1995 = vrcp.f32 %v1003_v58  ;;  %v1006_v11 = vadd.f32 1.0, %v1968_v3  ;;  %v2512_v29 = vmul.f32 -1.442695, %v2492_v53  ;;  %v2515_v30 = vmul.f32 -1.442695, %v2496_v61 }
  0xe9   :  { %v1972_v17 = vpop.eup %1971  ;;  %1997 = vrcp.f32 %v974_v5  ;;  %v972_v18 = vadd.f32 1.0, %v1970_v10  ;;  %v2519_v42 = vmul.f32 -1.442695, %v2501_v7  ;;  %v655_v43 = vmul.f32 %v1856_v63, %v2358_v34  ;;  %v1859_v5 = vpop.f32.mrf.mxu0 }
  0xea   :  { %v1974_v23 = vpop.eup %1973  ;;  %1999 = vrcp.f32 %v1006_v11  ;;  %v1004_v25 = vadd.f32 1.0, %v1972_v17  ;;  %v2524_v50 = vmul.f32 -1.442695, %v2505_v15  ;;  %v687_v51 = vmul.f32 %v1888_v9, %v2358_v34 }
  0xeb   :  { %v1976_v37 = vpop.eup %1975  ;;  %v1161_v39 = vmul.f32 %v1974_v23, %v2368_v41  ;;  %2001 = vrcp.f32 %v972_v18  ;;  %v653_v58 = vmul.f32 %v2358_v34, %v429_v35  ;;  %v2540_v9 = vadd.f32 %v2363_v36, %v655_v43 }
  0xec   :  { %v1978_v46 = vpop.eup %1977  ;;  %v1193_v49 = vmul.f32 %v1976_v37, %v2372_v44  ;;  %2003 = vrcp.f32 %v1004_v25  ;;  %v685_v44 = vmul.f32 %v2358_v34, %v557_v45  ;;  %v2549_v18 = vadd.f32 %v2363_v36, %v687_v51 }
  0xed   :  { %v1980_v55 = vpop.eup %1979  ;;  %v1744_v57 = vpack.c.bf16 %v1161_v39, %v1161_v39  ;;  %v1159_v41 = vmul.f32 %v1978_v46, %v2377_v48  ;;  %2005 = vpow2.f32 %v2464_v14  ;;  %v2557_v25 = vadd.f32 %v2363_v36, %v653_v58  ;;  %v442_v39 = vpop.f32.mrf.mxu0 }
  0xee   :  { %v1982_v62 = vpop.eup %1981  ;;  %v1776_v63 = vpack.c.bf16 %v1193_v49, %v1193_v49  ;;  %v1191_v3 = vmul.f32 %v1980_v55, %v2382_v52  ;;  %2007 = vpow2.f32 %v2468_v21  ;;  %v1891_v52 = vpop.f32.mrf.mxu1  ;;  %v2565_v37 = vadd.f32 %v2363_v36, %v685_v44 }
  0xef   :  { %v1984_v10 = vpop.eup %1983  ;;  %1482 = vst.msk [vmem:[%s3094_s4 + $0x8] sm:$0xf] %vm1479_vm2, %v1744_v57  ;;  %v1742_v48 = vpack.c.bf16 %v1159_v41, %v1159_v41  ;;  %v1162_v14 = vmul.f32 %v1982_v62, %v2387_v56  ;;  %2009 = vpow2.f32 %v2472_v26  ;;  %v1629_v45 = vmul.f32 -1.442695, %v2540_v9  ;;  %v1860_v62 = vpop.f32.mrf.mxu0 }
  0xf0   :  { %v1986_v11 = vpop.eup %1985  ;;  %1514 = vst.msk [vmem:[%s3094_s4 + $0x88] sm:$0xf] %vm1479_vm2, %v1776_v63  ;;  %v1774_v21 = vpack.c.bf16 %v1191_v3, %v1191_v3  ;;  %v1194_v17 = vmul.f32 %v1984_v10, %v2392_v60  ;;  %2011 = vpow2.f32 %v2475_v27  ;;  %v570_v46 = vpop.f32.mrf.mxu1  ;;  %v1661_v51 = vmul.f32 -1.442695, %v2549_v18 }
  0xf1   :  { %v1988_v56 = vpop.eup %1987  ;;  %1480 = vst.msk [vmem:[%s3094_s4] sm:$0xf] %vm1479_vm2, %v1742_v48  ;;  %v1745_v26 = vpack.c.bf16 %v1162_v14, %v1162_v14  ;;  %v1160_v23 = vmul.f32 %v1986_v11, %v2397_v0  ;;  %2013 = vpow2.f32 %v1625_v6  ;;  %v1627_v57 = vmul.f32 -1.442695, %v2557_v25 }
  0xf2   :  { %v1990_v35 = vpop.eup %1989  ;;  %1512 = vst.msk [vmem:[%s3094_s4 + $0x80] sm:$0xf] %vm1479_vm2, %v1774_v21  ;;  %v1777_v60 = vpack.c.bf16 %v1194_v17, %v1194_v17  ;;  %v1192_v27 = vmul.f32 %v1988_v56, %v2402_v4  ;;  %2015 = vpow2.f32 %v1657_v13  ;;  %v1659_v58 = vmul.f32 -1.442695, %v2565_v37  ;;  %v1892_v44 = vpop.f32.mrf.mxu1 }
  0xf3   :  { %v1992_v43 = vpop.eup %1991  ;;  %1483 = vst.msk [vmem:[%s3094_s4 + $0xc] sm:$0xf] %vm1479_vm2, %v1745_v26  ;;  %v1743_v0 = vpack.c.bf16 %v1160_v23, %v1160_v23  ;;  %v1165_v6 = vmul.f32 %v1990_v35, %v2407_v8  ;;  %2017 = vpow2.f32 %v1623_v19  ;;  %v658_v3 = vmul.f32 %v1859_v5, %v2358_v34  ;;  %v445_v21 = vpop.f32.mrf.mxu0 }
  0xf4   :  { %v1994_v49 = vpop.eup %1993  ;;  %1515 = vst.msk [vmem:[%s3094_s4 + $0x8c] sm:$0xf] %vm1479_vm2, %v1777_v60  ;;  %v1775_v4 = vpack.c.bf16 %v1192_v27, %v1192_v27  ;;  %v1197_v13 = vmul.f32 %v1992_v43, %v2412_v12  ;;  %2019 = vpow2.f32 %v2509_v22  ;;  %v690_v48 = vmul.f32 %v1891_v52, %v2358_v34  ;;  %v573_v23 = vpop.f32.mrf.mxu1 }
  0xf5   :  { %v1996_v55 = vpop.eup %1995  ;;  %1481 = vst.msk [vmem:[%s3094_s4 + $0x4] sm:$0xf] %vm1479_vm2, %v1743_v0  ;;  %v1748_v8 = vpack.c.bf16 %v1165_v6, %v1165_v6  ;;  %v1163_v19 = vmul.f32 %v1994_v49, %v2417_v16  ;;  %2021 = vpow2.f32 %v2512_v29  ;;  %v656_v5 = vmul.f32 %v2358_v34, %v442_v39 }
  0xf6   :  { %v1998_v41 = vpop.eup %1997  ;;  %1513 = vst.msk [vmem:[%s3094_s4 + $0x84] sm:$0xf] %vm1479_vm2, %v1775_v4  ;;  %v1780_v12 = vpack.c.bf16 %v1197_v13, %v1197_v13  ;;  %v1195_v22 = vmul.f32 %v1996_v55, %v2422_v20  ;;  %2023 = vpow2.f32 %v2515_v30  ;;  %v688_v52 = vmul.f32 %v2358_v34, %v570_v46  ;;  %v1863_v13 = vpop.f32.mrf.mxu0 }
  0xf7   :  { %v2000_v63 = vpop.eup %1999  ;;  %1486 = vst.msk [vmem:[%s3094_s4 + $0x18] sm:$0xf] %vm1479_vm2, %v1748_v8  ;;  %v1746_v16 = vpack.c.bf16 %v1163_v19, %v1163_v19  ;;  %v1166_v29 = vmul.f32 %v1998_v41, %v2427_v24  ;;  %2025 = vpow2.f32 %v2519_v42  ;;  %v2625_v26 = vadd.f32 %v2363_v36, %v658_v3 }
  0xf8   :  { %v2002_v20 = vpop.eup %2001  ;;  %1518 = vst.msk [vmem:[%s3094_s4 + $0x98] sm:$0xf] %vm1479_vm2, %v1780_v12  ;;  %v1778_v30 = vpack.c.bf16 %v1195_v22, %v1195_v22  ;;  %v1198_v10 = vmul.f32 %v2000_v63, %v2432_v28  ;;  %2027 = vpow2.f32 %v2524_v50  ;;  %v2632_v27 = vadd.f32 %v2363_v36, %v690_v48 }
  0xf9   :  { %v2004_v14 = vpop.eup %2003  ;;  %1484 = vst.msk [vmem:[%s3094_s4 + $0x10] sm:$0xf] %vm1479_vm2, %v1746_v16  ;;  %v1749_v24 = vpack.c.bf16 %v1166_v29, %v1166_v29  ;;  %v1164_v42 = vmul.f32 %v2002_v20, %v2437_v32  ;;  %2029 = vpow2.f32 %v1629_v45  ;;  %v2639_v0 = vadd.f32 %v2363_v36, %v656_v5 }
  0xfa   :  { %v2006_v11 = vpop.eup %2005  ;;  %1516 = vst.msk [vmem:[%s3094_s4 + $0x90] sm:$0xf] %vm1479_vm2, %v1778_v30  ;;  %v1781_v28 = vpack.c.bf16 %v1198_v10, %v1198_v10  ;;  %v1196_v50 = vmul.f32 %v2004_v14, %v2442_v38  ;;  %2031 = vpow2.f32 %v1661_v51  ;;  %v2642_v6 = vadd.f32 %v2363_v36, %v688_v52  ;;  %v458_v10 = vpop.f32.mrf.mxu0 }
  0xfb   :  { %v2008_v17 = vpop.eup %2007  ;;  %1487 = vst.msk [vmem:[%s3094_s4 + $0x1c] sm:$0xf] %vm1479_vm2, %v1749_v24  ;;  %v1747_v32 = vpack.c.bf16 %v1164_v42, %v1164_v42  ;;  %v977_v56 = vadd.f32 1.0, %v2006_v11  ;;  %2033 = vpow2.f32 %v1627_v57  ;;  %v659_v49 = vmul.f32 %v1860_v62, %v2358_v34  ;;  %v1895_v57 = vpop.f32.mrf.mxu1 }
  0xfc   :  { %v2010_v35 = vpop.eup %2009  ;;  %1519 = vst.msk [vmem:[%s3094_s4 + $0x9c] sm:$0xf] %vm1479_vm2, %v1781_v28  ;;  %v1779_v38 = vpack.c.bf16 %v1196_v50, %v1196_v50  ;;  %v1009_v60 = vadd.f32 1.0, %v2008_v17  ;;  %2035 = vpow2.f32 %v1659_v58  ;;  %v691_v4 = vmul.f32 %v1892_v44, %v2358_v34 }
  0xfd   :  { %v2012_v39 = vpop.eup %2011  ;;  %1485 = vst.msk [vmem:[%s3094_s4 + $0x14] sm:$0xf] %vm1479_vm2, %v1747_v32  ;;  %2037 = vrcp.f32 %v977_v56  ;;  %v975_v43 = vadd.f32 1.0, %v2010_v35  ;;  %v2651_v8 = vmul.f32 -1.442695, %v2625_v26  ;;  %v657_v19 = vmul.f32 %v2358_v34, %v445_v21  ;;  %v586_v5 = vpop.f32.mrf.mxu1 }
  0xfe   :  { %v2014_v45 = vpop.eup %2013  ;;  %1517 = vst.msk [vmem:[%s3094_s4 + $0x94] sm:$0xf] %vm1479_vm2, %v1779_v38  ;;  %2039 = vrcp.f32 %v1009_v60  ;;  %v1007_v46 = vadd.f32 1.0, %v2012_v39  ;;  %v2655_v22 = vmul.f32 -1.442695, %v2632_v27  ;;  %v689_v58 = vmul.f32 %v2358_v34, %v573_v23  ;;  %v1864_v39 = vpop.f32.mrf.mxu0 }
  0xff   :  { %v2016_v51 = vpop.eup %2015  ;;  %2041 = vrcp.f32 %v975_v43  ;;  %v978_v55 = vadd.f32 1.0, %v2014_v45  ;;  %v2659_v16 = vmul.f32 -1.442695, %v2639_v0  ;;  %v2662_v29 = vmul.f32 -1.442695, %v2642_v6 }
 0x100   :  { %v2018_v41 = vpop.eup %2017  ;;  %2043 = vrcp.f32 %v1007_v46  ;;  %v1010_v12 = vadd.f32 1.0, %v2016_v51  ;;  %v2665_v20 = vadd.f32 %v2363_v36, %v659_v49  ;;  %v2668_v30 = vadd.f32 %v2363_v36, %v691_v4  ;;  %v1896_v4 = vpop.f32.mrf.mxu1 }
 0x101   :  { %v2020_v62 = vpop.eup %2019  ;;  %2045 = vrcp.f32 %v978_v55  ;;  %v976_v63 = vadd.f32 1.0, %v2018_v41  ;;  %v2671_v24 = vadd.f32 %v2363_v36, %v657_v19  ;;  %v662_v42 = vmul.f32 %v1863_v13, %v2358_v34 }
 0x102   :  { %v2022_v3 = vpop.eup %2021  ;;  %2047 = vrcp.f32 %v1010_v12  ;;  %v1008_v44 = vadd.f32 1.0, %v2020_v62  ;;  %v2675_v50 = vadd.f32 %v2363_v36, %v689_v58  ;;  %v694_v52 = vmul.f32 %v1895_v57, %v2358_v34 }
 0x103   :  { %v2024_v48 = vpop.eup %2023  ;;  %2049 = vrcp.f32 %v976_v63  ;;  %v981_v14 = vadd.f32 1.0, %v2022_v3  ;;  %v2679_v32 = vadd.f32 %v2363_v36, %v662_v42  ;;  %v660_v56 = vmul.f32 %v2358_v34, %v458_v10  ;;  %v461_v10 = vpop.f32.mrf.mxu0 }
 0x104   :  { %v2026_v11 = vpop.eup %2025  ;;  %2051 = vrcp.f32 %v1008_v44  ;;  %v1013_v28 = vadd.f32 1.0, %v2024_v48  ;;  %v2683_v38 = vadd.f32 %v2363_v36, %v694_v52  ;;  %v692_v60 = vmul.f32 %v2358_v34, %v586_v5 }
 0x105   :  { %v2028_v21 = vpop.eup %2027  ;;  %2053 = vrcp.f32 %v981_v14  ;;  %v979_v17 = vadd.f32 1.0, %v2026_v11  ;;  %v1633_v46 = vmul.f32 -1.442695, %v2665_v20  ;;  %v2688_v49 = vadd.f32 %v2363_v36, %v660_v56  ;;  %v589_v11 = vpop.f32.mrf.mxu1 }
 0x106   :  { %v2030_v23 = vpop.eup %2029  ;;  %2055 = vrcp.f32 %v1013_v28  ;;  %v1011_v35 = vadd.f32 1.0, %v2028_v21  ;;  %v1665_v55 = vmul.f32 -1.442695, %v2668_v30  ;;  %v2692_v19 = vadd.f32 %v2363_v36, %v692_v60 }
 0x107   :  { %v2032_v43 = vpop.eup %2031  ;;  %2057 = vrcp.f32 %v979_v17  ;;  %v982_v45 = vadd.f32 1.0, %v2030_v23  ;;  %v1631_v12 = vmul.f32 -1.442695, %v2671_v24  ;;  %v2696_v58 = vmul.f32 -1.442695, %v2675_v50 }
 0x108   :  { %v2034_v13 = vpop.eup %2033  ;;  %2059 = vrcp.f32 %v1011_v35  ;;  %v1014_v51 = vadd.f32 1.0, %v2032_v43  ;;  %v2699_v3 = vmul.f32 -1.442695, %v2679_v32  ;;  %v2702_v44 = vmul.f32 -1.442695, %v2683_v38 }
 0x109   :  { %v2036_v57 = vpop.eup %2035  ;;  %2061 = vrcp.f32 %v982_v45  ;;  %v980_v41 = vadd.f32 1.0, %v2034_v13  ;;  %v2706_v42 = vmul.f32 -1.442695, %v2688_v49  ;;  %v663_v5 = vmul.f32 %v1864_v39, %v2358_v34  ;;  %v1867_v45 = vpop.f32.mrf.mxu0 }
 0x10a   :  { %v2038_v62 = vpop.eup %2037  ;;  %2063 = vrcp.f32 %v1014_v51  ;;  %v1012_v63 = vadd.f32 1.0, %v2036_v57  ;;  %v2711_v21 = vmul.f32 -1.442695, %v2692_v19  ;;  %v695_v17 = vmul.f32 %v1896_v4, %v2358_v34 }
 0x10b   :  { %v2040_v48 = vpop.eup %2039  ;;  %v1169_v14 = vmul.f32 %v2038_v62, %v2450_v54  ;;  %2065 = vrcp.f32 %v980_v41  ;;  %v661_v35 = vmul.f32 %v2358_v34, %v461_v10  ;;  %v2727_v4 = vadd.f32 %v2363_v36, %v663_v5 }
 0x10c   :  { %v2042_v28 = vpop.eup %2041  ;;  %v1201_v52 = vmul.f32 %v2040_v48, %v2453_v59  ;;  %2067 = vrcp.f32 %v1012_v63  ;;  %v693_v59 = vmul.f32 %v2358_v34, %v589_v11  ;;  %v2736_v41 = vadd.f32 %v2363_v36, %v695_v17 }
 0x10d   :  { %v2044_v56 = vpop.eup %2043  ;;  %v1752_v23 = vpack.c.bf16 %v1169_v14, %v1169_v14  ;;  %v1167_v54 = vmul.f32 %v2042_v28, %v2456_v1  ;;  %2069 = vpow2.f32 %v2651_v8  ;;  %v2744_v63 = vadd.f32 %v2363_v36, %v661_v35  ;;  %v474_v14 = vpop.f32.mrf.mxu0 }
 0x10e   :  { %v2046_v60 = vpop.eup %2045  ;;  %v1784_v39 = vpack.c.bf16 %v1201_v52, %v1201_v52  ;;  %v1199_v43 = vmul.f32 %v2044_v56, %v2459_v2  ;;  %2071 = vpow2.f32 %v2655_v22  ;;  %v1899_v2 = vpop.f32.mrf.mxu1  ;;  %v2752_v48 = vadd.f32 %v2363_v36, %v693_v59 }
 0x10f   :  { %v2048_v13 = vpop.eup %2047  ;;  %1490 = vst.msk [vmem:[%s3094_s4 + $0x28] sm:$0xf] %vm1479_vm2, %v1752_v23  ;;  %v1750_v1 = vpack.c.bf16 %v1167_v54, %v1167_v54  ;;  %v1170_v8 = vmul.f32 %v2046_v60, %v2478_v31  ;;  %2073 = vpow2.f32 %v2659_v16  ;;  %v1637_v11 = vmul.f32 -1.442695, %v2727_v4  ;;  %v1868_v60 = vpop.f32.mrf.mxu0 }
 0x110   :  { %v2050_v51 = vpop.eup %2049  ;;  %1522 = vst.msk [vmem:[%s3094_s4 + $0xa8] sm:$0xf] %vm1479_vm2, %v1784_v39  ;;  %v1782_v22 = vpack.c.bf16 %v1199_v43, %v1199_v43  ;;  %v1202_v57 = vmul.f32 %v2048_v13, %v2481_v33  ;;  %2075 = vpow2.f32 %v2662_v29  ;;  %v602_v28 = vpop.f32.mrf.mxu1  ;;  %v1669_v17 = vmul.f32 -1.442695, %v2736_v41 }
 0x111   :  { %v2052_v31 = vpop.eup %2051  ;;  %1488 = vst.msk [vmem:[%s3094_s4 + $0x20] sm:$0xf] %vm1479_vm2, %v1750_v1  ;;  %v1753_v16 = vpack.c.bf16 %v1170_v8, %v1170_v8  ;;  %v1168_v62 = vmul.f32 %v2050_v51, %v2484_v40  ;;  %2077 = vpow2.f32 %v1633_v46  ;;  %v1635_v23 = vmul.f32 -1.442695, %v2744_v63 }
 0x112   :  { %v2054_v10 = vpop.eup %2053  ;;  %1520 = vst.msk [vmem:[%s3094_s4 + $0xa0] sm:$0xf] %vm1479_vm2, %v1782_v22  ;;  %v1785_v33 = vpack.c.bf16 %v1202_v57, %v1202_v57  ;;  %v1200_v29 = vmul.f32 %v2052_v31, %v2488_v47  ;;  %2079 = vpow2.f32 %v1665_v55  ;;  %v1667_v35 = vmul.f32 -1.442695, %v2752_v48  ;;  %v1900_v59 = vpop.f32.mrf.mxu1 }
 0x113   :  { %v2056_v5 = vpop.eup %2055  ;;  %1491 = vst.msk [vmem:[%s3094_s4 + $0x2c] sm:$0xf] %vm1479_vm2, %v1753_v16  ;;  %v1751_v40 = vpack.c.bf16 %v1168_v62, %v1168_v62  ;;  %v1173_v46 = vmul.f32 %v2054_v10, %v2492_v53  ;;  %2081 = vpow2.f32 %v1631_v12  ;;  %v666_v43 = vmul.f32 %v1867_v45, %v2358_v34  ;;  %v477_v22 = vpop.f32.mrf.mxu0 }
 0x114   :  { %v2058_v52 = vpop.eup %2057  ;;  %1523 = vst.msk [vmem:[%s3094_s4 + $0xac] sm:$0xf] %vm1479_vm2, %v1785_v33  ;;  %v1783_v47 = vpack.c.bf16 %v1200_v29, %v1200_v29  ;;  %v1205_v55 = vmul.f32 %v2056_v5, %v2496_v61  ;;  %2083 = vpow2.f32 %v2696_v58  ;;  %v698_v1 = vmul.f32 %v1899_v2, %v2358_v34  ;;  %v605_v62 = vpop.f32.mrf.mxu1 }
 0x115   :  { %v2060_v56 = vpop.eup %2059  ;;  %1489 = vst.msk [vmem:[%s3094_s4 + $0x24] sm:$0xf] %vm1479_vm2, %v1751_v40  ;;  %v1756_v53 = vpack.c.bf16 %v1173_v46, %v1173_v46  ;;  %v1171_v12 = vmul.f32 %v2058_v52, %v2501_v7  ;;  %2085 = vpow2.f32 %v2699_v3  ;;  %v664_v45 = vmul.f32 %v2358_v34, %v474_v14  ;;  %v1871_v52 = vpop.f32.mrf.mxu0 }
 0x116   :  { %v2062_v54 = vpop.eup %2061  ;;  %1521 = vst.msk [vmem:[%s3094_s4 + $0xa4] sm:$0xf] %vm1479_vm2, %v1783_v47  ;;  %v1788_v61 = vpack.c.bf16 %v1205_v55, %v1205_v55  ;;  %v1203_v58 = vmul.f32 %v2060_v56, %v2505_v15  ;;  %2087 = vpow2.f32 %v2702_v44  ;;  %v696_v2 = vmul.f32 %v2358_v34, %v602_v28 }
 0x117   :  { %v2064_v39 = vpop.eup %2063  ;;  %1494 = vst.msk [vmem:[%s3094_s4 + $0x38] sm:$0xf] %vm1479_vm2, %v1756_v53  ;;  %v1754_v7 = vpack.c.bf16 %v1171_v12, %v1171_v12  ;;  %v1174_v3 = vmul.f32 %v2062_v54, %v2540_v9  ;;  %2089 = vpow2.f32 %v2706_v42  ;;  %v2812_v16 = vadd.f32 %v2363_v36, %v666_v43  ;;  %v1903_v53 = vpop.f32.mrf.mxu1  ;;  %v2853_v43 = vld [vmem:[%s3092_s2] ss:$0 sm:$0xff] }
 0x118   :  { %v2066_v15 = vpop.eup %2065  ;;  %1526 = vst.msk [vmem:[%s3094_s4 + $0xb8] sm:$0xf] %vm1479_vm2, %v1788_v61  ;;  %v1786_v44 = vpack.c.bf16 %v1203_v58, %v1203_v58  ;;  %v1206_v13 = vmul.f32 %v2064_v39, %v2549_v18  ;;  %2091 = vpow2.f32 %v2711_v21  ;;  %v2819_v29 = vadd.f32 %v2363_v36, %v698_v1 }
 0x119   :  { %v2068_v8 = vpop.eup %2067  ;;  %1492 = vst.msk [vmem:[%s3094_s4 + $0x30] sm:$0xf] %vm1479_vm2, %v1754_v7  ;;  %v1757_v9 = vpack.c.bf16 %v1174_v3, %v1174_v3  ;;  %v1172_v42 = vmul.f32 %v2066_v15, %v2557_v25  ;;  %2093 = vpow2.f32 %v1637_v11  ;;  %v2826_v40 = vadd.f32 %v2363_v36, %v664_v45  ;;  %v490_v15 = vpop.f32.mrf.mxu0 }
 0x11a   :  { %v2070_v51 = vpop.eup %2069  ;;  %1524 = vst.msk [vmem:[%s3094_s4 + $0xb0] sm:$0xf] %vm1479_vm2, %v1786_v44  ;;  %v1789_v18 = vpack.c.bf16 %v1206_v13, %v1206_v13  ;;  %v1204_v21 = vmul.f32 %v2068_v8, %v2565_v37  ;;  %2095 = vpow2.f32 %v1669_v17  ;;  %v2833_v28 = vadd.f32 %v2363_v36, %v696_v2 }
 0x11b   :  { %v2072_v57 = vpop.eup %2071  ;;  %1495 = vst.msk [vmem:[%s3094_s4 + $0x3c] sm:$0xf] %vm1479_vm2, %v1757_v9  ;;  %v1755_v25 = vpack.c.bf16 %v1172_v42, %v1172_v42  ;;  %v985_v31 = vadd.f32 1.0, %v2070_v51  ;;  %2097 = vpow2.f32 %v1635_v23  ;;  %v2836_v17 = vmul.f32 -1.442695, %v2812_v16  ;;  %v618_v9 = vpop.f32.mrf.mxu1 }
 0x11c   :  { %v2074_v10 = vpop.eup %2073  ;;  %1527 = vst.msk [vmem:[%s3094_s4 + $0xbc] sm:$0xf] %vm1479_vm2, %v1789_v18  ;;  %v1787_v37 = vpack.c.bf16 %v1204_v21, %v1204_v21  ;;  %v1017_v33 = vadd.f32 1.0, %v2072_v57  ;;  %2099 = vpow2.f32 %v1667_v35  ;;  %v667_v56 = vmul.f32 %v1868_v60, %v2358_v34 }
 0x11d   :  { %v2076_v14 = vpop.eup %2075  ;;  %1493 = vst.msk [vmem:[%s3094_s4 + $0x34] sm:$0xf] %vm1479_vm2, %v1755_v25  ;;  %2101 = vrcp.f32 %v985_v31  ;;  %v983_v5 = vadd.f32 1.0, %v2074_v10  ;;  %v2840_v54 = vmul.f32 -1.442695, %v2819_v29  ;;  %v699_v61 = vmul.f32 %v1900_v59, %v2358_v34 }
 0x11e   :  { %v2078_v46 = vpop.eup %2077  ;;  %1525 = vst.msk [vmem:[%s3094_s4 + $0xb4] sm:$0xf] %vm1479_vm2, %v1787_v37  ;;  %2103 = vrcp.f32 %v1017_v33  ;;  %v1015_v11 = vadd.f32 1.0, %v2076_v14  ;;  %v2844_v35 = vmul.f32 -1.442695, %v2826_v40  ;;  %v665_v39 = vmul.f32 %v2358_v34, %v477_v22 }
 0x11f   :  { %v2080_v47 = vpop.eup %2079  ;;  %2105 = vrcp.f32 %v983_v5  ;;  %v986_v55 = vadd.f32 1.0, %v2078_v46  ;;  %v2848_v3 = vmul.f32 -1.442695, %v2833_v28  ;;  %v697_v59 = vmul.f32 %v2853_v43, %v605_v62  ;;  %v2859_v34 = vld [vmem:[%s3093_s3] ss:$0 sm:$0xff] }
 0x120   :  { %v2082_v12 = vpop.eup %2081  ;;  %2107 = vrcp.f32 %v1015_v11  ;;  %v1018_v23 = vadd.f32 1.0, %v2080_v47  ;;  %v2862_v1 = vadd.f32 %v2859_v34, %v667_v56  ;;  %v670_v8 = vmul.f32 %v2853_v43, %v1871_v52 }
 0x121   :  { %v2084_v36 = vpop.eup %2083  ;;  %2109 = vrcp.f32 %v986_v55  ;;  %v984_v58 = vadd.f32 1.0, %v2082_v12  ;;  %v2866_v51 = vadd.f32 %v2859_v34, %v699_v61  ;;  %v702_v18 = vmul.f32 %v2853_v43, %v1903_v53  ;;  %v1872_v55 = vpop.f32.mrf.mxu0 }
 0x122   :  { %v2086_v7 = vpop.eup %2085  ;;  %2111 = vrcp.f32 %v1018_v23  ;;  %v1016_v60 = vadd.f32 1.0, %v2084_v36  ;;  %v2870_v22 = vadd.f32 %v2859_v34, %v665_v39  ;;  %v668_v57 = vmul.f32 %v2853_v43, %v490_v15  ;;  %v1904_v61 = vpop.f32.mrf.mxu1 }
 0x123   :  { %v2088_v44 = vpop.eup %2087  ;;  %2113 = vrcp.f32 %v984_v58  ;;  %v989_v13 = vadd.f32 1.0, %v2086_v7  ;;  %v2874_v62 = vadd.f32 %v2859_v34, %v697_v59  ;;  %v700_v10 = vmul.f32 %v2853_v43, %v618_v9 }
 0x124   :  { %v2090_v42 = vpop.eup %2089  ;;  %2115 = vrcp.f32 %v1016_v60  ;;  %v1021_v45 = vadd.f32 1.0, %v2088_v44  ;;  %v2878_v14 = vadd.f32 %v2859_v34, %v670_v8  ;;  %v2881_v5 = vadd.f32 %v2859_v34, %v702_v18 }
 0x125   :  { %v2092_v21 = vpop.eup %2091  ;;  %2117 = vrcp.f32 %v989_v13  ;;  %v987_v2 = vadd.f32 1.0, %v2090_v42  ;;  %v1641_v52 = vmul.f32 -1.442695, %v2862_v1  ;;  %v2885_v47 = vadd.f32 %v2859_v34, %v668_v57  ;;  %v621_v57 = vpop.f32.mrf.mxu1 }
 0x126   :  { %v2094_v25 = vpop.eup %2093  ;;  %2119 = vrcp.f32 %v1021_v45  ;;  %v1019_v31 = vadd.f32 1.0, %v2092_v21  ;;  %v1673_v12 = vmul.f32 -1.442695, %v2866_v51  ;;  %v2889_v23 = vadd.f32 %v2859_v34, %v700_v10  ;;  %v493_v45 = vpop.f32.mrf.mxu0 }
 0x127   :  { %v2096_v37 = vpop.eup %2095  ;;  %2121 = vrcp.f32 %v987_v2  ;;  %v990_v33 = vadd.f32 1.0, %v2094_v25  ;;  %v1639_v39 = vmul.f32 -1.442695, %v2870_v22  ;;  %v1671_v7 = vmul.f32 -1.442695, %v2874_v62 }
 0x128   :  { %v2098_v46 = vpop.eup %2097  ;;  %2123 = vrcp.f32 %v1019_v31  ;;  %v1022_v11 = vadd.f32 1.0, %v2096_v37  ;;  %v1644_v15 = vmul.f32 -1.442695, %v2878_v14  ;;  %v2896_v44 = vmul.f32 -1.442695, %v2881_v5 }
 0x129   :  { %v2100_v56 = vpop.eup %2099  ;;  %2125 = vrcp.f32 %v990_v33  ;;  %v988_v53 = vadd.f32 1.0, %v2098_v46  ;;  %v2900_v9 = vmul.f32 -1.442695, %v2885_v47  ;;  %v671_v42 = vmul.f32 %v2853_v43, %v1872_v55 }
 0x12a   :  { %v2102_v36 = vpop.eup %2101  ;;  %2127 = vrcp.f32 %v1022_v11  ;;  %v1020_v58 = vadd.f32 1.0, %v2100_v56  ;;  %v2906_v2 = vmul.f32 -1.442695, %v2889_v23  ;;  %v703_v10 = vmul.f32 %v2853_v43, %v1904_v61 }
 0x12b   :  { %v2104_v60 = vpop.eup %2103  ;;  %v1177_v59 = vmul.f32 %v2102_v36, %v2625_v26  ;;  %2129 = vrcp.f32 %v988_v53  ;;  %v669_v33 = vmul.f32 %v2853_v43, %v493_v45  ;;  %v701_v11 = vmul.f32 %v2853_v43, %v621_v57 }
 0x12c   :  { %v2106_v13 = vpop.eup %2105  ;;  %v1209_v8 = vmul.f32 %v2104_v60, %v2632_v27  ;;  %2131 = vrcp.f32 %v1020_v58  ;;  %v2931_v56 = vadd.f32 %v2859_v34, %v671_v42  ;;  %v2939_v43 = vadd.f32 %v2859_v34, %v703_v10 }
 0x12d   :  { %v2108_v18 = vpop.eup %2107  ;;  %v1760_v21 = vpack.c.bf16 %v1177_v59, %v1177_v59  ;;  %v1175_v26 = vmul.f32 %v2106_v13, %v2639_v0  ;;  %2133 = vpow2.f32 %v2836_v17  ;;  %v2947_v36 = vadd.f32 %v2859_v34, %v669_v33 }
 0x12e   :  { %v2110_v25 = vpop.eup %2109  ;;  %v1792_v31 = vpack.c.bf16 %v1209_v8, %v1209_v8  ;;  %v1207_v27 = vmul.f32 %v2108_v18, %v2642_v6  ;;  %2135 = vpow2.f32 %v2840_v54  ;;  %v2955_v60 = vadd.f32 %v2859_v34, %v701_v11 }
 0x12f   :  { %v2112_v37 = vpop.eup %2111  ;;  %1498 = vst.msk [vmem:[%s3094_s4 + $0x48] sm:$0xf] %vm1479_vm2, %v1760_v21  ;;  %v1758_v0 = vpack.c.bf16 %v1175_v26, %v1175_v26  ;;  %v1178_v17 = vmul.f32 %v2110_v25, %v2665_v20  ;;  %2137 = vpow2.f32 %v2844_v35  ;;  %v1645_v13 = vmul.f32 -1.442695, %v2931_v56 }
 0x130   :  { %v2114_v46 = vpop.eup %2113  ;;  %1530 = vst.msk [vmem:[%s3094_s4 + $0xc8] sm:$0xf] %vm1479_vm2, %v1792_v31  ;;  %v1790_v6 = vpack.c.bf16 %v1207_v27, %v1207_v27  ;;  %v1210_v54 = vmul.f32 %v2112_v37, %v2668_v30  ;;  %2139 = vpow2.f32 %v2848_v3  ;;  %v1643_v45 = vmul.f32 -1.442695, %v2947_v36 }
 0x131   :  { %v2116_v55 = vpop.eup %2115  ;;  %1496 = vst.msk [vmem:[%s3094_s4 + $0x40] sm:$0xf] %vm1479_vm2, %v1758_v0  ;;  %v1761_v20 = vpack.c.bf16 %v1178_v17, %v1178_v17  ;;  %v1176_v35 = vmul.f32 %v2114_v46, %v2671_v24  ;;  %2141 = vpow2.f32 %v1641_v52  ;;  %v1675_v21 = vmul.f32 -1.442695, %v2955_v60 }
 0x132   :  { %v2118_v53 = vpop.eup %2117  ;;  %1528 = vst.msk [vmem:[%s3094_s4 + $0xc0] sm:$0xf] %vm1479_vm2, %v1790_v6  ;;  %v1793_v30 = vpack.c.bf16 %v1210_v54, %v1210_v54  ;;  %v1208_v3 = vmul.f32 %v2116_v55, %v2675_v50  ;;  %2143 = vpow2.f32 %v1673_v12 }
 0x133   :  { %v2120_v61 = vpop.eup %2119  ;;  %1499 = vst.msk [vmem:[%s3094_s4 + $0x4c] sm:$0xf] %vm1479_vm2, %v1761_v20  ;;  %v1759_v24 = vpack.c.bf16 %v1176_v35, %v1176_v35  ;;  %v1181_v52 = vmul.f32 %v2118_v53, %v2679_v32  ;;  %2145 = vpow2.f32 %v1639_v39 }
 0x134   :  { %v2122_v58 = vpop.eup %2121  ;;  %1531 = vst.msk [vmem:[%s3094_s4 + $0xcc] sm:$0xf] %vm1479_vm2, %v1793_v30  ;;  %v1791_v50 = vpack.c.bf16 %v1208_v3, %v1208_v3  ;;  %v1213_v12 = vmul.f32 %v2120_v61, %v2683_v38  ;;  %2147 = vpow2.f32 %v1671_v7  ;;  %v1677_v7 = vmul.f32 -1.442695, %v2939_v43 }
 0x135   :  { %v2124_v59 = vpop.eup %2123  ;;  %1497 = vst.msk [vmem:[%s3094_s4 + $0x44] sm:$0xf] %vm1479_vm2, %v1759_v24  ;;  %v1764_v32 = vpack.c.bf16 %v1181_v52, %v1181_v52  ;;  %v1179_v39 = vmul.f32 %v2122_v58, %v2688_v49  ;;  %2149 = vpow2.f32 %v1644_v15 }
 0x136   :  { %v2126_v8 = vpop.eup %2125  ;;  %1529 = vst.msk [vmem:[%s3094_s4 + $0xc4] sm:$0xf] %vm1479_vm2, %v1791_v50  ;;  %v1796_v38 = vpack.c.bf16 %v1213_v12, %v1213_v12  ;;  %v1211_v34 = vmul.f32 %v2124_v59, %v2692_v19  ;;  %2151 = vpow2.f32 %v2896_v44 }
 0x137   :  { %v2128_v42 = vpop.eup %2127  ;;  %1502 = vst.msk [vmem:[%s3094_s4 + $0x58] sm:$0xf] %vm1479_vm2, %v1764_v32  ;;  %v1762_v49 = vpack.c.bf16 %v1179_v39, %v1179_v39  ;;  %v1182_v15 = vmul.f32 %v2126_v8, %v2727_v4  ;;  %2153 = vpow2.f32 %v2900_v9 }
 0x138   :  { %v2130_v18 = vpop.eup %2129  ;;  %1534 = vst.msk [vmem:[%s3094_s4 + $0xd8] sm:$0xf] %vm1479_vm2, %v1796_v38  ;;  %v1794_v19 = vpack.c.bf16 %v1211_v34, %v1211_v34  ;;  %v1214_v44 = vmul.f32 %v2128_v42, %v2736_v41  ;;  %2155 = vpow2.f32 %v2906_v2 }
 0x139   :  { %v2132_v26 = vpop.eup %2131  ;;  %1500 = vst.msk [vmem:[%s3094_s4 + $0x50] sm:$0xf] %vm1479_vm2, %v1762_v49  ;;  %v1765_v4 = vpack.c.bf16 %v1182_v15, %v1182_v15  ;;  %v1180_v9 = vmul.f32 %v2130_v18, %v2744_v63  ;;  %2157 = vpow2.f32 %v1645_v13 }
 0x13a   :  { %v2134_v57 = vpop.eup %2133  ;;  %1532 = vst.msk [vmem:[%s3094_s4 + $0xd0] sm:$0xf] %vm1479_vm2, %v1794_v19  ;;  %v1797_v41 = vpack.c.bf16 %v1214_v44, %v1214_v44  ;;  %v1212_v2 = vmul.f32 %v2132_v26, %v2752_v48  ;;  %2159 = vpow2.f32 %v1677_v7 }
 0x13b   :  { %v2136_v25 = vpop.eup %2135  ;;  %1503 = vst.msk [vmem:[%s3094_s4 + $0x5c] sm:$0xf] %vm1479_vm2, %v1765_v4  ;;  %v1763_v31 = vpack.c.bf16 %v1180_v9, %v1180_v9  ;;  %v993_v27 = vadd.f32 1.0, %v2134_v57  ;;  %2161 = vpow2.f32 %v1643_v45 }
 0x13c   :  { %v2138_v63 = vpop.eup %2137  ;;  %1535 = vst.msk [vmem:[%s3094_s4 + $0xdc] sm:$0xf] %vm1479_vm2, %v1797_v41  ;;  %v1795_v10 = vpack.c.bf16 %v1212_v2, %v1212_v2  ;;  %v1025_v37 = vadd.f32 1.0, %v2136_v25  ;;  %2163 = vpow2.f32 %v1675_v21 }
 0x13d   :  { %v2140_v48 = vpop.eup %2139  ;;  %1501 = vst.msk [vmem:[%s3094_s4 + $0x54] sm:$0xf] %vm1479_vm2, %v1763_v31  ;;  %2165 = vrcp.f32 %v993_v27  ;;  %v991_v0 = vadd.f32 1.0, %v2138_v63 }
 0x13e   :  { %v2142_v17 = vpop.eup %2141  ;;  %1533 = vst.msk [vmem:[%s3094_s4 + $0xd4] sm:$0xf] %vm1479_vm2, %v1795_v10  ;;  %2167 = vrcp.f32 %v1025_v37  ;;  %v1023_v33 = vadd.f32 1.0, %v2140_v48 }
 0x13f   :  { %v2144_v46 = vpop.eup %2143  ;;  %2169 = vrcp.f32 %v991_v0  ;;  %v994_v6 = vadd.f32 1.0, %v2142_v17 }
 0x140   :  { %v2146_v54 = vpop.eup %2145  ;;  %2171 = vrcp.f32 %v1023_v33  ;;  %v1026_v11 = vadd.f32 1.0, %v2144_v46 }
 0x141   :  { %v2148_v55 = vpop.eup %2147  ;;  %2173 = vrcp.f32 %v994_v6  ;;  %v992_v20 = vadd.f32 1.0, %v2146_v54 }
 0x142   :  { %v2150_v35 = vpop.eup %2149  ;;  %2175 = vrcp.f32 %v1026_v11  ;;  %v1024_v53 = vadd.f32 1.0, %v2148_v55 }
 0x143   :  { %v2152_v30 = vpop.eup %2151  ;;  %2177 = vrcp.f32 %v992_v20  ;;  %v997_v3 = vadd.f32 1.0, %v2150_v35 }
 0x144   :  { %v2154_v61 = vpop.eup %2153  ;;  %2179 = vrcp.f32 %v1024_v53  ;;  %v1029_v24 = vadd.f32 1.0, %v2152_v30 }
 0x145   :  { %v2156_v52 = vpop.eup %2155  ;;  %2181 = vrcp.f32 %v997_v3  ;;  %v995_v58 = vadd.f32 1.0, %v2154_v61 }
 0x146   :  { %v2158_v50 = vpop.eup %2157  ;;  %2183 = vrcp.f32 %v1029_v24  ;;  %v1027_v12 = vadd.f32 1.0, %v2156_v52 }
 0x147   :  { %v2160_v59 = vpop.eup %2159  ;;  %2185 = vrcp.f32 %v995_v58  ;;  %v998_v32 = vadd.f32 1.0, %v2158_v50 }
 0x148   :  { %v2162_v39 = vpop.eup %2161  ;;  %2187 = vrcp.f32 %v1027_v12  ;;  %v1030_v13 = vadd.f32 1.0, %v2160_v59 }
 0x149   :  { %v2164_v8 = vpop.eup %2163  ;;  %2189 = vrcp.f32 %v998_v32  ;;  %v996_v38 = vadd.f32 1.0, %v2162_v39 }
 0x14a   :  { %v2166_v34 = vpop.eup %2165  ;;  %2191 = vrcp.f32 %v1030_v13  ;;  %v1028_v7 = vadd.f32 1.0, %v2164_v8 }
 0x14b   :  { %v2168_v42 = vpop.eup %2167  ;;  %v1185_v49 = vmul.f32 %v2166_v34, %v2812_v16  ;;  %2193 = vrcp.f32 %v996_v38 }
 0x14c   :  { %v2170_v15 = vpop.eup %2169  ;;  %v1217_v45 = vmul.f32 %v2168_v42, %v2819_v29  ;;  %2195 = vrcp.f32 %v1028_v7 }
 0x14d   :  { %v2172_v18 = vpop.eup %2171  ;;  %v1768_v19 = vpack.c.bf16 %v1185_v49, %v1185_v49  ;;  %v1183_v44 = vmul.f32 %v2170_v15, %v2826_v40 }
 0x14e   :  { %v2174_v21 = vpop.eup %2173  ;;  %v1800_v26 = vpack.c.bf16 %v1217_v45, %v1217_v45  ;;  %v1215_v4 = vmul.f32 %v2172_v18, %v2833_v28 }
 0x14f   :  { %v2176_v9 = vpop.eup %2175  ;;  %1506 = vst.msk [vmem:[%s3094_s4 + $0x68] sm:$0xf] %vm1479_vm2, %v1768_v19  ;;  %v1766_v16 = vpack.c.bf16 %v1183_v44, %v1183_v44  ;;  %v1186_v57 = vmul.f32 %v2174_v21, %v2862_v1 }
 0x150   :  { %v2178_v41 = vpop.eup %2177  ;;  %1538 = vst.msk [vmem:[%s3094_s4 + $0xe8] sm:$0xf] %vm1479_vm2, %v1800_v26  ;;  %v1798_v29 = vpack.c.bf16 %v1215_v4, %v1215_v4  ;;  %v1218_v40 = vmul.f32 %v2176_v9, %v2866_v51 }
 0x151   :  { %v2180_v2 = vpop.eup %2179  ;;  %1504 = vst.msk [vmem:[%s3094_s4 + $0x60] sm:$0xf] %vm1479_vm2, %v1766_v16  ;;  %v1769_v28 = vpack.c.bf16 %v1186_v57, %v1186_v57  ;;  %v1184_v25 = vmul.f32 %v2178_v41, %v2870_v22 }
 0x152   :  { %v2182_v31 = vpop.eup %2181  ;;  %1536 = vst.msk [vmem:[%s3094_s4 + $0xe0] sm:$0xf] %vm1479_vm2, %v1798_v29  ;;  %v1801_v1 = vpack.c.bf16 %v1218_v40, %v1218_v40  ;;  %v1216_v27 = vmul.f32 %v2180_v2, %v2874_v62 }
 0x153   :  { %v2184_v63 = vpop.eup %2183  ;;  %1507 = vst.msk [vmem:[%s3094_s4 + $0x6c] sm:$0xf] %vm1479_vm2, %v1769_v28  ;;  %v1767_v51 = vpack.c.bf16 %v1184_v25, %v1184_v25  ;;  %v1189_v10 = vmul.f32 %v2182_v31, %v2878_v14 }
 0x154   :  { %v2186_v37 = vpop.eup %2185  ;;  %1539 = vst.msk [vmem:[%s3094_s4 + $0xec] sm:$0xf] %vm1479_vm2, %v1801_v1  ;;  %v1799_v22 = vpack.c.bf16 %v1216_v27, %v1216_v27  ;;  %v1221_v48 = vmul.f32 %v2184_v63, %v2881_v5 }
 0x155   :  { %v2188_v0 = vpop.eup %2187  ;;  %1505 = vst.msk [vmem:[%s3094_s4 + $0x64] sm:$0xf] %vm1479_vm2, %v1767_v51  ;;  %v1772_v62 = vpack.c.bf16 %v1189_v10, %v1189_v10  ;;  %v1187_v17 = vmul.f32 %v2186_v37, %v2885_v47 }
 0x156   :  { %v2190_v33 = vpop.eup %2189  ;;  %1537 = vst.msk [vmem:[%s3094_s4 + $0xe4] sm:$0xf] %vm1479_vm2, %v1799_v22  ;;  %v1804_v14 = vpack.c.bf16 %v1221_v48, %v1221_v48  ;;  %v1219_v46 = vmul.f32 %v2188_v0, %v2889_v23 }
 0x157   :  { %v2192_v6 = vpop.eup %2191  ;;  %1510 = vst.msk [vmem:[%s3094_s4 + $0x78] sm:$0xf] %vm1479_vm2, %v1772_v62  ;;  %v1770_v5 = vpack.c.bf16 %v1187_v17, %v1187_v17  ;;  %v1190_v54 = vmul.f32 %v2190_v33, %v2931_v56 }
 0x158   :  { %v2194_v11 = vpop.eup %2193  ;;  %1542 = vst.msk [vmem:[%s3094_s4 + $0xf8] sm:$0xf] %vm1479_vm2, %v1804_v14  ;;  %v1802_v47 = vpack.c.bf16 %v1219_v46, %v1219_v46  ;;  %v1222_v55 = vmul.f32 %v2192_v6, %v2939_v43 }
 0x159   :  { %v2196_v20 = vpop.eup %2195  ;;  %1508 = vst.msk [vmem:[%s3094_s4 + $0x70] sm:$0xf] %vm1479_vm2, %v1770_v5  ;;  %v1773_v23 = vpack.c.bf16 %v1190_v54, %v1190_v54  ;;  %v1188_v35 = vmul.f32 %v2194_v11, %v2947_v36 }
 0x15a   :  { %1540 = vst.msk [vmem:[%s3094_s4 + $0xf0] sm:$0xf] %vm1479_vm2, %v1802_v47  ;;  %v1805_v56 = vpack.c.bf16 %v1222_v55, %v1222_v55  ;;  %v1220_v53 = vmul.f32 %v2196_v20, %v2955_v60 }
 0x15b   :  { %1511 = vst.msk [vmem:[%s3094_s4 + $0x7c] sm:$0xf] %vm1479_vm2, %v1773_v23  ;;  %v1771_v43 = vpack.c.bf16 %v1188_v35, %v1188_v35 }
 0x15c   :  { %1543 = vst.msk [vmem:[%s3094_s4 + $0xfc] sm:$0xf] %vm1479_vm2, %v1805_v56  ;;  %v1803_v36 = vpack.c.bf16 %v1220_v53, %v1220_v53 }
 0x15d   :  { %1509 = vst.msk [vmem:[%s3094_s4 + $0x74] sm:$0xf] %vm1479_vm2, %v1771_v43 }
 0x15e   :  { %1541 = vst.msk [vmem:[%s3094_s4 + $0xf4] sm:$0xf] %vm1479_vm2, %v1803_v36 }

// kernel: gelan_forward.23
= control target key start
LH: loop header
LB: loop body
LE: loop exit
PB: predicated region body
PF: predicated region fallthrough
CT: control target
= control target key end

     0   :  { %vm340_vm0 = vcmask 1041408   ;;  %vm243_vm1 = vcmask 31744   ;;  %vm1479_vm2 = vcmask 27648   ;;  %s3090_s1 = inlined_call_operand.vmem [shape: bf16[4,4], index: 1, kind: input, shape index: {}]   ;;  %s3091_s0 = inlined_call_operand.vmem [shape: bf16[512,4], index: 0, kind: input, shape index: {}]   ;;  %s3092_s2 = inlined_call_operand.vmem [shape: f32[1,4], index: 2, kind: input, shape index: {}]   ;;  %s3093_s3 = inlined_call_operand.vmem [shape: f32[1,4], index: 3, kind: input, shape index: {}]   ;;  %s3094_s4 = inlined_call_operand.vmem [shape: bf16[512,4], index: 4, kind: output, shape index: {}]  }
   0x1   :  { %v82_v0 = vld [vmem:[%s3090_s1] sm:$0x3]  ;;  %v1911_v4 = vld [vmem:[%s3091_s0 + $0x8] sm:$0xff]   ;;  %v1913_v6 = vld [vmem:[%s3091_s0 + $0x10] sm:$0xff]  }
   0x2   :  { %1907 = vmatprep.subr.msk.bf16.mxu0 %vm340_vm0, %v82_v0  ;;  %1908 = vmatprep.subr.msk.bf16.mxu1 %vm340_vm0, %v82_v0  ;;  %v342_v1 = vsel %vm340_vm0, %v82_v0, 0  ;;  %v1909_v2 = vld [vmem:[%s3091_s0] sm:$0xff]   ;;  %v1912_v5 = vld [vmem:[%s3091_s0 + $0x88] sm:$0xff]   ;;  %v1914_v7 = vld [vmem:[%s3091_s0 + $0x90] sm:$0xff]  }
   0x3   :  { %1840 = vmatpush3.bf16.msra.mxu0 %v342_v1  ;;  %1906 = vmatpush3.bf16.msra.mxu1 %v342_v1  ;;  %v1910_v3 = vld [vmem:[%s3091_s0 + $0x80] sm:$0xff]   ;;  %v1915_v8 = vld [vmem:[%s3091_s0 + $0x18] sm:$0xff]   ;;  %v1919_v12 = vld [vmem:[%s3091_s0 + $0x28] sm:$0xff]  }
   0x4   :  { %1841 = vmatprep.mubr.msk.bf16.mxu0 %vm243_vm1, %v1909_v2  ;;  %1873 = vmatprep.mubr.msk.bf16.mxu1 %vm243_vm1, %v1910_v3  ;;  %v1916_v9 = vld [vmem:[%s3091_s0 + $0x98] sm:$0xff]   ;;  %v1917_v10 = vld [vmem:[%s3091_s0 + $0x20] sm:$0xff]   ;;  %v1920_v13 = vld [vmem:[%s3091_s0 + $0xa8] sm:$0xff]  }
   0x5   :  { %v1918_v11 = vld [vmem:[%s3091_s0 + $0xa0] sm:$0xff]   ;;  %v1921_v14 = vld [vmem:[%s3091_s0 + $0x30] sm:$0xff]   ;;  %v1923_v16 = vld [vmem:[%s3091_s0 + $0x38] sm:$0xff]  }
   0x6   :  { %1842 = vmatmul.mubr.msk.bf16.vlgmr.msra.gmra.mxu0 %vm243_vm1, %v1911_v4  ;;  %1874 = vmatmul.mubr.msk.bf16.vlgmr.msra.gmra.mxu1 %vm243_vm1, %v1912_v5  ;;  %v1922_v15 = vld [vmem:[%s3091_s0 + $0xb0] sm:$0xff]   ;;  %v1924_v17 = vld [vmem:[%s3091_s0 + $0xb8] sm:$0xff]   ;;  %v1925_v18 = vld [vmem:[%s3091_s0 + $0x40] sm:$0xff]  }
   0x7   :  { %1845 = vmatprep.mubr.msk.bf16.mxu0 %vm243_vm1, %v1913_v6  ;;  %1877 = vmatprep.mubr.msk.bf16.mxu1 %vm243_vm1, %v1914_v7  ;;  %v1926_v19 = vld [vmem:[%s3091_s0 + $0xc0] sm:$0xff]   ;;  %v1927_v20 = vld [vmem:[%s3091_s0 + $0x48] sm:$0xff]   ;;  %v1929_v22 = vld [vmem:[%s3091_s0 + $0x50] sm:$0xff]  }
   0x8   :  { %v1928_v21 = vld [vmem:[%s3091_s0 + $0xc8] sm:$0xff]   ;;  %v1930_v23 = vld [vmem:[%s3091_s0 + $0xd0] sm:$0xff]   ;;  %v1931_v24 = vld [vmem:[%s3091_s0 + $0x58] sm:$0xff]  }
   0x9   :  { %v1932_v25 = vld [vmem:[%s3091_s0 + $0xd8] sm:$0xff]   ;;  %v1933_v26 = vld [vmem:[%s3091_s0 + $0x60] sm:$0xff]   ;;  %v1935_v28 = vld [vmem:[%s3091_s0 + $0x68] sm:$0xff]  }
   0xa   :  { %v1934_v27 = vld [vmem:[%s3091_s0 + $0xe0] sm:$0xff]   ;;  %v1936_v29 = vld [vmem:[%s3091_s0 + $0xe8] sm:$0xff]   ;;  %v1937_v30 = vld [vmem:[%s3091_s0 + $0x70] sm:$0xff]  }
   0xb   :  { %v1938_v31 = vld [vmem:[%s3091_s0 + $0xf0] sm:$0xff]   ;;  %v1939_v32 = vld [vmem:[%s3091_s0 + $0x78] sm:$0xff]   ;;  %v2358_v34 = vld [vmem:[%s3092_s2] ss:$0 sm:$0xff] }
   0xc   :  { %v1940_v33 = vld [vmem:[%s3091_s0 + $0xf8] sm:$0xff]   ;;  %v2363_v36 = vld [vmem:[%s3093_s3] ss:$0 sm:$0xff] }
   0xe   :  { %1846 = vmatmul.mubr.msk.bf16.gmra.mxu0 %vm243_vm1, %v1915_v8  ;;  %1878 = vmatmul.mubr.msk.bf16.gmra.mxu1 %vm243_vm1, %v1916_v9 }
   0xf   :  { %1849 = vmatprep.mubr.msk.bf16.mxu0 %vm243_vm1, %v1917_v10  ;;  %1881 = vmatprep.mubr.msk.bf16.mxu1 %vm243_vm1, %v1918_v11 }
  0x16   :  { %1850 = vmatmul.mubr.msk.bf16.gmra.mxu0 %vm243_vm1, %v1919_v12  ;;  %1882 = vmatmul.mubr.msk.bf16.gmra.mxu1 %vm243_vm1, %v1920_v13 }
  0x17   :  { %1853 = vmatprep.mubr.msk.bf16.mxu0 %vm243_vm1, %v1921_v14  ;;  %1885 = vmatprep.mubr.msk.bf16.mxu1 %vm243_vm1, %v1922_v15 }
  0x1e   :  { %1854 = vmatmul.mubr.msk.bf16.gmra.mxu0 %vm243_vm1, %v1923_v16  ;;  %1886 = vmatmul.mubr.msk.bf16.gmra.mxu1 %vm243_vm1, %v1924_v17 }
  0x1f   :  { %1857 = vmatprep.mubr.msk.bf16.mxu0 %vm243_vm1, %v1925_v18  ;;  %1889 = vmatprep.mubr.msk.bf16.mxu1 %vm243_vm1, %v1926_v19 }
  0x26   :  { %1858 = vmatmul.mubr.msk.bf16.gmra.mxu0 %vm243_vm1, %v1927_v20  ;;  %1890 = vmatmul.mubr.msk.bf16.gmra.mxu1 %vm243_vm1, %v1928_v21 }
  0x27   :  { %1861 = vmatprep.mubr.msk.bf16.mxu0 %vm243_vm1, %v1929_v22  ;;  %1893 = vmatprep.mubr.msk.bf16.mxu1 %vm243_vm1, %v1930_v23 }
  0x2e   :  { %1862 = vmatmul.mubr.msk.bf16.gmra.mxu0 %vm243_vm1, %v1931_v24  ;;  %1894 = vmatmul.mubr.msk.bf16.gmra.mxu1 %vm243_vm1, %v1932_v25 }
  0x2f   :  { %1865 = vmatprep.mubr.msk.bf16.mxu0 %vm243_vm1, %v1933_v26  ;;  %1897 = vmatprep.mubr.msk.bf16.mxu1 %vm243_vm1, %v1934_v27 }
  0x36   :  { %1866 = vmatmul.mubr.msk.bf16.gmra.mxu0 %vm243_vm1, %v1935_v28  ;;  %1898 = vmatmul.mubr.msk.bf16.gmra.mxu1 %vm243_vm1, %v1936_v29 }
  0x37   :  { %1869 = vmatprep.mubr.msk.bf16.mxu0 %vm243_vm1, %v1937_v30  ;;  %1901 = vmatprep.mubr.msk.bf16.mxu1 %vm243_vm1, %v1938_v31 }
  0x3e   :  { %1870 = vmatmul.mubr.msk.bf16.gmra.mxu0 %vm243_vm1, %v1939_v32  ;;  %1902 = vmatmul.mubr.msk.bf16.gmra.mxu1 %vm243_vm1, %v1940_v33 }
  0xc6   :  { %v1843_v35 = vpop.f32.mrf.mxu0  ;;  %v1875_v38 = vpop.f32.mrf.mxu1 }
  0xc7   :  { %v642_v37 = vmul.f32 %v1843_v35, %v2358_v34  ;;  %v674_v39 = vmul.f32 %v1875_v38, %v2358_v34 }
  0xc8   :  { %v378_v40 = vpop.f32.mrf.mxu0  ;;  %v506_v43 = vpop.f32.mrf.mxu1 }
  0xc9   :  { %v2368_v41 = vadd.f32 %v2363_v36, %v642_v37  ;;  %v640_v42 = vmul.f32 %v2358_v34, %v378_v40  ;;  %v2372_v44 = vadd.f32 %v2363_v36, %v674_v39  ;;  %v672_v45 = vmul.f32 %v2358_v34, %v506_v43 }
  0xca   :  { %v1844_v46 = vpop.f32.mrf.mxu0  ;;  %v1876_v50 = vpop.f32.mrf.mxu1 }
  0xcb   :  { %v1616_v47 = vmul.f32 -1.442695, %v2368_v41  ;;  %v2377_v48 = vadd.f32 %v2363_v36, %v640_v42  ;;  %v643_v49 = vmul.f32 %v1844_v46, %v2358_v34  ;;  %v1648_v51 = vmul.f32 -1.442695, %v2372_v44 }
  0xcc   :  { %v2382_v52 = vadd.f32 %v2363_v36, %v672_v45  ;;  %v675_v53 = vmul.f32 %v1876_v50, %v2358_v34  ;;  %v381_v54 = vpop.f32.mrf.mxu0  ;;  %v509_v58 = vpop.f32.mrf.mxu1 }
  0xcd   :  { %1941 = vpow2.f32 %v1616_v47  ;;  %v1614_v55 = vmul.f32 -1.442695, %v2377_v48  ;;  %v2387_v56 = vadd.f32 %v2363_v36, %v643_v49  ;;  %v641_v57 = vmul.f32 %v2358_v34, %v381_v54 }
  0xce   :  { %1943 = vpow2.f32 %v1648_v51  ;;  %v1646_v59 = vmul.f32 -1.442695, %v2382_v52  ;;  %v2392_v60 = vadd.f32 %v2363_v36, %v675_v53  ;;  %v673_v61 = vmul.f32 %v2358_v34, %v509_v58  ;;  %v1847_v62 = vpop.f32.mrf.mxu0  ;;  %v1879_v2 = vpop.f32.mrf.mxu1 }
  0xcf   :  { %1945 = vpow2.f32 %v1614_v55  ;;  %v1617_v63 = vmul.f32 -1.442695, %v2387_v56  ;;  %v2397_v0 = vadd.f32 %v2363_v36, %v641_v57  ;;  %v646_v1 = vmul.f32 %v1847_v62, %v2358_v34 }
  0xd0   :  { %1947 = vpow2.f32 %v1646_v59  ;;  %v1649_v3 = vmul.f32 -1.442695, %v2392_v60  ;;  %v2402_v4 = vadd.f32 %v2363_v36, %v673_v61  ;;  %v678_v5 = vmul.f32 %v1879_v2, %v2358_v34  ;;  %v394_v6 = vpop.f32.mrf.mxu0  ;;  %v522_v10 = vpop.f32.mrf.mxu1 }
  0xd1   :  { %1949 = vpow2.f32 %v1617_v63  ;;  %v1615_v7 = vmul.f32 -1.442695, %v2397_v0  ;;  %v2407_v8 = vadd.f32 %v2363_v36, %v646_v1  ;;  %v644_v9 = vmul.f32 %v2358_v34, %v394_v6 }
  0xd2   :  { %1951 = vpow2.f32 %v1649_v3  ;;  %v1647_v11 = vmul.f32 -1.442695, %v2402_v4  ;;  %v2412_v12 = vadd.f32 %v2363_v36, %v678_v5  ;;  %v676_v13 = vmul.f32 %v2358_v34, %v522_v10  ;;  %v1848_v14 = vpop.f32.mrf.mxu0  ;;  %v1880_v18 = vpop.f32.mrf.mxu1 }
  0xd3   :  { %1953 = vpow2.f32 %v1615_v7  ;;  %v1620_v15 = vmul.f32 -1.442695, %v2407_v8  ;;  %v2417_v16 = vadd.f32 %v2363_v36, %v644_v9  ;;  %v647_v17 = vmul.f32 %v1848_v14, %v2358_v34 }
  0xd4   :  { %1955 = vpow2.f32 %v1647_v11  ;;  %v1652_v19 = vmul.f32 -1.442695, %v2412_v12  ;;  %v2422_v20 = vadd.f32 %v2363_v36, %v676_v13  ;;  %v679_v21 = vmul.f32 %v1880_v18, %v2358_v34  ;;  %v397_v22 = vpop.f32.mrf.mxu0  ;;  %v525_v26 = vpop.f32.mrf.mxu1 }
  0xd5   :  { %1957 = vpow2.f32 %v1620_v15  ;;  %v1618_v23 = vmul.f32 -1.442695, %v2417_v16  ;;  %v2427_v24 = vadd.f32 %v2363_v36, %v647_v17  ;;  %v645_v25 = vmul.f32 %v2358_v34, %v397_v22 }
  0xd6   :  { %1959 = vpow2.f32 %v1652_v19  ;;  %v1650_v27 = vmul.f32 -1.442695, %v2422_v20  ;;  %v2432_v28 = vadd.f32 %v2363_v36, %v679_v21  ;;  %v677_v29 = vmul.f32 %v2358_v34, %v525_v26  ;;  %v1851_v30 = vpop.f32.mrf.mxu0  ;;  %v1883_v35 = vpop.f32.mrf.mxu1 }
  0xd7   :  { %1961 = vpow2.f32 %v1618_v23  ;;  %v1621_v31 = vmul.f32 -1.442695, %v2427_v24  ;;  %v2437_v32 = vadd.f32 %v2363_v36, %v645_v25  ;;  %v650_v33 = vmul.f32 %v1851_v30, %v2358_v34 }
  0xd8   :  { %1963 = vpow2.f32 %v1650_v27  ;;  %v1653_v37 = vmul.f32 -1.442695, %v2432_v28  ;;  %v2442_v38 = vadd.f32 %v2363_v36, %v677_v29  ;;  %v682_v39 = vmul.f32 %v1883_v35, %v2358_v34  ;;  %v410_v40 = vpop.f32.mrf.mxu0  ;;  %v538_v45 = vpop.f32.mrf.mxu1 }
  0xd9   :  { %1965 = vpow2.f32 %v1621_v31  ;;  %v1619_v42 = vmul.f32 -1.442695, %v2437_v32  ;;  %v648_v43 = vmul.f32 %v2358_v34, %v410_v40  ;;  %v680_v49 = vmul.f32 %v2358_v34, %v538_v45 }
  0xda   :  { %v1942_v46 = vpop.eup %1941  ;;  %1967 = vpow2.f32 %v1653_v37  ;;  %v1651_v47 = vmul.f32 -1.442695, %v2442_v38  ;;  %v1852_v50 = vpop.f32.mrf.mxu0  ;;  %v2450_v54 = vadd.f32 %v2363_v36, %v650_v33  ;;  %v2453_v59 = vadd.f32 %v2363_v36, %v682_v39 }
  0xdb   :  { %v1944_v51 = vpop.eup %1943  ;;  %v969_v53 = vadd.f32 1.0, %v1942_v46  ;;  %1969 = vpow2.f32 %v1619_v42  ;;  %v1884_v55 = vpop.f32.mrf.mxu1  ;;  %v2456_v1 = vadd.f32 %v2363_v36, %v648_v43  ;;  %v2459_v2 = vadd.f32 %v2363_v36, %v680_v49 }
  0xdc   :  { %v1946_v57 = vpop.eup %1945  ;;  %v1001_v58 = vadd.f32 1.0, %v1944_v51  ;;  %1971 = vpow2.f32 %v1651_v47  ;;  %v413_v61 = vpop.f32.mrf.mxu0  ;;  %v651_v7 = vmul.f32 %v1852_v50, %v2358_v34  ;;  %v683_v9 = vmul.f32 %v1884_v55, %v2358_v34 }
  0xdd   :  { %v1948_v62 = vpop.eup %1947  ;;  %1973 = vrcp.f32 %v969_v53  ;;  %v967_v63 = vadd.f32 1.0, %v1946_v57  ;;  %v541_v3 = vpop.f32.mrf.mxu1  ;;  %v2464_v14 = vmul.f32 -1.442695, %v2450_v54  ;;  %v649_v15 = vmul.f32 %v2358_v34, %v413_v61 }
  0xde   :  { %v1950_v5 = vpop.eup %1949  ;;  %1975 = vrcp.f32 %v1001_v58  ;;  %v999_v6 = vadd.f32 1.0, %v1948_v62  ;;  %v1855_v10 = vpop.f32.mrf.mxu0  ;;  %v2468_v21 = vmul.f32 -1.442695, %v2453_v59  ;;  %v681_v22 = vmul.f32 %v2358_v34, %v541_v3 }
  0xdf   :  { %v1952_v11 = vpop.eup %1951  ;;  %1977 = vrcp.f32 %v967_v63  ;;  %v970_v13 = vadd.f32 1.0, %v1950_v5  ;;  %v1887_v17 = vpop.f32.mrf.mxu1  ;;  %v2472_v26 = vmul.f32 -1.442695, %v2456_v1  ;;  %v2475_v27 = vmul.f32 -1.442695, %v2459_v2 }
  0xe0   :  { %v1954_v18 = vpop.eup %1953  ;;  %1979 = vrcp.f32 %v999_v6  ;;  %v1002_v19 = vadd.f32 1.0, %v1952_v11  ;;  %v2478_v31 = vadd.f32 %v2363_v36, %v651_v7  ;;  %v2481_v33 = vadd.f32 %v2363_v36, %v683_v9  ;;  %v426_v35 = vpop.f32.mrf.mxu0 }
  0xe1   :  { %v1956_v23 = vpop.eup %1955  ;;  %1981 = vrcp.f32 %v970_v13  ;;  %v968_v25 = vadd.f32 1.0, %v1954_v18  ;;  %v2484_v40 = vadd.f32 %v2363_v36, %v649_v15  ;;  %v654_v42 = vmul.f32 %v1855_v10, %v2358_v34  ;;  %v554_v43 = vpop.f32.mrf.mxu1 }
  0xe2   :  { %v1958_v29 = vpop.eup %1957  ;;  %1983 = vrcp.f32 %v1002_v19  ;;  %v1000_v30 = vadd.f32 1.0, %v1956_v23  ;;  %v2488_v47 = vadd.f32 %v2363_v36, %v681_v22  ;;  %v686_v49 = vmul.f32 %v1887_v17, %v2358_v34  ;;  %v1856_v63 = vpop.f32.mrf.mxu0 }
  0xe3   :  { %v1960_v37 = vpop.eup %1959  ;;  %1985 = vrcp.f32 %v968_v25  ;;  %v973_v39 = vadd.f32 1.0, %v1958_v29  ;;  %v2492_v53 = vadd.f32 %v2363_v36, %v654_v42  ;;  %v652_v55 = vmul.f32 %v2358_v34, %v426_v35  ;;  %v1888_v9 = vpop.f32.mrf.mxu1 }
  0xe4   :  { %v1962_v45 = vpop.eup %1961  ;;  %1987 = vrcp.f32 %v1000_v30  ;;  %v1005_v46 = vadd.f32 1.0, %v1960_v37  ;;  %v2496_v61 = vadd.f32 %v2363_v36, %v686_v49  ;;  %v684_v62 = vmul.f32 %v2358_v34, %v554_v43  ;;  %v429_v35 = vpop.f32.mrf.mxu0 }
  0xe5   :  { %v1964_v50 = vpop.eup %1963  ;;  %1989 = vrcp.f32 %v973_v39  ;;  %v971_v51 = vadd.f32 1.0, %v1962_v45  ;;  %v1625_v6 = vmul.f32 -1.442695, %v2478_v31  ;;  %v2501_v7 = vadd.f32 %v2363_v36, %v652_v55  ;;  %v557_v45 = vpop.f32.mrf.mxu1 }
  0xe6   :  { %v1966_v57 = vpop.eup %1965  ;;  %1991 = vrcp.f32 %v1005_v46  ;;  %v1003_v58 = vadd.f32 1.0, %v1964_v50  ;;  %v1657_v13 = vmul.f32 -1.442695, %v2481_v33  ;;  %v2505_v15 = vadd.f32 %v2363_v36, %v684_v62 }
  0xe7   :  { %v1968_v3 = vpop.eup %1967  ;;  %1993 = vrcp.f32 %v971_v51  ;;  %v974_v5 = vadd.f32 1.0, %v1966_v57  ;;  %v1623_v19 = vmul.f32 -1.442695, %v2484_v40  ;;  %v2509_v22 = vmul.f32 -1.442695, %v2488_v47 }
  0xe8   :  { %v1970_v10 = vpop.eup %1969  ;;  %1995 = vrcp.f32 %v1003_v58  ;;  %v1006_v11 = vadd.f32 1.0, %v1968_v3  ;;  %v2512_v29 = vmul.f32 -1.442695, %v2492_v53  ;;  %v2515_v30 = vmul.f32 -1.442695, %v2496_v61 }
  0xe9   :  { %v1972_v17 = vpop.eup %1971  ;;  %1997 = vrcp.f32 %v974_v5  ;;  %v972_v18 = vadd.f32 1.0, %v1970_v10  ;;  %v2519_v42 = vmul.f32 -1.442695, %v2501_v7  ;;  %v655_v43 = vmul.f32 %v1856_v63, %v2358_v34  ;;  %v1859_v5 = vpop.f32.mrf.mxu0 }
  0xea   :  { %v1974_v23 = vpop.eup %1973  ;;  %1999 = vrcp.f32 %v1006_v11  ;;  %v1004_v25 = vadd.f32 1.0, %v1972_v17  ;;  %v2524_v50 = vmul.f32 -1.442695, %v2505_v15  ;;  %v687_v51 = vmul.f32 %v1888_v9, %v2358_v34 }
  0xeb   :  { %v1976_v37 = vpop.eup %1975  ;;  %v1161_v39 = vmul.f32 %v1974_v23, %v2368_v41  ;;  %2001 = vrcp.f32 %v972_v18  ;;  %v653_v58 = vmul.f32 %v2358_v34, %v429_v35  ;;  %v2540_v9 = vadd.f32 %v2363_v36, %v655_v43 }
  0xec   :  { %v1978_v46 = vpop.eup %1977  ;;  %v1193_v49 = vmul.f32 %v1976_v37, %v2372_v44  ;;  %2003 = vrcp.f32 %v1004_v25  ;;  %v685_v44 = vmul.f32 %v2358_v34, %v557_v45  ;;  %v2549_v18 = vadd.f32 %v2363_v36, %v687_v51 }
  0xed   :  { %v1980_v55 = vpop.eup %1979  ;;  %v1744_v57 = vpack.c.bf16 %v1161_v39, %v1161_v39  ;;  %v1159_v41 = vmul.f32 %v1978_v46, %v2377_v48  ;;  %2005 = vpow2.f32 %v2464_v14  ;;  %v2557_v25 = vadd.f32 %v2363_v36, %v653_v58  ;;  %v442_v39 = vpop.f32.mrf.mxu0 }
  0xee   :  { %v1982_v62 = vpop.eup %1981  ;;  %v1776_v63 = vpack.c.bf16 %v1193_v49, %v1193_v49  ;;  %v1191_v3 = vmul.f32 %v1980_v55, %v2382_v52  ;;  %2007 = vpow2.f32 %v2468_v21  ;;  %v1891_v52 = vpop.f32.mrf.mxu1  ;;  %v2565_v37 = vadd.f32 %v2363_v36, %v685_v44 }
  0xef   :  { %v1984_v10 = vpop.eup %1983  ;;  %1482 = vst.msk [vmem:[%s3094_s4 + $0x8] sm:$0xf] %vm1479_vm2, %v1744_v57  ;;  %v1742_v48 = vpack.c.bf16 %v1159_v41, %v1159_v41  ;;  %v1162_v14 = vmul.f32 %v1982_v62, %v2387_v56  ;;  %2009 = vpow2.f32 %v2472_v26  ;;  %v1629_v45 = vmul.f32 -1.442695, %v2540_v9  ;;  %v1860_v62 = vpop.f32.mrf.mxu0 }
  0xf0   :  { %v1986_v11 = vpop.eup %1985  ;;  %1514 = vst.msk [vmem:[%s3094_s4 + $0x88] sm:$0xf] %vm1479_vm2, %v1776_v63  ;;  %v1774_v21 = vpack.c.bf16 %v1191_v3, %v1191_v3  ;;  %v1194_v17 = vmul.f32 %v1984_v10, %v2392_v60  ;;  %2011 = vpow2.f32 %v2475_v27  ;;  %v570_v46 = vpop.f32.mrf.mxu1  ;;  %v1661_v51 = vmul.f32 -1.442695, %v2549_v18 }
  0xf1   :  { %v1988_v56 = vpop.eup %1987  ;;  %1480 = vst.msk [vmem:[%s3094_s4] sm:$0xf] %vm1479_vm2, %v1742_v48  ;;  %v1745_v26 = vpack.c.bf16 %v1162_v14, %v1162_v14  ;;  %v1160_v23 = vmul.f32 %v1986_v11, %v2397_v0  ;;  %2013 = vpow2.f32 %v1625_v6  ;;  %v1627_v57 = vmul.f32 -1.442695, %v2557_v25 }
  0xf2   :  { %v1990_v35 = vpop.eup %1989  ;;  %1512 = vst.msk [vmem:[%s3094_s4 + $0x80] sm:$0xf] %vm1479_vm2, %v1774_v21  ;;  %v1777_v60 = vpack.c.bf16 %v1194_v17, %v1194_v17  ;;  %v1192_v27 = vmul.f32 %v1988_v56, %v2402_v4  ;;  %2015 = vpow2.f32 %v1657_v13  ;;  %v1659_v58 = vmul.f32 -1.442695, %v2565_v37  ;;  %v1892_v44 = vpop.f32.mrf.mxu1 }
  0xf3   :  { %v1992_v43 = vpop.eup %1991  ;;  %1483 = vst.msk [vmem:[%s3094_s4 + $0xc] sm:$0xf] %vm1479_vm2, %v1745_v26  ;;  %v1743_v0 = vpack.c.bf16 %v1160_v23, %v1160_v23  ;;  %v1165_v6 = vmul.f32 %v1990_v35, %v2407_v8  ;;  %2017 = vpow2.f32 %v1623_v19  ;;  %v658_v3 = vmul.f32 %v1859_v5, %v2358_v34  ;;  %v445_v21 = vpop.f32.mrf.mxu0 }
  0xf4   :  { %v1994_v49 = vpop.eup %1993  ;;  %1515 = vst.msk [vmem:[%s3094_s4 + $0x8c] sm:$0xf] %vm1479_vm2, %v1777_v60  ;;  %v1775_v4 = vpack.c.bf16 %v1192_v27, %v1192_v27  ;;  %v1197_v13 = vmul.f32 %v1992_v43, %v2412_v12  ;;  %2019 = vpow2.f32 %v2509_v22  ;;  %v690_v48 = vmul.f32 %v1891_v52, %v2358_v34  ;;  %v573_v23 = vpop.f32.mrf.mxu1 }
  0xf5   :  { %v1996_v55 = vpop.eup %1995  ;;  %1481 = vst.msk [vmem:[%s3094_s4 + $0x4] sm:$0xf] %vm1479_vm2, %v1743_v0  ;;  %v1748_v8 = vpack.c.bf16 %v1165_v6, %v1165_v6  ;;  %v1163_v19 = vmul.f32 %v1994_v49, %v2417_v16  ;;  %2021 = vpow2.f32 %v2512_v29  ;;  %v656_v5 = vmul.f32 %v2358_v34, %v442_v39 }
  0xf6   :  { %v1998_v41 = vpop.eup %1997  ;;  %1513 = vst.msk [vmem:[%s3094_s4 + $0x84] sm:$0xf] %vm1479_vm2, %v1775_v4  ;;  %v1780_v12 = vpack.c.bf16 %v1197_v13, %v1197_v13  ;;  %v1195_v22 = vmul.f32 %v1996_v55, %v2422_v20  ;;  %2023 = vpow2.f32 %v2515_v30  ;;  %v688_v52 = vmul.f32 %v2358_v34, %v570_v46  ;;  %v1863_v13 = vpop.f32.mrf.mxu0 }
  0xf7   :  { %v2000_v63 = vpop.eup %1999  ;;  %1486 = vst.msk [vmem:[%s3094_s4 + $0x18] sm:$0xf] %vm1479_vm2, %v1748_v8  ;;  %v1746_v16 = vpack.c.bf16 %v1163_v19, %v1163_v19  ;;  %v1166_v29 = vmul.f32 %v1998_v41, %v2427_v24  ;;  %2025 = vpow2.f32 %v2519_v42  ;;  %v2625_v26 = vadd.f32 %v2363_v36, %v658_v3 }
  0xf8   :  { %v2002_v20 = vpop.eup %2001  ;;  %1518 = vst.msk [vmem:[%s3094_s4 + $0x98] sm:$0xf] %vm1479_vm2, %v1780_v12  ;;  %v1778_v30 = vpack.c.bf16 %v1195_v22, %v1195_v22  ;;  %v1198_v10 = vmul.f32 %v2000_v63, %v2432_v28  ;;  %2027 = vpow2.f32 %v2524_v50  ;;  %v2632_v27 = vadd.f32 %v2363_v36, %v690_v48 }
  0xf9   :  { %v2004_v14 = vpop.eup %2003  ;;  %1484 = vst.msk [vmem:[%s3094_s4 + $0x10] sm:$0xf] %vm1479_vm2, %v1746_v16  ;;  %v1749_v24 = vpack.c.bf16 %v1166_v29, %v1166_v29  ;;  %v1164_v42 = vmul.f32 %v2002_v20, %v2437_v32  ;;  %2029 = vpow2.f32 %v1629_v45  ;;  %v2639_v0 = vadd.f32 %v2363_v36, %v656_v5 }
  0xfa   :  { %v2006_v11 = vpop.eup %2005  ;;  %1516 = vst.msk [vmem:[%s3094_s4 + $0x90] sm:$0xf] %vm1479_vm2, %v1778_v30  ;;  %v1781_v28 = vpack.c.bf16 %v1198_v10, %v1198_v10  ;;  %v1196_v50 = vmul.f32 %v2004_v14, %v2442_v38  ;;  %2031 = vpow2.f32 %v1661_v51  ;;  %v2642_v6 = vadd.f32 %v2363_v36, %v688_v52  ;;  %v458_v10 = vpop.f32.mrf.mxu0 }
  0xfb   :  { %v2008_v17 = vpop.eup %2007  ;;  %1487 = vst.msk [vmem:[%s3094_s4 + $0x1c] sm:$0xf] %vm1479_vm2, %v1749_v24  ;;  %v1747_v32 = vpack.c.bf16 %v1164_v42, %v1164_v42  ;;  %v977_v56 = vadd.f32 1.0, %v2006_v11  ;;  %2033 = vpow2.f32 %v1627_v57  ;;  %v659_v49 = vmul.f32 %v1860_v62, %v2358_v34  ;;  %v1895_v57 = vpop.f32.mrf.mxu1 }
  0xfc   :  { %v2010_v35 = vpop.eup %2009  ;;  %1519 = vst.msk [vmem:[%s3094_s4 + $0x9c] sm:$0xf] %vm1479_vm2, %v1781_v28  ;;  %v1779_v38 = vpack.c.bf16 %v1196_v50, %v1196_v50  ;;  %v1009_v60 = vadd.f32 1.0, %v2008_v17  ;;  %2035 = vpow2.f32 %v1659_v58  ;;  %v691_v4 = vmul.f32 %v1892_v44, %v2358_v34 }
  0xfd   :  { %v2012_v39 = vpop.eup %2011  ;;  %1485 = vst.msk [vmem:[%s3094_s4 + $0x14] sm:$0xf] %vm1479_vm2, %v1747_v32  ;;  %2037 = vrcp.f32 %v977_v56  ;;  %v975_v43 = vadd.f32 1.0, %v2010_v35  ;;  %v2651_v8 = vmul.f32 -1.442695, %v2625_v26  ;;  %v657_v19 = vmul.f32 %v2358_v34, %v445_v21  ;;  %v586_v5 = vpop.f32.mrf.mxu1 }
  0xfe   :  { %v2014_v45 = vpop.eup %2013  ;;  %1517 = vst.msk [vmem:[%s3094_s4 + $0x94] sm:$0xf] %vm1479_vm2, %v1779_v38  ;;  %2039 = vrcp.f32 %v1009_v60  ;;  %v1007_v46 = vadd.f32 1.0, %v2012_v39  ;;  %v2655_v22 = vmul.f32 -1.442695, %v2632_v27  ;;  %v689_v58 = vmul.f32 %v2358_v34, %v573_v23  ;;  %v1864_v39 = vpop.f32.mrf.mxu0 }
  0xff   :  { %v2016_v51 = vpop.eup %2015  ;;  %2041 = vrcp.f32 %v975_v43  ;;  %v978_v55 = vadd.f32 1.0, %v2014_v45  ;;  %v2659_v16 = vmul.f32 -1.442695, %v2639_v0  ;;  %v2662_v29 = vmul.f32 -1.442695, %v2642_v6 }
 0x100   :  { %v2018_v41 = vpop.eup %2017  ;;  %2043 = vrcp.f32 %v1007_v46  ;;  %v1010_v12 = vadd.f32 1.0, %v2016_v51  ;;  %v2665_v20 = vadd.f32 %v2363_v36, %v659_v49  ;;  %v2668_v30 = vadd.f32 %v2363_v36, %v691_v4  ;;  %v1896_v4 = vpop.f32.mrf.mxu1 }
 0x101   :  { %v2020_v62 = vpop.eup %2019  ;;  %2045 = vrcp.f32 %v978_v55  ;;  %v976_v63 = vadd.f32 1.0, %v2018_v41  ;;  %v2671_v24 = vadd.f32 %v2363_v36, %v657_v19  ;;  %v662_v42 = vmul.f32 %v1863_v13, %v2358_v34 }
 0x102   :  { %v2022_v3 = vpop.eup %2021  ;;  %2047 = vrcp.f32 %v1010_v12  ;;  %v1008_v44 = vadd.f32 1.0, %v2020_v62  ;;  %v2675_v50 = vadd.f32 %v2363_v36, %v689_v58  ;;  %v694_v52 = vmul.f32 %v1895_v57, %v2358_v34 }
 0x103   :  { %v2024_v48 = vpop.eup %2023  ;;  %2049 = vrcp.f32 %v976_v63  ;;  %v981_v14 = vadd.f32 1.0, %v2022_v3  ;;  %v2679_v32 = vadd.f32 %v2363_v36, %v662_v42  ;;  %v660_v56 = vmul.f32 %v2358_v34, %v458_v10  ;;  %v461_v10 = vpop.f32.mrf.mxu0 }
 0x104   :  { %v2026_v11 = vpop.eup %2025  ;;  %2051 = vrcp.f32 %v1008_v44  ;;  %v1013_v28 = vadd.f32 1.0, %v2024_v48  ;;  %v2683_v38 = vadd.f32 %v2363_v36, %v694_v52  ;;  %v692_v60 = vmul.f32 %v2358_v34, %v586_v5 }
 0x105   :  { %v2028_v21 = vpop.eup %2027  ;;  %2053 = vrcp.f32 %v981_v14  ;;  %v979_v17 = vadd.f32 1.0, %v2026_v11  ;;  %v1633_v46 = vmul.f32 -1.442695, %v2665_v20  ;;  %v2688_v49 = vadd.f32 %v2363_v36, %v660_v56  ;;  %v589_v11 = vpop.f32.mrf.mxu1 }
 0x106   :  { %v2030_v23 = vpop.eup %2029  ;;  %2055 = vrcp.f32 %v1013_v28  ;;  %v1011_v35 = vadd.f32 1.0, %v2028_v21  ;;  %v1665_v55 = vmul.f32 -1.442695, %v2668_v30  ;;  %v2692_v19 = vadd.f32 %v2363_v36, %v692_v60 }
 0x107   :  { %v2032_v43 = vpop.eup %2031  ;;  %2057 = vrcp.f32 %v979_v17  ;;  %v982_v45 = vadd.f32 1.0, %v2030_v23  ;;  %v1631_v12 = vmul.f32 -1.442695, %v2671_v24  ;;  %v2696_v58 = vmul.f32 -1.442695, %v2675_v50 }
 0x108   :  { %v2034_v13 = vpop.eup %2033  ;;  %2059 = vrcp.f32 %v1011_v35  ;;  %v1014_v51 = vadd.f32 1.0, %v2032_v43  ;;  %v2699_v3 = vmul.f32 -1.442695, %v2679_v32  ;;  %v2702_v44 = vmul.f32 -1.442695, %v2683_v38 }
 0x109   :  { %v2036_v57 = vpop.eup %2035  ;;  %2061 = vrcp.f32 %v982_v45  ;;  %v980_v41 = vadd.f32 1.0, %v2034_v13  ;;  %v2706_v42 = vmul.f32 -1.442695, %v2688_v49  ;;  %v663_v5 = vmul.f32 %v1864_v39, %v2358_v34  ;;  %v1867_v45 = vpop.f32.mrf.mxu0 }
 0x10a   :  { %v2038_v62 = vpop.eup %2037  ;;  %2063 = vrcp.f32 %v1014_v51  ;;  %v1012_v63 = vadd.f32 1.0, %v2036_v57  ;;  %v2711_v21 = vmul.f32 -1.442695, %v2692_v19  ;;  %v695_v17 = vmul.f32 %v1896_v4, %v2358_v34 }
 0x10b   :  { %v2040_v48 = vpop.eup %2039  ;;  %v1169_v14 = vmul.f32 %v2038_v62, %v2450_v54  ;;  %2065 = vrcp.f32 %v980_v41  ;;  %v661_v35 = vmul.f32 %v2358_v34, %v461_v10  ;;  %v2727_v4 = vadd.f32 %v2363_v36, %v663_v5 }
 0x10c   :  { %v2042_v28 = vpop.eup %2041  ;;  %v1201_v52 = vmul.f32 %v2040_v48, %v2453_v59  ;;  %2067 = vrcp.f32 %v1012_v63  ;;  %v693_v59 = vmul.f32 %v2358_v34, %v589_v11  ;;  %v2736_v41 = vadd.f32 %v2363_v36, %v695_v17 }
 0x10d   :  { %v2044_v56 = vpop.eup %2043  ;;  %v1752_v23 = vpack.c.bf16 %v1169_v14, %v1169_v14  ;;  %v1167_v54 = vmul.f32 %v2042_v28, %v2456_v1  ;;  %2069 = vpow2.f32 %v2651_v8  ;;  %v2744_v63 = vadd.f32 %v2363_v36, %v661_v35  ;;  %v474_v14 = vpop.f32.mrf.mxu0 }
 0x10e   :  { %v2046_v60 = vpop.eup %2045  ;;  %v1784_v39 = vpack.c.bf16 %v1201_v52, %v1201_v52  ;;  %v1199_v43 = vmul.f32 %v2044_v56, %v2459_v2  ;;  %2071 = vpow2.f32 %v2655_v22  ;;  %v1899_v2 = vpop.f32.mrf.mxu1  ;;  %v2752_v48 = vadd.f32 %v2363_v36, %v693_v59 }
 0x10f   :  { %v2048_v13 = vpop.eup %2047  ;;  %1490 = vst.msk [vmem:[%s3094_s4 + $0x28] sm:$0xf] %vm1479_vm2, %v1752_v23  ;;  %v1750_v1 = vpack.c.bf16 %v1167_v54, %v1167_v54  ;;  %v1170_v8 = vmul.f32 %v2046_v60, %v2478_v31  ;;  %2073 = vpow2.f32 %v2659_v16  ;;  %v1637_v11 = vmul.f32 -1.442695, %v2727_v4  ;;  %v1868_v60 = vpop.f32.mrf.mxu0 }
 0x110   :  { %v2050_v51 = vpop.eup %2049  ;;  %1522 = vst.msk [vmem:[%s3094_s4 + $0xa8] sm:$0xf] %vm1479_vm2, %v1784_v39  ;;  %v1782_v22 = vpack.c.bf16 %v1199_v43, %v1199_v43  ;;  %v1202_v57 = vmul.f32 %v2048_v13, %v2481_v33  ;;  %2075 = vpow2.f32 %v2662_v29  ;;  %v602_v28 = vpop.f32.mrf.mxu1  ;;  %v1669_v17 = vmul.f32 -1.442695, %v2736_v41 }
 0x111   :  { %v2052_v31 = vpop.eup %2051  ;;  %1488 = vst.msk [vmem:[%s3094_s4 + $0x20] sm:$0xf] %vm1479_vm2, %v1750_v1  ;;  %v1753_v16 = vpack.c.bf16 %v1170_v8, %v1170_v8  ;;  %v1168_v62 = vmul.f32 %v2050_v51, %v2484_v40  ;;  %2077 = vpow2.f32 %v1633_v46  ;;  %v1635_v23 = vmul.f32 -1.442695, %v2744_v63 }
 0x112   :  { %v2054_v10 = vpop.eup %2053  ;;  %1520 = vst.msk [vmem:[%s3094_s4 + $0xa0] sm:$0xf] %vm1479_vm2, %v1782_v22  ;;  %v1785_v33 = vpack.c.bf16 %v1202_v57, %v1202_v57  ;;  %v1200_v29 = vmul.f32 %v2052_v31, %v2488_v47  ;;  %2079 = vpow2.f32 %v1665_v55  ;;  %v1667_v35 = vmul.f32 -1.442695, %v2752_v48  ;;  %v1900_v59 = vpop.f32.mrf.mxu1 }
 0x113   :  { %v2056_v5 = vpop.eup %2055  ;;  %1491 = vst.msk [vmem:[%s3094_s4 + $0x2c] sm:$0xf] %vm1479_vm2, %v1753_v16  ;;  %v1751_v40 = vpack.c.bf16 %v1168_v62, %v1168_v62  ;;  %v1173_v46 = vmul.f32 %v2054_v10, %v2492_v53  ;;  %2081 = vpow2.f32 %v1631_v12  ;;  %v666_v43 = vmul.f32 %v1867_v45, %v2358_v34  ;;  %v477_v22 = vpop.f32.mrf.mxu0 }
 0x114   :  { %v2058_v52 = vpop.eup %2057  ;;  %1523 = vst.msk [vmem:[%s3094_s4 + $0xac] sm:$0xf] %vm1479_vm2, %v1785_v33  ;;  %v1783_v47 = vpack.c.bf16 %v1200_v29, %v1200_v29  ;;  %v1205_v55 = vmul.f32 %v2056_v5, %v2496_v61  ;;  %2083 = vpow2.f32 %v2696_v58  ;;  %v698_v1 = vmul.f32 %v1899_v2, %v2358_v34  ;;  %v605_v62 = vpop.f32.mrf.mxu1 }
 0x115   :  { %v2060_v56 = vpop.eup %2059  ;;  %1489 = vst.msk [vmem:[%s3094_s4 + $0x24] sm:$0xf] %vm1479_vm2, %v1751_v40  ;;  %v1756_v53 = vpack.c.bf16 %v1173_v46, %v1173_v46  ;;  %v1171_v12 = vmul.f32 %v2058_v52, %v2501_v7  ;;  %2085 = vpow2.f32 %v2699_v3  ;;  %v664_v45 = vmul.f32 %v2358_v34, %v474_v14  ;;  %v1871_v52 = vpop.f32.mrf.mxu0 }
 0x116   :  { %v2062_v54 = vpop.eup %2061  ;;  %1521 = vst.msk [vmem:[%s3094_s4 + $0xa4] sm:$0xf] %vm1479_vm2, %v1783_v47  ;;  %v1788_v61 = vpack.c.bf16 %v1205_v55, %v1205_v55  ;;  %v1203_v58 = vmul.f32 %v2060_v56, %v2505_v15  ;;  %2087 = vpow2.f32 %v2702_v44  ;;  %v696_v2 = vmul.f32 %v2358_v34, %v602_v28 }
 0x117   :  { %v2064_v39 = vpop.eup %2063  ;;  %1494 = vst.msk [vmem:[%s3094_s4 + $0x38] sm:$0xf] %vm1479_vm2, %v1756_v53  ;;  %v1754_v7 = vpack.c.bf16 %v1171_v12, %v1171_v12  ;;  %v1174_v3 = vmul.f32 %v2062_v54, %v2540_v9  ;;  %2089 = vpow2.f32 %v2706_v42  ;;  %v2812_v16 = vadd.f32 %v2363_v36, %v666_v43  ;;  %v1903_v53 = vpop.f32.mrf.mxu1  ;;  %v2853_v43 = vld [vmem:[%s3092_s2] ss:$0 sm:$0xff] }
 0x118   :  { %v2066_v15 = vpop.eup %2065  ;;  %1526 = vst.msk [vmem:[%s3094_s4 + $0xb8] sm:$0xf] %vm1479_vm2, %v1788_v61  ;;  %v1786_v44 = vpack.c.bf16 %v1203_v58, %v1203_v58  ;;  %v1206_v13 = vmul.f32 %v2064_v39, %v2549_v18  ;;  %2091 = vpow2.f32 %v2711_v21  ;;  %v2819_v29 = vadd.f32 %v2363_v36, %v698_v1 }
 0x119   :  { %v2068_v8 = vpop.eup %2067  ;;  %1492 = vst.msk [vmem:[%s3094_s4 + $0x30] sm:$0xf] %vm1479_vm2, %v1754_v7  ;;  %v1757_v9 = vpack.c.bf16 %v1174_v3, %v1174_v3  ;;  %v1172_v42 = vmul.f32 %v2066_v15, %v2557_v25  ;;  %2093 = vpow2.f32 %v1637_v11  ;;  %v2826_v40 = vadd.f32 %v2363_v36, %v664_v45  ;;  %v490_v15 = vpop.f32.mrf.mxu0 }
 0x11a   :  { %v2070_v51 = vpop.eup %2069  ;;  %1524 = vst.msk [vmem:[%s3094_s4 + $0xb0] sm:$0xf] %vm1479_vm2, %v1786_v44  ;;  %v1789_v18 = vpack.c.bf16 %v1206_v13, %v1206_v13  ;;  %v1204_v21 = vmul.f32 %v2068_v8, %v2565_v37  ;;  %2095 = vpow2.f32 %v1669_v17  ;;  %v2833_v28 = vadd.f32 %v2363_v36, %v696_v2 }
 0x11b   :  { %v2072_v57 = vpop.eup %2071  ;;  %1495 = vst.msk [vmem:[%s3094_s4 + $0x3c] sm:$0xf] %vm1479_vm2, %v1757_v9  ;;  %v1755_v25 = vpack.c.bf16 %v1172_v42, %v1172_v42  ;;  %v985_v31 = vadd.f32 1.0, %v2070_v51  ;;  %2097 = vpow2.f32 %v1635_v23  ;;  %v2836_v17 = vmul.f32 -1.442695, %v2812_v16  ;;  %v618_v9 = vpop.f32.mrf.mxu1 }
 0x11c   :  { %v2074_v10 = vpop.eup %2073  ;;  %1527 = vst.msk [vmem:[%s3094_s4 + $0xbc] sm:$0xf] %vm1479_vm2, %v1789_v18  ;;  %v1787_v37 = vpack.c.bf16 %v1204_v21, %v1204_v21  ;;  %v1017_v33 = vadd.f32 1.0, %v2072_v57  ;;  %2099 = vpow2.f32 %v1667_v35  ;;  %v667_v56 = vmul.f32 %v1868_v60, %v2358_v34 }
 0x11d   :  { %v2076_v14 = vpop.eup %2075  ;;  %1493 = vst.msk [vmem:[%s3094_s4 + $0x34] sm:$0xf] %vm1479_vm2, %v1755_v25  ;;  %2101 = vrcp.f32 %v985_v31  ;;  %v983_v5 = vadd.f32 1.0, %v2074_v10  ;;  %v2840_v54 = vmul.f32 -1.442695, %v2819_v29  ;;  %v699_v61 = vmul.f32 %v1900_v59, %v2358_v34 }
 0x11e   :  { %v2078_v46 = vpop.eup %2077  ;;  %1525 = vst.msk [vmem:[%s3094_s4 + $0xb4] sm:$0xf] %vm1479_vm2, %v1787_v37  ;;  %2103 = vrcp.f32 %v1017_v33  ;;  %v1015_v11 = vadd.f32 1.0, %v2076_v14  ;;  %v2844_v35 = vmul.f32 -1.442695, %v2826_v40  ;;  %v665_v39 = vmul.f32 %v2358_v34, %v477_v22 }
 0x11f   :  { %v2080_v47 = vpop.eup %2079  ;;  %2105 = vrcp.f32 %v983_v5  ;;  %v986_v55 = vadd.f32 1.0, %v2078_v46  ;;  %v2848_v3 = vmul.f32 -1.442695, %v2833_v28  ;;  %v697_v59 = vmul.f32 %v2853_v43, %v605_v62  ;;  %v2859_v34 = vld [vmem:[%s3093_s3] ss:$0 sm:$0xff] }
 0x120   :  { %v2082_v12 = vpop.eup %2081  ;;  %2107 = vrcp.f32 %v1015_v11  ;;  %v1018_v23 = vadd.f32 1.0, %v2080_v47  ;;  %v2862_v1 = vadd.f32 %v2859_v34, %v667_v56  ;;  %v670_v8 = vmul.f32 %v2853_v43, %v1871_v52 }
 0x121   :  { %v2084_v36 = vpop.eup %2083  ;;  %2109 = vrcp.f32 %v986_v55  ;;  %v984_v58 = vadd.f32 1.0, %v2082_v12  ;;  %v2866_v51 = vadd.f32 %v2859_v34, %v699_v61  ;;  %v702_v18 = vmul.f32 %v2853_v43, %v1903_v53  ;;  %v1872_v55 = vpop.f32.mrf.mxu0 }
 0x122   :  { %v2086_v7 = vpop.eup %2085  ;;  %2111 = vrcp.f32 %v1018_v23  ;;  %v1016_v60 = vadd.f32 1.0, %v2084_v36  ;;  %v2870_v22 = vadd.f32 %v2859_v34, %v665_v39  ;;  %v668_v57 = vmul.f32 %v2853_v43, %v490_v15  ;;  %v1904_v61 = vpop.f32.mrf.mxu1 }
 0x123   :  { %v2088_v44 = vpop.eup %2087  ;;  %2113 = vrcp.f32 %v984_v58  ;;  %v989_v13 = vadd.f32 1.0, %v2086_v7  ;;  %v2874_v62 = vadd.f32 %v2859_v34, %v697_v59  ;;  %v700_v10 = vmul.f32 %v2853_v43, %v618_v9 }
 0x124   :  { %v2090_v42 = vpop.eup %2089  ;;  %2115 = vrcp.f32 %v1016_v60  ;;  %v1021_v45 = vadd.f32 1.0, %v2088_v44  ;;  %v2878_v14 = vadd.f32 %v2859_v34, %v670_v8  ;;  %v2881_v5 = vadd.f32 %v2859_v34, %v702_v18 }
 0x125   :  { %v2092_v21 = vpop.eup %2091  ;;  %2117 = vrcp.f32 %v989_v13  ;;  %v987_v2 = vadd.f32 1.0, %v2090_v42  ;;  %v1641_v52 = vmul.f32 -1.442695, %v2862_v1  ;;  %v2885_v47 = vadd.f32 %v2859_v34, %v668_v57  ;;  %v621_v57 = vpop.f32.mrf.mxu1 }
 0x126   :  { %v2094_v25 = vpop.eup %2093  ;;  %2119 = vrcp.f32 %v1021_v45  ;;  %v1019_v31 = vadd.f32 1.0, %v2092_v21  ;;  %v1673_v12 = vmul.f32 -1.442695, %v2866_v51  ;;  %v2889_v23 = vadd.f32 %v2859_v34, %v700_v10  ;;  %v493_v45 = vpop.f32.mrf.mxu0 }
 0x127   :  { %v2096_v37 = vpop.eup %2095  ;;  %2121 = vrcp.f32 %v987_v2  ;;  %v990_v33 = vadd.f32 1.0, %v2094_v25  ;;  %v1639_v39 = vmul.f32 -1.442695, %v2870_v22  ;;  %v1671_v7 = vmul.f32 -1.442695, %v2874_v62 }
 0x128   :  { %v2098_v46 = vpop.eup %2097  ;;  %2123 = vrcp.f32 %v1019_v31  ;;  %v1022_v11 = vadd.f32 1.0, %v2096_v37  ;;  %v1644_v15 = vmul.f32 -1.442695, %v2878_v14  ;;  %v2896_v44 = vmul.f32 -1.442695, %v2881_v5 }
 0x129   :  { %v2100_v56 = vpop.eup %2099  ;;  %2125 = vrcp.f32 %v990_v33  ;;  %v988_v53 = vadd.f32 1.0, %v2098_v46  ;;  %v2900_v9 = vmul.f32 -1.442695, %v2885_v47  ;;  %v671_v42 = vmul.f32 %v2853_v43, %v1872_v55 }
 0x12a   :  { %v2102_v36 = vpop.eup %2101  ;;  %2127 = vrcp.f32 %v1022_v11  ;;  %v1020_v58 = vadd.f32 1.0, %v2100_v56  ;;  %v2906_v2 = vmul.f32 -1.442695, %v2889_v23  ;;  %v703_v10 = vmul.f32 %v2853_v43, %v1904_v61 }
 0x12b   :  { %v2104_v60 = vpop.eup %2103  ;;  %v1177_v59 = vmul.f32 %v2102_v36, %v2625_v26  ;;  %2129 = vrcp.f32 %v988_v53  ;;  %v669_v33 = vmul.f32 %v2853_v43, %v493_v45  ;;  %v701_v11 = vmul.f32 %v2853_v43, %v621_v57 }
 0x12c   :  { %v2106_v13 = vpop.eup %2105  ;;  %v1209_v8 = vmul.f32 %v2104_v60, %v2632_v27  ;;  %2131 = vrcp.f32 %v1020_v58  ;;  %v2931_v56 = vadd.f32 %v2859_v34, %v671_v42  ;;  %v2939_v43 = vadd.f32 %v2859_v34, %v703_v10 }
 0x12d   :  { %v2108_v18 = vpop.eup %2107  ;;  %v1760_v21 = vpack.c.bf16 %v1177_v59, %v1177_v59  ;;  %v1175_v26 = vmul.f32 %v2106_v13, %v2639_v0  ;;  %2133 = vpow2.f32 %v2836_v17  ;;  %v2947_v36 = vadd.f32 %v2859_v34, %v669_v33 }
 0x12e   :  { %v2110_v25 = vpop.eup %2109  ;;  %v1792_v31 = vpack.c.bf16 %v1209_v8, %v1209_v8  ;;  %v1207_v27 = vmul.f32 %v2108_v18, %v2642_v6  ;;  %2135 = vpow2.f32 %v2840_v54  ;;  %v2955_v60 = vadd.f32 %v2859_v34, %v701_v11 }
 0x12f   :  { %v2112_v37 = vpop.eup %2111  ;;  %1498 = vst.msk [vmem:[%s3094_s4 + $0x48] sm:$0xf] %vm1479_vm2, %v1760_v21  ;;  %v1758_v0 = vpack.c.bf16 %v1175_v26, %v1175_v26  ;;  %v1178_v17 = vmul.f32 %v2110_v25, %v2665_v20  ;;  %2137 = vpow2.f32 %v2844_v35  ;;  %v1645_v13 = vmul.f32 -1.442695, %v2931_v56 }
 0x130   :  { %v2114_v46 = vpop.eup %2113  ;;  %1530 = vst.msk [vmem:[%s3094_s4 + $0xc8] sm:$0xf] %vm1479_vm2, %v1792_v31  ;;  %v1790_v6 = vpack.c.bf16 %v1207_v27, %v1207_v27  ;;  %v1210_v54 = vmul.f32 %v2112_v37, %v2668_v30  ;;  %2139 = vpow2.f32 %v2848_v3  ;;  %v1643_v45 = vmul.f32 -1.442695, %v2947_v36 }
 0x131   :  { %v2116_v55 = vpop.eup %2115  ;;  %1496 = vst.msk [vmem:[%s3094_s4 + $0x40] sm:$0xf] %vm1479_vm2, %v1758_v0  ;;  %v1761_v20 = vpack.c.bf16 %v1178_v17, %v1178_v17  ;;  %v1176_v35 = vmul.f32 %v2114_v46, %v2671_v24  ;;  %2141 = vpow2.f32 %v1641_v52  ;;  %v1675_v21 = vmul.f32 -1.442695, %v2955_v60 }
 0x132   :  { %v2118_v53 = vpop.eup %2117  ;;  %1528 = vst.msk [vmem:[%s3094_s4 + $0xc0] sm:$0xf] %vm1479_vm2, %v1790_v6  ;;  %v1793_v30 = vpack.c.bf16 %v1210_v54, %v1210_v54  ;;  %v1208_v3 = vmul.f32 %v2116_v55, %v2675_v50  ;;  %2143 = vpow2.f32 %v1673_v12 }
 0x133   :  { %v2120_v61 = vpop.eup %2119  ;;  %1499 = vst.msk [vmem:[%s3094_s4 + $0x4c] sm:$0xf] %vm1479_vm2, %v1761_v20  ;;  %v1759_v24 = vpack.c.bf16 %v1176_v35, %v1176_v35  ;;  %v1181_v52 = vmul.f32 %v2118_v53, %v2679_v32  ;;  %2145 = vpow2.f32 %v1639_v39 }
 0x134   :  { %v2122_v58 = vpop.eup %2121  ;;  %1531 = vst.msk [vmem:[%s3094_s4 + $0xcc] sm:$0xf] %vm1479_vm2, %v1793_v30  ;;  %v1791_v50 = vpack.c.bf16 %v1208_v3, %v1208_v3  ;;  %v1213_v12 = vmul.f32 %v2120_v61, %v2683_v38  ;;  %2147 = vpow2.f32 %v1671_v7  ;;  %v1677_v7 = vmul.f32 -1.442695, %v2939_v43 }
 0x135   :  { %v2124_v59 = vpop.eup %2123  ;;  %1497 = vst.msk [vmem:[%s3094_s4 + $0x44] sm:$0xf] %vm1479_vm2, %v1759_v24  ;;  %v1764_v32 = vpack.c.bf16 %v1181_v52, %v1181_v52  ;;  %v1179_v39 = vmul.f32 %v2122_v58, %v2688_v49  ;;  %2149 = vpow2.f32 %v1644_v15 }
 0x136   :  { %v2126_v8 = vpop.eup %2125  ;;  %1529 = vst.msk [vmem:[%s3094_s4 + $0xc4] sm:$0xf] %vm1479_vm2, %v1791_v50  ;;  %v1796_v38 = vpack.c.bf16 %v1213_v12, %v1213_v12  ;;  %v1211_v34 = vmul.f32 %v2124_v59, %v2692_v19  ;;  %2151 = vpow2.f32 %v2896_v44 }
 0x137   :  { %v2128_v42 = vpop.eup %2127  ;;  %1502 = vst.msk [vmem:[%s3094_s4 + $0x58] sm:$0xf] %vm1479_vm2, %v1764_v32  ;;  %v1762_v49 = vpack.c.bf16 %v1179_v39, %v1179_v39  ;;  %v1182_v15 = vmul.f32 %v2126_v8, %v2727_v4  ;;  %2153 = vpow2.f32 %v2900_v9 }
 0x138   :  { %v2130_v18 = vpop.eup %2129  ;;  %1534 = vst.msk [vmem:[%s3094_s4 + $0xd8] sm:$0xf] %vm1479_vm2, %v1796_v38  ;;  %v1794_v19 = vpack.c.bf16 %v1211_v34, %v1211_v34  ;;  %v1214_v44 = vmul.f32 %v2128_v42, %v2736_v41  ;;  %2155 = vpow2.f32 %v2906_v2 }
 0x139   :  { %v2132_v26 = vpop.eup %2131  ;;  %1500 = vst.msk [vmem:[%s3094_s4 + $0x50] sm:$0xf] %vm1479_vm2, %v1762_v49  ;;  %v1765_v4 = vpack.c.bf16 %v1182_v15, %v1182_v15  ;;  %v1180_v9 = vmul.f32 %v2130_v18, %v2744_v63  ;;  %2157 = vpow2.f32 %v1645_v13 }
 0x13a   :  { %v2134_v57 = vpop.eup %2133  ;;  %1532 = vst.msk [vmem:[%s3094_s4 + $0xd0] sm:$0xf] %vm1479_vm2, %v1794_v19  ;;  %v1797_v41 = vpack.c.bf16 %v1214_v44, %v1214_v44  ;;  %v1212_v2 = vmul.f32 %v2132_v26, %v2752_v48  ;;  %2159 = vpow2.f32 %v1677_v7 }
 0x13b   :  { %v2136_v25 = vpop.eup %2135  ;;  %1503 = vst.msk [vmem:[%s3094_s4 + $0x5c] sm:$0xf] %vm1479_vm2, %v1765_v4  ;;  %v1763_v31 = vpack.c.bf16 %v1180_v9, %v1180_v9  ;;  %v993_v27 = vadd.f32 1.0, %v2134_v57  ;;  %2161 = vpow2.f32 %v1643_v45 }
 0x13c   :  { %v2138_v63 = vpop.eup %2137  ;;  %1535 = vst.msk [vmem:[%s3094_s4 + $0xdc] sm:$0xf] %vm1479_vm2, %v1797_v41  ;;  %v1795_v10 = vpack.c.bf16 %v1212_v2, %v1212_v2  ;;  %v1025_v37 = vadd.f32 1.0, %v2136_v25  ;;  %2163 = vpow2.f32 %v1675_v21 }
 0x13d   :  { %v2140_v48 = vpop.eup %2139  ;;  %1501 = vst.msk [vmem:[%s3094_s4 + $0x54] sm:$0xf] %vm1479_vm2, %v1763_v31  ;;  %2165 = vrcp.f32 %v993_v27  ;;  %v991_v0 = vadd.f32 1.0, %v2138_v63 }
 0x13e   :  { %v2142_v17 = vpop.eup %2141  ;;  %1533 = vst.msk [vmem:[%s3094_s4 + $0xd4] sm:$0xf] %vm1479_vm2, %v1795_v10  ;;  %2167 = vrcp.f32 %v1025_v37  ;;  %v1023_v33 = vadd.f32 1.0, %v2140_v48 }
 0x13f   :  { %v2144_v46 = vpop.eup %2143  ;;  %2169 = vrcp.f32 %v991_v0  ;;  %v994_v6 = vadd.f32 1.0, %v2142_v17 }
 0x140   :  { %v2146_v54 = vpop.eup %2145  ;;  %2171 = vrcp.f32 %v1023_v33  ;;  %v1026_v11 = vadd.f32 1.0, %v2144_v46 }
 0x141   :  { %v2148_v55 = vpop.eup %2147  ;;  %2173 = vrcp.f32 %v994_v6  ;;  %v992_v20 = vadd.f32 1.0, %v2146_v54 }
 0x142   :  { %v2150_v35 = vpop.eup %2149  ;;  %2175 = vrcp.f32 %v1026_v11  ;;  %v1024_v53 = vadd.f32 1.0, %v2148_v55 }
 0x143   :  { %v2152_v30 = vpop.eup %2151  ;;  %2177 = vrcp.f32 %v992_v20  ;;  %v997_v3 = vadd.f32 1.0, %v2150_v35 }
 0x144   :  { %v2154_v61 = vpop.eup %2153  ;;  %2179 = vrcp.f32 %v1024_v53  ;;  %v1029_v24 = vadd.f32 1.0, %v2152_v30 }
 0x145   :  { %v2156_v52 = vpop.eup %2155  ;;  %2181 = vrcp.f32 %v997_v3  ;;  %v995_v58 = vadd.f32 1.0, %v2154_v61 }
 0x146   :  { %v2158_v50 = vpop.eup %2157  ;;  %2183 = vrcp.f32 %v1029_v24  ;;  %v1027_v12 = vadd.f32 1.0, %v2156_v52 }
 0x147   :  { %v2160_v59 = vpop.eup %2159  ;;  %2185 = vrcp.f32 %v995_v58  ;;  %v998_v32 = vadd.f32 1.0, %v2158_v50 }
 0x148   :  { %v2162_v39 = vpop.eup %2161  ;;  %2187 = vrcp.f32 %v1027_v12  ;;  %v1030_v13 = vadd.f32 1.0, %v2160_v59 }
 0x149   :  { %v2164_v8 = vpop.eup %2163  ;;  %2189 = vrcp.f32 %v998_v32  ;;  %v996_v38 = vadd.f32 1.0, %v2162_v39 }
 0x14a   :  { %v2166_v34 = vpop.eup %2165  ;;  %2191 = vrcp.f32 %v1030_v13  ;;  %v1028_v7 = vadd.f32 1.0, %v2164_v8 }
 0x14b   :  { %v2168_v42 = vpop.eup %2167  ;;  %v1185_v49 = vmul.f32 %v2166_v34, %v2812_v16  ;;  %2193 = vrcp.f32 %v996_v38 }
 0x14c   :  { %v2170_v15 = vpop.eup %2169  ;;  %v1217_v45 = vmul.f32 %v2168_v42, %v2819_v29  ;;  %2195 = vrcp.f32 %v1028_v7 }
 0x14d   :  { %v2172_v18 = vpop.eup %2171  ;;  %v1768_v19 = vpack.c.bf16 %v1185_v49, %v1185_v49  ;;  %v1183_v44 = vmul.f32 %v2170_v15, %v2826_v40 }
 0x14e   :  { %v2174_v21 = vpop.eup %2173  ;;  %v1800_v26 = vpack.c.bf16 %v1217_v45, %v1217_v45  ;;  %v1215_v4 = vmul.f32 %v2172_v18, %v2833_v28 }
 0x14f   :  { %v2176_v9 = vpop.eup %2175  ;;  %1506 = vst.msk [vmem:[%s3094_s4 + $0x68] sm:$0xf] %vm1479_vm2, %v1768_v19  ;;  %v1766_v16 = vpack.c.bf16 %v1183_v44, %v1183_v44  ;;  %v1186_v57 = vmul.f32 %v2174_v21, %v2862_v1 }
 0x150   :  { %v2178_v41 = vpop.eup %2177  ;;  %1538 = vst.msk [vmem:[%s3094_s4 + $0xe8] sm:$0xf] %vm1479_vm2, %v1800_v26  ;;  %v1798_v29 = vpack.c.bf16 %v1215_v4, %v1215_v4  ;;  %v1218_v40 = vmul.f32 %v2176_v9, %v2866_v51 }
 0x151   :  { %v2180_v2 = vpop.eup %2179  ;;  %1504 = vst.msk [vmem:[%s3094_s4 + $0x60] sm:$0xf] %vm1479_vm2, %v1766_v16  ;;  %v1769_v28 = vpack.c.bf16 %v1186_v57, %v1186_v57  ;;  %v1184_v25 = vmul.f32 %v2178_v41, %v2870_v22 }
 0x152   :  { %v2182_v31 = vpop.eup %2181  ;;  %1536 = vst.msk [vmem:[%s3094_s4 + $0xe0] sm:$0xf] %vm1479_vm2, %v1798_v29  ;;  %v1801_v1 = vpack.c.bf16 %v1218_v40, %v1218_v40  ;;  %v1216_v27 = vmul.f32 %v2180_v2, %v2874_v62 }
 0x153   :  { %v2184_v63 = vpop.eup %2183  ;;  %1507 = vst.msk [vmem:[%s3094_s4 + $0x6c] sm:$0xf] %vm1479_vm2, %v1769_v28  ;;  %v1767_v51 = vpack.c.bf16 %v1184_v25, %v1184_v25  ;;  %v1189_v10 = vmul.f32 %v2182_v31, %v2878_v14 }
 0x154   :  { %v2186_v37 = vpop.eup %2185  ;;  %1539 = vst.msk [vmem:[%s3094_s4 + $0xec] sm:$0xf] %vm1479_vm2, %v1801_v1  ;;  %v1799_v22 = vpack.c.bf16 %v1216_v27, %v1216_v27  ;;  %v1221_v48 = vmul.f32 %v2184_v63, %v2881_v5 }
 0x155   :  { %v2188_v0 = vpop.eup %2187  ;;  %1505 = vst.msk [vmem:[%s3094_s4 + $0x64] sm:$0xf] %vm1479_vm2, %v1767_v51  ;;  %v1772_v62 = vpack.c.bf16 %v1189_v10, %v1189_v10  ;;  %v1187_v17 = vmul.f32 %v2186_v37, %v2885_v47 }
 0x156   :  { %v2190_v33 = vpop.eup %2189  ;;  %1537 = vst.msk [vmem:[%s3094_s4 + $0xe4] sm:$0xf] %vm1479_vm2, %v1799_v22  ;;  %v1804_v14 = vpack.c.bf16 %v1221_v48, %v1221_v48  ;;  %v1219_v46 = vmul.f32 %v2188_v0, %v2889_v23 }
 0x157   :  { %v2192_v6 = vpop.eup %2191  ;;  %1510 = vst.msk [vmem:[%s3094_s4 + $0x78] sm:$0xf] %vm1479_vm2, %v1772_v62  ;;  %v1770_v5 = vpack.c.bf16 %v1187_v17, %v1187_v17  ;;  %v1190_v54 = vmul.f32 %v2190_v33, %v2931_v56 }
 0x158   :  { %v2194_v11 = vpop.eup %2193  ;;  %1542 = vst.msk [vmem:[%s3094_s4 + $0xf8] sm:$0xf] %vm1479_vm2, %v1804_v14  ;;  %v1802_v47 = vpack.c.bf16 %v1219_v46, %v1219_v46  ;;  %v1222_v55 = vmul.f32 %v2192_v6, %v2939_v43 }
 0x159   :  { %v2196_v20 = vpop.eup %2195  ;;  %1508 = vst.msk [vmem:[%s3094_s4 + $0x70] sm:$0xf] %vm1479_vm2, %v1770_v5  ;;  %v1773_v23 = vpack.c.bf16 %v1190_v54, %v1190_v54  ;;  %v1188_v35 = vmul.f32 %v2194_v11, %v2947_v36 }
 0x15a   :  { %1540 = vst.msk [vmem:[%s3094_s4 + $0xf0] sm:$0xf] %vm1479_vm2, %v1802_v47  ;;  %v1805_v56 = vpack.c.bf16 %v1222_v55, %v1222_v55  ;;  %v1220_v53 = vmul.f32 %v2196_v20, %v2955_v60 }
 0x15b   :  { %1511 = vst.msk [vmem:[%s3094_s4 + $0x7c] sm:$0xf] %vm1479_vm2, %v1773_v23  ;;  %v1771_v43 = vpack.c.bf16 %v1188_v35, %v1188_v35 }
 0x15c   :  { %1543 = vst.msk [vmem:[%s3094_s4 + $0xfc] sm:$0xf] %vm1479_vm2, %v1805_v56  ;;  %v1803_v36 = vpack.c.bf16 %v1220_v53, %v1220_v53 }
 0x15d   :  { %1509 = vst.msk [vmem:[%s3094_s4 + $0x74] sm:$0xf] %vm1479_vm2, %v1771_v43 }
 0x15e   :  { %1541 = vst.msk [vmem:[%s3094_s4 + $0xf4] sm:$0xf] %vm1479_vm2, %v1803_v36 }

// kernel: gelan_forward.24
= control target key start
LH: loop header
LB: loop body
LE: loop exit
PB: predicated region body
PF: predicated region fallthrough
CT: control target
= control target key end

     0   :  { %vm340_vm0 = vcmask 1040384   ;;  %vm243_vm1 = vcmask 15360   ;;  %vm1479_vm2 = vcmask 27648   ;;  %s3090_s1 = inlined_call_operand.vmem [shape: bf16[2,4], index: 1, kind: input, shape index: {}]   ;;  %s3091_s0 = inlined_call_operand.vmem [shape: bf16[512,2], index: 0, kind: input, shape index: {}]   ;;  %s3092_s2 = inlined_call_operand.vmem [shape: f32[1,4], index: 2, kind: input, shape index: {}]   ;;  %s3093_s3 = inlined_call_operand.vmem [shape: f32[1,4], index: 3, kind: input, shape index: {}]   ;;  %s3094_s4 = inlined_call_operand.vmem [shape: bf16[512,4], index: 4, kind: output, shape index: {}]  }
   0x1   :  { %v82_v0 = vld [vmem:[%s3090_s1] sm:$0x1]  ;;  %v1911_v4 = vld [vmem:[%s3091_s0 + $0x8] sm:$0xff]   ;;  %v1913_v6 = vld [vmem:[%s3091_s0 + $0x10] sm:$0xff]  }
   0x2   :  { %1907 = vmatprep.subr.msk.bf16.mxu0 %vm340_vm0, %v82_v0  ;;  %1908 = vmatprep.subr.msk.bf16.mxu1 %vm340_vm0, %v82_v0  ;;  %v342_v1 = vsel %vm340_vm0, %v82_v0, 0  ;;  %v1909_v2 = vld [vmem:[%s3091_s0] sm:$0xff]   ;;  %v1912_v5 = vld [vmem:[%s3091_s0 + $0x88] sm:$0xff]   ;;  %v1914_v7 = vld [vmem:[%s3091_s0 + $0x90] sm:$0xff]  }
   0x3   :  { %1840 = vmatpush3.bf16.msra.mxu0 %v342_v1  ;;  %1906 = vmatpush3.bf16.msra.mxu1 %v342_v1  ;;  %v1910_v3 = vld [vmem:[%s3091_s0 + $0x80] sm:$0xff]   ;;  %v1915_v8 = vld [vmem:[%s3091_s0 + $0x18] sm:$0xff]   ;;  %v1919_v12 = vld [vmem:[%s3091_s0 + $0x28] sm:$0xff]  }
   0x4   :  { %1841 = vmatprep.mubr.msk.bf16.mxu0 %vm243_vm1, %v1909_v2  ;;  %1873 = vmatprep.mubr.msk.bf16.mxu1 %vm243_vm1, %v1910_v3  ;;  %v1916_v9 = vld [vmem:[%s3091_s0 + $0x98] sm:$0xff]   ;;  %v1917_v10 = vld [vmem:[%s3091_s0 + $0x20] sm:$0xff]   ;;  %v1920_v13 = vld [vmem:[%s3091_s0 + $0xa8] sm:$0xff]  }
   0x5   :  { %v1918_v11 = vld [vmem:[%s3091_s0 + $0xa0] sm:$0xff]   ;;  %v1921_v14 = vld [vmem:[%s3091_s0 + $0x30] sm:$0xff]   ;;  %v1923_v16 = vld [vmem:[%s3091_s0 + $0x38] sm:$0xff]  }
   0x6   :  { %1842 = vmatmul.mubr.msk.bf16.vlgmr.msra.gmra.mxu0 %vm243_vm1, %v1911_v4  ;;  %1874 = vmatmul.mubr.msk.bf16.vlgmr.msra.gmra.mxu1 %vm243_vm1, %v1912_v5  ;;  %v1922_v15 = vld [vmem:[%s3091_s0 + $0xb0] sm:$0xff]   ;;  %v1924_v17 = vld [vmem:[%s3091_s0 + $0xb8] sm:$0xff]   ;;  %v1925_v18 = vld [vmem:[%s3091_s0 + $0x40] sm:$0xff]  }
   0x7   :  { %1845 = vmatprep.mubr.msk.bf16.mxu0 %vm243_vm1, %v1913_v6  ;;  %1877 = vmatprep.mubr.msk.bf16.mxu1 %vm243_vm1, %v1914_v7  ;;  %v1926_v19 = vld [vmem:[%s3091_s0 + $0xc0] sm:$0xff]   ;;  %v1927_v20 = vld [vmem:[%s3091_s0 + $0x48] sm:$0xff]   ;;  %v1929_v22 = vld [vmem:[%s3091_s0 + $0x50] sm:$0xff]  }
   0x8   :  { %v1928_v21 = vld [vmem:[%s3091_s0 + $0xc8] sm:$0xff]   ;;  %v1930_v23 = vld [vmem:[%s3091_s0 + $0xd0] sm:$0xff]   ;;  %v1931_v24 = vld [vmem:[%s3091_s0 + $0x58] sm:$0xff]  }
   0x9   :  { %v1932_v25 = vld [vmem:[%s3091_s0 + $0xd8] sm:$0xff]   ;;  %v1933_v26 = vld [vmem:[%s3091_s0 + $0x60] sm:$0xff]   ;;  %v1935_v28 = vld [vmem:[%s3091_s0 + $0x68] sm:$0xff]  }
   0xa   :  { %v1934_v27 = vld [vmem:[%s3091_s0 + $0xe0] sm:$0xff]   ;;  %v1936_v29 = vld [vmem:[%s3091_s0 + $0xe8] sm:$0xff]   ;;  %v1937_v30 = vld [vmem:[%s3091_s0 + $0x70] sm:$0xff]  }
   0xb   :  { %v1938_v31 = vld [vmem:[%s3091_s0 + $0xf0] sm:$0xff]   ;;  %v1939_v32 = vld [vmem:[%s3091_s0 + $0x78] sm:$0xff]   ;;  %v2358_v34 = vld [vmem:[%s3092_s2] ss:$0 sm:$0xff] }
   0xc   :  { %v1940_v33 = vld [vmem:[%s3091_s0 + $0xf8] sm:$0xff]   ;;  %v2363_v36 = vld [vmem:[%s3093_s3] ss:$0 sm:$0xff] }
   0xe   :  { %1846 = vmatmul.mubr.msk.bf16.gmra.mxu0 %vm243_vm1, %v1915_v8  ;;  %1878 = vmatmul.mubr.msk.bf16.gmra.mxu1 %vm243_vm1, %v1916_v9 }
   0xf   :  { %1849 = vmatprep.mubr.msk.bf16.mxu0 %vm243_vm1, %v1917_v10  ;;  %1881 = vmatprep.mubr.msk.bf16.mxu1 %vm243_vm1, %v1918_v11 }
  0x16   :  { %1850 = vmatmul.mubr.msk.bf16.gmra.mxu0 %vm243_vm1, %v1919_v12  ;;  %1882 = vmatmul.mubr.msk.bf16.gmra.mxu1 %vm243_vm1, %v1920_v13 }
  0x17   :  { %1853 = vmatprep.mubr.msk.bf16.mxu0 %vm243_vm1, %v1921_v14  ;;  %1885 = vmatprep.mubr.msk.bf16.mxu1 %vm243_vm1, %v1922_v15 }
  0x1e   :  { %1854 = vmatmul.mubr.msk.bf16.gmra.mxu0 %vm243_vm1, %v1923_v16  ;;  %1886 = vmatmul.mubr.msk.bf16.gmra.mxu1 %vm243_vm1, %v1924_v17 }
  0x1f   :  { %1857 = vmatprep.mubr.msk.bf16.mxu0 %vm243_vm1, %v1925_v18  ;;  %1889 = vmatprep.mubr.msk.bf16.mxu1 %vm243_vm1, %v1926_v19 }
  0x26   :  { %1858 = vmatmul.mubr.msk.bf16.gmra.mxu0 %vm243_vm1, %v1927_v20  ;;  %1890 = vmatmul.mubr.msk.bf16.gmra.mxu1 %vm243_vm1, %v1928_v21 }
  0x27   :  { %1861 = vmatprep.mubr.msk.bf16.mxu0 %vm243_vm1, %v1929_v22  ;;  %1893 = vmatprep.mubr.msk.bf16.mxu1 %vm243_vm1, %v1930_v23 }
  0x2e   :  { %1862 = vmatmul.mubr.msk.bf16.gmra.mxu0 %vm243_vm1, %v1931_v24  ;;  %1894 = vmatmul.mubr.msk.bf16.gmra.mxu1 %vm243_vm1, %v1932_v25 }
  0x2f   :  { %1865 = vmatprep.mubr.msk.bf16.mxu0 %vm243_vm1, %v1933_v26  ;;  %1897 = vmatprep.mubr.msk.bf16.mxu1 %vm243_vm1, %v1934_v27 }
  0x36   :  { %1866 = vmatmul.mubr.msk.bf16.gmra.mxu0 %vm243_vm1, %v1935_v28  ;;  %1898 = vmatmul.mubr.msk.bf16.gmra.mxu1 %vm243_vm1, %v1936_v29 }
  0x37   :  { %1869 = vmatprep.mubr.msk.bf16.mxu0 %vm243_vm1, %v1937_v30  ;;  %1901 = vmatprep.mubr.msk.bf16.mxu1 %vm243_vm1, %v1938_v31 }
  0x3e   :  { %1870 = vmatmul.mubr.msk.bf16.gmra.mxu0 %vm243_vm1, %v1939_v32  ;;  %1902 = vmatmul.mubr.msk.bf16.gmra.mxu1 %vm243_vm1, %v1940_v33 }
  0xc6   :  { %v1843_v35 = vpop.f32.mrf.mxu0  ;;  %v1875_v38 = vpop.f32.mrf.mxu1 }
  0xc7   :  { %v642_v37 = vmul.f32 %v1843_v35, %v2358_v34  ;;  %v674_v39 = vmul.f32 %v1875_v38, %v2358_v34 }
  0xc8   :  { %v378_v40 = vpop.f32.mrf.mxu0  ;;  %v506_v43 = vpop.f32.mrf.mxu1 }
  0xc9   :  { %v2368_v41 = vadd.f32 %v2363_v36, %v642_v37  ;;  %v640_v42 = vmul.f32 %v2358_v34, %v378_v40  ;;  %v2372_v44 = vadd.f32 %v2363_v36, %v674_v39  ;;  %v672_v45 = vmul.f32 %v2358_v34, %v506_v43 }
  0xca   :  { %v1844_v46 = vpop.f32.mrf.mxu0  ;;  %v1876_v50 = vpop.f32.mrf.mxu1 }
  0xcb   :  { %v1616_v47 = vmul.f32 -1.442695, %v2368_v41  ;;  %v2377_v48 = vadd.f32 %v2363_v36, %v640_v42  ;;  %v643_v49 = vmul.f32 %v1844_v46, %v2358_v34  ;;  %v1648_v51 = vmul.f32 -1.442695, %v2372_v44 }
  0xcc   :  { %v2382_v52 = vadd.f32 %v2363_v36, %v672_v45  ;;  %v675_v53 = vmul.f32 %v1876_v50, %v2358_v34  ;;  %v381_v54 = vpop.f32.mrf.mxu0  ;;  %v509_v58 = vpop.f32.mrf.mxu1 }
  0xcd   :  { %1941 = vpow2.f32 %v1616_v47  ;;  %v1614_v55 = vmul.f32 -1.442695, %v2377_v48  ;;  %v2387_v56 = vadd.f32 %v2363_v36, %v643_v49  ;;  %v641_v57 = vmul.f32 %v2358_v34, %v381_v54 }
  0xce   :  { %1943 = vpow2.f32 %v1648_v51  ;;  %v1646_v59 = vmul.f32 -1.442695, %v2382_v52  ;;  %v2392_v60 = vadd.f32 %v2363_v36, %v675_v53  ;;  %v673_v61 = vmul.f32 %v2358_v34, %v509_v58  ;;  %v1847_v62 = vpop.f32.mrf.mxu0  ;;  %v1879_v2 = vpop.f32.mrf.mxu1 }
  0xcf   :  { %1945 = vpow2.f32 %v1614_v55  ;;  %v1617_v63 = vmul.f32 -1.442695, %v2387_v56  ;;  %v2397_v0 = vadd.f32 %v2363_v36, %v641_v57  ;;  %v646_v1 = vmul.f32 %v1847_v62, %v2358_v34 }
  0xd0   :  { %1947 = vpow2.f32 %v1646_v59  ;;  %v1649_v3 = vmul.f32 -1.442695, %v2392_v60  ;;  %v2402_v4 = vadd.f32 %v2363_v36, %v673_v61  ;;  %v678_v5 = vmul.f32 %v1879_v2, %v2358_v34  ;;  %v394_v6 = vpop.f32.mrf.mxu0  ;;  %v522_v10 = vpop.f32.mrf.mxu1 }
  0xd1   :  { %1949 = vpow2.f32 %v1617_v63  ;;  %v1615_v7 = vmul.f32 -1.442695, %v2397_v0  ;;  %v2407_v8 = vadd.f32 %v2363_v36, %v646_v1  ;;  %v644_v9 = vmul.f32 %v2358_v34, %v394_v6 }
  0xd2   :  { %1951 = vpow2.f32 %v1649_v3  ;;  %v1647_v11 = vmul.f32 -1.442695, %v2402_v4  ;;  %v2412_v12 = vadd.f32 %v2363_v36, %v678_v5  ;;  %v676_v13 = vmul.f32 %v2358_v34, %v522_v10  ;;  %v1848_v14 = vpop.f32.mrf.mxu0  ;;  %v1880_v18 = vpop.f32.mrf.mxu1 }
  0xd3   :  { %1953 = vpow2.f32 %v1615_v7  ;;  %v1620_v15 = vmul.f32 -1.442695, %v2407_v8  ;;  %v2417_v16 = vadd.f32 %v2363_v36, %v644_v9  ;;  %v647_v17 = vmul.f32 %v1848_v14, %v2358_v34 }
  0xd4   :  { %1955 = vpow2.f32 %v1647_v11  ;;  %v1652_v19 = vmul.f32 -1.442695, %v2412_v12  ;;  %v2422_v20 = vadd.f32 %v2363_v36, %v676_v13  ;;  %v679_v21 = vmul.f32 %v1880_v18, %v2358_v34  ;;  %v397_v22 = vpop.f32.mrf.mxu0  ;;  %v525_v26 = vpop.f32.mrf.mxu1 }
  0xd5   :  { %1957 = vpow2.f32 %v1620_v15  ;;  %v1618_v23 = vmul.f32 -1.442695, %v2417_v16  ;;  %v2427_v24 = vadd.f32 %v2363_v36, %v647_v17  ;;  %v645_v25 = vmul.f32 %v2358_v34, %v397_v22 }
  0xd6   :  { %1959 = vpow2.f32 %v1652_v19  ;;  %v1650_v27 = vmul.f32 -1.442695, %v2422_v20  ;;  %v2432_v28 = vadd.f32 %v2363_v36, %v679_v21  ;;  %v677_v29 = vmul.f32 %v2358_v34, %v525_v26  ;;  %v1851_v30 = vpop.f32.mrf.mxu0  ;;  %v1883_v35 = vpop.f32.mrf.mxu1 }
  0xd7   :  { %1961 = vpow2.f32 %v1618_v23  ;;  %v1621_v31 = vmul.f32 -1.442695, %v2427_v24  ;;  %v2437_v32 = vadd.f32 %v2363_v36, %v645_v25  ;;  %v650_v33 = vmul.f32 %v1851_v30, %v2358_v34 }
  0xd8   :  { %1963 = vpow2.f32 %v1650_v27  ;;  %v1653_v37 = vmul.f32 -1.442695, %v2432_v28  ;;  %v2442_v38 = vadd.f32 %v2363_v36, %v677_v29  ;;  %v682_v39 = vmul.f32 %v1883_v35, %v2358_v34  ;;  %v410_v40 = vpop.f32.mrf.mxu0  ;;  %v538_v45 = vpop.f32.mrf.mxu1 }
  0xd9   :  { %1965 = vpow2.f32 %v1621_v31  ;;  %v1619_v42 = vmul.f32 -1.442695, %v2437_v32  ;;  %v648_v43 = vmul.f32 %v2358_v34, %v410_v40  ;;  %v680_v49 = vmul.f32 %v2358_v34, %v538_v45 }
  0xda   :  { %v1942_v46 = vpop.eup %1941  ;;  %1967 = vpow2.f32 %v1653_v37  ;;  %v1651_v47 = vmul.f32 -1.442695, %v2442_v38  ;;  %v1852_v50 = vpop.f32.mrf.mxu0  ;;  %v2450_v54 = vadd.f32 %v2363_v36, %v650_v33  ;;  %v2453_v59 = vadd.f32 %v2363_v36, %v682_v39 }
  0xdb   :  { %v1944_v51 = vpop.eup %1943  ;;  %v969_v53 = vadd.f32 1.0, %v1942_v46  ;;  %1969 = vpow2.f32 %v1619_v42  ;;  %v1884_v55 = vpop.f32.mrf.mxu1  ;;  %v2456_v1 = vadd.f32 %v2363_v36, %v648_v43  ;;  %v2459_v2 = vadd.f32 %v2363_v36, %v680_v49 }
  0xdc   :  { %v1946_v57 = vpop.eup %1945  ;;  %v1001_v58 = vadd.f32 1.0, %v1944_v51  ;;  %1971 = vpow2.f32 %v1651_v47  ;;  %v413_v61 = vpop.f32.mrf.mxu0  ;;  %v651_v7 = vmul.f32 %v1852_v50, %v2358_v34  ;;  %v683_v9 = vmul.f32 %v1884_v55, %v2358_v34 }
  0xdd   :  { %v1948_v62 = vpop.eup %1947  ;;  %1973 = vrcp.f32 %v969_v53  ;;  %v967_v63 = vadd.f32 1.0, %v1946_v57  ;;  %v541_v3 = vpop.f32.mrf.mxu1  ;;  %v2464_v14 = vmul.f32 -1.442695, %v2450_v54  ;;  %v649_v15 = vmul.f32 %v2358_v34, %v413_v61 }
  0xde   :  { %v1950_v5 = vpop.eup %1949  ;;  %1975 = vrcp.f32 %v1001_v58  ;;  %v999_v6 = vadd.f32 1.0, %v1948_v62  ;;  %v1855_v10 = vpop.f32.mrf.mxu0  ;;  %v2468_v21 = vmul.f32 -1.442695, %v2453_v59  ;;  %v681_v22 = vmul.f32 %v2358_v34, %v541_v3 }
  0xdf   :  { %v1952_v11 = vpop.eup %1951  ;;  %1977 = vrcp.f32 %v967_v63  ;;  %v970_v13 = vadd.f32 1.0, %v1950_v5  ;;  %v1887_v17 = vpop.f32.mrf.mxu1  ;;  %v2472_v26 = vmul.f32 -1.442695, %v2456_v1  ;;  %v2475_v27 = vmul.f32 -1.442695, %v2459_v2 }
  0xe0   :  { %v1954_v18 = vpop.eup %1953  ;;  %1979 = vrcp.f32 %v999_v6  ;;  %v1002_v19 = vadd.f32 1.0, %v1952_v11  ;;  %v2478_v31 = vadd.f32 %v2363_v36, %v651_v7  ;;  %v2481_v33 = vadd.f32 %v2363_v36, %v683_v9  ;;  %v426_v35 = vpop.f32.mrf.mxu0 }
  0xe1   :  { %v1956_v23 = vpop.eup %1955  ;;  %1981 = vrcp.f32 %v970_v13  ;;  %v968_v25 = vadd.f32 1.0, %v1954_v18  ;;  %v2484_v40 = vadd.f32 %v2363_v36, %v649_v15  ;;  %v654_v42 = vmul.f32 %v1855_v10, %v2358_v34  ;;  %v554_v43 = vpop.f32.mrf.mxu1 }
  0xe2   :  { %v1958_v29 = vpop.eup %1957  ;;  %1983 = vrcp.f32 %v1002_v19  ;;  %v1000_v30 = vadd.f32 1.0, %v1956_v23  ;;  %v2488_v47 = vadd.f32 %v2363_v36, %v681_v22  ;;  %v686_v49 = vmul.f32 %v1887_v17, %v2358_v34  ;;  %v1856_v63 = vpop.f32.mrf.mxu0 }
  0xe3   :  { %v1960_v37 = vpop.eup %1959  ;;  %1985 = vrcp.f32 %v968_v25  ;;  %v973_v39 = vadd.f32 1.0, %v1958_v29  ;;  %v2492_v53 = vadd.f32 %v2363_v36, %v654_v42  ;;  %v652_v55 = vmul.f32 %v2358_v34, %v426_v35  ;;  %v1888_v9 = vpop.f32.mrf.mxu1 }
  0xe4   :  { %v1962_v45 = vpop.eup %1961  ;;  %1987 = vrcp.f32 %v1000_v30  ;;  %v1005_v46 = vadd.f32 1.0, %v1960_v37  ;;  %v2496_v61 = vadd.f32 %v2363_v36, %v686_v49  ;;  %v684_v62 = vmul.f32 %v2358_v34, %v554_v43  ;;  %v429_v35 = vpop.f32.mrf.mxu0 }
  0xe5   :  { %v1964_v50 = vpop.eup %1963  ;;  %1989 = vrcp.f32 %v973_v39  ;;  %v971_v51 = vadd.f32 1.0, %v1962_v45  ;;  %v1625_v6 = vmul.f32 -1.442695, %v2478_v31  ;;  %v2501_v7 = vadd.f32 %v2363_v36, %v652_v55  ;;  %v557_v45 = vpop.f32.mrf.mxu1 }
  0xe6   :  { %v1966_v57 = vpop.eup %1965  ;;  %1991 = vrcp.f32 %v1005_v46  ;;  %v1003_v58 = vadd.f32 1.0, %v1964_v50  ;;  %v1657_v13 = vmul.f32 -1.442695, %v2481_v33  ;;  %v2505_v15 = vadd.f32 %v2363_v36, %v684_v62 }
  0xe7   :  { %v1968_v3 = vpop.eup %1967  ;;  %1993 = vrcp.f32 %v971_v51  ;;  %v974_v5 = vadd.f32 1.0, %v1966_v57  ;;  %v1623_v19 = vmul.f32 -1.442695, %v2484_v40  ;;  %v2509_v22 = vmul.f32 -1.442695, %v2488_v47 }
  0xe8   :  { %v1970_v10 = vpop.eup %1969  ;;  %1995 = vrcp.f32 %v1003_v58  ;;  %v1006_v11 = vadd.f32 1.0, %v1968_v3  ;;  %v2512_v29 = vmul.f32 -1.442695, %v2492_v53  ;;  %v2515_v30 = vmul.f32 -1.442695, %v2496_v61 }
  0xe9   :  { %v1972_v17 = vpop.eup %1971  ;;  %1997 = vrcp.f32 %v974_v5  ;;  %v972_v18 = vadd.f32 1.0, %v1970_v10  ;;  %v2519_v42 = vmul.f32 -1.442695, %v2501_v7  ;;  %v655_v43 = vmul.f32 %v1856_v63, %v2358_v34  ;;  %v1859_v5 = vpop.f32.mrf.mxu0 }
  0xea   :  { %v1974_v23 = vpop.eup %1973  ;;  %1999 = vrcp.f32 %v1006_v11  ;;  %v1004_v25 = vadd.f32 1.0, %v1972_v17  ;;  %v2524_v50 = vmul.f32 -1.442695, %v2505_v15  ;;  %v687_v51 = vmul.f32 %v1888_v9, %v2358_v34 }
  0xeb   :  { %v1976_v37 = vpop.eup %1975  ;;  %v1161_v39 = vmul.f32 %v1974_v23, %v2368_v41  ;;  %2001 = vrcp.f32 %v972_v18  ;;  %v653_v58 = vmul.f32 %v2358_v34, %v429_v35  ;;  %v2540_v9 = vadd.f32 %v2363_v36, %v655_v43 }
  0xec   :  { %v1978_v46 = vpop.eup %1977  ;;  %v1193_v49 = vmul.f32 %v1976_v37, %v2372_v44  ;;  %2003 = vrcp.f32 %v1004_v25  ;;  %v685_v44 = vmul.f32 %v2358_v34, %v557_v45  ;;  %v2549_v18 = vadd.f32 %v2363_v36, %v687_v51 }
  0xed   :  { %v1980_v55 = vpop.eup %1979  ;;  %v1744_v57 = vpack.c.bf16 %v1161_v39, %v1161_v39  ;;  %v1159_v41 = vmul.f32 %v1978_v46, %v2377_v48  ;;  %2005 = vpow2.f32 %v2464_v14  ;;  %v2557_v25 = vadd.f32 %v2363_v36, %v653_v58  ;;  %v442_v39 = vpop.f32.mrf.mxu0 }
  0xee   :  { %v1982_v62 = vpop.eup %1981  ;;  %v1776_v63 = vpack.c.bf16 %v1193_v49, %v1193_v49  ;;  %v1191_v3 = vmul.f32 %v1980_v55, %v2382_v52  ;;  %2007 = vpow2.f32 %v2468_v21  ;;  %v1891_v52 = vpop.f32.mrf.mxu1  ;;  %v2565_v37 = vadd.f32 %v2363_v36, %v685_v44 }
  0xef   :  { %v1984_v10 = vpop.eup %1983  ;;  %1482 = vst.msk [vmem:[%s3094_s4 + $0x8] sm:$0xf] %vm1479_vm2, %v1744_v57  ;;  %v1742_v48 = vpack.c.bf16 %v1159_v41, %v1159_v41  ;;  %v1162_v14 = vmul.f32 %v1982_v62, %v2387_v56  ;;  %2009 = vpow2.f32 %v2472_v26  ;;  %v1629_v45 = vmul.f32 -1.442695, %v2540_v9  ;;  %v1860_v62 = vpop.f32.mrf.mxu0 }
  0xf0   :  { %v1986_v11 = vpop.eup %1985  ;;  %1514 = vst.msk [vmem:[%s3094_s4 + $0x88] sm:$0xf] %vm1479_vm2, %v1776_v63  ;;  %v1774_v21 = vpack.c.bf16 %v1191_v3, %v1191_v3  ;;  %v1194_v17 = vmul.f32 %v1984_v10, %v2392_v60  ;;  %2011 = vpow2.f32 %v2475_v27  ;;  %v570_v46 = vpop.f32.mrf.mxu1  ;;  %v1661_v51 = vmul.f32 -1.442695, %v2549_v18 }
  0xf1   :  { %v1988_v56 = vpop.eup %1987  ;;  %1480 = vst.msk [vmem:[%s3094_s4] sm:$0xf] %vm1479_vm2, %v1742_v48  ;;  %v1745_v26 = vpack.c.bf16 %v1162_v14, %v1162_v14  ;;  %v1160_v23 = vmul.f32 %v1986_v11, %v2397_v0  ;;  %2013 = vpow2.f32 %v1625_v6  ;;  %v1627_v57 = vmul.f32 -1.442695, %v2557_v25 }
  0xf2   :  { %v1990_v35 = vpop.eup %1989  ;;  %1512 = vst.msk [vmem:[%s3094_s4 + $0x80] sm:$0xf] %vm1479_vm2, %v1774_v21  ;;  %v1777_v60 = vpack.c.bf16 %v1194_v17, %v1194_v17  ;;  %v1192_v27 = vmul.f32 %v1988_v56, %v2402_v4  ;;  %2015 = vpow2.f32 %v1657_v13  ;;  %v1659_v58 = vmul.f32 -1.442695, %v2565_v37  ;;  %v1892_v44 = vpop.f32.mrf.mxu1 }
  0xf3   :  { %v1992_v43 = vpop.eup %1991  ;;  %1483 = vst.msk [vmem:[%s3094_s4 + $0xc] sm:$0xf] %vm1479_vm2, %v1745_v26  ;;  %v1743_v0 = vpack.c.bf16 %v1160_v23, %v1160_v23  ;;  %v1165_v6 = vmul.f32 %v1990_v35, %v2407_v8  ;;  %2017 = vpow2.f32 %v1623_v19  ;;  %v658_v3 = vmul.f32 %v1859_v5, %v2358_v34  ;;  %v445_v21 = vpop.f32.mrf.mxu0 }
  0xf4   :  { %v1994_v49 = vpop.eup %1993  ;;  %1515 = vst.msk [vmem:[%s3094_s4 + $0x8c] sm:$0xf] %vm1479_vm2, %v1777_v60  ;;  %v1775_v4 = vpack.c.bf16 %v1192_v27, %v1192_v27  ;;  %v1197_v13 = vmul.f32 %v1992_v43, %v2412_v12  ;;  %2019 = vpow2.f32 %v2509_v22  ;;  %v690_v48 = vmul.f32 %v1891_v52, %v2358_v34  ;;  %v573_v23 = vpop.f32.mrf.mxu1 }
  0xf5   :  { %v1996_v55 = vpop.eup %1995  ;;  %1481 = vst.msk [vmem:[%s3094_s4 + $0x4] sm:$0xf] %vm1479_vm2, %v1743_v0  ;;  %v1748_v8 = vpack.c.bf16 %v1165_v6, %v1165_v6  ;;  %v1163_v19 = vmul.f32 %v1994_v49, %v2417_v16  ;;  %2021 = vpow2.f32 %v2512_v29  ;;  %v656_v5 = vmul.f32 %v2358_v34, %v442_v39 }
  0xf6   :  { %v1998_v41 = vpop.eup %1997  ;;  %1513 = vst.msk [vmem:[%s3094_s4 + $0x84] sm:$0xf] %vm1479_vm2, %v1775_v4  ;;  %v1780_v12 = vpack.c.bf16 %v1197_v13, %v1197_v13  ;;  %v1195_v22 = vmul.f32 %v1996_v55, %v2422_v20  ;;  %2023 = vpow2.f32 %v2515_v30  ;;  %v688_v52 = vmul.f32 %v2358_v34, %v570_v46  ;;  %v1863_v13 = vpop.f32.mrf.mxu0 }
  0xf7   :  { %v2000_v63 = vpop.eup %1999  ;;  %1486 = vst.msk [vmem:[%s3094_s4 + $0x18] sm:$0xf] %vm1479_vm2, %v1748_v8  ;;  %v1746_v16 = vpack.c.bf16 %v1163_v19, %v1163_v19  ;;  %v1166_v29 = vmul.f32 %v1998_v41, %v2427_v24  ;;  %2025 = vpow2.f32 %v2519_v42  ;;  %v2625_v26 = vadd.f32 %v2363_v36, %v658_v3 }
  0xf8   :  { %v2002_v20 = vpop.eup %2001  ;;  %1518 = vst.msk [vmem:[%s3094_s4 + $0x98] sm:$0xf] %vm1479_vm2, %v1780_v12  ;;  %v1778_v30 = vpack.c.bf16 %v1195_v22, %v1195_v22  ;;  %v1198_v10 = vmul.f32 %v2000_v63, %v2432_v28  ;;  %2027 = vpow2.f32 %v2524_v50  ;;  %v2632_v27 = vadd.f32 %v2363_v36, %v690_v48 }
  0xf9   :  { %v2004_v14 = vpop.eup %2003  ;;  %1484 = vst.msk [vmem:[%s3094_s4 + $0x10] sm:$0xf] %vm1479_vm2, %v1746_v16  ;;  %v1749_v24 = vpack.c.bf16 %v1166_v29, %v1166_v29  ;;  %v1164_v42 = vmul.f32 %v2002_v20, %v2437_v32  ;;  %2029 = vpow2.f32 %v1629_v45  ;;  %v2639_v0 = vadd.f32 %v2363_v36, %v656_v5 }
  0xfa   :  { %v2006_v11 = vpop.eup %2005  ;;  %1516 = vst.msk [vmem:[%s3094_s4 + $0x90] sm:$0xf] %vm1479_vm2, %v1778_v30  ;;  %v1781_v28 = vpack.c.bf16 %v1198_v10, %v1198_v10  ;;  %v1196_v50 = vmul.f32 %v2004_v14, %v2442_v38  ;;  %2031 = vpow2.f32 %v1661_v51  ;;  %v2642_v6 = vadd.f32 %v2363_v36, %v688_v52  ;;  %v458_v10 = vpop.f32.mrf.mxu0 }
  0xfb   :  { %v2008_v17 = vpop.eup %2007  ;;  %1487 = vst.msk [vmem:[%s3094_s4 + $0x1c] sm:$0xf] %vm1479_vm2, %v1749_v24  ;;  %v1747_v32 = vpack.c.bf16 %v1164_v42, %v1164_v42  ;;  %v977_v56 = vadd.f32 1.0, %v2006_v11  ;;  %2033 = vpow2.f32 %v1627_v57  ;;  %v659_v49 = vmul.f32 %v1860_v62, %v2358_v34  ;;  %v1895_v57 = vpop.f32.mrf.mxu1 }
  0xfc   :  { %v2010_v35 = vpop.eup %2009  ;;  %1519 = vst.msk [vmem:[%s3094_s4 + $0x9c] sm:$0xf] %vm1479_vm2, %v1781_v28  ;;  %v1779_v38 = vpack.c.bf16 %v1196_v50, %v1196_v50  ;;  %v1009_v60 = vadd.f32 1.0, %v2008_v17  ;;  %2035 = vpow2.f32 %v1659_v58  ;;  %v691_v4 = vmul.f32 %v1892_v44, %v2358_v34 }
  0xfd   :  { %v2012_v39 = vpop.eup %2011  ;;  %1485 = vst.msk [vmem:[%s3094_s4 + $0x14] sm:$0xf] %vm1479_vm2, %v1747_v32  ;;  %2037 = vrcp.f32 %v977_v56  ;;  %v975_v43 = vadd.f32 1.0, %v2010_v35  ;;  %v2651_v8 = vmul.f32 -1.442695, %v2625_v26  ;;  %v657_v19 = vmul.f32 %v2358_v34, %v445_v21  ;;  %v586_v5 = vpop.f32.mrf.mxu1 }
  0xfe   :  { %v2014_v45 = vpop.eup %2013  ;;  %1517 = vst.msk [vmem:[%s3094_s4 + $0x94] sm:$0xf] %vm1479_vm2, %v1779_v38  ;;  %2039 = vrcp.f32 %v1009_v60  ;;  %v1007_v46 = vadd.f32 1.0, %v2012_v39  ;;  %v2655_v22 = vmul.f32 -1.442695, %v2632_v27  ;;  %v689_v58 = vmul.f32 %v2358_v34, %v573_v23  ;;  %v1864_v39 = vpop.f32.mrf.mxu0 }
  0xff   :  { %v2016_v51 = vpop.eup %2015  ;;  %2041 = vrcp.f32 %v975_v43  ;;  %v978_v55 = vadd.f32 1.0, %v2014_v45  ;;  %v2659_v16 = vmul.f32 -1.442695, %v2639_v0  ;;  %v2662_v29 = vmul.f32 -1.442695, %v2642_v6 }
 0x100   :  { %v2018_v41 = vpop.eup %2017  ;;  %2043 = vrcp.f32 %v1007_v46  ;;  %v1010_v12 = vadd.f32 1.0, %v2016_v51  ;;  %v2665_v20 = vadd.f32 %v2363_v36, %v659_v49  ;;  %v2668_v30 = vadd.f32 %v2363_v36, %v691_v4  ;;  %v1896_v4 = vpop.f32.mrf.mxu1 }
 0x101   :  { %v2020_v62 = vpop.eup %2019  ;;  %2045 = vrcp.f32 %v978_v55  ;;  %v976_v63 = vadd.f32 1.0, %v2018_v41  ;;  %v2671_v24 = vadd.f32 %v2363_v36, %v657_v19  ;;  %v662_v42 = vmul.f32 %v1863_v13, %v2358_v34 }
 0x102   :  { %v2022_v3 = vpop.eup %2021  ;;  %2047 = vrcp.f32 %v1010_v12  ;;  %v1008_v44 = vadd.f32 1.0, %v2020_v62  ;;  %v2675_v50 = vadd.f32 %v2363_v36, %v689_v58  ;;  %v694_v52 = vmul.f32 %v1895_v57, %v2358_v34 }
 0x103   :  { %v2024_v48 = vpop.eup %2023  ;;  %2049 = vrcp.f32 %v976_v63  ;;  %v981_v14 = vadd.f32 1.0, %v2022_v3  ;;  %v2679_v32 = vadd.f32 %v2363_v36, %v662_v42  ;;  %v660_v56 = vmul.f32 %v2358_v34, %v458_v10  ;;  %v461_v10 = vpop.f32.mrf.mxu0 }
 0x104   :  { %v2026_v11 = vpop.eup %2025  ;;  %2051 = vrcp.f32 %v1008_v44  ;;  %v1013_v28 = vadd.f32 1.0, %v2024_v48  ;;  %v2683_v38 = vadd.f32 %v2363_v36, %v694_v52  ;;  %v692_v60 = vmul.f32 %v2358_v34, %v586_v5 }
 0x105   :  { %v2028_v21 = vpop.eup %2027  ;;  %2053 = vrcp.f32 %v981_v14  ;;  %v979_v17 = vadd.f32 1.0, %v2026_v11  ;;  %v1633_v46 = vmul.f32 -1.442695, %v2665_v20  ;;  %v2688_v49 = vadd.f32 %v2363_v36, %v660_v56  ;;  %v589_v11 = vpop.f32.mrf.mxu1 }
 0x106   :  { %v2030_v23 = vpop.eup %2029  ;;  %2055 = vrcp.f32 %v1013_v28  ;;  %v1011_v35 = vadd.f32 1.0, %v2028_v21  ;;  %v1665_v55 = vmul.f32 -1.442695, %v2668_v30  ;;  %v2692_v19 = vadd.f32 %v2363_v36, %v692_v60 }
 0x107   :  { %v2032_v43 = vpop.eup %2031  ;;  %2057 = vrcp.f32 %v979_v17  ;;  %v982_v45 = vadd.f32 1.0, %v2030_v23  ;;  %v1631_v12 = vmul.f32 -1.442695, %v2671_v24  ;;  %v2696_v58 = vmul.f32 -1.442695, %v2675_v50 }
 0x108   :  { %v2034_v13 = vpop.eup %2033  ;;  %2059 = vrcp.f32 %v1011_v35  ;;  %v1014_v51 = vadd.f32 1.0, %v2032_v43  ;;  %v2699_v3 = vmul.f32 -1.442695, %v2679_v32  ;;  %v2702_v44 = vmul.f32 -1.442695, %v2683_v38 }
 0x109   :  { %v2036_v57 = vpop.eup %2035  ;;  %2061 = vrcp.f32 %v982_v45  ;;  %v980_v41 = vadd.f32 1.0, %v2034_v13  ;;  %v2706_v42 = vmul.f32 -1.442695, %v2688_v49  ;;  %v663_v5 = vmul.f32 %v1864_v39, %v2358_v34  ;;  %v1867_v45 = vpop.f32.mrf.mxu0 }
 0x10a   :  { %v2038_v62 = vpop.eup %2037  ;;  %2063 = vrcp.f32 %v1014_v51  ;;  %v1012_v63 = vadd.f32 1.0, %v2036_v57  ;;  %v2711_v21 = vmul.f32 -1.442695, %v2692_v19  ;;  %v695_v17 = vmul.f32 %v1896_v4, %v2358_v34 }
 0x10b   :  { %v2040_v48 = vpop.eup %2039  ;;  %v1169_v14 = vmul.f32 %v2038_v62, %v2450_v54  ;;  %2065 = vrcp.f32 %v980_v41  ;;  %v661_v35 = vmul.f32 %v2358_v34, %v461_v10  ;;  %v2727_v4 = vadd.f32 %v2363_v36, %v663_v5 }
 0x10c   :  { %v2042_v28 = vpop.eup %2041  ;;  %v1201_v52 = vmul.f32 %v2040_v48, %v2453_v59  ;;  %2067 = vrcp.f32 %v1012_v63  ;;  %v693_v59 = vmul.f32 %v2358_v34, %v589_v11  ;;  %v2736_v41 = vadd.f32 %v2363_v36, %v695_v17 }
 0x10d   :  { %v2044_v56 = vpop.eup %2043  ;;  %v1752_v23 = vpack.c.bf16 %v1169_v14, %v1169_v14  ;;  %v1167_v54 = vmul.f32 %v2042_v28, %v2456_v1  ;;  %2069 = vpow2.f32 %v2651_v8  ;;  %v2744_v63 = vadd.f32 %v2363_v36, %v661_v35  ;;  %v474_v14 = vpop.f32.mrf.mxu0 }
 0x10e   :  { %v2046_v60 = vpop.eup %2045  ;;  %v1784_v39 = vpack.c.bf16 %v1201_v52, %v1201_v52  ;;  %v1199_v43 = vmul.f32 %v2044_v56, %v2459_v2  ;;  %2071 = vpow2.f32 %v2655_v22  ;;  %v1899_v2 = vpop.f32.mrf.mxu1  ;;  %v2752_v48 = vadd.f32 %v2363_v36, %v693_v59 }
 0x10f   :  { %v2048_v13 = vpop.eup %2047  ;;  %1490 = vst.msk [vmem:[%s3094_s4 + $0x28] sm:$0xf] %vm1479_vm2, %v1752_v23  ;;  %v1750_v1 = vpack.c.bf16 %v1167_v54, %v1167_v54  ;;  %v1170_v8 = vmul.f32 %v2046_v60, %v2478_v31  ;;  %2073 = vpow2.f32 %v2659_v16  ;;  %v1637_v11 = vmul.f32 -1.442695, %v2727_v4  ;;  %v1868_v60 = vpop.f32.mrf.mxu0 }
 0x110   :  { %v2050_v51 = vpop.eup %2049  ;;  %1522 = vst.msk [vmem:[%s3094_s4 + $0xa8] sm:$0xf] %vm1479_vm2, %v1784_v39  ;;  %v1782_v22 = vpack.c.bf16 %v1199_v43, %v1199_v43  ;;  %v1202_v57 = vmul.f32 %v2048_v13, %v2481_v33  ;;  %2075 = vpow2.f32 %v2662_v29  ;;  %v602_v28 = vpop.f32.mrf.mxu1  ;;  %v1669_v17 = vmul.f32 -1.442695, %v2736_v41 }
 0x111   :  { %v2052_v31 = vpop.eup %2051  ;;  %1488 = vst.msk [vmem:[%s3094_s4 + $0x20] sm:$0xf] %vm1479_vm2, %v1750_v1  ;;  %v1753_v16 = vpack.c.bf16 %v1170_v8, %v1170_v8  ;;  %v1168_v62 = vmul.f32 %v2050_v51, %v2484_v40  ;;  %2077 = vpow2.f32 %v1633_v46  ;;  %v1635_v23 = vmul.f32 -1.442695, %v2744_v63 }
 0x112   :  { %v2054_v10 = vpop.eup %2053  ;;  %1520 = vst.msk [vmem:[%s3094_s4 + $0xa0] sm:$0xf] %vm1479_vm2, %v1782_v22  ;;  %v1785_v33 = vpack.c.bf16 %v1202_v57, %v1202_v57  ;;  %v1200_v29 = vmul.f32 %v2052_v31, %v2488_v47  ;;  %2079 = vpow2.f32 %v1665_v55  ;;  %v1667_v35 = vmul.f32 -1.442695, %v2752_v48  ;;  %v1900_v59 = vpop.f32.mrf.mxu1 }
 0x113   :  { %v2056_v5 = vpop.eup %2055  ;;  %1491 = vst.msk [vmem:[%s3094_s4 + $0x2c] sm:$0xf] %vm1479_vm2, %v1753_v16  ;;  %v1751_v40 = vpack.c.bf16 %v1168_v62, %v1168_v62  ;;  %v1173_v46 = vmul.f32 %v2054_v10, %v2492_v53  ;;  %2081 = vpow2.f32 %v1631_v12  ;;  %v666_v43 = vmul.f32 %v1867_v45, %v2358_v34  ;;  %v477_v22 = vpop.f32.mrf.mxu0 }
 0x114   :  { %v2058_v52 = vpop.eup %2057  ;;  %1523 = vst.msk [vmem:[%s3094_s4 + $0xac] sm:$0xf] %vm1479_vm2, %v1785_v33  ;;  %v1783_v47 = vpack.c.bf16 %v1200_v29, %v1200_v29  ;;  %v1205_v55 = vmul.f32 %v2056_v5, %v2496_v61  ;;  %2083 = vpow2.f32 %v2696_v58  ;;  %v698_v1 = vmul.f32 %v1899_v2, %v2358_v34  ;;  %v605_v62 = vpop.f32.mrf.mxu1 }
 0x115   :  { %v2060_v56 = vpop.eup %2059  ;;  %1489 = vst.msk [vmem:[%s3094_s4 + $0x24] sm:$0xf] %vm1479_vm2, %v1751_v40  ;;  %v1756_v53 = vpack.c.bf16 %v1173_v46, %v1173_v46  ;;  %v1171_v12 = vmul.f32 %v2058_v52, %v2501_v7  ;;  %2085 = vpow2.f32 %v2699_v3  ;;  %v664_v45 = vmul.f32 %v2358_v34, %v474_v14  ;;  %v1871_v52 = vpop.f32.mrf.mxu0 }
 0x116   :  { %v2062_v54 = vpop.eup %2061  ;;  %1521 = vst.msk [vmem:[%s3094_s4 + $0xa4] sm:$0xf] %vm1479_vm2, %v1783_v47  ;;  %v1788_v61 = vpack.c.bf16 %v1205_v55, %v1205_v55  ;;  %v1203_v58 = vmul.f32 %v2060_v56, %v2505_v15  ;;  %2087 = vpow2.f32 %v2702_v44  ;;  %v696_v2 = vmul.f32 %v2358_v34, %v602_v28 }
 0x117   :  { %v2064_v39 = vpop.eup %2063  ;;  %1494 = vst.msk [vmem:[%s3094_s4 + $0x38] sm:$0xf] %vm1479_vm2, %v1756_v53  ;;  %v1754_v7 = vpack.c.bf16 %v1171_v12, %v1171_v12  ;;  %v1174_v3 = vmul.f32 %v2062_v54, %v2540_v9  ;;  %2089 = vpow2.f32 %v2706_v42  ;;  %v2812_v16 = vadd.f32 %v2363_v36, %v666_v43  ;;  %v1903_v53 = vpop.f32.mrf.mxu1  ;;  %v2853_v43 = vld [vmem:[%s3092_s2] ss:$0 sm:$0xff] }
 0x118   :  { %v2066_v15 = vpop.eup %2065  ;;  %1526 = vst.msk [vmem:[%s3094_s4 + $0xb8] sm:$0xf] %vm1479_vm2, %v1788_v61  ;;  %v1786_v44 = vpack.c.bf16 %v1203_v58, %v1203_v58  ;;  %v1206_v13 = vmul.f32 %v2064_v39, %v2549_v18  ;;  %2091 = vpow2.f32 %v2711_v21  ;;  %v2819_v29 = vadd.f32 %v2363_v36, %v698_v1 }
 0x119   :  { %v2068_v8 = vpop.eup %2067  ;;  %1492 = vst.msk [vmem:[%s3094_s4 + $0x30] sm:$0xf] %vm1479_vm2, %v1754_v7  ;;  %v1757_v9 = vpack.c.bf16 %v1174_v3, %v1174_v3  ;;  %v1172_v42 = vmul.f32 %v2066_v15, %v2557_v25  ;;  %2093 = vpow2.f32 %v1637_v11  ;;  %v2826_v40 = vadd.f32 %v2363_v36, %v664_v45  ;;  %v490_v15 = vpop.f32.mrf.mxu0 }
 0x11a   :  { %v2070_v51 = vpop.eup %2069  ;;  %1524 = vst.msk [vmem:[%s3094_s4 + $0xb0] sm:$0xf] %vm1479_vm2, %v1786_v44  ;;  %v1789_v18 = vpack.c.bf16 %v1206_v13, %v1206_v13  ;;  %v1204_v21 = vmul.f32 %v2068_v8, %v2565_v37  ;;  %2095 = vpow2.f32 %v1669_v17  ;;  %v2833_v28 = vadd.f32 %v2363_v36, %v696_v2 }
 0x11b   :  { %v2072_v57 = vpop.eup %2071  ;;  %1495 = vst.msk [vmem:[%s3094_s4 + $0x3c] sm:$0xf] %vm1479_vm2, %v1757_v9  ;;  %v1755_v25 = vpack.c.bf16 %v1172_v42, %v1172_v42  ;;  %v985_v31 = vadd.f32 1.0, %v2070_v51  ;;  %2097 = vpow2.f32 %v1635_v23  ;;  %v2836_v17 = vmul.f32 -1.442695, %v2812_v16  ;;  %v618_v9 = vpop.f32.mrf.mxu1 }
 0x11c   :  { %v2074_v10 = vpop.eup %2073  ;;  %1527 = vst.msk [vmem:[%s3094_s4 + $0xbc] sm:$0xf] %vm1479_vm2, %v1789_v18  ;;  %v1787_v37 = vpack.c.bf16 %v1204_v21, %v1204_v21  ;;  %v1017_v33 = vadd.f32 1.0, %v2072_v57  ;;  %2099 = vpow2.f32 %v1667_v35  ;;  %v667_v56 = vmul.f32 %v1868_v60, %v2358_v34 }
 0x11d   :  { %v2076_v14 = vpop.eup %2075  ;;  %1493 = vst.msk [vmem:[%s3094_s4 + $0x34] sm:$0xf] %vm1479_vm2, %v1755_v25  ;;  %2101 = vrcp.f32 %v985_v31  ;;  %v983_v5 = vadd.f32 1.0, %v2074_v10  ;;  %v2840_v54 = vmul.f32 -1.442695, %v2819_v29  ;;  %v699_v61 = vmul.f32 %v1900_v59, %v2358_v34 }
 0x11e   :  { %v2078_v46 = vpop.eup %2077  ;;  %1525 = vst.msk [vmem:[%s3094_s4 + $0xb4] sm:$0xf] %vm1479_vm2, %v1787_v37  ;;  %2103 = vrcp.f32 %v1017_v33  ;;  %v1015_v11 = vadd.f32 1.0, %v2076_v14  ;;  %v2844_v35 = vmul.f32 -1.442695, %v2826_v40  ;;  %v665_v39 = vmul.f32 %v2358_v34, %v477_v22 }
 0x11f   :  { %v2080_v47 = vpop.eup %2079  ;;  %2105 = vrcp.f32 %v983_v5  ;;  %v986_v55 = vadd.f32 1.0, %v2078_v46  ;;  %v2848_v3 = vmul.f32 -1.442695, %v2833_v28  ;;  %v697_v59 = vmul.f32 %v2853_v43, %v605_v62  ;;  %v2859_v34 = vld [vmem:[%s3093_s3] ss:$0 sm:$0xff] }
 0x120   :  { %v2082_v12 = vpop.eup %2081  ;;  %2107 = vrcp.f32 %v1015_v11  ;;  %v1018_v23 = vadd.f32 1.0, %v2080_v47  ;;  %v2862_v1 = vadd.f32 %v2859_v34, %v667_v56  ;;  %v670_v8 = vmul.f32 %v2853_v43, %v1871_v52 }
 0x121   :  { %v2084_v36 = vpop.eup %2083  ;;  %2109 = vrcp.f32 %v986_v55  ;;  %v984_v58 = vadd.f32 1.0, %v2082_v12  ;;  %v2866_v51 = vadd.f32 %v2859_v34, %v699_v61  ;;  %v702_v18 = vmul.f32 %v2853_v43, %v1903_v53  ;;  %v1872_v55 = vpop.f32.mrf.mxu0 }
 0x122   :  { %v2086_v7 = vpop.eup %2085  ;;  %2111 = vrcp.f32 %v1018_v23  ;;  %v1016_v60 = vadd.f32 1.0, %v2084_v36  ;;  %v2870_v22 = vadd.f32 %v2859_v34, %v665_v39  ;;  %v668_v57 = vmul.f32 %v2853_v43, %v490_v15  ;;  %v1904_v61 = vpop.f32.mrf.mxu1 }
 0x123   :  { %v2088_v44 = vpop.eup %2087  ;;  %2113 = vrcp.f32 %v984_v58  ;;  %v989_v13 = vadd.f32 1.0, %v2086_v7  ;;  %v2874_v62 = vadd.f32 %v2859_v34, %v697_v59  ;;  %v700_v10 = vmul.f32 %v2853_v43, %v618_v9 }
 0x124   :  { %v2090_v42 = vpop.eup %2089  ;;  %2115 = vrcp.f32 %v1016_v60  ;;  %v1021_v45 = vadd.f32 1.0, %v2088_v44  ;;  %v2878_v14 = vadd.f32 %v2859_v34, %v670_v8  ;;  %v2881_v5 = vadd.f32 %v2859_v34, %v702_v18 }
 0x125   :  { %v2092_v21 = vpop.eup %2091  ;;  %2117 = vrcp.f32 %v989_v13  ;;  %v987_v2 = vadd.f32 1.0, %v2090_v42  ;;  %v1641_v52 = vmul.f32 -1.442695, %v2862_v1  ;;  %v2885_v47 = vadd.f32 %v2859_v34, %v668_v57  ;;  %v621_v57 = vpop.f32.mrf.mxu1 }
 0x126   :  { %v2094_v25 = vpop.eup %2093  ;;  %2119 = vrcp.f32 %v1021_v45  ;;  %v1019_v31 = vadd.f32 1.0, %v2092_v21  ;;  %v1673_v12 = vmul.f32 -1.442695, %v2866_v51  ;;  %v2889_v23 = vadd.f32 %v2859_v34, %v700_v10  ;;  %v493_v45 = vpop.f32.mrf.mxu0 }
 0x127   :  { %v2096_v37 = vpop.eup %2095  ;;  %2121 = vrcp.f32 %v987_v2  ;;  %v990_v33 = vadd.f32 1.0, %v2094_v25  ;;  %v1639_v39 = vmul.f32 -1.442695, %v2870_v22  ;;  %v1671_v7 = vmul.f32 -1.442695, %v2874_v62 }
 0x128   :  { %v2098_v46 = vpop.eup %2097  ;;  %2123 = vrcp.f32 %v1019_v31  ;;  %v1022_v11 = vadd.f32 1.0, %v2096_v37  ;;  %v1644_v15 = vmul.f32 -1.442695, %v2878_v14  ;;  %v2896_v44 = vmul.f32 -1.442695, %v2881_v5 }
 0x129   :  { %v2100_v56 = vpop.eup %2099  ;;  %2125 = vrcp.f32 %v990_v33  ;;  %v988_v53 = vadd.f32 1.0, %v2098_v46  ;;  %v2900_v9 = vmul.f32 -1.442695, %v2885_v47  ;;  %v671_v42 = vmul.f32 %v2853_v43, %v1872_v55 }
 0x12a   :  { %v2102_v36 = vpop.eup %2101  ;;  %2127 = vrcp.f32 %v1022_v11  ;;  %v1020_v58 = vadd.f32 1.0, %v2100_v56  ;;  %v2906_v2 = vmul.f32 -1.442695, %v2889_v23  ;;  %v703_v10 = vmul.f32 %v2853_v43, %v1904_v61 }
 0x12b   :  { %v2104_v60 = vpop.eup %2103  ;;  %v1177_v59 = vmul.f32 %v2102_v36, %v2625_v26  ;;  %2129 = vrcp.f32 %v988_v53  ;;  %v669_v33 = vmul.f32 %v2853_v43, %v493_v45  ;;  %v701_v11 = vmul.f32 %v2853_v43, %v621_v57 }
 0x12c   :  { %v2106_v13 = vpop.eup %2105  ;;  %v1209_v8 = vmul.f32 %v2104_v60, %v2632_v27  ;;  %2131 = vrcp.f32 %v1020_v58  ;;  %v2931_v56 = vadd.f32 %v2859_v34, %v671_v42  ;;  %v2939_v43 = vadd.f32 %v2859_v34, %v703_v10 }
 0x12d   :  { %v2108_v18 = vpop.eup %2107  ;;  %v1760_v21 = vpack.c.bf16 %v1177_v59, %v1177_v59  ;;  %v1175_v26 = vmul.f32 %v2106_v13, %v2639_v0  ;;  %2133 = vpow2.f32 %v2836_v17  ;;  %v2947_v36 = vadd.f32 %v2859_v34, %v669_v33 }
 0x12e   :  { %v2110_v25 = vpop.eup %2109  ;;  %v1792_v31 = vpack.c.bf16 %v1209_v8, %v1209_v8  ;;  %v1207_v27 = vmul.f32 %v2108_v18, %v2642_v6  ;;  %2135 = vpow2.f32 %v2840_v54  ;;  %v2955_v60 = vadd.f32 %v2859_v34, %v701_v11 }
 0x12f   :  { %v2112_v37 = vpop.eup %2111  ;;  %1498 = vst.msk [vmem:[%s3094_s4 + $0x48] sm:$0xf] %vm1479_vm2, %v1760_v21  ;;  %v1758_v0 = vpack.c.bf16 %v1175_v26, %v1175_v26  ;;  %v1178_v17 = vmul.f32 %v2110_v25, %v2665_v20  ;;  %2137 = vpow2.f32 %v2844_v35  ;;  %v1645_v13 = vmul.f32 -1.442695, %v2931_v56 }
 0x130   :  { %v2114_v46 = vpop.eup %2113  ;;  %1530 = vst.msk [vmem:[%s3094_s4 + $0xc8] sm:$0xf] %vm1479_vm2, %v1792_v31  ;;  %v1790_v6 = vpack.c.bf16 %v1207_v27, %v1207_v27  ;;  %v1210_v54 = vmul.f32 %v2112_v37, %v2668_v30  ;;  %2139 = vpow2.f32 %v2848_v3  ;;  %v1643_v45 = vmul.f32 -1.442695, %v2947_v36 }
 0x131   :  { %v2116_v55 = vpop.eup %2115  ;;  %1496 = vst.msk [vmem:[%s3094_s4 + $0x40] sm:$0xf] %vm1479_vm2, %v1758_v0  ;;  %v1761_v20 = vpack.c.bf16 %v1178_v17, %v1178_v17  ;;  %v1176_v35 = vmul.f32 %v2114_v46, %v2671_v24  ;;  %2141 = vpow2.f32 %v1641_v52  ;;  %v1675_v21 = vmul.f32 -1.442695, %v2955_v60 }
 0x132   :  { %v2118_v53 = vpop.eup %2117  ;;  %1528 = vst.msk [vmem:[%s3094_s4 + $0xc0] sm:$0xf] %vm1479_vm2, %v1790_v6  ;;  %v1793_v30 = vpack.c.bf16 %v1210_v54, %v1210_v54  ;;  %v1208_v3 = vmul.f32 %v2116_v55, %v2675_v50  ;;  %2143 = vpow2.f32 %v1673_v12 }
 0x133   :  { %v2120_v61 = vpop.eup %2119  ;;  %1499 = vst.msk [vmem:[%s3094_s4 + $0x4c] sm:$0xf] %vm1479_vm2, %v1761_v20  ;;  %v1759_v24 = vpack.c.bf16 %v1176_v35, %v1176_v35  ;;  %v1181_v52 = vmul.f32 %v2118_v53, %v2679_v32  ;;  %2145 = vpow2.f32 %v1639_v39 }
 0x134   :  { %v2122_v58 = vpop.eup %2121  ;;  %1531 = vst.msk [vmem:[%s3094_s4 + $0xcc] sm:$0xf] %vm1479_vm2, %v1793_v30  ;;  %v1791_v50 = vpack.c.bf16 %v1208_v3, %v1208_v3  ;;  %v1213_v12 = vmul.f32 %v2120_v61, %v2683_v38  ;;  %2147 = vpow2.f32 %v1671_v7  ;;  %v1677_v7 = vmul.f32 -1.442695, %v2939_v43 }
 0x135   :  { %v2124_v59 = vpop.eup %2123  ;;  %1497 = vst.msk [vmem:[%s3094_s4 + $0x44] sm:$0xf] %vm1479_vm2, %v1759_v24  ;;  %v1764_v32 = vpack.c.bf16 %v1181_v52, %v1181_v52  ;;  %v1179_v39 = vmul.f32 %v2122_v58, %v2688_v49  ;;  %2149 = vpow2.f32 %v1644_v15 }
 0x136   :  { %v2126_v8 = vpop.eup %2125  ;;  %1529 = vst.msk [vmem:[%s3094_s4 + $0xc4] sm:$0xf] %vm1479_vm2, %v1791_v50  ;;  %v1796_v38 = vpack.c.bf16 %v1213_v12, %v1213_v12  ;;  %v1211_v34 = vmul.f32 %v2124_v59, %v2692_v19  ;;  %2151 = vpow2.f32 %v2896_v44 }
 0x137   :  { %v2128_v42 = vpop.eup %2127  ;;  %1502 = vst.msk [vmem:[%s3094_s4 + $0x58] sm:$0xf] %vm1479_vm2, %v1764_v32  ;;  %v1762_v49 = vpack.c.bf16 %v1179_v39, %v1179_v39  ;;  %v1182_v15 = vmul.f32 %v2126_v8, %v2727_v4  ;;  %2153 = vpow2.f32 %v2900_v9 }
 0x138   :  { %v2130_v18 = vpop.eup %2129  ;;  %1534 = vst.msk [vmem:[%s3094_s4 + $0xd8] sm:$0xf] %vm1479_vm2, %v1796_v38  ;;  %v1794_v19 = vpack.c.bf16 %v1211_v34, %v1211_v34  ;;  %v1214_v44 = vmul.f32 %v2128_v42, %v2736_v41  ;;  %2155 = vpow2.f32 %v2906_v2 }
 0x139   :  { %v2132_v26 = vpop.eup %2131  ;;  %1500 = vst.msk [vmem:[%s3094_s4 + $0x50] sm:$0xf] %vm1479_vm2, %v1762_v49  ;;  %v1765_v4 = vpack.c.bf16 %v1182_v15, %v1182_v15  ;;  %v1180_v9 = vmul.f32 %v2130_v18, %v2744_v63  ;;  %2157 = vpow2.f32 %v1645_v13 }
 0x13a   :  { %v2134_v57 = vpop.eup %2133  ;;  %1532 = vst.msk [vmem:[%s3094_s4 + $0xd0] sm:$0xf] %vm1479_vm2, %v1794_v19  ;;  %v1797_v41 = vpack.c.bf16 %v1214_v44, %v1214_v44  ;;  %v1212_v2 = vmul.f32 %v2132_v26, %v2752_v48  ;;  %2159 = vpow2.f32 %v1677_v7 }
 0x13b   :  { %v2136_v25 = vpop.eup %2135  ;;  %1503 = vst.msk [vmem:[%s3094_s4 + $0x5c] sm:$0xf] %vm1479_vm2, %v1765_v4  ;;  %v1763_v31 = vpack.c.bf16 %v1180_v9, %v1180_v9  ;;  %v993_v27 = vadd.f32 1.0, %v2134_v57  ;;  %2161 = vpow2.f32 %v1643_v45 }
 0x13c   :  { %v2138_v63 = vpop.eup %2137  ;;  %1535 = vst.msk [vmem:[%s3094_s4 + $0xdc] sm:$0xf] %vm1479_vm2, %v1797_v41  ;;  %v1795_v10 = vpack.c.bf16 %v1212_v2, %v1212_v2  ;;  %v1025_v37 = vadd.f32 1.0, %v2136_v25  ;;  %2163 = vpow2.f32 %v1675_v21 }
 0x13d   :  { %v2140_v48 = vpop.eup %2139  ;;  %1501 = vst.msk [vmem:[%s3094_s4 + $0x54] sm:$0xf] %vm1479_vm2, %v1763_v31  ;;  %2165 = vrcp.f32 %v993_v27  ;;  %v991_v0 = vadd.f32 1.0, %v2138_v63 }
 0x13e   :  { %v2142_v17 = vpop.eup %2141  ;;  %1533 = vst.msk [vmem:[%s3094_s4 + $0xd4] sm:$0xf] %vm1479_vm2, %v1795_v10  ;;  %2167 = vrcp.f32 %v1025_v37  ;;  %v1023_v33 = vadd.f32 1.0, %v2140_v48 }
 0x13f   :  { %v2144_v46 = vpop.eup %2143  ;;  %2169 = vrcp.f32 %v991_v0  ;;  %v994_v6 = vadd.f32 1.0, %v2142_v17 }
 0x140   :  { %v2146_v54 = vpop.eup %2145  ;;  %2171 = vrcp.f32 %v1023_v33  ;;  %v1026_v11 = vadd.f32 1.0, %v2144_v46 }
 0x141   :  { %v2148_v55 = vpop.eup %2147  ;;  %2173 = vrcp.f32 %v994_v6  ;;  %v992_v20 = vadd.f32 1.0, %v2146_v54 }
 0x142   :  { %v2150_v35 = vpop.eup %2149  ;;  %2175 = vrcp.f32 %v1026_v11  ;;  %v1024_v53 = vadd.f32 1.0, %v2148_v55 }
 0x143   :  { %v2152_v30 = vpop.eup %2151  ;;  %2177 = vrcp.f32 %v992_v20  ;;  %v997_v3 = vadd.f32 1.0, %v2150_v35 }
 0x144   :  { %v2154_v61 = vpop.eup %2153  ;;  %2179 = vrcp.f32 %v1024_v53  ;;  %v1029_v24 = vadd.f32 1.0, %v2152_v30 }
 0x145   :  { %v2156_v52 = vpop.eup %2155  ;;  %2181 = vrcp.f32 %v997_v3  ;;  %v995_v58 = vadd.f32 1.0, %v2154_v61 }
 0x146   :  { %v2158_v50 = vpop.eup %2157  ;;  %2183 = vrcp.f32 %v1029_v24  ;;  %v1027_v12 = vadd.f32 1.0, %v2156_v52 }
 0x147   :  { %v2160_v59 = vpop.eup %2159  ;;  %2185 = vrcp.f32 %v995_v58  ;;  %v998_v32 = vadd.f32 1.0, %v2158_v50 }
 0x148   :  { %v2162_v39 = vpop.eup %2161  ;;  %2187 = vrcp.f32 %v1027_v12  ;;  %v1030_v13 = vadd.f32 1.0, %v2160_v59 }
 0x149   :  { %v2164_v8 = vpop.eup %2163  ;;  %2189 = vrcp.f32 %v998_v32  ;;  %v996_v38 = vadd.f32 1.0, %v2162_v39 }
 0x14a   :  { %v2166_v34 = vpop.eup %2165  ;;  %2191 = vrcp.f32 %v1030_v13  ;;  %v1028_v7 = vadd.f32 1.0, %v2164_v8 }
 0x14b   :  { %v2168_v42 = vpop.eup %2167  ;;  %v1185_v49 = vmul.f32 %v2166_v34, %v2812_v16  ;;  %2193 = vrcp.f32 %v996_v38 }
 0x14c   :  { %v2170_v15 = vpop.eup %2169  ;;  %v1217_v45 = vmul.f32 %v2168_v42, %v2819_v29  ;;  %2195 = vrcp.f32 %v1028_v7 }
 0x14d   :  { %v2172_v18 = vpop.eup %2171  ;;  %v1768_v19 = vpack.c.bf16 %v1185_v49, %v1185_v49  ;;  %v1183_v44 = vmul.f32 %v2170_v15, %v2826_v40 }
 0x14e   :  { %v2174_v21 = vpop.eup %2173  ;;  %v1800_v26 = vpack.c.bf16 %v1217_v45, %v1217_v45  ;;  %v1215_v4 = vmul.f32 %v2172_v18, %v2833_v28 }
 0x14f   :  { %v2176_v9 = vpop.eup %2175  ;;  %1506 = vst.msk [vmem:[%s3094_s4 + $0x68] sm:$0xf] %vm1479_vm2, %v1768_v19  ;;  %v1766_v16 = vpack.c.bf16 %v1183_v44, %v1183_v44  ;;  %v1186_v57 = vmul.f32 %v2174_v21, %v2862_v1 }
 0x150   :  { %v2178_v41 = vpop.eup %2177  ;;  %1538 = vst.msk [vmem:[%s3094_s4 + $0xe8] sm:$0xf] %vm1479_vm2, %v1800_v26  ;;  %v1798_v29 = vpack.c.bf16 %v1215_v4, %v1215_v4  ;;  %v1218_v40 = vmul.f32 %v2176_v9, %v2866_v51 }
 0x151   :  { %v2180_v2 = vpop.eup %2179  ;;  %1504 = vst.msk [vmem:[%s3094_s4 + $0x60] sm:$0xf] %vm1479_vm2, %v1766_v16  ;;  %v1769_v28 = vpack.c.bf16 %v1186_v57, %v1186_v57  ;;  %v1184_v25 = vmul.f32 %v2178_v41, %v2870_v22 }
 0x152   :  { %v2182_v31 = vpop.eup %2181  ;;  %1536 = vst.msk [vmem:[%s3094_s4 + $0xe0] sm:$0xf] %vm1479_vm2, %v1798_v29  ;;  %v1801_v1 = vpack.c.bf16 %v1218_v40, %v1218_v40  ;;  %v1216_v27 = vmul.f32 %v2180_v2, %v2874_v62 }
 0x153   :  { %v2184_v63 = vpop.eup %2183  ;;  %1507 = vst.msk [vmem:[%s3094_s4 + $0x6c] sm:$0xf] %vm1479_vm2, %v1769_v28  ;;  %v1767_v51 = vpack.c.bf16 %v1184_v25, %v1184_v25  ;;  %v1189_v10 = vmul.f32 %v2182_v31, %v2878_v14 }
 0x154   :  { %v2186_v37 = vpop.eup %2185  ;;  %1539 = vst.msk [vmem:[%s3094_s4 + $0xec] sm:$0xf] %vm1479_vm2, %v1801_v1  ;;  %v1799_v22 = vpack.c.bf16 %v1216_v27, %v1216_v27  ;;  %v1221_v48 = vmul.f32 %v2184_v63, %v2881_v5 }
 0x155   :  { %v2188_v0 = vpop.eup %2187  ;;  %1505 = vst.msk [vmem:[%s3094_s4 + $0x64] sm:$0xf] %vm1479_vm2, %v1767_v51  ;;  %v1772_v62 = vpack.c.bf16 %v1189_v10, %v1189_v10  ;;  %v1187_v17 = vmul.f32 %v2186_v37, %v2885_v47 }
 0x156   :  { %v2190_v33 = vpop.eup %2189  ;;  %1537 = vst.msk [vmem:[%s3094_s4 + $0xe4] sm:$0xf] %vm1479_vm2, %v1799_v22  ;;  %v1804_v14 = vpack.c.bf16 %v1221_v48, %v1221_v48  ;;  %v1219_v46 = vmul.f32 %v2188_v0, %v2889_v23 }
 0x157   :  { %v2192_v6 = vpop.eup %2191  ;;  %1510 = vst.msk [vmem:[%s3094_s4 + $0x78] sm:$0xf] %vm1479_vm2, %v1772_v62  ;;  %v1770_v5 = vpack.c.bf16 %v1187_v17, %v1187_v17  ;;  %v1190_v54 = vmul.f32 %v2190_v33, %v2931_v56 }
 0x158   :  { %v2194_v11 = vpop.eup %2193  ;;  %1542 = vst.msk [vmem:[%s3094_s4 + $0xf8] sm:$0xf] %vm1479_vm2, %v1804_v14  ;;  %v1802_v47 = vpack.c.bf16 %v1219_v46, %v1219_v46  ;;  %v1222_v55 = vmul.f32 %v2192_v6, %v2939_v43 }
 0x159   :  { %v2196_v20 = vpop.eup %2195  ;;  %1508 = vst.msk [vmem:[%s3094_s4 + $0x70] sm:$0xf] %vm1479_vm2, %v1770_v5  ;;  %v1773_v23 = vpack.c.bf16 %v1190_v54, %v1190_v54  ;;  %v1188_v35 = vmul.f32 %v2194_v11, %v2947_v36 }
 0x15a   :  { %1540 = vst.msk [vmem:[%s3094_s4 + $0xf0] sm:$0xf] %vm1479_vm2, %v1802_v47  ;;  %v1805_v56 = vpack.c.bf16 %v1222_v55, %v1222_v55  ;;  %v1220_v53 = vmul.f32 %v2196_v20, %v2955_v60 }
 0x15b   :  { %1511 = vst.msk [vmem:[%s3094_s4 + $0x7c] sm:$0xf] %vm1479_vm2, %v1773_v23  ;;  %v1771_v43 = vpack.c.bf16 %v1188_v35, %v1188_v35 }
 0x15c   :  { %1543 = vst.msk [vmem:[%s3094_s4 + $0xfc] sm:$0xf] %vm1479_vm2, %v1805_v56  ;;  %v1803_v36 = vpack.c.bf16 %v1220_v53, %v1220_v53 }
 0x15d   :  { %1509 = vst.msk [vmem:[%s3094_s4 + $0x74] sm:$0xf] %vm1479_vm2, %v1771_v43 }
 0x15e   :  { %1541 = vst.msk [vmem:[%s3094_s4 + $0xf4] sm:$0xf] %vm1479_vm2, %v1803_v36 }

// kernel: gelan_forward.25
= control target key start
LH: loop header
LB: loop body
LE: loop exit
PB: predicated region body
PF: predicated region fallthrough
CT: control target
= control target key end

     0   :  { %s3084_s27 = smov 0   ;;  %s3086_s28 = smov 0   ;;  %s3929_s0 = inlined_call_operand.vmem [shape: bf16[2,288,4], index: 0, kind: input, shape index: {}, may-alias: {0,1}]   ;;  %s3930_s1 = inlined_call_operand.vmem [shape: bf16[2,288,4], index: 1, kind: input, shape index: {}, may-alias: {0,1}]   ;;  %s3931_s2 = inlined_call_operand.vmem [shape: bf16[9,4,2], index: 2, kind: input, shape index: {}]   ;;  %s3932_s3 = inlined_call_operand.vmem [shape: f32[1,2], index: 3, kind: input, shape index: {}]   ;;  %s3933_s4 = inlined_call_operand.vmem [shape: f32[1,2], index: 4, kind: input, shape index: {}]   ;;  %s3934_s5 = inlined_call_operand.vmem [shape: f32[128,1], index: 5, kind: input, shape index: {}]   ;;  %s3935_s6 = inlined_call_operand.vmem [shape: f32[128,1], index: 6, kind: input, shape index: {}]   ;;  %s3936_s7 = inlined_call_operand.vmem [shape: bf16[2,256,2], index: 7, kind: input, shape index: {}]   ;;  %s3937_s8 = inlined_call_operand.vmem [shape: bf16[2,256,2], index: 8, kind: output, shape index: {}]  }
   0x1   :  { %s3088_s29 = smov 0   ;;  %s3090_s30 = smov 0  }
   0x2   :  { %s3092_s9 = smov 0  }
   0x3 LB: > { %s27_s10 = sadd.s32 1, %s3028_s29  ;;  %s30_s11 = sadd.s32 1, %s3032_s30  ;;  %s3036_s9 = sphi %s3092_s9, %s18_s9   ;;  %s3032_s30 = sphi %s3090_s30, %s3941_s30   ;;  %s3028_s29 = sphi %s3088_s29, %s3940_s29   ;;  %s3024_s28 = sphi %s3086_s28, %s3939_s28   ;;  %s3020_s27 = sphi %s3084_s27, %s3938_s27  }
   0x4   : > { %p28_p0 = scmp.ge.s32.totalorder %s27_s10, 2  ;;  %p2423_p1 = scmp.ge.s32.totalorder %s3036_s9, 1 }
   0x5   : > { %p333_p2 = scmp.lt.s32.totalorder %s3036_s9, 5 }
   0x6   : > { %s3943_s10 = smov (%p28_p0, %s27_s10), 0  ;;  %s3945_s11 = smov (!%p28_p0, %s30_s11), %s3032_s30 }
   0x7   : > { %p334_p3 = pnand %p2423_p1, %p333_p2  ;;  %p32_p4 = scmp.ge.s32.totalorder %s3945_s11, 2 }
   0x8   : > { %s3117_s14 = sshll.u32 (!%p334_p3), %s3020_s27, 4  ;;  %p404_p5 = scmp.lt.s32.totalorder (!%p334_p3), %s3024_s28, 1 }
   0x9   : > { %s3947_s11 = smov (%p32_p4, %s3945_s11), 0  ;;  %337 = sbr.rel (%p334_p3) target bundleno = 429 (0x1ad), region = 52 }
   0xa   : > { %p406_p6 = scmp.lt.s32.totalorder (!%p334_p3), %s3117_s14, 35  ;;  %s2617_s21 = sadd.s32 (!%p334_p3), 16, %s3117_s14 }
   0xb   : > { %p422_p7 = scmp.lt.s32.totalorder (!%p334_p3), %s2617_s21, 35  ;;  %p434_p8 = scmp.lt.s32.totalorder (!%p334_p3), %s3117_s14, 31 }
   0xe   : > { %v2446_v0 = vld [vmem:[%s3931_s2 + $0x8] sm:$0x3]  ;;  %vm551_vm0 = vcmask 1041408   ;;  %v2445_v2 = vld [vmem:[%s3931_s2 + $0x2] sm:$0x3]  ;;  %s3949_s28 = smov (!%p404_p5, %s3024_s28), 1 }
   0xf   : > { %2871 = vmatprep.subr.msk.bf16.mxu1 %vm551_vm0, %v2446_v0  ;;  %2870 = vmatprep.subr.msk.bf16.mxu0 %vm551_vm0, %v2446_v0  ;;  %v553_v1 = vsel %vm551_vm0, %v2446_v0, 0  ;;  %v2463_v3 = vld [vmem:[%s3931_s2 + $0xe] sm:$0x3]  ;;  %s407_s19 = scalar_select %p406_p6, %s3117_s14, 35  ;;  %v3038_v4 = vmov 0   ;;  %v1298_v5 = vld [vmem:[%s3934_s5 + $0x10] sm:$0xff] }
  0x10   : > { %2869 = vmatpush3.bf16.msra.mxu1 %v553_v1  ;;  %2707 = vmatpush3.bf16.msra.mxu0 %v553_v1  ;;  %s2880_s20 = smul.u32 36, %s3949_s28  ;;  %v1296_v6 = vld [vmem:[%s3934_s5] sm:$0xff]  ;;  %vm526_vm1 = vcmask 31744   ;;  %v1299_v7 = vld [vmem:[%s3934_s5 + $0x18] sm:$0xff]  ;;  %v1297_v8 = vld [vmem:[%s3934_s5 + $0x8] sm:$0xff]  ;;  %s3951_s21 = smov (!%p422_p7, %s2617_s21), 35 }
  0x11   : > { %2872 = vmatprep.subr.msk.bf16.mxu1 %vm551_vm0, %v2445_v2  ;;  %2873 = vmatprep.subr.msk.bf16.mxu0 %vm551_vm0, %v2463_v3  ;;  %v656_v11 = vsel %vm551_vm0, %v2445_v2, 0  ;;  %v761_v13 = vsel %vm551_vm0, %v2463_v3, 0  ;;  %v2472_v14 = vld [vmem:[%s3931_s2 + $0x6] sm:$0x3]  ;;  %v909_v16 = vld [vmem:[%s3931_s2] sm:$0x3] }
  0x12   : > { %2923 = vset.pattern.permute.xlu1 %v3038_v4  ;;  %2922 = vset.pattern.permute.xlu0 %v3038_v4  ;;  %s409_s22 = sadd.s32 %s2880_s20, %s407_s19  ;;  %v1301_v17 = vld [vmem:[%s3934_s5 + $0x28] sm:$0xff]  ;;  %v1300_v20 = vld [vmem:[%s3934_s5 + $0x20] sm:$0xff]  ;;  %v1303_v21 = vld [vmem:[%s3934_s5 + $0x38] sm:$0xff]  ;;  %v1013_v29 = vsel %vm551_vm0, %v909_v16, 0  ;;  %v913_v30 = vsel %vm551_vm0, %v2472_v14, 0  ;;  %vm876_vm2 = vcmask 15360  }
  0x13   : > { %s2425_s27 = sshll.u32 %s409_s22, 2  ;;  %1324 = vperm.xlu1 %2923, %v1298_v5   ;;  %1314 = vperm.xlu0 %2922, %v1296_v6   ;;  %s425_s22 = sadd.s32 %s2880_s20, %s3951_s21  ;;  %v1302_v25 = vld [vmem:[%s3934_s5 + $0x30] sm:$0xff]  ;;  %v1305_v26 = vld [vmem:[%s3934_s5 + $0x48] sm:$0xff]  ;;  %v1304_v27 = vld [vmem:[%s3934_s5 + $0x40] sm:$0xff]  ;;  %vm1248_vm3 = vcmask 1040384   ;;  %vm1794_vm4 = vcmask 1046528  }
  0x14   : > { %s3145_s15 = scalar_lea.vmem %s3929_s0, %s2425_s27  ;;  %s2428_s25 = sshll.u32 %s425_s22, 2  ;;  %v1307_v28 = vld [vmem:[%s3934_s5 + $0x58] sm:$0xff]  ;;  %v2489_v31 = vld [vmem:[%s3931_s2 + $0xc] sm:$0x3]  ;;  %v2499_v32 = vld [vmem:[%s3931_s2 + $0xa] sm:$0x3] }
  0x15   : > { %v3154_v9 = vld [vmem:[%s3145_s15 + $0x8] sm:$0xff]   ;;  %v3163_v12 = vld [vmem:[%s3145_s15 + $0x10] sm:$0xff]   ;;  %v3183_v18 = vld [vmem:[%s3145_s15 + $0x18] sm:$0xff]   ;;  %s3195_s16 = scalar_lea.vmem %s3930_s1, %s2428_s25  ;;  %v1461_v49 = vsel %vm551_vm0, %v2499_v32, 0  ;;  %v1115_v50 = vsel %vm551_vm0, %v2489_v31, 0  ;;  %s3953_s14 = smov (!%p434_p8, %s3117_s14), 31 }
  0x16   : > { %v3157_v10 = vld [vmem:[%s3145_s15 + $0x28] sm:$0xff]   ;;  %2708 = vmatprep.mubr.msk.bf16.mxu0 %vm526_vm1, %v3154_v9  ;;  %v3172_v15 = vld [vmem:[%s3145_s15 + $0x30] sm:$0xff]   ;;  %v3188_v19 = vld [vmem:[%s3145_s15 + $0x38] sm:$0xff]   ;;  %vm2274_vm5 = vcmask 11264  }
  0x17   : > { %1329 = vperm.xlu1 %2923, %v1299_v7   ;;  %2716 = vmatprep.mubr.msk.bf16.mxu1 %vm526_vm1, %v3157_v10  ;;  %v3207_v22 = vld [vmem:[%s3145_s15 + $0x20] sm:$0xff]   ;;  %v1306_v33 = vld [vmem:[%s3934_s5 + $0x50] sm:$0xff]  ;;  %v1309_v34 = vld [vmem:[%s3934_s5 + $0x68] sm:$0xff] }
  0x18   : > { %1319 = vperm.xlu0 %2922, %v1297_v8   ;;  %2709 = vmatmul.mubr.msk.bf16.vlgmr.msra.gmra.mxu0 %vm526_vm1, %v3163_v12  ;;  %v3211_v23 = vld [vmem:[%s3195_s16] sm:$0xff]   ;;  %v1311_v36 = vld [vmem:[%s3934_s5 + $0x78] sm:$0xff]  ;;  %v1310_v37 = vld [vmem:[%s3934_s5 + $0x70] sm:$0xff] }
  0x19   : > { %2717 = vmatmul.mubr.msk.bf16.vlgmr.msra.gmra.mxu1 %vm526_vm1, %v3172_v15  ;;  %2743 = vmatpush3.bf16.msra.mxu0 %v761_v13  ;;  %v3214_v24 = vld [vmem:[%s3145_s15] sm:$0xff]   ;;  %v1845_v38 = vld [vmem:[%s3935_s6 + $0x8] sm:$0xff]  ;;  %v1847_v40 = vld [vmem:[%s3935_s6 + $0x18] sm:$0xff]  ;;  %s2430_s15 = sshll.u32 %s3949_s28, 5 }
  0x1a   : > { %2725 = vmatpush3.bf16.msra.mxu1 %v656_v11  ;;  %2712 = vmatprep.mubr.msk.bf16.mxu0 %vm526_vm1, %v3183_v18  ;;  %v1308_v35 = vld [vmem:[%s3934_s5 + $0x60] sm:$0xff]  ;;  %v1846_v41 = vld [vmem:[%s3935_s6 + $0x10] sm:$0xff]  ;;  %v1849_v42 = vld [vmem:[%s3935_s6 + $0x28] sm:$0xff]  ;;  %s3808_s28 = sadd.s32 %s2430_s15, %s3953_s14 }
  0x1b   : > { %2720 = vmatprep.mubr.msk.bf16.mxu1 %vm526_vm1, %v3188_v19  ;;  %2874 = vmatprep.subr.msk.bf16.mxu1 %vm551_vm0, %v2472_v14  ;;  %v1844_v39 = vld [vmem:[%s3935_s6] sm:$0xff]  ;;  %v3301_v43 = vld [vmem:[%s3195_s16 + $0x8] sm:$0xff]   ;;  %v1851_v45 = vld [vmem:[%s3935_s6 + $0x38] sm:$0xff]  ;;  %s2431_s14 = sshll.u32 %s3808_s28, 2 }
  0x1c   : > { %2875 = vmatprep.subr.msk.bf16.mxu0 %vm551_vm0, %v909_v16  ;;  %1339 = vperm.xlu1 %2923, %v1301_v17   ;;  %v1848_v44 = vld [vmem:[%s3935_s6 + $0x20] sm:$0xff]  ;;  %v1850_v46 = vld [vmem:[%s3935_s6 + $0x30] sm:$0xff]  ;;  %v1853_v47 = vld [vmem:[%s3935_s6 + $0x48] sm:$0xff]  ;;  %s3825_s13 = scalar_lea.vmem %s3936_s7, %s2431_s14  ;;  %s3860_s21 = scalar_lea.vmem %s3937_s8, %s2431_s14 }
  0x1d   : > { %1334 = vperm.xlu0 %2922, %v1300_v20   ;;  %v1852_v48 = vld [vmem:[%s3935_s6 + $0x40] sm:$0xff]  ;;  %v2516_v52 = vld [vmem:[%s3931_s2 + $0x10] sm:$0x3]  ;;  %v1855_v53 = vld [vmem:[%s3935_s6 + $0x58] sm:$0xff] }
  0x1e   : > { %v2498_v51 = vld [vmem:[%s3931_s2 + $0x4] sm:$0x3]  ;;  %v1854_v54 = vld [vmem:[%s3935_s6 + $0x50] sm:$0xff]  ;;  %v1857_v55 = vld [vmem:[%s3935_s6 + $0x68] sm:$0xff]  ;;  %v1663_v59 = vsel %vm551_vm0, %v2516_v52, 0 }
  0x1f   : > { %v1856_v56 = vld [vmem:[%s3935_s6 + $0x60] sm:$0xff]  ;;  %v1859_v57 = vld [vmem:[%s3935_s6 + $0x78] sm:$0xff]  ;;  %v1858_v58 = vld [vmem:[%s3935_s6 + $0x70] sm:$0xff]  ;;  %v1561_v60 = vsel %vm551_vm0, %v2498_v51, 0 }
  0x20   : > { %2713 = vmatmul.mubr.msk.bf16.gmra.mxu0 %vm526_vm1, %v3207_v22  ;;  %1349 = vperm.xlu1 %2923, %v1303_v21  }
  0x21   : > { %2721 = vmatmul.mubr.msk.bf16.gmra.mxu1 %vm526_vm1, %v3211_v23  ;;  %2744 = vmatprep.mubr.msk.bf16.mxu0 %vm526_vm1, %v3163_v12 }
  0x22   : > { %2726 = vmatprep.mubr.msk.bf16.mxu1 %vm526_vm1, %v3214_v24  ;;  %1344 = vperm.xlu0 %2922, %v1302_v25  }
  0x24   : > { %1359 = vperm.xlu1 %2923, %v1305_v26  }
  0x26   : > { %1354 = vperm.xlu0 %2922, %v1304_v27  }
  0x28   : > { %2745 = vmatmul.mubr.msk.bf16.vlgmr.msra.gmra.mxu0 %vm526_vm1, %v3183_v18  ;;  %1369 = vperm.xlu1 %2923, %v1307_v28  }
  0x29   : > { %2727 = vmatmul.mubr.msk.bf16.vlgmr.msra.gmra.mxu1 %vm526_vm1, %v3154_v9  ;;  %2779 = vmatpush3.bf16.msra.mxu0 %v1013_v29 }
  0x2a   : > { %2761 = vmatpush3.bf16.msra.mxu1 %v913_v30  ;;  %2730 = vmatprep.mubr.msk.bf16.mxu1 %vm526_vm1, %v3163_v12 }
  0x2b   : > { %2748 = vmatprep.mubr.msk.bf16.mxu0 %vm526_vm1, %v3207_v22  ;;  %2876 = vmatprep.subr.msk.bf16.mxu1 %vm551_vm0, %v2489_v31 }
  0x2c   : > { %2877 = vmatprep.subr.msk.bf16.mxu0 %vm551_vm0, %v2499_v32  ;;  %1364 = vperm.xlu0 %2922, %v1306_v33  }
  0x2d   : > { %1379 = vperm.xlu1 %2923, %v1309_v34  }
  0x30   : > { %2749 = vmatmul.mubr.msk.bf16.gmra.mxu0 %vm526_vm1, %v3157_v10  ;;  %1374 = vperm.xlu0 %2922, %v1308_v35  }
  0x31   : > { %2731 = vmatmul.mubr.msk.bf16.gmra.mxu1 %vm526_vm1, %v3183_v18  ;;  %2752 = vmatprep.mubr.msk.bf16.mxu0 %vm526_vm1, %v3172_v15 }
  0x32   : > { %2734 = vmatprep.mubr.msk.bf16.mxu1 %vm526_vm1, %v3207_v22  ;;  %1389 = vperm.xlu1 %2923, %v1311_v36  }
  0x34   : > { %1384 = vperm.xlu0 %2922, %v1310_v37  }
  0x36   : > { %1867 = vperm.xlu1 %2923, %v1845_v38  }
  0x38   : > { %2753 = vmatmul.mubr.msk.bf16.gmra.mxu0 %vm526_vm1, %v3188_v19  ;;  %1862 = vperm.xlu0 %2922, %v1844_v39  }
  0x39   : > { %2735 = vmatmul.mubr.msk.bf16.gmra.mxu1 %vm526_vm1, %v3157_v10  ;;  %2756 = vmatprep.mubr.msk.bf16.mxu0 %vm526_vm1, %v3211_v23 }
  0x3a   : > { %2738 = vmatprep.mubr.msk.bf16.mxu1 %vm526_vm1, %v3172_v15  ;;  %1877 = vperm.xlu1 %2923, %v1847_v40  }
  0x3c   : > { %1872 = vperm.xlu0 %2922, %v1846_v41  }
  0x3e   : > { %1887 = vperm.xlu1 %2923, %v1849_v42  }
  0x40   : > { %2757 = vmatmul.mubr.msk.bf16.gmra.mxu0 %vm526_vm1, %v3301_v43  ;;  %1882 = vperm.xlu0 %2922, %v1848_v44  }
  0x41   : > { %2739 = vmatmul.mubr.msk.bf16.gmra.mxu1 %vm526_vm1, %v3188_v19  ;;  %2780 = vmatprep.mubr.msk.bf16.mxu0 %vm526_vm1, %v3214_v24 }
  0x42   : > { %2762 = vmatprep.mubr.msk.bf16.mxu1 %vm526_vm1, %v3154_v9  ;;  %1897 = vperm.xlu1 %2923, %v1851_v45  }
  0x44   : > { %1892 = vperm.xlu0 %2922, %v1850_v46  }
  0x46   : > { %1907 = vperm.xlu1 %2923, %v1853_v47  }
  0x48   : > { %2781 = vmatmul.mubr.msk.bf16.vlgmr.msra.gmra.mxu0 %vm526_vm1, %v3154_v9  ;;  %1902 = vperm.xlu0 %2922, %v1852_v48  }
  0x49   : > { %2763 = vmatmul.mubr.msk.bf16.vlgmr.msra.gmra.mxu1 %vm526_vm1, %v3163_v12  ;;  %2815 = vmatpush3.bf16.msra.mxu0 %v1461_v49 }
  0x4a   : > { %2797 = vmatpush3.bf16.msra.mxu1 %v1115_v50  ;;  %2766 = vmatprep.mubr.msk.bf16.mxu1 %vm526_vm1, %v3183_v18 }
  0x4b   : > { %2784 = vmatprep.mubr.msk.bf16.mxu0 %vm526_vm1, %v3163_v12  ;;  %2878 = vmatprep.subr.msk.bf16.mxu1 %vm551_vm0, %v2498_v51 }
  0x4c   : > { %2879 = vmatprep.subr.msk.bf16.mxu0 %vm551_vm0, %v2516_v52  ;;  %1917 = vperm.xlu1 %2923, %v1855_v53  }
  0x4d   : > { %1912 = vperm.xlu0 %2922, %v1854_v54  }
  0x50   : > { %2785 = vmatmul.mubr.msk.bf16.gmra.mxu0 %vm526_vm1, %v3183_v18  ;;  %1927 = vperm.xlu1 %2923, %v1857_v55  }
  0x51   : > { %2767 = vmatmul.mubr.msk.bf16.gmra.mxu1 %vm526_vm1, %v3207_v22  ;;  %2788 = vmatprep.mubr.msk.bf16.mxu0 %vm526_vm1, %v3207_v22 }
  0x52   : > { %2770 = vmatprep.mubr.msk.bf16.mxu1 %vm526_vm1, %v3157_v10  ;;  %1922 = vperm.xlu0 %2922, %v1856_v56  }
  0x54   : > { %1937 = vperm.xlu1 %2923, %v1859_v57  }
  0x56   : > { %1932 = vperm.xlu0 %2922, %v1858_v58  }
  0x58   : > { %2789 = vmatmul.mubr.msk.bf16.gmra.mxu0 %vm526_vm1, %v3157_v10 }
  0x59   : > { %2771 = vmatmul.mubr.msk.bf16.gmra.mxu1 %vm526_vm1, %v3172_v15  ;;  %2792 = vmatprep.mubr.msk.bf16.mxu0 %vm526_vm1, %v3172_v15 }
  0x5a   : > { %2774 = vmatprep.mubr.msk.bf16.mxu1 %vm526_vm1, %v3188_v19 }
  0x60   : > { %2793 = vmatmul.mubr.msk.bf16.gmra.mxu0 %vm526_vm1, %v3188_v19 }
  0x61   : > { %2775 = vmatmul.mubr.msk.bf16.gmra.mxu1 %vm526_vm1, %v3211_v23  ;;  %2816 = vmatprep.mubr.msk.bf16.mxu0 %vm526_vm1, %v3154_v9 }
  0x62   : > { %2798 = vmatprep.mubr.msk.bf16.mxu1 %vm526_vm1, %v3163_v12 }
  0x68   : > { %2817 = vmatmul.mubr.msk.bf16.vlgmr.msra.gmra.mxu0 %vm526_vm1, %v3163_v12 }
  0x69   : > { %2799 = vmatmul.mubr.msk.bf16.vlgmr.msra.gmra.mxu1 %vm526_vm1, %v3183_v18  ;;  %2851 = vmatpush3.bf16.msra.mxu0 %v1663_v59 }
  0x6a   : > { %2833 = vmatpush3.bf16.msra.mxu1 %v1561_v60  ;;  %2802 = vmatprep.mubr.msk.bf16.mxu1 %vm526_vm1, %v3207_v22 }
  0x6b   : > { %2820 = vmatprep.mubr.msk.bf16.mxu0 %vm526_vm1, %v3183_v18 }
  0x70   : > { %2821 = vmatmul.mubr.msk.bf16.gmra.mxu0 %vm526_vm1, %v3207_v22 }
  0x71   : > { %2803 = vmatmul.mubr.msk.bf16.gmra.mxu1 %vm526_vm1, %v3157_v10  ;;  %2824 = vmatprep.mubr.msk.bf16.mxu0 %vm526_vm1, %v3157_v10 }
  0x72   : > { %2806 = vmatprep.mubr.msk.bf16.mxu1 %vm526_vm1, %v3172_v15 }
  0x78   : > { %2825 = vmatmul.mubr.msk.bf16.gmra.mxu0 %vm526_vm1, %v3172_v15 }
  0x79   : > { %2807 = vmatmul.mubr.msk.bf16.gmra.mxu1 %vm526_vm1, %v3188_v19  ;;  %2828 = vmatprep.mubr.msk.bf16.mxu0 %vm526_vm1, %v3188_v19 }
  0x7a   : > { %2810 = vmatprep.mubr.msk.bf16.mxu1 %vm526_vm1, %v3211_v23 }
  0x80   : > { %2829 = vmatmul.mubr.msk.bf16.gmra.mxu0 %vm526_vm1, %v3211_v23 }
  0x81   : > { %2811 = vmatmul.mubr.msk.bf16.gmra.mxu1 %vm526_vm1, %v3301_v43  ;;  %2852 = vmatprep.mubr.msk.bf16.mxu0 %vm526_vm1, %v3163_v12 }
  0x82   : > { %2834 = vmatprep.mubr.msk.bf16.mxu1 %vm526_vm1, %v3214_v24 }
  0x88   : > { %2853 = vmatmul.mubr.msk.bf16.vlgmr.msra.gmra.mxu0 %vm526_vm1, %v3183_v18 }
  0x89   : > { %2835 = vmatmul.mubr.msk.bf16.vlgmr.msra.gmra.mxu1 %vm526_vm1, %v3154_v9  ;;  %2856 = vmatprep.mubr.msk.bf16.mxu0 %vm526_vm1, %v3207_v22 }
  0x8a   : > { %2838 = vmatprep.mubr.msk.bf16.mxu1 %vm526_vm1, %v3163_v12 }
  0x90   : > { %2857 = vmatmul.mubr.msk.bf16.gmra.mxu0 %vm526_vm1, %v3157_v10 }
  0x91   : > { %2839 = vmatmul.mubr.msk.bf16.gmra.mxu1 %vm526_vm1, %v3183_v18  ;;  %2860 = vmatprep.mubr.msk.bf16.mxu0 %vm526_vm1, %v3172_v15 }
  0x92   : > { %2842 = vmatprep.mubr.msk.bf16.mxu1 %vm526_vm1, %v3207_v22 }
  0x98   : > { %2861 = vmatmul.mubr.msk.bf16.gmra.mxu0 %vm526_vm1, %v3188_v19 }
  0x99   : > { %2843 = vmatmul.mubr.msk.bf16.gmra.mxu1 %vm526_vm1, %v3157_v10  ;;  %2864 = vmatprep.mubr.msk.bf16.mxu0 %vm526_vm1, %v3211_v23 }
  0x9a   : > { %2846 = vmatprep.mubr.msk.bf16.mxu1 %vm526_vm1, %v3172_v15 }
  0xa0   : > { %2865 = vmatmul.mubr.msk.bf16.gmra.mxu0 %vm526_vm1, %v3301_v43 }
  0xa1   : > { %2847 = vmatmul.mubr.msk.bf16.gmra.mxu1 %vm526_vm1, %v3188_v19 }
  0xd8   : > { %v2710_v61 = vpop.f32.mrf.mxu0 }
  0xd9   : > { %v2718_v62 = vpop.f32.mrf.mxu1 }
  0xda   : > { %v589_v63 = vpop.f32.mrf.mxu0 }
  0xdb   : > { %v621_v0 = vpop.f32.mrf.mxu1 }
  0xdc   : > { %v2711_v1 = vpop.f32.mrf.mxu0 }
  0xdd   : > { %v3448_v2 = vpop.f32.mrf.mxu1 }
  0xde   : > { %v592_v3 = vpop.f32.mrf.mxu0 }
  0xdf   : > { %v3450_v4 = vpop.f32.mrf.mxu1 }
  0xe0   : > { %v2714_v5 = vpop.f32.mrf.mxu0 }
  0xe1   : > { %v3452_v6 = vpop.f32.mrf.mxu1 }
  0xe2   : > { %v605_v7 = vpop.f32.mrf.mxu0 }
  0xe3   : > { %v3454_v8 = vpop.f32.mrf.mxu1 }
  0xe4   : > { %v2715_v9 = vpop.f32.mrf.mxu0 }
  0xe5   : > { %v3456_v10 = vpop.f32.mrf.mxu1 }
  0xe6   : > { %v608_v11 = vpop.f32.mrf.mxu0 }
  0xe7   : > { %v3458_v12 = vpop.f32.mrf.mxu1 }
  0xe8   : > { %v2746_v13 = vpop.f32.mrf.mxu0 }
  0xe9   : > { %v2728_v14 = vpop.f32.mrf.mxu1 }
  0xea   : > { %v701_v15 = vadd.f32 %v2728_v14, %v2710_v61  ;;  %v797_v16 = vpop.f32.mrf.mxu0 }
  0xeb   : > { %v692_v17 = vpop.f32.mrf.mxu1 }
  0xec   : > { %v862_v18 = vadd.f32 %v2746_v13, %v701_v15  ;;  %v693_v19 = vadd.f32 %v692_v17, %v589_v63  ;;  %v2747_v20 = vpop.f32.mrf.mxu0 }
  0xed   : > { %v2729_v21 = vpop.f32.mrf.mxu1 }
  0xee   : > { %879 = vst.msk [vmem:[#allocation2 + $0x10] sm:$0xff] %vm876_vm2, %v862_v18  ;;  %v860_v22 = vadd.f32 %v797_v16, %v693_v19  ;;  %v704_v23 = vadd.f32 %v2729_v21, %v2711_v1  ;;  %v800_v24 = vpop.f32.mrf.mxu0 }
  0xef   : > { %v695_v25 = vpop.f32.mrf.mxu1 }
  0xf0   : > { %877 = vst.msk [vmem:[#allocation2] sm:$0xff] %vm876_vm2, %v860_v22  ;;  %v863_v26 = vadd.f32 %v2747_v20, %v704_v23  ;;  %v696_v27 = vadd.f32 %v695_v25, %v592_v3  ;;  %v2750_v28 = vpop.f32.mrf.mxu0 }
  0xf1   : > { %v2732_v29 = vpop.f32.mrf.mxu1 }
  0xf2   : > { %880 = vst.msk [vmem:[#allocation2 + $0x18] sm:$0xff] %vm876_vm2, %v863_v26  ;;  %v861_v30 = vadd.f32 %v800_v24, %v696_v27  ;;  %v717_v31 = vadd.f32 %v2732_v29, %v2714_v5  ;;  %v813_v32 = vpop.f32.mrf.mxu0  ;;  %v3482_v27 = vpop.permute.xlu1 %1324 }
  0xf3   : > { %v708_v33 = vpop.f32.mrf.mxu1 }
  0xf4   : > { %878 = vst.msk [vmem:[#allocation2 + $0x8] sm:$0xff] %vm876_vm2, %v861_v30  ;;  %v866_v34 = vadd.f32 %v2750_v28, %v717_v31  ;;  %v709_v35 = vadd.f32 %v708_v33, %v605_v7  ;;  %v2751_v36 = vpop.f32.mrf.mxu0  ;;  %v3484_v28 = vpop.permute.xlu0 %1314 }
  0xf5   : > { %v2733_v37 = vpop.f32.mrf.mxu1 }
  0xf6   : > { %883 = vst.msk [vmem:[#allocation2 + $0x30] sm:$0xff] %vm876_vm2, %v866_v34  ;;  %v864_v38 = vadd.f32 %v813_v32, %v709_v35  ;;  %v720_v39 = vadd.f32 %v2733_v37, %v2715_v9  ;;  %v816_v40 = vpop.f32.mrf.mxu0  ;;  %v1330_v34 = vpop.permute.xlu1 %1329 }
  0xf7   : > { %v711_v41 = vpop.f32.mrf.mxu1 }
  0xf8   : > { %881 = vst.msk [vmem:[#allocation2 + $0x20] sm:$0xff] %vm876_vm2, %v864_v38  ;;  %v867_v42 = vadd.f32 %v2751_v36, %v720_v39  ;;  %v712_v43 = vadd.f32 %v711_v41, %v608_v11  ;;  %v2754_v44 = vpop.f32.mrf.mxu0  ;;  %v1320_v36 = vpop.permute.xlu0 %1319 }
  0xf9   : > { %v2736_v45 = vpop.f32.mrf.mxu1 }
  0xfa   : > { %884 = vst.msk [vmem:[#allocation2 + $0x38] sm:$0xff] %vm876_vm2, %v867_v42  ;;  %v865_v46 = vadd.f32 %v816_v40, %v712_v43  ;;  %v733_v47 = vadd.f32 %v2736_v45, %v2718_v62  ;;  %v829_v48 = vpop.f32.mrf.mxu0  ;;  %v3508_v42 = vpop.permute.xlu1 %1339 }
  0xfb   : > { %v724_v49 = vpop.f32.mrf.mxu1 }
  0xfc   : > { %882 = vst.msk [vmem:[#allocation2 + $0x28] sm:$0xff] %vm876_vm2, %v865_v46  ;;  %v870_v50 = vadd.f32 %v2754_v44, %v733_v47  ;;  %v725_v51 = vadd.f32 %v724_v49, %v621_v0  ;;  %v2755_v52 = vpop.f32.mrf.mxu0  ;;  %v3512_v44 = vpop.permute.xlu0 %1334 }
  0xfd   : > { %v2737_v53 = vpop.f32.mrf.mxu1 }
  0xfe   : > { %887 = vst.msk [vmem:[#allocation2 + $0x50] sm:$0xff] %vm876_vm2, %v870_v50  ;;  %v868_v54 = vadd.f32 %v829_v48, %v725_v51  ;;  %v736_v55 = vadd.f32 %v2737_v53, %v3448_v2  ;;  %v832_v56 = vpop.f32.mrf.mxu0  ;;  %v3524_v50 = vpop.permute.xlu1 %1349 }
  0xff   : > { %v727_v57 = vpop.f32.mrf.mxu1 }
 0x100   : > { %885 = vst.msk [vmem:[#allocation2 + $0x40] sm:$0xff] %vm876_vm2, %v868_v54  ;;  %v871_v58 = vadd.f32 %v2755_v52, %v736_v55  ;;  %v728_v59 = vadd.f32 %v727_v57, %v3450_v4  ;;  %v2758_v60 = vpop.f32.mrf.mxu0  ;;  %v3528_v52 = vpop.permute.xlu0 %1344 }
 0x101   : > { %v2740_v61 = vpop.f32.mrf.mxu1 }
 0x102   : > { %888 = vst.msk [vmem:[#allocation2 + $0x58] sm:$0xff] %vm876_vm2, %v871_v58  ;;  %v869_v62 = vadd.f32 %v832_v56, %v728_v59  ;;  %v749_v63 = vadd.f32 %v2740_v61, %v3452_v6  ;;  %v845_v0 = vpop.f32.mrf.mxu0 }
 0x103   : > { %v740_v1 = vpop.f32.mrf.mxu1 }
 0x104   : > { %886 = vst.msk [vmem:[#allocation2 + $0x48] sm:$0xff] %vm876_vm2, %v869_v62  ;;  %v874_v3 = vadd.f32 %v2758_v60, %v749_v63  ;;  %v741_v2 = vadd.f32 %v740_v1, %v3454_v8  ;;  %v2759_v5 = vpop.f32.mrf.mxu0  ;;  %v3536_v62 = vpop.permute.xlu1 %1359 }
 0x105   : > { %v2741_v7 = vpop.f32.mrf.mxu1 }
 0x106   : > { %891 = vst.msk [vmem:[#allocation2 + $0x70] sm:$0xff] %vm876_vm2, %v874_v3  ;;  %v872_v9 = vadd.f32 %v845_v0, %v741_v2  ;;  %v752_v4 = vadd.f32 %v2741_v7, %v3456_v10  ;;  %v848_v11 = vpop.f32.mrf.mxu0  ;;  %v3538_v0 = vpop.permute.xlu0 %1354 }
 0x107   : > { %v743_v13 = vpop.f32.mrf.mxu1 }
 0x108   : > { %889 = vst.msk [vmem:[#allocation2 + $0x60] sm:$0xff] %vm876_vm2, %v872_v9  ;;  %v875_v14 = vadd.f32 %v2759_v5, %v752_v4  ;;  %v744_v6 = vadd.f32 %v743_v13, %v3458_v12  ;;  %v2782_v15 = vpop.f32.mrf.mxu0 }
 0x109   : > { %v2764_v16 = vpop.f32.mrf.mxu1 }
 0x10a   : > { %892 = vst.msk [vmem:[#allocation2 + $0x78] sm:$0xff] %vm876_vm2, %v875_v14  ;;  %v873_v17 = vadd.f32 %v848_v11, %v744_v6  ;;  %v1049_v8 = vpop.f32.mrf.mxu0  ;;  %v1058_v55 = vadd.f32 %v2782_v15, %v2764_v16 }
 0x10b   : > { %v949_v18 = vpop.f32.mrf.mxu1 }
 0x10c   : > { %890 = vst.msk [vmem:[#allocation2 + $0x68] sm:$0xff] %vm876_vm2, %v873_v17  ;;  %v2783_v19 = vpop.f32.mrf.mxu0  ;;  %v1050_v58 = vadd.f32 %v1049_v8, %v949_v18 }
 0x10d   : > { %v2765_v20 = vpop.f32.mrf.mxu1 }
 0x10e   : > { %v1052_v21 = vpop.f32.mrf.mxu0  ;;  %v1061_v59 = vadd.f32 %v2783_v19, %v2765_v20  ;;  %v3550_v19 = vpop.permute.xlu1 %1369 }
 0x10f   : > { %v952_v10 = vpop.f32.mrf.mxu1 }
 0x110   : > { %v2786_v22 = vpop.f32.mrf.mxu0  ;;  %v1053_v1 = vadd.f32 %v1052_v21, %v952_v10 }
 0x111   : > { %v2768_v23 = vpop.f32.mrf.mxu1 }
 0x112   : > { %v1065_v24 = vpop.f32.mrf.mxu0  ;;  %v1074_v14 = vadd.f32 %v2786_v22, %v2768_v23 }
 0x113   : > { %v965_v25 = vpop.f32.mrf.mxu1 }
 0x114   : > { %v2787_v26 = vpop.f32.mrf.mxu0  ;;  %v1066_v15 = vadd.f32 %v1065_v24, %v965_v25 }
 0x115   : > { %v2769_v12 = vpop.f32.mrf.mxu1 }
 0x116   : > { %v3486_v29 = vpop.f32.mrf.mxu0  ;;  %v1077_v20 = vadd.f32 %v2787_v26, %v2769_v12 }
 0x117   : > { %v3488_v30 = vpop.f32.mrf.mxu1 }
 0x118   : > { %v3490_v31 = vpop.f32.mrf.mxu0  ;;  %v1069_v12 = vadd.f32 %v3486_v29, %v3488_v30 }
 0x119   : > { %v3492_v32 = vpop.f32.mrf.mxu1 }
 0x11a   : > { %v3494_v33 = vpop.f32.mrf.mxu0 }
 0x11b   : > { %v3496_v35 = vpop.f32.mrf.mxu1 }
 0x11c   : > { %v3498_v37 = vpop.f32.mrf.mxu0 }
 0x11d   : > { %v3500_v38 = vpop.f32.mrf.mxu1 }
 0x11e   : > { %v3502_v39 = vpop.f32.mrf.mxu0 }
 0x11f   : > { %v3504_v40 = vpop.f32.mrf.mxu1 }
 0x120   : > { %v3506_v41 = vpop.f32.mrf.mxu0 }
 0x121   : > { %v3510_v43 = vpop.f32.mrf.mxu1 }
 0x122   : > { %v3514_v45 = vpop.f32.mrf.mxu0 }
 0x123   : > { %v3516_v46 = vpop.f32.mrf.mxu1 }
 0x124   : > { %v3518_v47 = vpop.f32.mrf.mxu0 }
 0x125   : > { %v3520_v48 = vpop.f32.mrf.mxu1 }
 0x126   : > { %v3522_v49 = vpop.f32.mrf.mxu0 }
 0x127   : > { %v3526_v51 = vpop.f32.mrf.mxu1 }
 0x128   : > { %v3530_v53 = vpop.f32.mrf.mxu0 }
 0x129   : > { %v2800_v54 = vpop.f32.mrf.mxu1 }
 0x12a   : > { %v3532_v56 = vpop.f32.mrf.mxu0  ;;  %v1216_v60 = vadd.f32 %v2800_v54, %v1058_v55  ;;  %v3552_v54 = vpop.permute.xlu0 %1364  ;;  %v896_v55 = vld [vmem:[#allocation2 + $0x18] sm:$0xff] }
 0x12b   : > { %v1151_v57 = vpop.f32.mrf.mxu1 }
 0x12c   : > { %v3534_v61 = vpop.f32.mrf.mxu0  ;;  %v3540_v3 = vadd.f32 %v1151_v57, %v1050_v58  ;;  %v1252_v9 = vrot.slane %v1216_v60, 7 }
 0x12d   : > { %v2801_v63 = vpop.f32.mrf.mxu1 }
 0x12e   : > { %v1217_v2 = vadd.f32 %v2801_v63, %v1061_v59  ;;  %v3542_v5 = vpop.f32.mrf.mxu0  ;;  %v1249_v16 = vrot.slane %v3540_v3, 7  ;;  %v895_v63 = vld [vmem:[#allocation2 + $0x10] sm:$0xff] }
 0x12f   : > { %v1154_v7 = vpop.f32.mrf.mxu1 }
 0x130   : > { %v1254_v4 = vrot.slane %v1217_v2, 7  ;;  %v1215_v11 = vadd.f32 %v1154_v7, %v1053_v1  ;;  %v3544_v13 = vpop.f32.mrf.mxu0 }
 0x131   : > { %v2804_v6 = vpop.f32.mrf.mxu1 }
 0x132   : > { %v1255_v17 = vsel %vm1248_vm3, %v1252_v9, %v1254_v4  ;;  %v1250_v8 = vrot.slane %v1215_v11, 7  ;;  %v3548_v18 = vpop.f32.mrf.mxu0  ;;  %v1220_v24 = vadd.f32 %v2804_v6, %v1074_v14 }
 0x133   : > { %v1395_v21 = vmul.f32 %v1330_v34, %v1255_v17  ;;  %v1167_v10 = vpop.f32.mrf.mxu1  ;;  %v894_v34 = vld [vmem:[#allocation2 + $0x8] sm:$0xff] }
 0x134   : > { %v1251_v22 = vsel %vm1248_vm3, %v1249_v16, %v1250_v8  ;;  %v1253_v23 = vsel %vm1248_vm3, %v1250_v8, %v1252_v9  ;;  %v1218_v25 = vadd.f32 %v1167_v10, %v1066_v15  ;;  %v3558_v57 = vpop.f32.mrf.mxu0  ;;  %v1260_v6 = vrot.slane %v1220_v24, 7  ;;  %v3569_v8 = vpop.permute.xlu1 %1379  ;;  %v897_v10 = vld [vmem:[#allocation2 + $0x20] sm:$0xff] }
 0x135   : > { %v1411_v58 = vadd.f32 %v1395_v21, %v896_v55  ;;  %v1393_v59 = vmul.f32 %v1320_v36, %v1251_v22  ;;  %v1394_v60 = vmul.f32 %v3482_v27, %v1253_v23  ;;  %v2805_v26 = vpop.f32.mrf.mxu1  ;;  %v1090_v21 = vadd.f32 %v3490_v31, %v3492_v32 }
 0x136   : > { %v1256_v1 = vrot.slane %v1218_v25, 7  ;;  %v1221_v2 = vadd.f32 %v2805_v26, %v1077_v20  ;;  %v3563_v7 = vpop.f32.mrf.mxu0  ;;  %v3574_v20 = vpop.permute.xlu0 %1374  ;;  %v1093_v24 = vadd.f32 %v3498_v37, %v3500_v38 }
 0x137   : > { %1427 = vst.msk [vmem:[#allocation2 + $0x18] sm:$0xff] %vm876_vm2, %v1411_v58  ;;  %v1409_v9 = vadd.f32 %v1393_v59, %v894_v34  ;;  %v1410_v11 = vadd.f32 %v1394_v60, %v895_v63  ;;  %v1170_v14 = vpop.f32.mrf.mxu1  ;;  %v900_v59 = vld [vmem:[#allocation2 + $0x38] sm:$0xff]  ;;  %v898_v34 = vld [vmem:[#allocation2 + $0x28] sm:$0xff]  ;;  %v899_v63 = vld [vmem:[#allocation2 + $0x30] sm:$0xff] }
 0x138   : > { %v1257_v36 = vsel %vm1248_vm3, %v1254_v4, %v1256_v1  ;;  %v1262_v15 = vrot.slane %v1221_v2, 7  ;;  %v1219_v27 = vadd.f32 %v1170_v14, %v1069_v12  ;;  %v3567_v17 = vpop.f32.mrf.mxu0  ;;  %v1082_v4 = vadd.f32 %v3494_v33, %v3496_v35 }
 0x139   : > { %1425 = vst.msk [vmem:[#allocation2 + $0x8] sm:$0xff] %vm876_vm2, %v1409_v9  ;;  %1426 = vst.msk [vmem:[#allocation2 + $0x10] sm:$0xff] %vm876_vm2, %v1410_v11  ;;  %v1396_v29 = vmul.f32 %v3512_v44, %v1257_v36  ;;  %v2808_v30 = vpop.f32.mrf.mxu1  ;;  %v3597_v11 = vpop.permute.xlu1 %1389 }
 0x13a   : > { %v1263_v55 = vsel %vm1248_vm3, %v1260_v6, %v1262_v15  ;;  %v1258_v22 = vrot.slane %v1219_v27, 7  ;;  %v3581_v23 = vpop.f32.mrf.mxu0  ;;  %v1224_v32 = vadd.f32 %v2808_v30, %v1090_v21 }
 0x13b   : > { %v1412_v25 = vadd.f32 %v1396_v29, %v897_v10  ;;  %v1399_v44 = vmul.f32 %v3524_v50, %v1263_v55  ;;  %v1183_v58 = vpop.f32.mrf.mxu1  ;;  %v1085_v50 = vadd.f32 %v3502_v39, %v3504_v40  ;;  %v1098_v10 = vadd.f32 %v3514_v45, %v3516_v46  ;;  %v901_v55 = vld [vmem:[#allocation2 + $0x40] sm:$0xff] }
 0x13c   : > { %v1259_v60 = vsel %vm1248_vm3, %v1256_v1, %v1258_v22  ;;  %v1261_v31 = vsel %vm1248_vm3, %v1258_v22, %v1260_v6  ;;  %v1222_v33 = vadd.f32 %v1183_v58, %v1082_v4  ;;  %v3588_v35 = vpop.f32.mrf.mxu0  ;;  %v1106_v4 = vadd.f32 %v3506_v41, %v3510_v43 }
 0x13d   : > { %1428 = vst.msk [vmem:[#allocation2 + $0x20] sm:$0xff] %vm876_vm2, %v1412_v25  ;;  %v1415_v26 = vadd.f32 %v1399_v44, %v900_v59  ;;  %v1397_v12 = vmul.f32 %v3508_v42, %v1259_v60  ;;  %v1398_v37 = vmul.f32 %v3528_v52, %v1261_v31  ;;  %v2809_v38 = vpop.f32.mrf.mxu1  ;;  %v3600_v42 = vpop.permute.xlu0 %1384  ;;  %v1268_v52 = vrot.slane %v1224_v32, 7  ;;  %v904_v59 = vld [vmem:[#allocation2 + $0x58] sm:$0xff] }
 0x13e   : > { %v1264_v1 = vrot.slane %v1222_v33, 7  ;;  %v1225_v2 = vadd.f32 %v2809_v38, %v1093_v24  ;;  %v3595_v9 = vpop.f32.mrf.mxu0  ;;  %v1109_v25 = vadd.f32 %v3518_v47, %v3520_v48  ;;  %v3622_v31 = vpop.permute.xlu1 %1867 }
 0x13f   : > { %1431 = vst.msk [vmem:[#allocation2 + $0x38] sm:$0xff] %vm876_vm2, %v1415_v26  ;;  %v1413_v14 = vadd.f32 %v1397_v12, %v898_v34  ;;  %v1414_v6 = vadd.f32 %v1398_v37, %v899_v63  ;;  %v1186_v36 = vpop.f32.mrf.mxu1  ;;  %v1101_v26 = vadd.f32 %v3522_v49, %v3526_v51  ;;  %v902_v12 = vld [vmem:[#allocation2 + $0x48] sm:$0xff]  ;;  %v903_v37 = vld [vmem:[#allocation2 + $0x50] sm:$0xff] }
 0x140   : > { %v1265_v27 = vsel %vm1248_vm3, %v1262_v15, %v1264_v1  ;;  %v1270_v29 = vrot.slane %v1225_v2, 7  ;;  %v1223_v39 = vadd.f32 %v1186_v36, %v1085_v50  ;;  %v3603_v40 = vpop.f32.mrf.mxu0 }
 0x141   : > { %1429 = vst.msk [vmem:[#allocation2 + $0x28] sm:$0xff] %vm876_vm2, %v1413_v14  ;;  %1430 = vst.msk [vmem:[#allocation2 + $0x30] sm:$0xff] %vm876_vm2, %v1414_v6  ;;  %v1400_v30 = vmul.f32 %v3538_v0, %v1265_v27  ;;  %v2812_v21 = vpop.f32.mrf.mxu1  ;;  %v3627_v33 = vpop.permute.xlu0 %1862 }
 0x142   : > { %v1271_v15 = vsel %vm1248_vm3, %v1268_v52, %v1270_v29  ;;  %v1266_v22 = vrot.slane %v1223_v39, 7  ;;  %v3613_v24 = vpop.f32.mrf.mxu0  ;;  %v1228_v43 = vadd.f32 %v2812_v21, %v1106_v4  ;;  %v3643_v4 = vpop.permute.xlu1 %1877 }
 0x143   : > { %v1416_v44 = vadd.f32 %v1400_v30, %v901_v55  ;;  %v1403_v58 = vmul.f32 %v3550_v19, %v1271_v15  ;;  %v1199_v0 = vpop.f32.mrf.mxu1 }
 0x144   : > { %v1267_v60 = vsel %vm1248_vm3, %v1264_v1, %v1266_v22  ;;  %v1269_v41 = vsel %vm1248_vm3, %v1266_v22, %v1268_v52  ;;  %v1226_v45 = vadd.f32 %v1199_v0, %v1098_v10  ;;  %v3620_v46 = vpop.f32.mrf.mxu0  ;;  %v905_v52 = vld [vmem:[#allocation2 + $0x60] sm:$0xff] }
 0x145   : > { %1432 = vst.msk [vmem:[#allocation2 + $0x40] sm:$0xff] %vm876_vm2, %v1416_v44  ;;  %v1419_v32 = vadd.f32 %v1403_v58, %v904_v59  ;;  %v1401_v47 = vmul.f32 %v3536_v62, %v1267_v60  ;;  %v1402_v48 = vmul.f32 %v3552_v54, %v1269_v41  ;;  %v2813_v19 = vpop.f32.mrf.mxu1  ;;  %v1276_v62 = vrot.slane %v1228_v43, 7  ;;  %v1873_v22 = vpop.permute.xlu0 %1872  ;;  %v908_v44 = vld [vmem:[#allocation2 + $0x78] sm:$0xff]  ;;  %v906_v41 = vld [vmem:[#allocation2 + $0x68] sm:$0xff]  ;;  %v907_v43 = vld [vmem:[#allocation2 + $0x70] sm:$0xff] }
 0x146   : > { %v1272_v38 = vrot.slane %v1226_v45, 7  ;;  %v1229_v50 = vadd.f32 %v2813_v19, %v1109_v25  ;;  %v3631_v34 = vpop.f32.mrf.mxu0  ;;  %v893_v25 = vld [vmem:[#allocation2] sm:$0xff] }
 0x147   : > { %1435 = vst.msk [vmem:[#allocation2 + $0x58] sm:$0xff] %vm876_vm2, %v1419_v32  ;;  %v1417_v63 = vadd.f32 %v1401_v47, %v902_v12  ;;  %v1418_v1 = vadd.f32 %v1402_v48, %v903_v37  ;;  %v1202_v2 = vpop.f32.mrf.mxu1  ;;  %v3659_v37 = vpop.permute.xlu1 %1887 }
 0x148   : > { %v1273_v54 = vsel %vm1248_vm3, %v1270_v29, %v1272_v38  ;;  %v1231_v14 = vrot.slane %v1229_v50, 7  ;;  %v1227_v6 = vadd.f32 %v1202_v2, %v1101_v26  ;;  %v2854_v36 = vpop.f32.mrf.mxu0 }
 0x149   : > { %1433 = vst.msk [vmem:[#allocation2 + $0x48] sm:$0xff] %vm876_vm2, %v1417_v63  ;;  %1434 = vst.msk [vmem:[#allocation2 + $0x50] sm:$0xff] %vm876_vm2, %v1418_v1  ;;  %v1404_v49 = vmul.f32 %v3574_v20, %v1273_v54  ;;  %v2836_v51 = vpop.f32.mrf.mxu1 }
 0x14a   : > { %v1278_v27 = vsel %vm1248_vm3, %v1276_v62, %v1231_v14  ;;  %v1295_v39 = vsel %vm1248_vm3, %v1231_v14, %v1249_v16  ;;  %v1274_v30 = vrot.slane %v1227_v6, 7  ;;  %v1606_v29 = vadd.f32 %v2836_v51, %v3530_v53  ;;  %v1699_v21 = vpop.f32.mrf.mxu0 }
 0x14b   : > { %v1420_v10 = vadd.f32 %v1404_v49, %v905_v52  ;;  %v1392_v55 = vmul.f32 %v3484_v28, %v1295_v39  ;;  %v1407_v15 = vmul.f32 %v3597_v11, %v1278_v27  ;;  %v1597_v20 = vpop.f32.mrf.mxu1  ;;  %v1442_v27 = vld [vmem:[#allocation2 + $0x10] sm:$0xff] }
 0x14c   : > { %v1275_v58 = vsel %vm1248_vm3, %v1272_v38, %v1274_v30  ;;  %v1277_v3 = vsel %vm1248_vm3, %v1274_v30, %v1276_v62  ;;  %v1598_v16 = vadd.f32 %v1597_v20, %v3532_v56  ;;  %v2855_v0 = vpop.f32.mrf.mxu0  ;;  %v1764_v45 = vadd.f32 %v2854_v36, %v1606_v29  ;;  %v3663_v38 = vpop.permute.xlu0 %1882 }
 0x14d   : > { %1436 = vst.msk [vmem:[#allocation2 + $0x60] sm:$0xff] %vm876_vm2, %v1420_v10  ;;  %v1408_v53 = vadd.f32 %v1392_v55, %v893_v25  ;;  %v1423_v59 = vadd.f32 %v1407_v15, %v908_v44  ;;  %v1405_v60 = vmul.f32 %v3569_v8, %v1275_v58  ;;  %v1406_v28 = vmul.f32 %v3600_v42, %v1277_v3  ;;  %v2837_v11 = vpop.f32.mrf.mxu1  ;;  %v3673_v10 = vpop.permute.xlu1 %1897  ;;  %v1441_v58 = vld [vmem:[#allocation2 + $0x8] sm:$0xff] }
 0x14e   : > { %v1609_v32 = vadd.f32 %v2837_v11, %v3534_v61  ;;  %v1702_v47 = vpop.f32.mrf.mxu0  ;;  %v3656_v26 = vadd.f32 %v1699_v21, %v1598_v16  ;;  %v1798_v50 = vrot.slane %v1764_v45, 1 }
 0x14f   : > { %1424 = vst.msk [vmem:[#allocation2] sm:$0xff] %vm876_vm2, %v1408_v53  ;;  %1439 = vst.msk [vmem:[#allocation2 + $0x78] sm:$0xff] %vm876_vm2, %v1423_v59  ;;  %v1421_v56 = vadd.f32 %v1405_v60, %v906_v41  ;;  %v1422_v48 = vadd.f32 %v1406_v28, %v907_v43  ;;  %v1600_v19 = vpop.f32.mrf.mxu1 }
 0x150   : > { %v1765_v12 = vadd.f32 %v2855_v0, %v1609_v32  ;;  %v1601_v8 = vadd.f32 %v1600_v19, %v3542_v5  ;;  %v2858_v42 = vpop.f32.mrf.mxu0  ;;  %v1795_v5 = vrot.slane %v3656_v26, 1  ;;  %v1893_v25 = vpop.permute.xlu0 %1892  ;;  %v1443_v32 = vld [vmem:[#allocation2 + $0x18] sm:$0xff] }
 0x151   : > { %1437 = vst.msk [vmem:[#allocation2 + $0x68] sm:$0xff] %vm876_vm2, %v1421_v56  ;;  %1438 = vst.msk [vmem:[#allocation2 + $0x70] sm:$0xff] %vm876_vm2, %v1422_v48  ;;  %v2840_v61 = vpop.f32.mrf.mxu1  ;;  %v3686_v19 = vpop.permute.xlu1 %1907 }
 0x152   : > { %v1800_v63 = vrot.slane %v1765_v12, 1  ;;  %v1763_v1 = vadd.f32 %v1702_v47, %v1601_v8  ;;  %v1622_v2 = vadd.f32 %v2840_v61, %v3544_v13  ;;  %v1715_v62 = vpop.f32.mrf.mxu0  ;;  %v3694_v61 = vld [vmem:[%s3932_s3] ss:$0 sm:$0xff] }
 0x153   : > { %v1613_v54 = vpop.f32.mrf.mxu1 }
 0x154   : > { %v1801_v14 = vsel %vm1794_vm4, %v1798_v50, %v1800_v63  ;;  %v1796_v6 = vrot.slane %v1763_v1, 1  ;;  %v1614_v36 = vadd.f32 %v1613_v54, %v3548_v18  ;;  %v2859_v49 = vpop.f32.mrf.mxu0  ;;  %v1768_v13 = vadd.f32 %v2858_v42, %v1622_v2  ;;  %v3689_v42 = vpop.permute.xlu0 %1902  ;;  %v3701_v2 = vld [vmem:[%s3933_s4] ss:$0 sm:$0xff] }
 0x155   : > { %v1942_v51 = vmul.f32 %v1873_v22, %v1801_v14  ;;  %v2841_v52 = vpop.f32.mrf.mxu1 }
 0x156   : > { %v1797_v39 = vsel %vm1794_vm4, %v1795_v5, %v1796_v6  ;;  %v1799_v30 = vsel %vm1794_vm4, %v1796_v6, %v1798_v50  ;;  %v1766_v29 = vadd.f32 %v1715_v62, %v1614_v36  ;;  %v1718_v21 = vpop.f32.mrf.mxu0  ;;  %v1625_v20 = vadd.f32 %v2841_v52, %v3558_v57  ;;  %v1440_v44 = vld [vmem:[#allocation2] sm:$0xff]  ;;  %v1446_v62 = vld [vmem:[#allocation2 + $0x30] sm:$0xff] }
 0x157   : > { %v1958_v55 = vadd.f32 %v1942_v51, %v1442_v27  ;;  %v1940_v15 = vmul.f32 %v3627_v33, %v1797_v39  ;;  %v1941_v18 = vmul.f32 %v3622_v31, %v1799_v30  ;;  %v1616_v22 = vpop.f32.mrf.mxu1  ;;  %v1806_v41 = vrot.slane %v1768_v13, 1  ;;  %v1444_v27 = vld [vmem:[#allocation2 + $0x20] sm:$0xff]  ;;  %v1445_v39 = vld [vmem:[#allocation2 + $0x28] sm:$0xff] }
 0x158   : > { %v1802_v3 = vrot.slane %v1766_v29, 1  ;;  %v1617_v16 = vadd.f32 %v1616_v22, %v3563_v7  ;;  %v2862_v0 = vpop.f32.mrf.mxu0  ;;  %v1769_v60 = vadd.f32 %v2859_v49, %v1625_v20 }
 0x159   : > { %1974 = vst.msk [vmem:[#allocation2 + $0x10] sm:$0xff] %vm876_vm2, %v1958_v55  ;;  %v1956_v53 = vadd.f32 %v1940_v15, %v1440_v44  ;;  %v1957_v59 = vadd.f32 %v1941_v18, %v1441_v58  ;;  %v2844_v28 = vpop.f32.mrf.mxu1 }
 0x15a   : > { %v1803_v33 = vsel %vm1794_vm4, %v1800_v63, %v1802_v3  ;;  %v1767_v11 = vadd.f32 %v1718_v21, %v1617_v16  ;;  %v1638_v31 = vadd.f32 %v2844_v28, %v3567_v17  ;;  %v1731_v57 = vpop.f32.mrf.mxu0  ;;  %v1808_v43 = vrot.slane %v1769_v60, 1  ;;  %v3720_v16 = vpop.permute.xlu1 %1917 }
 0x15b   : > { %1972 = vst.msk [vmem:[#allocation2] sm:$0xff] %vm876_vm2, %v1956_v53  ;;  %1973 = vst.msk [vmem:[#allocation2 + $0x8] sm:$0xff] %vm876_vm2, %v1957_v59  ;;  %v1943_v7 = vmul.f32 %v3643_v4, %v1803_v33  ;;  %v1629_v45 = vpop.f32.mrf.mxu1 }
 0x15c   : > { %v1804_v47 = vrot.slane %v1767_v11, 1  ;;  %v1630_v56 = vadd.f32 %v1629_v45, %v3581_v23  ;;  %v2863_v48 = vpop.f32.mrf.mxu0  ;;  %v1809_v17 = vsel %vm1794_vm4, %v1806_v41, %v1808_v43  ;;  %v1772_v23 = vadd.f32 %v2862_v0, %v1638_v31  ;;  %v1913_v0 = vpop.permute.xlu0 %1912 }
 0x15d   : > { %v1959_v12 = vadd.f32 %v1943_v7, %v1443_v32  ;;  %v2845_v8 = vpop.f32.mrf.mxu1  ;;  %v1946_v4 = vmul.f32 %v1893_v25, %v1809_v17 }
 0x15e   : > { %v1805_v50 = vsel %vm1794_vm4, %v1802_v3, %v1804_v47  ;;  %v1807_v63 = vsel %vm1794_vm4, %v1804_v47, %v1806_v41  ;;  %v1734_v1 = vpop.f32.mrf.mxu0  ;;  %v1770_v6 = vadd.f32 %v1731_v57, %v1630_v56  ;;  %v1641_v36 = vadd.f32 %v2845_v8, %v3588_v35  ;;  %v1447_v57 = vld [vmem:[#allocation2 + $0x38] sm:$0xff] }
 0x15f   : > { %1975 = vst.msk [vmem:[#allocation2 + $0x18] sm:$0xff] %vm876_vm2, %v1959_v12  ;;  %v1944_v54 = vmul.f32 %v3663_v38, %v1805_v50  ;;  %v1945_v14 = vmul.f32 %v3659_v37, %v1807_v63  ;;  %v1632_v49 = vpop.f32.mrf.mxu1  ;;  %v1962_v52 = vadd.f32 %v1946_v4, %v1446_v62  ;;  %v1814_v37 = vrot.slane %v1772_v23, 1  ;;  %v1450_v23 = vld [vmem:[#allocation2 + $0x50] sm:$0xff] }
 0x160   : > { %v1990_v51 = vld [vmem:[#allocation2 + $0x10] sm:$0xff]  ;;  %v1633_v30 = vadd.f32 %v1632_v49, %v3595_v9  ;;  %v1810_v55 = vrot.slane %v1770_v6, 1  ;;  %v2866_v18 = vpop.f32.mrf.mxu0  ;;  %v3710_v35 = vadd.f32 %v2863_v48, %v1641_v36  ;;  %v3750_v36 = vpop.permute.xlu1 %1927 }
 0x161   : > { %v2013_v13 = vmul.f32 %v3694_v61, %v1990_v51  ;;  %v1960_v29 = vadd.f32 %v1944_v54, %v1444_v27  ;;  %v1961_v21 = vadd.f32 %v1945_v14, %v1445_v39  ;;  %v2848_v15 = vpop.f32.mrf.mxu1  ;;  %1978 = vst.msk [vmem:[#allocation2 + $0x30] sm:$0xff] %vm876_vm2, %v1962_v52  ;;  %v1449_v27 = vld [vmem:[#allocation2 + $0x48] sm:$0xff] }
 0x162   : > { %v1988_v38 = vld [vmem:[#allocation2] sm:$0xff]  ;;  %v1989_v20 = vld [vmem:[#allocation2 + $0x8] sm:$0xff]  ;;  %v1771_v22 = vadd.f32 %v1734_v1, %v1633_v30  ;;  %v1811_v58 = vsel %vm1794_vm4, %v1808_v43, %v1810_v55  ;;  %v1816_v59 = vrot.slane %v3710_v35, 1  ;;  %v1654_v28 = vadd.f32 %v2848_v15, %v3603_v40  ;;  %v1747_v7 = vpop.f32.mrf.mxu0 }
 0x163   : > { %v3713_v25 = vadd.f32 %v3701_v2, %v2013_v13  ;;  %v2011_v9 = vmul.f32 %v3694_v61, %v1988_v38  ;;  %v2012_v44 = vmul.f32 %v3694_v61, %v1989_v20  ;;  %1976 = vst.msk [vmem:[#allocation2 + $0x20] sm:$0xff] %vm876_vm2, %v1960_v29  ;;  %1977 = vst.msk [vmem:[#allocation2 + $0x28] sm:$0xff] %vm876_vm2, %v1961_v21  ;;  %v1645_v3 = vpop.f32.mrf.mxu1  ;;  %v1448_v1 = vld [vmem:[#allocation2 + $0x40] sm:$0xff] }
 0x164   : > { %v1947_v53 = vmul.f32 %v3673_v10, %v1811_v58  ;;  %v1812_v60 = vrot.slane %v1771_v22, 1  ;;  %v1646_v41 = vadd.f32 %v1645_v3, %v3613_v24  ;;  %v1817_v32 = vsel %vm1794_vm4, %v1814_v37, %v1816_v59  ;;  %v2867_v14 = vpop.f32.mrf.mxu0 }
 0x165   : > { %v2529_v33 = vmul.f32 -1.442695, %v3713_v25  ;;  %v3727_v11 = vadd.f32 %v3701_v2, %v2011_v9  ;;  %v3730_v31 = vadd.f32 %v3701_v2, %v2012_v44  ;;  %v2849_v43 = vpop.f32.mrf.mxu1  ;;  %v1950_v24 = vmul.f32 %v1913_v0, %v1817_v32  ;;  %v1455_v32 = vld [vmem:[#allocation2 + $0x78] sm:$0xff] }
 0x166   : > { %v1991_v45 = vld [vmem:[#allocation2 + $0x18] sm:$0xff]  ;;  %v1963_v10 = vadd.f32 %v1947_v53, %v1447_v57  ;;  %v1813_v47 = vsel %vm1794_vm4, %v1810_v55, %v1812_v60  ;;  %v1815_v40 = vsel %vm1794_vm4, %v1812_v60, %v1814_v37  ;;  %v3742_v4 = vadd.f32 %v2866_v18, %v1654_v28  ;;  %v1750_v35 = vpop.f32.mrf.mxu0  ;;  %v1938_v60 = vpop.permute.xlu1 %1937 }
 0x167   : > { %2934 = vpow2.f32 %v2529_v33  ;;  %v2527_v56 = vmul.f32 -1.442695, %v3727_v11  ;;  %v2528_v48 = vmul.f32 -1.442695, %v3730_v31  ;;  %v2014_v12 = vmul.f32 %v3694_v61, %v1991_v45  ;;  %v1648_v6 = vpop.f32.mrf.mxu1  ;;  %v1451_v57 = vld [vmem:[#allocation2 + $0x58] sm:$0xff] }
 0x168   : > { %1979 = vst.msk [vmem:[#allocation2 + $0x38] sm:$0xff] %vm876_vm2, %v1963_v10  ;;  %v1948_v17 = vmul.f32 %v3689_v42, %v1813_v47  ;;  %v1949_v8 = vmul.f32 %v3686_v19, %v1815_v40  ;;  %v1994_v63 = vld [vmem:[#allocation2 + $0x30] sm:$0xff]  ;;  %v3747_v62 = vadd.f32 %v1747_v7, %v1646_v41  ;;  %v1657_v54 = vadd.f32 %v2849_v43, %v3620_v46  ;;  %v3752_v42 = vpop.permute.xlu0 %1922 }
 0x169   : > { %2936 = vpow2.f32 %v2527_v56  ;;  %v3745_v50 = vadd.f32 %v3701_v2, %v2014_v12  ;;  %v2017_v19 = vmul.f32 %v3694_v61, %v1994_v63  ;;  %v1966_v52 = vadd.f32 %v1950_v24, %v1450_v23  ;;  %v1454_v10 = vld [vmem:[#allocation2 + $0x70] sm:$0xff] }
 0x16a   : > { %2938 = vpow2.f32 %v2528_v48  ;;  %v1992_v49 = vld [vmem:[#allocation2 + $0x20] sm:$0xff]  ;;  %v1993_v51 = vld [vmem:[#allocation2 + $0x28] sm:$0xff]  ;;  %v1964_v39 = vadd.f32 %v1948_v17, %v1448_v1  ;;  %v1965_v29 = vadd.f32 %v1949_v8, %v1449_v27  ;;  %v1818_v55 = vrot.slane %v3747_v62, 1 }
 0x16b   : > { %v2530_v30 = vmul.f32 -1.442695, %v3745_v50  ;;  %v2015_v13 = vmul.f32 %v3694_v61, %v1992_v49  ;;  %v2016_v46 = vmul.f32 %v3694_v61, %v1993_v51  ;;  %v3759_v21 = vadd.f32 %v3701_v2, %v2017_v19  ;;  %1982 = vst.msk [vmem:[#allocation2 + $0x50] sm:$0xff] %vm876_vm2, %v1966_v52  ;;  %v1452_v19 = vld [vmem:[#allocation2 + $0x60] sm:$0xff] }
 0x16c   : > { %1980 = vst.msk [vmem:[#allocation2 + $0x40] sm:$0xff] %vm876_vm2, %v1964_v39  ;;  %v1777_v15 = vadd.f32 %v2867_v14, %v1657_v54  ;;  %v1649_v18 = vadd.f32 %v1648_v6, %v3631_v34  ;;  %1981 = vst.msk [vmem:[#allocation2 + $0x48] sm:$0xff] %vm876_vm2, %v1965_v29  ;;  %v1822_v37 = vrot.slane %v3742_v4, 1  ;;  %v1819_v9 = vsel %vm1794_vm4, %v1816_v59, %v1818_v55  ;;  %v1933_v28 = vpop.permute.xlu0 %1932 }
 0x16d   : > { %2940 = vpow2.f32 %v2530_v30  ;;  %v3766_v38 = vadd.f32 %v3701_v2, %v2015_v13  ;;  %v3769_v20 = vadd.f32 %v3701_v2, %v2016_v46  ;;  %v2533_v22 = vmul.f32 -1.442695, %v3759_v21 }
 0x16e   : > { %v1824_v44 = vrot.slane %v1777_v15, 1  ;;  %v1775_v58 = vadd.f32 %v1750_v35, %v1649_v18  ;;  %v1951_v53 = vmul.f32 %v3720_v16, %v1819_v9 }
 0x16f   : > { %v2531_v34 = vmul.f32 -1.442695, %v3766_v38  ;;  %v2532_v3 = vmul.f32 -1.442695, %v3769_v20  ;;  %v1995_v0 = vld [vmem:[#allocation2 + $0x38] sm:$0xff]  ;;  %2942 = vpow2.f32 %v2533_v22 }
 0x170   : > { %v2018_v33 = vmul.f32 %v3694_v61, %v1995_v0  ;;  %v1825_v59 = vsel %vm1794_vm4, %v1822_v37, %v1824_v44  ;;  %v1843_v41 = vsel %vm1794_vm4, %v1824_v44, %v1795_v5  ;;  %v1967_v7 = vadd.f32 %v1951_v53, %v1451_v57 }
 0x171   : > { %2944 = vpow2.f32 %v2531_v34  ;;  %v1954_v43 = vmul.f32 %v1933_v28, %v1825_v59  ;;  %v1955_v45 = vmul.f32 %v1938_v60, %v1843_v41  ;;  %v1820_v47 = vrot.slane %v1775_v58, 1  ;;  %v2618_v59 = vld [vmem:[%s3825_s13 + $0x8] sm:$0xff]  }
 0x172   : > { %2946 = vpow2.f32 %v2532_v3  ;;  %v3785_v16 = vadd.f32 %v3701_v2, %v2018_v33  ;;  %v1998_v40 = vld [vmem:[#allocation2 + $0x50] sm:$0xff]  ;;  %1983 = vst.msk [vmem:[#allocation2 + $0x58] sm:$0xff] %vm876_vm2, %v1967_v7 }
 0x173   : > { %v1996_v56 = vld [vmem:[#allocation2 + $0x40] sm:$0xff]  ;;  %v1970_v26 = vadd.f32 %v1954_v43, %v1454_v10  ;;  %v1971_v5 = vadd.f32 %v1955_v45, %v1455_v32  ;;  %v2021_v24 = vmul.f32 %v3694_v61, %v1998_v40  ;;  %v1997_v17 = vld [vmem:[#allocation2 + $0x48] sm:$0xff]  ;;  %v1821_v4 = vsel %vm1794_vm4, %v1818_v55, %v1820_v47 }
 0x174   : > { %v2935_v48 = vpop.eup %2934  ;;  %v2534_v12 = vmul.f32 -1.442695, %v3785_v16  ;;  %v2019_v8 = vmul.f32 %v3694_v61, %v1996_v56  ;;  %v2020_v23 = vmul.f32 %v3694_v61, %v1997_v17  ;;  %v1823_v1 = vsel %vm1794_vm4, %v1820_v47, %v1822_v37  ;;  %v2585_v47 = vld [vmem:[%s3825_s13] sm:$0xff]  }
 0x175   : > { %v2100_v63 = vadd.f32 1.0, %v2935_v48  ;;  %1986 = vst.msk [vmem:[#allocation2 + $0x70] sm:$0xff] %vm876_vm2, %v1970_v26  ;;  %1987 = vst.msk [vmem:[#allocation2 + $0x78] sm:$0xff] %vm876_vm2, %v1971_v5  ;;  %v1952_v62 = vmul.f32 %v3752_v42, %v1821_v4  ;;  %v3802_v14 = vadd.f32 %v3701_v2, %v2021_v24  ;;  %v1953_v49 = vmul.f32 %v3750_v36, %v1823_v1  ;;  %v1453_v42 = vld [vmem:[#allocation2 + $0x68] sm:$0xff] }
 0x176   : > { %v2937_v54 = vpop.eup %2936  ;;  %2948 = vpow2.f32 %v2534_v12  ;;  %v3805_v6 = vadd.f32 %v3701_v2, %v2019_v8  ;;  %v3811_v27 = vadd.f32 %v3701_v2, %v2020_v23  ;;  %v2590_v26 = vunpack.c.l.bf16 %v2618_v59 }
 0x177   : > { %v2939_v51 = vpop.eup %2938  ;;  %2950 = vrcp.f32 %v2100_v63  ;;  %v2098_v52 = vadd.f32 1.0, %v2937_v54  ;;  %v1968_v39 = vadd.f32 %v1952_v62, %v1452_v19  ;;  %v2537_v13 = vmul.f32 -1.442695, %v3802_v14 }
 0x178   : > { %v2099_v30 = vadd.f32 1.0, %v2939_v51  ;;  %v2535_v46 = vmul.f32 -1.442695, %v3805_v6  ;;  %v1969_v29 = vadd.f32 %v1953_v49, %v1453_v42  ;;  %v2536_v55 = vmul.f32 -1.442695, %v3811_v27  ;;  %v2620_v42 = vld [vmem:[%s3825_s13 + $0x18] sm:$0xff]  }
 0x179   : > { %2952 = vrcp.f32 %v2098_v52  ;;  %1984 = vst.msk [vmem:[#allocation2 + $0x60] sm:$0xff] %vm876_vm2, %v1968_v39  ;;  %v1999_v15 = vld [vmem:[#allocation2 + $0x58] sm:$0xff]  ;;  %v2586_v8 = vunpack.c.l.bf16 %v2585_v47  ;;  %v2587_v63 = vunpack.c.h.bf16 %v2585_v47  ;;  %v2591_v52 = vunpack.c.h.bf16 %v2618_v59 }
 0x17a   : > { %v2941_v36 = vpop.eup %2940  ;;  %2954 = vrcp.f32 %v2099_v30  ;;  %1985 = vst.msk [vmem:[#allocation2 + $0x68] sm:$0xff] %vm876_vm2, %v1969_v29  ;;  %v2022_v37 = vmul.f32 %v3694_v61, %v1999_v15  ;;  %v2598_v15 = vunpack.c.l.bf16 %v2620_v42 }
 0x17b   : > { %v2101_v18 = vadd.f32 1.0, %v2941_v36  ;;  %2956 = vpow2.f32 %v2537_v13  ;;  %v2619_v13 = vld [vmem:[%s3825_s13 + $0x10] sm:$0xff]  }
 0x17c   : > { %2958 = vpow2.f32 %v2535_v46  ;;  %v2002_v35 = vld [vmem:[#allocation2 + $0x70] sm:$0xff]  ;;  %v2003_v22 = vld [vmem:[#allocation2 + $0x78] sm:$0xff]  ;;  %v2943_v9 = vpop.eup %2942  ;;  %v3828_v44 = vadd.f32 %v3701_v2, %v2022_v37 }
 0x17d   : > { %2960 = vrcp.f32 %v2101_v18  ;;  %v2025_v58 = vmul.f32 %v3694_v61, %v2002_v35  ;;  %v2026_v34 = vmul.f32 %v3694_v61, %v2003_v22  ;;  %v2104_v0 = vadd.f32 1.0, %v2943_v9 }
 0x17e   : > { %v2945_v3 = vpop.eup %2944  ;;  %2962 = vpow2.f32 %v2536_v55  ;;  %v2538_v28 = vmul.f32 -1.442695, %v3828_v44  ;;  %v2594_v22 = vunpack.c.l.bf16 %v2619_v13 }
 0x17f   : > { %v2947_v53 = vpop.eup %2946  ;;  %v2102_v60 = vadd.f32 1.0, %v2945_v3  ;;  %v3834_v33 = vadd.f32 %v3701_v2, %v2025_v58  ;;  %v3837_v57 = vadd.f32 %v3701_v2, %v2026_v34  ;;  %2964 = vrcp.f32 %v2104_v0 }
 0x180   : > { %v2103_v41 = vadd.f32 1.0, %v2947_v53  ;;  %v2000_v7 = vld [vmem:[#allocation2 + $0x60] sm:$0xff]  ;;  %v2595_v34 = vunpack.c.h.bf16 %v2619_v13 }
 0x181   : > { %2966 = vrcp.f32 %v2102_v60  ;;  %v2541_v43 = vmul.f32 -1.442695, %v3834_v33  ;;  %v2542_v45 = vmul.f32 -1.442695, %v3837_v57  ;;  %v2001_v10 = vld [vmem:[#allocation2 + $0x68] sm:$0xff]  ;;  %v2023_v32 = vmul.f32 %v3694_v61, %v2000_v7 }
 0x182   : > { %2968 = vrcp.f32 %v2103_v41  ;;  %v2024_v40 = vmul.f32 %v3694_v61, %v2001_v10  ;;  %v2599_v10 = vunpack.c.h.bf16 %v2620_v42 }
 0x183   : > { %v2949_v56 = vpop.eup %2948  ;;  %2970 = vpow2.f32 %v2538_v28  ;;  %v3846_v5 = vadd.f32 %v3701_v2, %v2023_v32 }
 0x184   : > { %v2951_v48 = vpop.eup %2950  ;;  %v2105_v12 = vadd.f32 1.0, %v2949_v56  ;;  %2972 = vpow2.f32 %v2541_v43  ;;  %v3849_v24 = vadd.f32 %v3701_v2, %v2024_v40 }
 0x185   : > { %v2148_v17 = vmul.f32 %v2951_v48, %v3713_v25  ;;  %2974 = vpow2.f32 %v2542_v45  ;;  %v2539_v4 = vmul.f32 -1.442695, %v3846_v5  ;;  %v2622_v48 = vld [vmem:[%s3825_s13 + $0x28] sm:$0xff]  }
 0x186   : > { %v2953_v61 = vpop.eup %2952  ;;  %2976 = vrcp.f32 %v2105_v12  ;;  %v2540_v23 = vmul.f32 -1.442695, %v3849_v24 }
 0x187   : > { %v2955_v1 = vpop.eup %2954  ;;  %v2196_v62 = vadd.f32 %v2590_v26, %v2148_v17  ;;  %v2146_v54 = vmul.f32 %v2953_v61, %v3727_v11  ;;  %2978 = vpow2.f32 %v2539_v4  ;;  %v2621_v17 = vld [vmem:[%s3825_s13 + $0x20] sm:$0xff]  }
 0x188   : > { %v2957_v2 = vpop.eup %2956  ;;  %v2147_v25 = vmul.f32 %v2955_v1, %v3730_v31  ;;  %2980 = vpow2.f32 %v2540_v23 }
 0x189   : > { %v2959_v19 = vpop.eup %2958  ;;  %v2570_v49 = vpack.c.bf16 %v2196_v62, %v2196_v62  ;;  %v2194_v51 = vadd.f32 %v2586_v8, %v2146_v54  ;;  %v2108_v11 = vadd.f32 1.0, %v2957_v2 }
 0x18a   : > { %v2961_v39 = vpop.eup %2960  ;;  %v2195_v30 = vadd.f32 %v2587_v63, %v2147_v25  ;;  %v2106_v46 = vadd.f32 1.0, %v2959_v19  ;;  %v2606_v63 = vunpack.c.l.bf16 %v2622_v48  ;;  %v2603_v25 = vunpack.c.h.bf16 %v2621_v17 }
 0x18b   : > { %v2963_v29 = vpop.eup %2962  ;;  %2277 = vst.msk [vmem:[%s3860_s21 + $0x8] sm:$0xf] %vm2274_vm5, %v2570_v49  ;;  %v2568_v36 = vpack.c.bf16 %v2194_v51, %v2194_v51  ;;  %v2149_v55 = vmul.f32 %v2961_v39, %v3745_v50  ;;  %2982 = vrcp.f32 %v2108_v11  ;;  %v2624_v11 = vld [vmem:[%s3825_s13 + $0x38] sm:$0xff]  }
 0x18c   : > { %v2569_v31 = vpack.c.bf16 %v2195_v30, %v2195_v30  ;;  %v2107_v18 = vadd.f32 1.0, %v2963_v29  ;;  %2984 = vrcp.f32 %v2106_v46  ;;  %v2965_v37 = vpop.eup %2964  ;;  %v2623_v29 = vld [vmem:[%s3825_s13 + $0x30] sm:$0xff]  }
 0x18d   : > { %2275 = vst.msk [vmem:[%s3860_s21] sm:$0xf] %vm2274_vm5, %v2568_v36  ;;  %v2197_v35 = vadd.f32 %v2591_v52, %v2149_v55  ;;  %v2152_v58 = vmul.f32 %v2965_v37, %v3759_v21 }
 0x18e   : > { %v2967_v9 = vpop.eup %2966  ;;  %2276 = vst.msk [vmem:[%s3860_s21 + $0x4] sm:$0xf] %vm2274_vm5, %v2569_v31  ;;  %2986 = vrcp.f32 %v2107_v18  ;;  %v2615_v31 = vunpack.c.h.bf16 %v2624_v11 }
 0x18f   : > { %v2969_v3 = vpop.eup %2968  ;;  %v2571_v50 = vpack.c.bf16 %v2197_v35, %v2197_v35  ;;  %v2150_v0 = vmul.f32 %v2967_v9, %v3766_v38  ;;  %v2200_v60 = vadd.f32 %v2598_v15, %v2152_v58  ;;  %v2610_v35 = vunpack.c.l.bf16 %v2623_v29 }
 0x190   : > { %v2971_v53 = vpop.eup %2970  ;;  %v2151_v28 = vmul.f32 %v2969_v3, %v3769_v20  ;;  %v2611_v58 = vunpack.c.h.bf16 %v2623_v29 }
 0x191   : > { %v2973_v59 = vpop.eup %2972  ;;  %2278 = vst.msk [vmem:[%s3860_s21 + $0xc] sm:$0xf] %vm2274_vm5, %v2571_v50  ;;  %v2198_v41 = vadd.f32 %v2594_v22, %v2150_v0  ;;  %v2109_v7 = vadd.f32 1.0, %v2971_v53  ;;  %v2574_v21 = vpack.c.bf16 %v2200_v60, %v2200_v60 }
 0x192   : > { %v2975_v43 = vpop.eup %2974  ;;  %v2199_v45 = vadd.f32 %v2595_v34, %v2151_v28  ;;  %v2112_v32 = vadd.f32 1.0, %v2973_v59 }
 0x193   : > { %v2977_v38 = vpop.eup %2976  ;;  %v2572_v47 = vpack.c.bf16 %v2198_v41, %v2198_v41  ;;  %2988 = vrcp.f32 %v2109_v7  ;;  %v2113_v40 = vadd.f32 1.0, %v2975_v43  ;;  %2281 = vst.msk [vmem:[%s3860_s21 + $0x18] sm:$0xf] %vm2274_vm5, %v2574_v21 }
 0x194   : > { %v2979_v56 = vpop.eup %2978  ;;  %v2573_v20 = vpack.c.bf16 %v2199_v45, %v2199_v45  ;;  %v2153_v26 = vmul.f32 %v2977_v38, %v3785_v16  ;;  %2990 = vrcp.f32 %v2112_v32  ;;  %v2602_v16 = vunpack.c.l.bf16 %v2621_v17 }
 0x195   : > { %v2981_v12 = vpop.eup %2980  ;;  %2279 = vst.msk [vmem:[%s3860_s21 + $0x10] sm:$0xf] %vm2274_vm5, %v2572_v47  ;;  %2992 = vrcp.f32 %v2113_v40  ;;  %v2110_v8 = vadd.f32 1.0, %v2979_v56 }
 0x196   : > { %2280 = vst.msk [vmem:[%s3860_s21 + $0x14] sm:$0xf] %vm2274_vm5, %v2573_v20  ;;  %v2201_v4 = vadd.f32 %v2599_v10, %v2153_v26  ;;  %v2111_v61 = vadd.f32 1.0, %v2981_v12 }
 0x197   : > { %2994 = vrcp.f32 %v2110_v8 }
 0x198   : > { %v2983_v23 = vpop.eup %2982  ;;  %v2575_v1 = vpack.c.bf16 %v2201_v4, %v2201_v4  ;;  %2996 = vrcp.f32 %v2111_v61 }
 0x199   : > { %v2985_v62 = vpop.eup %2984  ;;  %v2156_v54 = vmul.f32 %v2983_v23, %v3802_v14  ;;  %v2607_v14 = vunpack.c.h.bf16 %v2622_v48 }
 0x19a   : > { %2282 = vst.msk [vmem:[%s3860_s21 + $0x1c] sm:$0xf] %vm2274_vm5, %v2575_v1  ;;  %v2154_v2 = vmul.f32 %v2985_v62, %v3805_v6  ;;  %v2614_v6 = vunpack.c.l.bf16 %v2624_v11 }
 0x19b   : > { %v2987_v19 = vpop.eup %2986  ;;  %v2204_v49 = vadd.f32 %v2606_v63, %v2156_v54 }
 0x19c   : > { %v2155_v51 = vmul.f32 %v2987_v19, %v3811_v27  ;;  %v2202_v52 = vadd.f32 %v2602_v16, %v2154_v2 }
 0x19d   : > { %v2578_v42 = vpack.c.bf16 %v2204_v49, %v2204_v49 }
 0x19e   : > { %v2203_v39 = vadd.f32 %v2603_v25, %v2155_v51  ;;  %v2576_v30 = vpack.c.bf16 %v2202_v52, %v2202_v52 }
 0x19f   : > { %2285 = vst.msk [vmem:[%s3860_s21 + $0x28] sm:$0xf] %vm2274_vm5, %v2578_v42 }
 0x1a0   : > { %v2989_v13 = vpop.eup %2988  ;;  %v2577_v46 = vpack.c.bf16 %v2203_v39, %v2203_v39  ;;  %2283 = vst.msk [vmem:[%s3860_s21 + $0x20] sm:$0xf] %vm2274_vm5, %v2576_v30 }
 0x1a1   : > { %v2991_v36 = vpop.eup %2990  ;;  %v2157_v55 = vmul.f32 %v2989_v13, %v3828_v44 }
 0x1a2   : > { %v2993_v27 = vpop.eup %2992  ;;  %2284 = vst.msk [vmem:[%s3860_s21 + $0x24] sm:$0xf] %vm2274_vm5, %v2577_v46  ;;  %v2160_v15 = vmul.f32 %v2991_v36, %v3834_v33 }
 0x1a3   : > { %v2205_v18 = vadd.f32 %v2607_v14, %v2157_v55  ;;  %v2161_v37 = vmul.f32 %v2993_v27, %v3837_v57 }
 0x1a4   : > { %v2995_v22 = vpop.eup %2994  ;;  %v2208_v9 = vadd.f32 %v2614_v6, %v2160_v15 }
 0x1a5   : > { %v2997_v34 = vpop.eup %2996  ;;  %v2579_v44 = vpack.c.bf16 %v2205_v18, %v2205_v18  ;;  %v2209_v3 = vadd.f32 %v2615_v31, %v2161_v37  ;;  %v2158_v50 = vmul.f32 %v2995_v22, %v3846_v5 }
 0x1a6   : > { %v2582_v0 = vpack.c.bf16 %v2208_v9, %v2208_v9  ;;  %v2159_v53 = vmul.f32 %v2997_v34, %v3849_v24 }
 0x1a7   : > { %2286 = vst.msk [vmem:[%s3860_s21 + $0x2c] sm:$0xf] %vm2274_vm5, %v2579_v44  ;;  %v2583_v33 = vpack.c.bf16 %v2209_v3, %v2209_v3  ;;  %v2206_v60 = vadd.f32 %v2610_v35, %v2158_v50 }
 0x1a8   : > { %2289 = vst.msk [vmem:[%s3860_s21 + $0x38] sm:$0xf] %vm2274_vm5, %v2582_v0  ;;  %v2207_v57 = vadd.f32 %v2611_v58, %v2159_v53 }
 0x1a9   : > { %2290 = vst.msk [vmem:[%s3860_s21 + $0x3c] sm:$0xf] %vm2274_vm5, %v2583_v33  ;;  %v2580_v28 = vpack.c.bf16 %v2206_v60, %v2206_v60 }
 0x1aa   : > { %v2581_v59 = vpack.c.bf16 %v2207_v57, %v2207_v57 }
 0x1ab   : > { %2287 = vst.msk [vmem:[%s3860_s21 + $0x30] sm:$0xf] %vm2274_vm5, %v2580_v28 }
 0x1ac   : > { %2288 = vst.msk [vmem:[%s3860_s21 + $0x34] sm:$0xf] %vm2274_vm5, %v2581_v59 }
 0x1ad PF: > { %s18_s9 = sadd.s32 1, %s3036_s9   ;;  %s3938_s27 = smov %s3028_s29 }
 0x1ae   : > { %p15_p9 = scmp.ge.s32.totalorder %s18_s9, 6   ;;  %s3939_s28 = smov %s3032_s30 }
 0x1af   : > { %s3940_s29 = smov %s3943_s10  ;;  %s3941_s30 = smov %s3947_s11 }
 0x1b0   :  { %17 = sbr.rel (!%p15_p9) target bundleno = 3 (0x3), region = 96 }

// kernel: gelan_forward.32
= control target key start
LH: loop header
LB: loop body
LE: loop exit
PB: predicated region body
PF: predicated region fallthrough
CT: control target
= control target key end

     0   :  { %vm411_vm0 = vcmask 1040384   ;;  %vm314_vm1 = vcmask 15360   ;;  %vm2098_vm2 = vcmask 27648   ;;  %s4025_s3 = inlined_call_operand.vmem [shape: bf16[2,4], index: 3, kind: input, shape index: {}]   ;;  %s4026_s2 = inlined_call_operand.vmem [shape: bf16[2,4], index: 2, kind: input, shape index: {}]   ;;  %s4027_s1 = inlined_call_operand.vmem [shape: bf16[512,2], index: 1, kind: input, shape index: {}]   ;;  %s4028_s0 = inlined_call_operand.vmem [shape: bf16[512,2], index: 0, kind: input, shape index: {}]   ;;  %s4029_s4 = inlined_call_operand.vmem [shape: f32[1,4], index: 4, kind: input, shape index: {}]   ;;  %s4030_s5 = inlined_call_operand.vmem [shape: f32[1,4], index: 5, kind: input, shape index: {}]   ;;  %s4031_s6 = inlined_call_operand.vmem [shape: bf16[512,4], index: 6, kind: output, shape index: {}]  }
   0x1   :  { %v153_v0 = vld [vmem:[%s4025_s3] sm:$0x1]  ;;  %v2691_v6 = vld [vmem:[%s4027_s1 + $0x8] sm:$0xff]   ;;  %v2693_v8 = vld [vmem:[%s4027_s1 + $0x10] sm:$0xff]  }
   0x2   :  { %v88_v1 = vld [vmem:[%s4026_s2] sm:$0x1]  ;;  %2687 = vmatprep.subr.msk.bf16.mxu0 %vm411_vm0, %v153_v0  ;;  %v413_v2 = vsel %vm411_vm0, %v153_v0, 0  ;;  %v2692_v7 = vld [vmem:[%s4028_s0 + $0x8] sm:$0xff]   ;;  %v2694_v9 = vld [vmem:[%s4028_s0 + $0x10] sm:$0xff]  }
   0x3   :  { %2688 = vmatprep.subr.msk.bf16.mxu1 %vm411_vm0, %v88_v1  ;;  %v961_v3 = vsel %vm411_vm0, %v88_v1, 0  ;;  %v2689_v4 = vld [vmem:[%s4027_s1] sm:$0xff]   ;;  %2556 = vmatpush3.bf16.msra.mxu0 %v413_v2  ;;  %v2695_v10 = vld [vmem:[%s4027_s1 + $0x18] sm:$0xff]   ;;  %v2699_v14 = vld [vmem:[%s4027_s1 + $0x28] sm:$0xff]  }
   0x4   :  { %v2690_v5 = vld [vmem:[%s4028_s0] sm:$0xff]   ;;  %2622 = vmatpush3.bf16.msra.mxu1 %v961_v3  ;;  %2557 = vmatprep.mubr.msk.bf16.mxu0 %vm314_vm1, %v2689_v4  ;;  %v2696_v11 = vld [vmem:[%s4028_s0 + $0x18] sm:$0xff]   ;;  %v2700_v15 = vld [vmem:[%s4028_s0 + $0x28] sm:$0xff]  }
   0x5   :  { %2623 = vmatprep.mubr.msk.bf16.mxu1 %vm314_vm1, %v2690_v5  ;;  %v2697_v12 = vld [vmem:[%s4027_s1 + $0x20] sm:$0xff]   ;;  %v2701_v16 = vld [vmem:[%s4027_s1 + $0x30] sm:$0xff]   ;;  %v2703_v18 = vld [vmem:[%s4027_s1 + $0x38] sm:$0xff]  }
   0x6   :  { %2558 = vmatmul.mubr.msk.bf16.vlgmr.msra.gmra.mxu0 %vm314_vm1, %v2691_v6  ;;  %v2698_v13 = vld [vmem:[%s4028_s0 + $0x20] sm:$0xff]   ;;  %v2702_v17 = vld [vmem:[%s4028_s0 + $0x30] sm:$0xff]   ;;  %v2704_v19 = vld [vmem:[%s4028_s0 + $0x38] sm:$0xff]  }
   0x7   :  { %2624 = vmatmul.mubr.msk.bf16.vlgmr.msra.gmra.mxu1 %vm314_vm1, %v2692_v7  ;;  %2561 = vmatprep.mubr.msk.bf16.mxu0 %vm314_vm1, %v2693_v8  ;;  %v2705_v20 = vld [vmem:[%s4027_s1 + $0x40] sm:$0xff]   ;;  %v2707_v22 = vld [vmem:[%s4027_s1 + $0x48] sm:$0xff]   ;;  %v2709_v24 = vld [vmem:[%s4027_s1 + $0x50] sm:$0xff]  }
   0x8   :  { %2627 = vmatprep.mubr.msk.bf16.mxu1 %vm314_vm1, %v2694_v9  ;;  %v2706_v21 = vld [vmem:[%s4028_s0 + $0x40] sm:$0xff]   ;;  %v2708_v23 = vld [vmem:[%s4028_s0 + $0x48] sm:$0xff]   ;;  %v2710_v25 = vld [vmem:[%s4028_s0 + $0x50] sm:$0xff]  }
   0x9   :  { %v2711_v26 = vld [vmem:[%s4027_s1 + $0x58] sm:$0xff]   ;;  %v2713_v28 = vld [vmem:[%s4027_s1 + $0x60] sm:$0xff]   ;;  %v2715_v30 = vld [vmem:[%s4027_s1 + $0x68] sm:$0xff]  }
   0xa   :  { %v2712_v27 = vld [vmem:[%s4028_s0 + $0x58] sm:$0xff]   ;;  %v2714_v29 = vld [vmem:[%s4028_s0 + $0x60] sm:$0xff]   ;;  %v2716_v31 = vld [vmem:[%s4028_s0 + $0x68] sm:$0xff]  }
   0xb   :  { %v2717_v32 = vld [vmem:[%s4027_s1 + $0x70] sm:$0xff]   ;;  %v2719_v34 = vld [vmem:[%s4027_s1 + $0x78] sm:$0xff]   ;;  %v2721_v36 = vld [vmem:[%s4027_s1 + $0x80] sm:$0xff]  }
   0xc   :  { %v2718_v33 = vld [vmem:[%s4028_s0 + $0x70] sm:$0xff]   ;;  %v2720_v35 = vld [vmem:[%s4028_s0 + $0x78] sm:$0xff]   ;;  %v2722_v37 = vld [vmem:[%s4028_s0 + $0x80] sm:$0xff]  }
   0xd   :  { %v2723_v38 = vld [vmem:[%s4027_s1 + $0x88] sm:$0xff]   ;;  %v2725_v40 = vld [vmem:[%s4027_s1 + $0x90] sm:$0xff]   ;;  %v2727_v42 = vld [vmem:[%s4027_s1 + $0x98] sm:$0xff]  }
   0xe   :  { %2562 = vmatmul.mubr.msk.bf16.gmra.mxu0 %vm314_vm1, %v2695_v10  ;;  %v2724_v39 = vld [vmem:[%s4028_s0 + $0x88] sm:$0xff]   ;;  %v2726_v41 = vld [vmem:[%s4028_s0 + $0x90] sm:$0xff]   ;;  %v2728_v43 = vld [vmem:[%s4028_s0 + $0x98] sm:$0xff]  }
   0xf   :  { %2628 = vmatmul.mubr.msk.bf16.gmra.mxu1 %vm314_vm1, %v2696_v11  ;;  %2565 = vmatprep.mubr.msk.bf16.mxu0 %vm314_vm1, %v2697_v12  ;;  %v2729_v44 = vld [vmem:[%s4027_s1 + $0xa0] sm:$0xff]   ;;  %v2731_v46 = vld [vmem:[%s4027_s1 + $0xa8] sm:$0xff]   ;;  %v2733_v48 = vld [vmem:[%s4027_s1 + $0xb0] sm:$0xff]  }
  0x10   :  { %2631 = vmatprep.mubr.msk.bf16.mxu1 %vm314_vm1, %v2698_v13  ;;  %v2730_v45 = vld [vmem:[%s4028_s0 + $0xa0] sm:$0xff]   ;;  %v2732_v47 = vld [vmem:[%s4028_s0 + $0xa8] sm:$0xff]   ;;  %v2734_v49 = vld [vmem:[%s4028_s0 + $0xb0] sm:$0xff]  }
  0x11   :  { %v2735_v50 = vld [vmem:[%s4027_s1 + $0xb8] sm:$0xff]   ;;  %v2737_v52 = vld [vmem:[%s4027_s1 + $0xc0] sm:$0xff]   ;;  %v2739_v54 = vld [vmem:[%s4027_s1 + $0xc8] sm:$0xff]  }
  0x12   :  { %v2736_v51 = vld [vmem:[%s4028_s0 + $0xb8] sm:$0xff]   ;;  %v2738_v53 = vld [vmem:[%s4028_s0 + $0xc0] sm:$0xff]   ;;  %v2740_v55 = vld [vmem:[%s4028_s0 + $0xc8] sm:$0xff]  }
  0x13   :  { %v2741_v56 = vld [vmem:[%s4027_s1 + $0xd0] sm:$0xff]   ;;  %v2743_v58 = vld [vmem:[%s4027_s1 + $0xd8] sm:$0xff]   ;;  %v2745_v60 = vld [vmem:[%s4027_s1 + $0xe0] sm:$0xff]  }
  0x14   :  { %v2742_v57 = vld [vmem:[%s4028_s0 + $0xd0] sm:$0xff]   ;;  %v2744_v59 = vld [vmem:[%s4028_s0 + $0xd8] sm:$0xff]   ;;  %v2746_v61 = vld [vmem:[%s4028_s0 + $0xe0] sm:$0xff]  }
  0x15   :  { %v2747_v62 = vld [vmem:[%s4027_s1 + $0xe8] sm:$0xff]   ;;  %v2749_v0 = vld [vmem:[%s4027_s1 + $0xf0] sm:$0xff]   ;;  %v2751_v2 = vld [vmem:[%s4027_s1 + $0xf8] sm:$0xff]  }
  0x16   :  { %2566 = vmatmul.mubr.msk.bf16.gmra.mxu0 %vm314_vm1, %v2699_v14  ;;  %v2748_v63 = vld [vmem:[%s4028_s0 + $0xe8] sm:$0xff]   ;;  %v2750_v1 = vld [vmem:[%s4028_s0 + $0xf0] sm:$0xff]   ;;  %v2752_v3 = vld [vmem:[%s4028_s0 + $0xf8] sm:$0xff]  }
  0x17   :  { %2632 = vmatmul.mubr.msk.bf16.gmra.mxu1 %vm314_vm1, %v2700_v15  ;;  %2569 = vmatprep.mubr.msk.bf16.mxu0 %vm314_vm1, %v2701_v16  ;;  %v3311_v6 = vld [vmem:[%s4029_s4] ss:$0 sm:$0xff] }
  0x18   :  { %2635 = vmatprep.mubr.msk.bf16.mxu1 %vm314_vm1, %v2702_v17  ;;  %v3316_v9 = vld [vmem:[%s4030_s5] ss:$0 sm:$0xff] }
  0x1e   :  { %2570 = vmatmul.mubr.msk.bf16.gmra.mxu0 %vm314_vm1, %v2703_v18 }
  0x1f   :  { %2636 = vmatmul.mubr.msk.bf16.gmra.mxu1 %vm314_vm1, %v2704_v19  ;;  %2573 = vmatprep.mubr.msk.bf16.mxu0 %vm314_vm1, %v2705_v20 }
  0x20   :  { %2639 = vmatprep.mubr.msk.bf16.mxu1 %vm314_vm1, %v2706_v21 }
  0x26   :  { %2574 = vmatmul.mubr.msk.bf16.gmra.mxu0 %vm314_vm1, %v2707_v22 }
  0x27   :  { %2640 = vmatmul.mubr.msk.bf16.gmra.mxu1 %vm314_vm1, %v2708_v23  ;;  %2577 = vmatprep.mubr.msk.bf16.mxu0 %vm314_vm1, %v2709_v24 }
  0x28   :  { %2643 = vmatprep.mubr.msk.bf16.mxu1 %vm314_vm1, %v2710_v25 }
  0x2e   :  { %2578 = vmatmul.mubr.msk.bf16.gmra.mxu0 %vm314_vm1, %v2711_v26 }
  0x2f   :  { %2644 = vmatmul.mubr.msk.bf16.gmra.mxu1 %vm314_vm1, %v2712_v27  ;;  %2581 = vmatprep.mubr.msk.bf16.mxu0 %vm314_vm1, %v2713_v28 }
  0x30   :  { %2647 = vmatprep.mubr.msk.bf16.mxu1 %vm314_vm1, %v2714_v29 }
  0x36   :  { %2582 = vmatmul.mubr.msk.bf16.gmra.mxu0 %vm314_vm1, %v2715_v30 }
  0x37   :  { %2648 = vmatmul.mubr.msk.bf16.gmra.mxu1 %vm314_vm1, %v2716_v31  ;;  %2585 = vmatprep.mubr.msk.bf16.mxu0 %vm314_vm1, %v2717_v32 }
  0x38   :  { %2651 = vmatprep.mubr.msk.bf16.mxu1 %vm314_vm1, %v2718_v33 }
  0x3e   :  { %2586 = vmatmul.mubr.msk.bf16.gmra.mxu0 %vm314_vm1, %v2719_v34 }
  0x3f   :  { %2652 = vmatmul.mubr.msk.bf16.gmra.mxu1 %vm314_vm1, %v2720_v35  ;;  %2589 = vmatprep.mubr.msk.bf16.mxu0 %vm314_vm1, %v2721_v36 }
  0x40   :  { %2655 = vmatprep.mubr.msk.bf16.mxu1 %vm314_vm1, %v2722_v37 }
  0x46   :  { %2590 = vmatmul.mubr.msk.bf16.gmra.mxu0 %vm314_vm1, %v2723_v38 }
  0x47   :  { %2656 = vmatmul.mubr.msk.bf16.gmra.mxu1 %vm314_vm1, %v2724_v39  ;;  %2593 = vmatprep.mubr.msk.bf16.mxu0 %vm314_vm1, %v2725_v40 }
  0x48   :  { %2659 = vmatprep.mubr.msk.bf16.mxu1 %vm314_vm1, %v2726_v41 }
  0x4e   :  { %2594 = vmatmul.mubr.msk.bf16.gmra.mxu0 %vm314_vm1, %v2727_v42 }
  0x4f   :  { %2660 = vmatmul.mubr.msk.bf16.gmra.mxu1 %vm314_vm1, %v2728_v43  ;;  %2597 = vmatprep.mubr.msk.bf16.mxu0 %vm314_vm1, %v2729_v44 }
  0x50   :  { %2663 = vmatprep.mubr.msk.bf16.mxu1 %vm314_vm1, %v2730_v45 }
  0x56   :  { %2598 = vmatmul.mubr.msk.bf16.gmra.mxu0 %vm314_vm1, %v2731_v46 }
  0x57   :  { %2664 = vmatmul.mubr.msk.bf16.gmra.mxu1 %vm314_vm1, %v2732_v47  ;;  %2601 = vmatprep.mubr.msk.bf16.mxu0 %vm314_vm1, %v2733_v48 }
  0x58   :  { %2667 = vmatprep.mubr.msk.bf16.mxu1 %vm314_vm1, %v2734_v49 }
  0x5e   :  { %2602 = vmatmul.mubr.msk.bf16.gmra.mxu0 %vm314_vm1, %v2735_v50 }
  0x5f   :  { %2668 = vmatmul.mubr.msk.bf16.gmra.mxu1 %vm314_vm1, %v2736_v51  ;;  %2605 = vmatprep.mubr.msk.bf16.mxu0 %vm314_vm1, %v2737_v52 }
  0x60   :  { %2671 = vmatprep.mubr.msk.bf16.mxu1 %vm314_vm1, %v2738_v53 }
  0x66   :  { %2606 = vmatmul.mubr.msk.bf16.gmra.mxu0 %vm314_vm1, %v2739_v54 }
  0x67   :  { %2672 = vmatmul.mubr.msk.bf16.gmra.mxu1 %vm314_vm1, %v2740_v55  ;;  %2609 = vmatprep.mubr.msk.bf16.mxu0 %vm314_vm1, %v2741_v56 }
  0x68   :  { %2675 = vmatprep.mubr.msk.bf16.mxu1 %vm314_vm1, %v2742_v57 }
  0x6e   :  { %2610 = vmatmul.mubr.msk.bf16.gmra.mxu0 %vm314_vm1, %v2743_v58 }
  0x6f   :  { %2676 = vmatmul.mubr.msk.bf16.gmra.mxu1 %vm314_vm1, %v2744_v59  ;;  %2613 = vmatprep.mubr.msk.bf16.mxu0 %vm314_vm1, %v2745_v60 }
  0x70   :  { %2679 = vmatprep.mubr.msk.bf16.mxu1 %vm314_vm1, %v2746_v61 }
  0x76   :  { %2614 = vmatmul.mubr.msk.bf16.gmra.mxu0 %vm314_vm1, %v2747_v62 }
  0x77   :  { %2680 = vmatmul.mubr.msk.bf16.gmra.mxu1 %vm314_vm1, %v2748_v63  ;;  %2617 = vmatprep.mubr.msk.bf16.mxu0 %vm314_vm1, %v2749_v0 }
  0x78   :  { %2683 = vmatprep.mubr.msk.bf16.mxu1 %vm314_vm1, %v2750_v1 }
  0x7e   :  { %2618 = vmatmul.mubr.msk.bf16.gmra.mxu0 %vm314_vm1, %v2751_v2 }
  0x7f   :  { %2684 = vmatmul.mubr.msk.bf16.gmra.mxu1 %vm314_vm1, %v2752_v3 }
  0xc6   :  { %v2559_v4 = vpop.f32.mrf.mxu0 }
  0xc7   :  { %v2625_v5 = vpop.f32.mrf.mxu1 }
  0xc8   :  { %v1006_v7 = vadd.f32 %v2625_v5, %v2559_v4  ;;  %v449_v8 = vpop.f32.mrf.mxu0 }
  0xc9   :  { %v997_v10 = vpop.f32.mrf.mxu1 }
  0xca   :  { %v1261_v11 = vmul.f32 %v3311_v6, %v1006_v7  ;;  %v998_v12 = vadd.f32 %v997_v10, %v449_v8  ;;  %v2560_v13 = vpop.f32.mrf.mxu0 }
  0xcb   :  { %v2626_v14 = vpop.f32.mrf.mxu1 }
  0xcc   :  { %v3320_v15 = vadd.f32 %v3316_v9, %v1261_v11  ;;  %v1259_v16 = vmul.f32 %v3311_v6, %v998_v12  ;;  %v1009_v17 = vadd.f32 %v2626_v14, %v2560_v13  ;;  %v452_v18 = vpop.f32.mrf.mxu0 }
  0xcd   :  { %v1000_v19 = vpop.f32.mrf.mxu1 }
  0xce   :  { %v2299_v20 = vmul.f32 -1.442695, %v3320_v15  ;;  %v3325_v21 = vadd.f32 %v3316_v9, %v1259_v16  ;;  %v1262_v22 = vmul.f32 %v3311_v6, %v1009_v17  ;;  %v1001_v23 = vadd.f32 %v1000_v19, %v452_v18  ;;  %v2563_v24 = vpop.f32.mrf.mxu0 }
  0xcf   :  { %v2629_v25 = vpop.f32.mrf.mxu1 }
  0xd0   :  { %2753 = vpow2.f32 %v2299_v20  ;;  %v2297_v26 = vmul.f32 -1.442695, %v3325_v21  ;;  %v3330_v27 = vadd.f32 %v3316_v9, %v1262_v22  ;;  %v1260_v28 = vmul.f32 %v3311_v6, %v1001_v23  ;;  %v465_v29 = vpop.f32.mrf.mxu0 }
  0xd1   :  { %v1022_v30 = vadd.f32 %v2629_v25, %v2563_v24  ;;  %v1013_v31 = vpop.f32.mrf.mxu1 }
  0xd2   :  { %2755 = vpow2.f32 %v2297_v26  ;;  %v2300_v32 = vmul.f32 -1.442695, %v3330_v27  ;;  %v3335_v33 = vadd.f32 %v3316_v9, %v1260_v28  ;;  %v1014_v34 = vadd.f32 %v1013_v31, %v465_v29  ;;  %v2564_v35 = vpop.f32.mrf.mxu0 }
  0xd3   :  { %v1265_v36 = vmul.f32 %v3311_v6, %v1022_v30  ;;  %v2630_v37 = vpop.f32.mrf.mxu1 }
  0xd4   :  { %2757 = vpow2.f32 %v2300_v32  ;;  %v2298_v38 = vmul.f32 -1.442695, %v3335_v33  ;;  %v1263_v39 = vmul.f32 %v3311_v6, %v1014_v34  ;;  %v1025_v40 = vadd.f32 %v2630_v37, %v2564_v35  ;;  %v468_v41 = vpop.f32.mrf.mxu0 }
  0xd5   :  { %v3341_v42 = vadd.f32 %v3316_v9, %v1265_v36  ;;  %v1016_v43 = vpop.f32.mrf.mxu1 }
  0xd6   :  { %2759 = vpow2.f32 %v2298_v38  ;;  %v3344_v44 = vadd.f32 %v3316_v9, %v1263_v39  ;;  %v1266_v45 = vmul.f32 %v3311_v6, %v1025_v40  ;;  %v1017_v46 = vadd.f32 %v1016_v43, %v468_v41  ;;  %v2567_v47 = vpop.f32.mrf.mxu0 }
  0xd7   :  { %v2303_v48 = vmul.f32 -1.442695, %v3341_v42  ;;  %v2633_v49 = vpop.f32.mrf.mxu1 }
  0xd8   :  { %v2301_v50 = vmul.f32 -1.442695, %v3344_v44  ;;  %v3350_v51 = vadd.f32 %v3316_v9, %v1266_v45  ;;  %v1264_v52 = vmul.f32 %v3311_v6, %v1017_v46  ;;  %v1038_v53 = vadd.f32 %v2633_v49, %v2567_v47  ;;  %v481_v54 = vpop.f32.mrf.mxu0 }
  0xd9   :  { %2761 = vpow2.f32 %v2303_v48  ;;  %v1029_v55 = vpop.f32.mrf.mxu1 }
  0xda   :  { %2763 = vpow2.f32 %v2301_v50  ;;  %v2304_v56 = vmul.f32 -1.442695, %v3350_v51  ;;  %v3355_v57 = vadd.f32 %v3316_v9, %v1264_v52  ;;  %v1269_v58 = vmul.f32 %v3311_v6, %v1038_v53  ;;  %v2568_v59 = vpop.f32.mrf.mxu0 }
  0xdb   :  { %v1030_v60 = vadd.f32 %v1029_v55, %v481_v54  ;;  %v2634_v61 = vpop.f32.mrf.mxu1 }
  0xdc   :  { %2765 = vpow2.f32 %v2304_v56  ;;  %v2302_v62 = vmul.f32 -1.442695, %v3355_v57  ;;  %v3360_v63 = vadd.f32 %v3316_v9, %v1269_v58  ;;  %v1041_v0 = vadd.f32 %v2634_v61, %v2568_v59  ;;  %v484_v1 = vpop.f32.mrf.mxu0 }
  0xdd   :  { %v2754_v2 = vpop.eup %2753  ;;  %v1267_v3 = vmul.f32 %v3311_v6, %v1030_v60  ;;  %v1032_v4 = vpop.f32.mrf.mxu1 }
  0xde   :  { %v1588_v5 = vadd.f32 1.0, %v2754_v2  ;;  %2767 = vpow2.f32 %v2302_v62  ;;  %v2307_v7 = vmul.f32 -1.442695, %v3360_v63  ;;  %v1270_v8 = vmul.f32 %v3311_v6, %v1041_v0  ;;  %v2571_v10 = vpop.f32.mrf.mxu0 }
  0xdf   :  { %v2756_v11 = vpop.eup %2755  ;;  %v3366_v12 = vadd.f32 %v3316_v9, %v1267_v3  ;;  %v1033_v13 = vadd.f32 %v1032_v4, %v484_v1  ;;  %v2637_v14 = vpop.f32.mrf.mxu1 }
  0xe0   :  { %2769 = vrcp.f32 %v1588_v5  ;;  %v1586_v16 = vadd.f32 1.0, %v2756_v11  ;;  %v3369_v17 = vadd.f32 %v3316_v9, %v1270_v8  ;;  %v1054_v18 = vadd.f32 %v2637_v14, %v2571_v10  ;;  %v497_v19 = vpop.f32.mrf.mxu0 }
  0xe1   :  { %v2758_v20 = vpop.eup %2757  ;;  %2771 = vpow2.f32 %v2307_v7  ;;  %v2305_v22 = vmul.f32 -1.442695, %v3366_v12  ;;  %v1268_v23 = vmul.f32 %v3311_v6, %v1033_v13  ;;  %v1045_v24 = vpop.f32.mrf.mxu1 }
  0xe2   :  { %2773 = vrcp.f32 %v1586_v16  ;;  %v1589_v25 = vadd.f32 1.0, %v2758_v20  ;;  %v2308_v26 = vmul.f32 -1.442695, %v3369_v17  ;;  %v1273_v28 = vmul.f32 %v3311_v6, %v1054_v18  ;;  %v2572_v29 = vpop.f32.mrf.mxu0 }
  0xe3   :  { %v2760_v30 = vpop.eup %2759  ;;  %2775 = vpow2.f32 %v2305_v22  ;;  %v3376_v31 = vadd.f32 %v3316_v9, %v1268_v23  ;;  %v1046_v32 = vadd.f32 %v1045_v24, %v497_v19  ;;  %v2638_v34 = vpop.f32.mrf.mxu1 }
  0xe4   :  { %2777 = vrcp.f32 %v1589_v25  ;;  %v1587_v35 = vadd.f32 1.0, %v2760_v30  ;;  %v3379_v36 = vadd.f32 %v3316_v9, %v1273_v28  ;;  %v1057_v37 = vadd.f32 %v2638_v34, %v2572_v29  ;;  %v500_v38 = vpop.f32.mrf.mxu0 }
  0xe5   :  { %2779 = vpow2.f32 %v2308_v26  ;;  %v2306_v39 = vmul.f32 -1.442695, %v3376_v31  ;;  %v1271_v40 = vmul.f32 %v3311_v6, %v1046_v32  ;;  %v1048_v41 = vpop.f32.mrf.mxu1 }
  0xe6   :  { %v2762_v43 = vpop.eup %2761  ;;  %2781 = vrcp.f32 %v1587_v35  ;;  %v2311_v45 = vmul.f32 -1.442695, %v3379_v36  ;;  %v1274_v46 = vmul.f32 %v3311_v6, %v1057_v37  ;;  %v1049_v47 = vadd.f32 %v1048_v41, %v500_v38  ;;  %v2575_v48 = vpop.f32.mrf.mxu0 }
  0xe7   :  { %v2764_v49 = vpop.eup %2763  ;;  %v1592_v50 = vadd.f32 1.0, %v2762_v43  ;;  %2783 = vpow2.f32 %v2306_v39  ;;  %v3386_v52 = vadd.f32 %v3316_v9, %v1271_v40  ;;  %v2641_v53 = vpop.f32.mrf.mxu1 }
  0xe8   :  { %v1590_v54 = vadd.f32 1.0, %v2764_v49  ;;  %2785 = vpow2.f32 %v2311_v45  ;;  %v3389_v55 = vadd.f32 %v3316_v9, %v1274_v46  ;;  %v1272_v56 = vmul.f32 %v3311_v6, %v1049_v47  ;;  %v513_v58 = vpop.f32.mrf.mxu0 }
  0xe9   :  { %v2766_v59 = vpop.eup %2765  ;;  %2787 = vrcp.f32 %v1592_v50  ;;  %v2309_v60 = vmul.f32 -1.442695, %v3386_v52  ;;  %v1070_v61 = vadd.f32 %v2641_v53, %v2575_v48  ;;  %v1061_v62 = vpop.f32.mrf.mxu1 }
  0xea   :  { %2789 = vrcp.f32 %v1590_v54  ;;  %v1593_v0 = vadd.f32 1.0, %v2766_v59  ;;  %v2312_v1 = vmul.f32 -1.442695, %v3389_v55  ;;  %v3395_v2 = vadd.f32 %v3316_v9, %v1272_v56  ;;  %v2576_v3 = vpop.f32.mrf.mxu0 }
  0xeb   :  { %v2768_v4 = vpop.eup %2767  ;;  %2791 = vpow2.f32 %v2309_v60  ;;  %v1277_v5 = vmul.f32 %v3311_v6, %v1070_v61  ;;  %v1062_v7 = vadd.f32 %v1061_v62, %v513_v58  ;;  %v2642_v8 = vpop.f32.mrf.mxu1 }
  0xec   :  { %2793 = vrcp.f32 %v1593_v0  ;;  %v1591_v10 = vadd.f32 1.0, %v2768_v4  ;;  %v2310_v11 = vmul.f32 -1.442695, %v3395_v2  ;;  %v1073_v13 = vadd.f32 %v2642_v8, %v2576_v3  ;;  %v516_v14 = vpop.f32.mrf.mxu0 }
  0xed   :  { %v2770_v16 = vpop.eup %2769  ;;  %2795 = vpow2.f32 %v2312_v1  ;;  %v3400_v18 = vadd.f32 %v3316_v9, %v1277_v5  ;;  %v1275_v19 = vmul.f32 %v3311_v6, %v1062_v7  ;;  %v1064_v20 = vpop.f32.mrf.mxu1 }
  0xee   :  { %v2772_v22 = vpop.eup %2771  ;;  %v1780_v23 = vmul.f32 %v2770_v16, %v3320_v15  ;;  %2797 = vrcp.f32 %v1591_v10  ;;  %v1278_v24 = vmul.f32 %v3311_v6, %v1073_v13  ;;  %v1065_v25 = vadd.f32 %v1064_v20, %v516_v14  ;;  %v2579_v26 = vpop.f32.mrf.mxu0 }
  0xef   :  { %v2774_v28 = vpop.eup %2773  ;;  %v1596_v29 = vadd.f32 1.0, %v2772_v22  ;;  %2799 = vpow2.f32 %v2310_v11  ;;  %v2315_v30 = vmul.f32 -1.442695, %v3400_v18  ;;  %v3407_v32 = vadd.f32 %v3316_v9, %v1275_v19  ;;  %v2645_v34 = vpop.f32.mrf.mxu1 }
  0xf0   :  { %v2776_v35 = vpop.eup %2775  ;;  %v2427_v37 = vpack.c.bf16 %v1780_v23, %v1780_v23  ;;  %v1778_v38 = vmul.f32 %v2774_v28, %v3325_v21  ;;  %v3411_v15 = vadd.f32 %v3316_v9, %v1278_v24  ;;  %v1276_v39 = vmul.f32 %v3311_v6, %v1065_v25  ;;  %v529_v40 = vpop.f32.mrf.mxu0 }
  0xf1   :  { %v2778_v41 = vpop.eup %2777  ;;  %2801 = vrcp.f32 %v1596_v29  ;;  %v1594_v43 = vadd.f32 1.0, %v2776_v35  ;;  %v2313_v45 = vmul.f32 -1.442695, %v3407_v32  ;;  %v1086_v46 = vadd.f32 %v2645_v34, %v2579_v26  ;;  %v1077_v47 = vpop.f32.mrf.mxu1 }
  0xf2   :  { %v2780_v48 = vpop.eup %2779  ;;  %2101 = vst.msk [vmem:[%s4031_s6 + $0x8] sm:$0xf] %vm2098_vm2, %v2427_v37  ;;  %v2425_v21 = vpack.c.bf16 %v1778_v38, %v1778_v38  ;;  %v1781_v49 = vmul.f32 %v2778_v41, %v3330_v27  ;;  %2803 = vpow2.f32 %v2315_v30  ;;  %v2316_v50 = vmul.f32 -1.442695, %v3411_v15  ;;  %v2580_v53 = vpop.f32.mrf.mxu0 }
  0xf3   :  { %v2782_v54 = vpop.eup %2781  ;;  %2805 = vrcp.f32 %v1594_v43  ;;  %v1597_v56 = vadd.f32 1.0, %v2780_v48  ;;  %v3422_v58 = vadd.f32 %v3316_v9, %v1276_v39  ;;  %v1281_v59 = vmul.f32 %v3311_v6, %v1086_v46  ;;  %v2646_v60 = vpop.f32.mrf.mxu1 }
  0xf4   :  { %v2784_v61 = vpop.eup %2783  ;;  %2099 = vst.msk [vmem:[%s4031_s6] sm:$0xf] %vm2098_vm2, %v2425_v21  ;;  %v2428_v27 = vpack.c.bf16 %v1781_v49, %v1781_v49  ;;  %v1779_v62 = vmul.f32 %v2782_v54, %v3335_v33  ;;  %2807 = vpow2.f32 %v2313_v45  ;;  %v1078_v0 = vadd.f32 %v1077_v47, %v529_v40  ;;  %v532_v1 = vpop.f32.mrf.mxu0 }
  0xf5   :  { %v2786_v3 = vpop.eup %2785  ;;  %2809 = vrcp.f32 %v1597_v56  ;;  %v1595_v4 = vadd.f32 1.0, %v2784_v61  ;;  %v2314_v5 = vmul.f32 -1.442695, %v3422_v58  ;;  %v3432_v7 = vadd.f32 %v3316_v9, %v1281_v59  ;;  %v1080_v8 = vpop.f32.mrf.mxu1 }
  0xf6   :  { %v2788_v10 = vpop.eup %2787  ;;  %2102 = vst.msk [vmem:[%s4031_s6 + $0xc] sm:$0xf] %vm2098_vm2, %v2428_v27  ;;  %v2426_v11 = vpack.c.bf16 %v1779_v62, %v1779_v62  ;;  %v1600_v33 = vadd.f32 1.0, %v2786_v3  ;;  %2811 = vpow2.f32 %v2316_v50  ;;  %v1279_v13 = vmul.f32 %v3311_v6, %v1078_v0  ;;  %v2583_v14 = vpop.f32.mrf.mxu0 }
  0xf7   :  { %v2790_v16 = vpop.eup %2789  ;;  %v1784_v19 = vmul.f32 %v2788_v10, %v3341_v42  ;;  %2813 = vrcp.f32 %v1595_v4  ;;  %v2319_v20 = vmul.f32 -1.442695, %v3432_v7  ;;  %v1089_v22 = vadd.f32 %v2646_v60, %v2580_v53  ;;  %v2649_v23 = vpop.f32.mrf.mxu1 }
  0xf8   :  { %v2792_v24 = vpop.eup %2791  ;;  %2100 = vst.msk [vmem:[%s4031_s6 + $0x4] sm:$0xf] %vm2098_vm2, %v2426_v11  ;;  %v1782_v25 = vmul.f32 %v2790_v16, %v3344_v44  ;;  %2815 = vrcp.f32 %v1600_v33  ;;  %v3447_v26 = vadd.f32 %v3316_v9, %v1279_v13  ;;  %v1081_v28 = vadd.f32 %v1080_v8, %v532_v1  ;;  %v545_v29 = vpop.f32.mrf.mxu0 }
  0xf9   :  { %v2794_v42 = vpop.eup %2793  ;;  %v2431_v30 = vpack.c.bf16 %v1784_v19, %v1784_v19  ;;  %v1598_v34 = vadd.f32 1.0, %v2792_v24  ;;  %2817 = vpow2.f32 %v2314_v5  ;;  %v1282_v35 = vmul.f32 %v3311_v6, %v1089_v22  ;;  %v1093_v37 = vpop.f32.mrf.mxu1 }
  0xfa   :  { %v2796_v38 = vpop.eup %2795  ;;  %v2429_v39 = vpack.c.bf16 %v1782_v25, %v1782_v25  ;;  %v1785_v40 = vmul.f32 %v2794_v42, %v3350_v51  ;;  %2819 = vpow2.f32 %v2319_v20  ;;  %v2317_v44 = vmul.f32 -1.442695, %v3447_v26  ;;  %v2584_v41 = vpop.f32.mrf.mxu0 }
  0xfb   :  { %v2798_v43 = vpop.eup %2797  ;;  %2105 = vst.msk [vmem:[%s4031_s6 + $0x18] sm:$0xf] %vm2098_vm2, %v2431_v30  ;;  %2821 = vrcp.f32 %v1598_v34  ;;  %v1601_v45 = vadd.f32 1.0, %v2796_v38  ;;  %v3457_v46 = vadd.f32 %v3316_v9, %v1282_v35  ;;  %v1280_v47 = vmul.f32 %v3311_v6, %v1081_v28  ;;  %v2650_v48 = vpop.f32.mrf.mxu1 }
  0xfc   :  { %v2800_v21 = vpop.eup %2799  ;;  %2103 = vst.msk [vmem:[%s4031_s6 + $0x10] sm:$0xf] %vm2098_vm2, %v2429_v39  ;;  %v2432_v51 = vpack.c.bf16 %v1785_v40, %v1785_v40  ;;  %v1783_v49 = vmul.f32 %v2798_v43, %v3355_v57  ;;  %2823 = vpow2.f32 %v2317_v44  ;;  %v1102_v50 = vadd.f32 %v2649_v23, %v2583_v14  ;;  %v548_v53 = vpop.f32.mrf.mxu0 }
  0xfd   :  { %2825 = vrcp.f32 %v1601_v45  ;;  %v1599_v54 = vadd.f32 1.0, %v2800_v21  ;;  %v2320_v56 = vmul.f32 -1.442695, %v3457_v46  ;;  %v3467_v59 = vadd.f32 %v3316_v9, %v1280_v47  ;;  %v1096_v60 = vpop.f32.mrf.mxu1 }
  0xfe   :  { %v2802_v61 = vpop.eup %2801  ;;  %2106 = vst.msk [vmem:[%s4031_s6 + $0x1c] sm:$0xf] %vm2098_vm2, %v2432_v51  ;;  %v2430_v27 = vpack.c.bf16 %v1783_v49, %v1783_v49  ;;  %v1285_v57 = vmul.f32 %v3311_v6, %v1102_v50  ;;  %v1094_v62 = vadd.f32 %v1093_v37, %v545_v29  ;;  %v1105_v0 = vadd.f32 %v2650_v48, %v2584_v41  ;;  %v2587_v1 = vpop.f32.mrf.mxu0 }
  0xff   :  { %v2804_v3 = vpop.eup %2803  ;;  %v1788_v4 = vmul.f32 %v2802_v61, %v3360_v63  ;;  %2827 = vrcp.f32 %v1599_v54  ;;  %v2318_v5 = vmul.f32 -1.442695, %v3467_v59  ;;  %v1097_v8 = vadd.f32 %v1096_v60, %v548_v53  ;;  %v2653_v10 = vpop.f32.mrf.mxu1 }
 0x100   :  { %v2806_v11 = vpop.eup %2805  ;;  %2104 = vst.msk [vmem:[%s4031_s6 + $0x14] sm:$0xf] %vm2098_vm2, %v2430_v27  ;;  %v1604_v33 = vadd.f32 1.0, %v2804_v3  ;;  %2829 = vpow2.f32 %v2320_v56  ;;  %v3481_v13 = vadd.f32 %v3316_v9, %v1285_v57  ;;  %v1283_v14 = vmul.f32 %v3311_v6, %v1094_v62  ;;  %v561_v16 = vpop.f32.mrf.mxu0 }
 0x101   :  { %v2808_v63 = vpop.eup %2807  ;;  %v2435_v19 = vpack.c.bf16 %v1788_v4, %v1788_v4  ;;  %v1786_v20 = vmul.f32 %v2806_v11, %v3366_v12  ;;  %2831 = vpow2.f32 %v2318_v5  ;;  %v1286_v22 = vmul.f32 %v3311_v6, %v1105_v0  ;;  %v1109_v23 = vpop.f32.mrf.mxu1 }
 0x102   :  { %v2810_v24 = vpop.eup %2809  ;;  %2833 = vrcp.f32 %v1604_v33  ;;  %v1602_v25 = vadd.f32 1.0, %v2808_v63  ;;  %v2323_v28 = vmul.f32 -1.442695, %v3481_v13  ;;  %v3488_v29 = vadd.f32 %v3316_v9, %v1283_v14  ;;  %v2588_v42 = vpop.f32.mrf.mxu0 }
 0x103   :  { %v2812_v30 = vpop.eup %2811  ;;  %2109 = vst.msk [vmem:[%s4031_s6 + $0x28] sm:$0xf] %vm2098_vm2, %v2435_v19  ;;  %v2433_v12 = vpack.c.bf16 %v1786_v20, %v1786_v20  ;;  %v1789_v34 = vmul.f32 %v2810_v24, %v3369_v17  ;;  %v3496_v35 = vadd.f32 %v3316_v9, %v1286_v22  ;;  %v1284_v37 = vmul.f32 %v3311_v6, %v1097_v8  ;;  %v2654_v38 = vpop.f32.mrf.mxu1 }
 0x104   :  { %v2814_v39 = vpop.eup %2813  ;;  %2835 = vrcp.f32 %v1602_v25  ;;  %v1605_v40 = vadd.f32 1.0, %v2812_v30  ;;  %v2321_v44 = vmul.f32 -1.442695, %v3488_v29  ;;  %v1118_v41 = vadd.f32 %v2653_v10, %v2587_v1  ;;  %v564_v43 = vpop.f32.mrf.mxu0 }
 0x105   :  { %v2816_v45 = vpop.eup %2815  ;;  %2107 = vst.msk [vmem:[%s4031_s6 + $0x20] sm:$0xf] %vm2098_vm2, %v2433_v12  ;;  %v2436_v17 = vpack.c.bf16 %v1789_v34, %v1789_v34  ;;  %v1787_v47 = vmul.f32 %v2814_v39, %v3376_v31  ;;  %2837 = vpow2.f32 %v2323_v28  ;;  %v2324_v48 = vmul.f32 -1.442695, %v3496_v35  ;;  %v1112_v21 = vpop.f32.mrf.mxu1 }
 0x106   :  { %v2818_v51 = vpop.eup %2817  ;;  %v1792_v49 = vmul.f32 %v2816_v45, %v3379_v36  ;;  %2839 = vrcp.f32 %v1605_v40  ;;  %v3508_v50 = vadd.f32 %v3316_v9, %v1284_v37  ;;  %v1289_v53 = vmul.f32 %v3311_v6, %v1118_v41  ;;  %v2591_v54 = vpop.f32.mrf.mxu0 }
 0x107   :  { %v2820_v56 = vpop.eup %2819  ;;  %2110 = vst.msk [vmem:[%s4031_s6 + $0x2c] sm:$0xf] %vm2098_vm2, %v2436_v17  ;;  %v2434_v31 = vpack.c.bf16 %v1787_v47, %v1787_v47  ;;  %v1603_v60 = vadd.f32 1.0, %v2818_v51  ;;  %2841 = vpow2.f32 %v2321_v44  ;;  %v1110_v61 = vadd.f32 %v1109_v23, %v561_v16  ;;  %v2657_v27 = vpop.f32.mrf.mxu1 }
 0x108   :  { %v2822_v57 = vpop.eup %2821  ;;  %v2439_v36 = vpack.c.bf16 %v1792_v49, %v1792_v49  ;;  %v1608_v62 = vadd.f32 1.0, %v2820_v56  ;;  %2843 = vpow2.f32 %v2324_v48  ;;  %v2322_v0 = vmul.f32 -1.442695, %v3508_v50  ;;  %v577_v1 = vpop.f32.mrf.mxu0 }
 0x109   :  { %v2824_v3 = vpop.eup %2823  ;;  %2108 = vst.msk [vmem:[%s4031_s6 + $0x24] sm:$0xf] %vm2098_vm2, %v2434_v31  ;;  %v1790_v4 = vmul.f32 %v2822_v57, %v3386_v52  ;;  %2845 = vrcp.f32 %v1603_v60  ;;  %v3522_v5 = vadd.f32 %v3316_v9, %v1289_v53  ;;  %v1287_v8 = vmul.f32 %v3311_v6, %v1110_v61  ;;  %v1125_v10 = vpop.f32.mrf.mxu1 }
 0x10a   :  { %v2826_v11 = vpop.eup %2825  ;;  %2113 = vst.msk [vmem:[%s4031_s6 + $0x38] sm:$0xf] %vm2098_vm2, %v2439_v36  ;;  %2847 = vrcp.f32 %v1608_v62  ;;  %v1606_v33 = vadd.f32 1.0, %v2824_v3  ;;  %v1121_v14 = vadd.f32 %v2654_v38, %v2588_v42  ;;  %v1113_v16 = vadd.f32 %v1112_v21, %v564_v43  ;;  %v2592_v63 = vpop.f32.mrf.mxu0 }
 0x10b   :  { %v2437_v19 = vpack.c.bf16 %v1790_v4, %v1790_v4  ;;  %v1793_v52 = vmul.f32 %v2826_v11, %v3389_v55  ;;  %2849 = vpow2.f32 %v2322_v0  ;;  %v2327_v20 = vmul.f32 -1.442695, %v3522_v5  ;;  %v2658_v22 = vpop.f32.mrf.mxu1 }
 0x10c   :  { %v2828_v23 = vpop.eup %2827  ;;  %2851 = vrcp.f32 %v1606_v33  ;;  %v3532_v24 = vadd.f32 %v3316_v9, %v1287_v8  ;;  %v1290_v25 = vmul.f32 %v3311_v6, %v1121_v14  ;;  %v1288_v28 = vmul.f32 %v3311_v6, %v1113_v16  ;;  %v580_v30 = vpop.f32.mrf.mxu0 }
 0x10d   :  { %v2830_v42 = vpop.eup %2829  ;;  %2111 = vst.msk [vmem:[%s4031_s6 + $0x30] sm:$0xf] %vm2098_vm2, %v2437_v19  ;;  %v2440_v55 = vpack.c.bf16 %v1793_v52, %v1793_v52  ;;  %v1791_v12 = vmul.f32 %v2828_v23, %v3395_v2  ;;  %2853 = vpow2.f32 %v2327_v20  ;;  %v1134_v34 = vadd.f32 %v2657_v27, %v2591_v54  ;;  %v1128_v37 = vpop.f32.mrf.mxu1 }
 0x10e   :  { %v2832_v38 = vpop.eup %2831  ;;  %v1609_v39 = vadd.f32 1.0, %v2830_v42  ;;  %v2325_v40 = vmul.f32 -1.442695, %v3532_v24  ;;  %v3543_v44 = vadd.f32 %v3316_v9, %v1290_v25  ;;  %v3546_v41 = vadd.f32 %v3316_v9, %v1288_v28  ;;  %v2595_v43 = vpop.f32.mrf.mxu0 }
 0x10f   :  { %v2834_v45 = vpop.eup %2833  ;;  %2114 = vst.msk [vmem:[%s4031_s6 + $0x3c] sm:$0xf] %vm2098_vm2, %v2440_v55  ;;  %v2438_v2 = vpack.c.bf16 %v1791_v12, %v1791_v12  ;;  %v1607_v17 = vadd.f32 1.0, %v2832_v38  ;;  %v1293_v47 = vmul.f32 %v3311_v6, %v1134_v34  ;;  %v1126_v48 = vadd.f32 %v1125_v10, %v577_v1  ;;  %v2661_v21 = vpop.f32.mrf.mxu1 }
 0x110   :  { %v1796_v51 = vmul.f32 %v2834_v45, %v3400_v18  ;;  %2855 = vrcp.f32 %v1609_v39  ;;  %v2328_v49 = vmul.f32 -1.442695, %v3543_v44  ;;  %v2326_v53 = vmul.f32 -1.442695, %v3546_v41  ;;  %v593_v54 = vpop.f32.mrf.mxu0 }
 0x111   :  { %v2836_v56 = vpop.eup %2835  ;;  %2112 = vst.msk [vmem:[%s4031_s6 + $0x34] sm:$0xf] %vm2098_vm2, %v2438_v2  ;;  %2857 = vrcp.f32 %v1607_v17  ;;  %v3561_v31 = vadd.f32 %v3316_v9, %v1293_v47  ;;  %v1291_v60 = vmul.f32 %v3311_v6, %v1126_v48  ;;  %v1137_v61 = vadd.f32 %v2658_v22, %v2592_v63  ;;  %v1141_v18 = vpop.f32.mrf.mxu1 }
 0x112   :  { %v2838_v27 = vpop.eup %2837  ;;  %v2443_v57 = vpack.c.bf16 %v1796_v51, %v1796_v51  ;;  %v1794_v36 = vmul.f32 %v2836_v56, %v3407_v32  ;;  %2859 = vpow2.f32 %v2325_v40  ;;  %v1129_v62 = vadd.f32 %v1128_v37, %v580_v30  ;;  %v2596_v0 = vpop.f32.mrf.mxu0 }
 0x113   :  { %v2840_v1 = vpop.eup %2839  ;;  %v1612_v3 = vadd.f32 1.0, %v2838_v27  ;;  %2861 = vpow2.f32 %v2328_v49  ;;  %v2331_v4 = vmul.f32 -1.442695, %v3561_v31  ;;  %v3567_v8 = vadd.f32 %v3316_v9, %v1291_v60  ;;  %v2662_v10 = vpop.f32.mrf.mxu1 }
 0x114   :  { %v2842_v11 = vpop.eup %2841  ;;  %2117 = vst.msk [vmem:[%s4031_s6 + $0x48] sm:$0xf] %vm2098_vm2, %v2443_v57  ;;  %v2441_v33 = vpack.c.bf16 %v1794_v36, %v1794_v36  ;;  %v1797_v32 = vmul.f32 %v2840_v1, %v3411_v15  ;;  %2863 = vpow2.f32 %v2326_v53  ;;  %v1294_v14 = vmul.f32 %v3311_v6, %v1137_v61  ;;  %v596_v16 = vpop.f32.mrf.mxu0 }
 0x115   :  { %v2844_v63 = vpop.eup %2843  ;;  %2865 = vrcp.f32 %v1612_v3  ;;  %v1610_v19 = vadd.f32 1.0, %v2842_v11  ;;  %v2329_v52 = vmul.f32 -1.442695, %v3567_v8  ;;  %v1292_v20 = vmul.f32 %v3311_v6, %v1129_v62  ;;  %v1144_v22 = vpop.f32.mrf.mxu1 }
 0x116   :  { %v2846_v23 = vpop.eup %2845  ;;  %2115 = vst.msk [vmem:[%s4031_s6 + $0x40] sm:$0xf] %vm2098_vm2, %v2441_v33  ;;  %v2444_v25 = vpack.c.bf16 %v1797_v32, %v1797_v32  ;;  %v1613_v15 = vadd.f32 1.0, %v2844_v63  ;;  %2867 = vpow2.f32 %v2331_v4  ;;  %v3582_v28 = vadd.f32 %v3316_v9, %v1294_v14  ;;  %v2599_v30 = vpop.f32.mrf.mxu0 }
 0x117   :  { %v2848_v42 = vpop.eup %2847  ;;  %v1795_v55 = vmul.f32 %v2846_v23, %v3422_v58  ;;  %2869 = vrcp.f32 %v1610_v19  ;;  %v3586_v12 = vadd.f32 %v3316_v9, %v1292_v20  ;;  %v1150_v34 = vadd.f32 %v2661_v21, %v2595_v43  ;;  %v2665_v37 = vpop.f32.mrf.mxu1 }
 0x118   :  { %v2850_v38 = vpop.eup %2849  ;;  %2118 = vst.msk [vmem:[%s4031_s6 + $0x4c] sm:$0xf] %vm2098_vm2, %v2444_v25  ;;  %v1800_v39 = vmul.f32 %v2848_v42, %v3432_v7  ;;  %2871 = vrcp.f32 %v1613_v15  ;;  %v2332_v40 = vmul.f32 -1.442695, %v3582_v28  ;;  %v1142_v45 = vadd.f32 %v1141_v18, %v593_v54  ;;  %v609_v2 = vpop.f32.mrf.mxu0 }
 0x119   :  { %v2852_v58 = vpop.eup %2851  ;;  %v2442_v17 = vpack.c.bf16 %v1795_v55, %v1795_v55  ;;  %v1611_v47 = vadd.f32 1.0, %v2850_v38  ;;  %2873 = vpow2.f32 %v2329_v52  ;;  %v2330_v43 = vmul.f32 -1.442695, %v3586_v12  ;;  %v1157_v48 = vpop.f32.mrf.mxu1 }
 0x11a   :  { %v2854_v21 = vpop.eup %2853  ;;  %v2447_v51 = vpack.c.bf16 %v1800_v39, %v1800_v39  ;;  %v1798_v49 = vmul.f32 %v2852_v58, %v3447_v26  ;;  %2875 = vpow2.f32 %v2332_v40  ;;  %v1297_v53 = vmul.f32 %v3311_v6, %v1150_v34  ;;  %v2600_v7 = vpop.f32.mrf.mxu0 }
 0x11b   :  { %2116 = vst.msk [vmem:[%s4031_s6 + $0x44] sm:$0xf] %vm2098_vm2, %v2442_v17  ;;  %2877 = vrcp.f32 %v1611_v47  ;;  %v1616_v54 = vadd.f32 1.0, %v2854_v21  ;;  %v1295_v56 = vmul.f32 %v3311_v6, %v1142_v45  ;;  %v1153_v60 = vadd.f32 %v2662_v10, %v2596_v0  ;;  %v2666_v61 = vpop.f32.mrf.mxu1 }
 0x11c   :  { %2121 = vst.msk [vmem:[%s4031_s6 + $0x58] sm:$0xf] %vm2098_vm2, %v2447_v51  ;;  %v2445_v26 = vpack.c.bf16 %v1798_v49, %v1798_v49  ;;  %2879 = vpow2.f32 %v2330_v43  ;;  %v3607_v18 = vadd.f32 %v3316_v9, %v1297_v53  ;;  %v1145_v27 = vadd.f32 %v1144_v22, %v596_v16  ;;  %v612_v57 = vpop.f32.mrf.mxu0 }
 0x11d   :  { %v2856_v36 = vpop.eup %2855  ;;  %2881 = vrcp.f32 %v1616_v54  ;;  %v3610_v62 = vadd.f32 %v3316_v9, %v1295_v56  ;;  %v1298_v0 = vmul.f32 %v3311_v6, %v1153_v60  ;;  %v1166_v1 = vadd.f32 %v2665_v37, %v2599_v30  ;;  %v1160_v3 = vpop.f32.mrf.mxu1 }
 0x11e   :  { %v2858_v4 = vpop.eup %2857  ;;  %2119 = vst.msk [vmem:[%s4031_s6 + $0x50] sm:$0xf] %vm2098_vm2, %v2445_v26  ;;  %v1801_v10 = vmul.f32 %v2856_v36, %v3457_v46  ;;  %v2335_v11 = vmul.f32 -1.442695, %v3607_v18  ;;  %v1296_v33 = vmul.f32 %v3311_v6, %v1145_v27  ;;  %v1158_v32 = vadd.f32 %v1157_v48, %v609_v2  ;;  %v3620_v14 = vpop.f32.mrf.mxu0 }
 0x11f   :  { %v2860_v16 = vpop.eup %2859  ;;  %v1799_v63 = vmul.f32 %v2858_v4, %v3467_v59  ;;  %v2333_v19 = vmul.f32 -1.442695, %v3610_v62  ;;  %v3625_v52 = vadd.f32 %v3316_v9, %v1298_v0  ;;  %v1301_v20 = vmul.f32 %v3311_v6, %v1166_v1  ;;  %v3628_v22 = vpop.f32.mrf.mxu1 }
 0x120   :  { %v2862_v46 = vpop.eup %2861  ;;  %v2448_v23 = vpack.c.bf16 %v1801_v10, %v1801_v10  ;;  %v1614_v25 = vadd.f32 1.0, %v2860_v16  ;;  %2883 = vpow2.f32 %v2335_v11  ;;  %v3631_v15 = vadd.f32 %v3316_v9, %v1296_v33  ;;  %v3633_v30 = vpop.f32.mrf.mxu0 }
 0x121   :  { %v2864_v42 = vpop.eup %2863  ;;  %v2446_v59 = vpack.c.bf16 %v1799_v63, %v1799_v63  ;;  %v1617_v55 = vadd.f32 1.0, %v2862_v46  ;;  %2885 = vpow2.f32 %v2333_v19  ;;  %v2336_v34 = vmul.f32 -1.442695, %v3625_v52  ;;  %v1173_v37 = vpop.f32.mrf.mxu1 }
 0x122   :  { %v2866_v38 = vpop.eup %2865  ;;  %2122 = vst.msk [vmem:[%s4031_s6 + $0x5c] sm:$0xf] %vm2098_vm2, %v2448_v23  ;;  %2887 = vrcp.f32 %v1614_v25  ;;  %v1615_v39 = vadd.f32 1.0, %v2864_v42  ;;  %v2334_v40 = vmul.f32 -1.442695, %v3631_v15  ;;  %v3642_v45 = vadd.f32 %v3316_v9, %v1301_v20  ;;  %v3644_v2 = vpop.f32.mrf.mxu0 }
 0x123   :  { %v2868_v58 = vpop.eup %2867  ;;  %2120 = vst.msk [vmem:[%s4031_s6 + $0x54] sm:$0xf] %vm2098_vm2, %v2446_v59  ;;  %v1804_v17 = vmul.f32 %v2866_v38, %v3481_v13  ;;  %2889 = vrcp.f32 %v1617_v55  ;;  %v1299_v47 = vmul.f32 %v3311_v6, %v1158_v32  ;;  %v1169_v43 = vadd.f32 %v2666_v61, %v2600_v7  ;;  %v2670_v48 = vpop.f32.mrf.mxu1  ;;  %v3702_v38 = vld [vmem:[%s4029_s4] ss:$0 sm:$0xff] }
 0x124   :  { %v2870_v21 = vpop.eup %2869  ;;  %2891 = vrcp.f32 %v1615_v39  ;;  %v1620_v51 = vadd.f32 1.0, %v2868_v58  ;;  %v2339_v49 = vmul.f32 -1.442695, %v3642_v45  ;;  %v1161_v53 = vadd.f32 %v1160_v3, %v612_v57  ;;  %v628_v54 = vpop.f32.mrf.mxu0 }
 0x125   :  { %v2872_v56 = vpop.eup %2871  ;;  %v2451_v60 = vpack.c.bf16 %v1804_v17, %v1804_v17  ;;  %v1802_v26 = vmul.f32 %v2870_v21, %v3488_v29  ;;  %2893 = vpow2.f32 %v2336_v34  ;;  %v3655_v27 = vadd.f32 %v3316_v9, %v1299_v47  ;;  %v1176_v13 = vpop.f32.mrf.mxu1 }
 0x126   :  { %v2874_v36 = vpop.eup %2873  ;;  %v1805_v7 = vmul.f32 %v2872_v56, %v3496_v35  ;;  %2895 = vrcp.f32 %v1620_v51  ;;  %v1302_v61 = vmul.f32 %v3311_v6, %v1169_v43  ;;  %v1300_v0 = vmul.f32 %v3311_v6, %v1161_v53  ;;  %v2607_v1 = vpop.f32.mrf.mxu0  ;;  %v3668_v6 = vld [vmem:[%s4030_s5] ss:$0 sm:$0xff] }
 0x127   :  { %v2876_v57 = vpop.eup %2875  ;;  %2125 = vst.msk [vmem:[%s4031_s6 + $0x68] sm:$0xf] %vm2098_vm2, %v2451_v60  ;;  %v2449_v29 = vpack.c.bf16 %v1802_v26, %v1802_v26  ;;  %v1618_v3 = vadd.f32 1.0, %v2874_v36  ;;  %2897 = vpow2.f32 %v2334_v40  ;;  %v2337_v9 = vmul.f32 -1.442695, %v3655_v27  ;;  %v2673_v4 = vpop.f32.mrf.mxu1 }
 0x128   :  { %v2878_v10 = vpop.eup %2877  ;;  %v2452_v35 = vpack.c.bf16 %v1805_v7, %v1805_v7  ;;  %v1621_v11 = vadd.f32 1.0, %v2876_v57  ;;  %2899 = vpow2.f32 %v2339_v49  ;;  %v3671_v33 = vadd.f32 %v3668_v6, %v1302_v61  ;;  %v3673_v32 = vpop.f32.mrf.mxu0 }
 0x129   :  { %v2880_v16 = vpop.eup %2879  ;;  %2123 = vst.msk [vmem:[%s4031_s6 + $0x60] sm:$0xf] %vm2098_vm2, %v2449_v29  ;;  %v1803_v63 = vmul.f32 %v2878_v10, %v3508_v50  ;;  %2901 = vrcp.f32 %v1618_v3  ;;  %v3681_v19 = vadd.f32 %v3668_v6, %v1300_v0  ;;  %v1182_v20 = vadd.f32 %v3628_v22, %v3620_v14  ;;  %v3685_v46 = vpop.f32.mrf.mxu1 }
 0x12a   :  { %v2882_v23 = vpop.eup %2881  ;;  %2126 = vst.msk [vmem:[%s4031_s6 + $0x6c] sm:$0xf] %vm2098_vm2, %v2452_v35  ;;  %2903 = vrcp.f32 %v1621_v11  ;;  %v1619_v25 = vadd.f32 1.0, %v2880_v16  ;;  %v2340_v42 = vmul.f32 -1.442695, %v3671_v33  ;;  %v1174_v50 = vadd.f32 %v1173_v37, %v3633_v30  ;;  %v3693_v59 = vpop.f32.mrf.mxu0 }
 0x12b   :  { %v2450_v55 = vpack.c.bf16 %v1803_v63, %v1803_v63  ;;  %v1808_v34 = vmul.f32 %v2882_v23, %v3522_v5  ;;  %2905 = vpow2.f32 %v2337_v9  ;;  %v2338_v14 = vmul.f32 -1.442695, %v3681_v19  ;;  %v3697_v22 = vpop.f32.mrf.mxu1 }
 0x12c   :  { %2907 = vrcp.f32 %v1619_v25  ;;  %v1305_v39 = vmul.f32 %v3702_v38, %v1182_v20  ;;  %v1303_v30 = vmul.f32 %v3702_v38, %v1174_v50  ;;  %v1185_v37 = vadd.f32 %v2670_v48, %v3644_v2  ;;  %v3707_v40 = vpop.f32.mrf.mxu0 }
 0x12d   :  { %v2884_v5 = vpop.eup %2883  ;;  %2124 = vst.msk [vmem:[%s4031_s6 + $0x64] sm:$0xf] %vm2098_vm2, %v2450_v55  ;;  %v2455_v58 = vpack.c.bf16 %v1808_v34, %v1808_v34  ;;  %2909 = vpow2.f32 %v2340_v42  ;;  %v1177_v17 = vadd.f32 %v1176_v13, %v628_v54  ;;  %v1198_v47 = vadd.f32 %v2673_v4, %v2607_v1  ;;  %v1192_v43 = vpop.f32.mrf.mxu1 }
 0x12e   :  { %v2886_v21 = vpop.eup %2885  ;;  %v1624_v51 = vadd.f32 1.0, %v2884_v5  ;;  %2911 = vpow2.f32 %v2338_v14  ;;  %v3714_v49 = vadd.f32 %v3668_v6, %v1305_v39  ;;  %v3717_v2 = vadd.f32 %v3668_v6, %v1303_v30  ;;  %v3719_v48 = vpop.f32.mrf.mxu0 }
 0x12f   :  { %v2888_v53 = vpop.eup %2887  ;;  %2129 = vst.msk [vmem:[%s4031_s6 + $0x78] sm:$0xf] %vm2098_vm2, %v2455_v58  ;;  %v1622_v54 = vadd.f32 1.0, %v2886_v21  ;;  %v1306_v56 = vmul.f32 %v3702_v38, %v1185_v37  ;;  %v1304_v60 = vmul.f32 %v3702_v38, %v1177_v17  ;;  %v1309_v26 = vmul.f32 %v3702_v38, %v1198_v47  ;;  %v2677_v13 = vpop.f32.mrf.mxu1 }
 0x130   :  { %v2890_v36 = vpop.eup %2889  ;;  %v1806_v7 = vmul.f32 %v2888_v53, %v3532_v24  ;;  %2913 = vrcp.f32 %v1624_v51  ;;  %v2343_v61 = vmul.f32 -1.442695, %v3714_v49  ;;  %v2341_v0 = vmul.f32 -1.442695, %v3717_v2  ;;  %v3731_v1 = vpop.f32.mrf.mxu0 }
 0x131   :  { %v2892_v57 = vpop.eup %2891  ;;  %v1809_v29 = vmul.f32 %v2890_v36, %v3543_v44  ;;  %2915 = vrcp.f32 %v1622_v54  ;;  %v3735_v3 = vadd.f32 %v3668_v6, %v1306_v56  ;;  %v3738_v9 = vadd.f32 %v3668_v6, %v1304_v60  ;;  %v3740_v4 = vpop.f32.mrf.mxu1 }
 0x132   :  { %v2894_v24 = vpop.eup %2893  ;;  %v2453_v10 = vpack.c.bf16 %v1806_v7, %v1806_v7  ;;  %v1807_v35 = vmul.f32 %v2892_v57, %v3546_v41  ;;  %2917 = vpow2.f32 %v2343_v61  ;;  %v3744_v11 = vadd.f32 %v3668_v6, %v1309_v26  ;;  %v3746_v16 = vpop.f32.mrf.mxu0 }
 0x133   :  { %v2896_v44 = vpop.eup %2895  ;;  %v2456_v63 = vpack.c.bf16 %v1809_v29, %v1809_v29  ;;  %v1625_v20 = vadd.f32 1.0, %v2894_v24  ;;  %2919 = vpow2.f32 %v2341_v0  ;;  %v2344_v23 = vmul.f32 -1.442695, %v3735_v3  ;;  %v3749_v25 = vpop.f32.mrf.mxu1 }
 0x134   :  { %v2898_v42 = vpop.eup %2897  ;;  %2127 = vst.msk [vmem:[%s4031_s6 + $0x70] sm:$0xf] %vm2098_vm2, %v2453_v10  ;;  %v2454_v41 = vpack.c.bf16 %v1807_v35, %v1807_v35  ;;  %v1812_v50 = vmul.f32 %v2896_v44, %v3561_v31  ;;  %v2342_v55 = vmul.f32 -1.442695, %v3738_v9  ;;  %v2347_v34 = vmul.f32 -1.442695, %v3744_v11  ;;  %v660_v14 = vpop.f32.mrf.mxu0 }
 0x135   :  { %v2900_v39 = vpop.eup %2899  ;;  %2130 = vst.msk [vmem:[%s4031_s6 + $0x7c] sm:$0xf] %vm2098_vm2, %v2456_v63  ;;  %2921 = vrcp.f32 %v1625_v20  ;;  %v1623_v30 = vadd.f32 1.0, %v2898_v42  ;;  %v1190_v37 = vadd.f32 %v3685_v46, %v3673_v32  ;;  %v1201_v5 = vadd.f32 %v3697_v22, %v3693_v59  ;;  %v1208_v31 = vpop.f32.mrf.mxu1 }
 0x136   :  { %v2902_v58 = vpop.eup %2901  ;;  %2128 = vst.msk [vmem:[%s4031_s6 + $0x74] sm:$0xf] %vm2098_vm2, %v2454_v41  ;;  %v2459_v17 = vpack.c.bf16 %v1812_v50, %v1812_v50  ;;  %v1628_v47 = vadd.f32 1.0, %v2900_v39  ;;  %2923 = vpow2.f32 %v2344_v23  ;;  %v1193_v21 = vadd.f32 %v1192_v43, %v3707_v40  ;;  %v3771_v51 = vpop.f32.mrf.mxu0 }
 0x137   :  { %v2904_v53 = vpop.eup %2903  ;;  %v1810_v32 = vmul.f32 %v2902_v58, %v3567_v8  ;;  %2925 = vrcp.f32 %v1623_v30  ;;  %v1307_v46 = vmul.f32 %v3702_v38, %v1190_v37  ;;  %v1310_v59 = vmul.f32 %v3702_v38, %v1201_v5  ;;  %v3776_v22 = vpop.f32.mrf.mxu1 }
 0x138   :  { %v2906_v54 = vpop.eup %2905  ;;  %2133 = vst.msk [vmem:[%s4031_s6 + $0x88] sm:$0xf] %vm2098_vm2, %v2459_v17  ;;  %v1813_v40 = vmul.f32 %v2904_v53, %v3582_v28  ;;  %2927 = vrcp.f32 %v1628_v47  ;;  %v1308_v43 = vmul.f32 %v3702_v38, %v1193_v21  ;;  %v1214_v8 = vadd.f32 %v2677_v13, %v3719_v48  ;;  %v3785_v56 = vpop.f32.mrf.mxu0 }
 0x139   :  { %v2908_v60 = vpop.eup %2907  ;;  %v2457_v26 = vpack.c.bf16 %v1810_v32, %v1810_v32  ;;  %v1626_v36 = vadd.f32 1.0, %v2906_v54  ;;  %2929 = vpow2.f32 %v2342_v55  ;;  %v3788_v7 = vadd.f32 %v3668_v6, %v1307_v46  ;;  %v1221_v61 = vpop.f32.mrf.mxu1 }
 0x13a   :  { %v2910_v0 = vpop.eup %2909  ;;  %v2460_v57 = vpack.c.bf16 %v1813_v40, %v1813_v40  ;;  %v1811_v29 = vmul.f32 %v2908_v60, %v3586_v12  ;;  %2931 = vpow2.f32 %v2347_v34  ;;  %v3792_v28 = vadd.f32 %v3668_v6, %v1310_v59  ;;  %v3802_v35 = vpop.f32.mrf.mxu0 }
 0x13b   :  { %v2912_v24 = vpop.eup %2911  ;;  %2131 = vst.msk [vmem:[%s4031_s6 + $0x80] sm:$0xf] %vm2098_vm2, %v2457_v26  ;;  %2933 = vrcp.f32 %v1626_v36  ;;  %v1629_v48 = vadd.f32 1.0, %v2910_v0  ;;  %v2345_v13 = vmul.f32 -1.442695, %v3788_v7  ;;  %v3800_v10 = vadd.f32 %v3668_v6, %v1308_v43  ;;  %v3804_v12 = vpop.f32.mrf.mxu1 }
 0x13c   :  { %2134 = vst.msk [vmem:[%s4031_s6 + $0x8c] sm:$0xf] %vm2098_vm2, %v2460_v57  ;;  %v2458_v44 = vpack.c.bf16 %v1811_v29, %v1811_v29  ;;  %v1627_v63 = vadd.f32 1.0, %v2912_v24  ;;  %v2348_v20 = vmul.f32 -1.442695, %v3792_v28  ;;  %v1313_v23 = vmul.f32 %v3702_v38, %v1214_v8 }
 0x13d   :  { %v2914_v42 = vpop.eup %2913  ;;  %2935 = vrcp.f32 %v1629_v48  ;;  %v2346_v41 = vmul.f32 -1.442695, %v3800_v10  ;;  %v1206_v50 = vadd.f32 %v3740_v4, %v3731_v1  ;;  %v1217_v55 = vadd.f32 %v3749_v25, %v3746_v16  ;;  %v676_v16 = vpop.f32.mrf.mxu0 }
 0x13e   :  { %v2916_v34 = vpop.eup %2915  ;;  %2132 = vst.msk [vmem:[%s4031_s6 + $0x84] sm:$0xf] %vm2098_vm2, %v2458_v44  ;;  %v1816_v39 = vmul.f32 %v2914_v42, %v3607_v18  ;;  %2937 = vrcp.f32 %v1627_v63  ;;  %v3823_v30 = vadd.f32 %v3668_v6, %v1313_v23  ;;  %v1209_v37 = vadd.f32 %v1208_v31, %v660_v14  ;;  %v1224_v25 = vpop.f32.mrf.mxu1 }
 0x13f   :  { %v2918_v5 = vpop.eup %2917  ;;  %v1814_v58 = vmul.f32 %v2916_v34, %v3610_v62  ;;  %2939 = vpow2.f32 %v2345_v13  ;;  %v1311_v1 = vmul.f32 %v3702_v38, %v1206_v50  ;;  %v1314_v4 = vmul.f32 %v3702_v38, %v1217_v55  ;;  %v2619_v60 = vpop.f32.mrf.mxu0 }
 0x140   :  { %v2920_v17 = vpop.eup %2919  ;;  %v2463_v47 = vpack.c.bf16 %v1816_v39, %v1816_v39  ;;  %v1632_v21 = vadd.f32 1.0, %v2918_v5  ;;  %2941 = vpow2.f32 %v2348_v20  ;;  %v2351_v18 = vmul.f32 -1.442695, %v3823_v30  ;;  %v2685_v26 = vpop.f32.mrf.mxu1 }
 0x141   :  { %v2461_v53 = vpack.c.bf16 %v1814_v58, %v1814_v58  ;;  %v1630_v32 = vadd.f32 1.0, %v2920_v17  ;;  %2943 = vpow2.f32 %v2346_v41  ;;  %v3830_v14 = vadd.f32 %v3668_v6, %v1311_v1  ;;  %v689_v23 = vpop.f32.mrf.mxu0 }
 0x142   :  { %v2922_v62 = vpop.eup %2921  ;;  %2137 = vst.msk [vmem:[%s4031_s6 + $0x98] sm:$0xf] %vm2098_vm2, %v2463_v47  ;;  %2945 = vrcp.f32 %v1632_v21  ;;  %v3837_v31 = vadd.f32 %v3668_v6, %v1314_v4  ;;  %v1312_v46 = vmul.f32 %v3702_v38, %v1209_v37  ;;  %v1230_v59 = vadd.f32 %v3776_v22, %v3771_v51  ;;  %v1237_v42 = vpop.f32.mrf.mxu1 }
 0x143   :  { %v2924_v54 = vpop.eup %2923  ;;  %2135 = vst.msk [vmem:[%s4031_s6 + $0x90] sm:$0xf] %vm2098_vm2, %v2461_v53  ;;  %v1817_v40 = vmul.f32 %v2922_v62, %v3625_v52  ;;  %2947 = vrcp.f32 %v1630_v32  ;;  %v2349_v43 = vmul.f32 -1.442695, %v3830_v14  ;;  %v1222_v8 = vadd.f32 %v1221_v61, %v3785_v56 }
 0x144   :  { %v2926_v36 = vpop.eup %2925  ;;  %v1633_v0 = vadd.f32 1.0, %v2924_v54  ;;  %2949 = vpow2.f32 %v2351_v18  ;;  %v2352_v51 = vmul.f32 -1.442695, %v3837_v31  ;;  %v3851_v22 = vadd.f32 %v3668_v6, %v1312_v46  ;;  %v2620_v18 = vpop.f32.mrf.mxu0 }
 0x145   :  { %v2928_v57 = vpop.eup %2927  ;;  %v2464_v29 = vpack.c.bf16 %v1817_v40, %v1817_v40  ;;  %v1815_v24 = vmul.f32 %v2926_v36, %v3631_v15  ;;  %2951 = vpow2.f32 %v2349_v43  ;;  %v1317_v52 = vmul.f32 %v3702_v38, %v1230_v59 }
 0x146   :  { %v2930_v48 = vpop.eup %2929  ;;  %v1820_v56 = vmul.f32 %v2928_v57, %v3642_v45  ;;  %2953 = vrcp.f32 %v1633_v0  ;;  %v2350_v61 = vmul.f32 -1.442695, %v3851_v22  ;;  %v1315_v13 = vmul.f32 %v3702_v38, %v1222_v8 }
 0x147   :  { %v2932_v44 = vpop.eup %2931  ;;  %2138 = vst.msk [vmem:[%s4031_s6 + $0x9c] sm:$0xf] %vm2098_vm2, %v2464_v29  ;;  %v2462_v63 = vpack.c.bf16 %v1815_v24, %v1815_v24  ;;  %v1631_v20 = vadd.f32 1.0, %v2930_v48  ;;  %2955 = vpow2.f32 %v2352_v51  ;;  %v3863_v15 = vadd.f32 %v3668_v6, %v1317_v52  ;;  %v692_v51 = vpop.f32.mrf.mxu0 }
 0x148   :  { %v2934_v45 = vpop.eup %2933  ;;  %v2467_v41 = vpack.c.bf16 %v1820_v56, %v1820_v56  ;;  %v1636_v50 = vadd.f32 1.0, %v2932_v44  ;;  %2957 = vpow2.f32 %v2350_v61  ;;  %v3866_v55 = vadd.f32 %v3668_v6, %v1315_v13 }
 0x149   :  { %2136 = vst.msk [vmem:[%s4031_s6 + $0x94] sm:$0xf] %vm2098_vm2, %v2462_v63  ;;  %v1818_v34 = vmul.f32 %v2934_v45, %v3655_v27  ;;  %2959 = vrcp.f32 %v1631_v20  ;;  %v2355_v39 = vmul.f32 -1.442695, %v3863_v15  ;;  %v1233_v37 = vadd.f32 %v3804_v12, %v3802_v35  ;;  %v2686_v35 = vpop.f32.mrf.mxu1 }
 0x14a   :  { %v2936_v5 = vpop.eup %2935  ;;  %2141 = vst.msk [vmem:[%s4031_s6 + $0xa8] sm:$0xf] %vm2098_vm2, %v2467_v41  ;;  %2961 = vrcp.f32 %v1636_v50  ;;  %v2353_v58 = vmul.f32 -1.442695, %v3866_v55  ;;  %v1225_v1 = vadd.f32 %v1224_v25, %v676_v16  ;;  %v1246_v4 = vadd.f32 %v2685_v26, %v2619_v60 }
 0x14b   :  { %v2938_v17 = vpop.eup %2937  ;;  %v2465_v47 = vpack.c.bf16 %v1818_v34, %v1818_v34  ;;  %v1821_v27 = vmul.f32 %v2936_v5, %v3671_v33  ;;  %2963 = vpow2.f32 %v2355_v39  ;;  %v1318_v21 = vmul.f32 %v3702_v38, %v1233_v37  ;;  %v1240_v57 = vpop.f32.mrf.mxu1 }
 0x14c   :  { %v2940_v12 = vpop.eup %2939  ;;  %v1819_v53 = vmul.f32 %v2938_v17, %v3681_v19  ;;  %2965 = vpow2.f32 %v2353_v58  ;;  %v1316_v32 = vmul.f32 %v3702_v38, %v1225_v1  ;;  %v1321_v62 = vmul.f32 %v3702_v38, %v1246_v4 }
 0x14d   :  { %v2942_v46 = vpop.eup %2941  ;;  %2139 = vst.msk [vmem:[%s4031_s6 + $0xa0] sm:$0xf] %vm2098_vm2, %v2465_v47  ;;  %v2468_v33 = vpack.c.bf16 %v1821_v27, %v1821_v27  ;;  %v1634_v16 = vadd.f32 1.0, %v2940_v12  ;;  %v3891_v25 = vadd.f32 %v3668_v6, %v1318_v21  ;;  %v1238_v59 = vadd.f32 %v1237_v42, %v689_v23 }
 0x14e   :  { %v2944_v54 = vpop.eup %2943  ;;  %v2466_v40 = vpack.c.bf16 %v1819_v53, %v1819_v53  ;;  %v1637_v19 = vadd.f32 1.0, %v2942_v46  ;;  %v3894_v43 = vadd.f32 %v3668_v6, %v1316_v32  ;;  %v3897_v8 = vadd.f32 %v3668_v6, %v1321_v62 }
 0x14f   :  { %v2946_v60 = vpop.eup %2945  ;;  %2142 = vst.msk [vmem:[%s4031_s6 + $0xac] sm:$0xf] %vm2098_vm2, %v2468_v33  ;;  %2967 = vrcp.f32 %v1634_v16  ;;  %v1635_v26 = vadd.f32 1.0, %v2944_v54  ;;  %v2356_v36 = vmul.f32 -1.442695, %v3891_v25  ;;  %v1319_v0 = vmul.f32 %v3702_v38, %v1238_v59 }
 0x150   :  { %v2948_v29 = vpop.eup %2947  ;;  %2140 = vst.msk [vmem:[%s4031_s6 + $0xa4] sm:$0xf] %vm2098_vm2, %v2466_v40  ;;  %v1824_v24 = vmul.f32 %v2946_v60, %v3714_v49  ;;  %2969 = vrcp.f32 %v1637_v19  ;;  %v2354_v52 = vmul.f32 -1.442695, %v3894_v43  ;;  %v2359_v48 = vmul.f32 -1.442695, %v3897_v8 }
 0x151   :  { %v2950_v56 = vpop.eup %2949  ;;  %v1822_v61 = vmul.f32 %v2948_v29, %v3717_v2  ;;  %2971 = vrcp.f32 %v1635_v26  ;;  %v3914_v13 = vadd.f32 %v3668_v6, %v1319_v0  ;;  %v1249_v44 = vadd.f32 %v2686_v35, %v2620_v18 }
 0x152   :  { %v2952_v63 = vpop.eup %2951  ;;  %v2471_v20 = vpack.c.bf16 %v1824_v24, %v1824_v24  ;;  %v1640_v23 = vadd.f32 1.0, %v2950_v56  ;;  %2973 = vpow2.f32 %v2356_v36  ;;  %v1241_v42 = vadd.f32 %v1240_v57, %v692_v51 }
 0x153   :  { %v2954_v45 = vpop.eup %2953  ;;  %v2469_v49 = vpack.c.bf16 %v1822_v61, %v1822_v61  ;;  %v1638_v41 = vadd.f32 1.0, %v2952_v63  ;;  %2975 = vpow2.f32 %v2354_v52  ;;  %v1322_v34 = vmul.f32 %v3702_v38, %v1249_v44 }
 0x154   :  { %v2956_v50 = vpop.eup %2955  ;;  %2145 = vst.msk [vmem:[%s4031_s6 + $0xb8] sm:$0xf] %vm2098_vm2, %v2471_v20  ;;  %v1825_v2 = vmul.f32 %v2954_v45, %v3735_v3  ;;  %2977 = vrcp.f32 %v1640_v23  ;;  %v1320_v39 = vmul.f32 %v3702_v38, %v1241_v42  ;;  %v2357_v58 = vmul.f32 -1.442695, %v3914_v13 }
 0x155   :  { %v2958_v37 = vpop.eup %2957  ;;  %2143 = vst.msk [vmem:[%s4031_s6 + $0xb0] sm:$0xf] %vm2098_vm2, %v2469_v49  ;;  %2979 = vrcp.f32 %v1638_v41  ;;  %v1641_v5 = vadd.f32 1.0, %v2956_v50  ;;  %v3929_v3 = vadd.f32 %v3668_v6, %v1322_v34 }
 0x156   :  { %v2960_v1 = vpop.eup %2959  ;;  %v2472_v4 = vpack.c.bf16 %v1825_v2, %v1825_v2  ;;  %v1639_v17 = vadd.f32 1.0, %v2958_v37  ;;  %2981 = vpow2.f32 %v2359_v48  ;;  %v3933_v27 = vadd.f32 %v3668_v6, %v1320_v39 }
 0x157   :  { %v2962_v47 = vpop.eup %2961  ;;  %v1823_v38 = vmul.f32 %v2960_v1, %v3738_v9  ;;  %2983 = vrcp.f32 %v1641_v5  ;;  %v2360_v35 = vmul.f32 -1.442695, %v3929_v3 }
 0x158   :  { %v2964_v21 = vpop.eup %2963  ;;  %2146 = vst.msk [vmem:[%s4031_s6 + $0xbc] sm:$0xf] %vm2098_vm2, %v2472_v4  ;;  %v1828_v18 = vmul.f32 %v2962_v47, %v3744_v11  ;;  %2985 = vrcp.f32 %v1639_v17  ;;  %v2358_v9 = vmul.f32 -1.442695, %v3933_v27 }
 0x159   :  { %v2966_v12 = vpop.eup %2965  ;;  %v2470_v53 = vpack.c.bf16 %v1823_v38, %v1823_v38  ;;  %v1644_v32 = vadd.f32 1.0, %v2964_v21  ;;  %2987 = vpow2.f32 %v2357_v58 }
 0x15a   :  { %v2475_v62 = vpack.c.bf16 %v1828_v18, %v1828_v18  ;;  %v1642_v6 = vadd.f32 1.0, %v2966_v12  ;;  %2989 = vpow2.f32 %v2360_v35 }
 0x15b   :  { %2144 = vst.msk [vmem:[%s4031_s6 + $0xb4] sm:$0xf] %vm2098_vm2, %v2470_v53  ;;  %2991 = vrcp.f32 %v1644_v32 }
 0x15c   :  { %v2968_v46 = vpop.eup %2967  ;;  %2149 = vst.msk [vmem:[%s4031_s6 + $0xc8] sm:$0xf] %vm2098_vm2, %v2475_v62  ;;  %2993 = vrcp.f32 %v1642_v6 }
 0x15d   :  { %v2970_v11 = vpop.eup %2969  ;;  %v1826_v33 = vmul.f32 %v2968_v46, %v3788_v7  ;;  %2995 = vpow2.f32 %v2358_v9 }
 0x15e   :  { %v2972_v16 = vpop.eup %2971  ;;  %v1829_v59 = vmul.f32 %v2970_v11, %v3792_v28 }
 0x15f   :  { %v2974_v54 = vpop.eup %2973  ;;  %v2473_v40 = vpack.c.bf16 %v1826_v33, %v1826_v33  ;;  %v1827_v19 = vmul.f32 %v2972_v16, %v3800_v10 }
 0x160   :  { %v2976_v60 = vpop.eup %2975  ;;  %v2476_v26 = vpack.c.bf16 %v1829_v59, %v1829_v59  ;;  %v1645_v36 = vadd.f32 1.0, %v2974_v54 }
 0x161   :  { %v2978_v0 = vpop.eup %2977  ;;  %2147 = vst.msk [vmem:[%s4031_s6 + $0xc0] sm:$0xf] %vm2098_vm2, %v2473_v40  ;;  %v2474_v51 = vpack.c.bf16 %v1827_v19, %v1827_v19  ;;  %v1643_v57 = vadd.f32 1.0, %v2976_v60 }
 0x162   :  { %v2980_v7 = vpop.eup %2979  ;;  %2150 = vst.msk [vmem:[%s4031_s6 + $0xcc] sm:$0xf] %vm2098_vm2, %v2476_v26  ;;  %v1832_v28 = vmul.f32 %v2978_v0, %v3823_v30  ;;  %2997 = vrcp.f32 %v1645_v36 }
 0x163   :  { %v2982_v10 = vpop.eup %2981  ;;  %2148 = vst.msk [vmem:[%s4031_s6 + $0xc4] sm:$0xf] %vm2098_vm2, %v2474_v51  ;;  %v1830_v29 = vmul.f32 %v2980_v7, %v3830_v14  ;;  %2999 = vrcp.f32 %v1643_v57 }
 0x164   :  { %v2984_v24 = vpop.eup %2983  ;;  %v2479_v52 = vpack.c.bf16 %v1832_v28, %v1832_v28  ;;  %v1648_v48 = vadd.f32 1.0, %v2982_v10 }
 0x165   :  { %v2986_v56 = vpop.eup %2985  ;;  %v2477_v61 = vpack.c.bf16 %v1830_v29, %v1830_v29  ;;  %v1833_v44 = vmul.f32 %v2984_v24, %v3837_v31 }
 0x166   :  { %v2988_v63 = vpop.eup %2987  ;;  %2153 = vst.msk [vmem:[%s4031_s6 + $0xd8] sm:$0xf] %vm2098_vm2, %v2479_v52  ;;  %v1831_v30 = vmul.f32 %v2986_v56, %v3851_v22  ;;  %3001 = vrcp.f32 %v1648_v48 }
 0x167   :  { %v2990_v20 = vpop.eup %2989  ;;  %2151 = vst.msk [vmem:[%s4031_s6 + $0xd0] sm:$0xf] %vm2098_vm2, %v2477_v61  ;;  %v2480_v14 = vpack.c.bf16 %v1833_v44, %v1833_v44  ;;  %v1646_v23 = vadd.f32 1.0, %v2988_v63 }
 0x168   :  { %v2992_v42 = vpop.eup %2991  ;;  %v2478_v45 = vpack.c.bf16 %v1831_v30, %v1831_v30  ;;  %v1649_v31 = vadd.f32 1.0, %v2990_v20 }
 0x169   :  { %v2994_v49 = vpop.eup %2993  ;;  %2154 = vst.msk [vmem:[%s4031_s6 + $0xdc] sm:$0xf] %vm2098_vm2, %v2480_v14  ;;  %v1836_v22 = vmul.f32 %v2992_v42, %v3863_v15  ;;  %3003 = vrcp.f32 %v1646_v23 }
 0x16a   :  { %v2996_v41 = vpop.eup %2995  ;;  %2152 = vst.msk [vmem:[%s4031_s6 + $0xd4] sm:$0xf] %vm2098_vm2, %v2478_v45  ;;  %v1834_v50 = vmul.f32 %v2994_v49, %v3866_v55  ;;  %3005 = vrcp.f32 %v1649_v31 }
 0x16b   :  { %v2483_v2 = vpack.c.bf16 %v1836_v22, %v1836_v22  ;;  %v1647_v34 = vadd.f32 1.0, %v2996_v41 }
 0x16c   :  { %v2481_v39 = vpack.c.bf16 %v1834_v50, %v1834_v50 }
 0x16d   :  { %2157 = vst.msk [vmem:[%s4031_s6 + $0xe8] sm:$0xf] %vm2098_vm2, %v2483_v2  ;;  %3007 = vrcp.f32 %v1647_v34 }
 0x16e   :  { %2155 = vst.msk [vmem:[%s4031_s6 + $0xe0] sm:$0xf] %vm2098_vm2, %v2481_v39 }
 0x16f   :  { %v2998_v15 = vpop.eup %2997 }
 0x170   :  { %v3000_v37 = vpop.eup %2999  ;;  %v1837_v5 = vmul.f32 %v2998_v15, %v3891_v25 }
 0x171   :  { %v1835_v55 = vmul.f32 %v3000_v37, %v3894_v43 }
 0x172   :  { %v2484_v58 = vpack.c.bf16 %v1837_v5, %v1837_v5 }
 0x173   :  { %v3002_v1 = vpop.eup %3001  ;;  %v2482_v4 = vpack.c.bf16 %v1835_v55, %v1835_v55 }
 0x174   :  { %2158 = vst.msk [vmem:[%s4031_s6 + $0xec] sm:$0xf] %vm2098_vm2, %v2484_v58  ;;  %v1840_v17 = vmul.f32 %v3002_v1, %v3897_v8 }
 0x175   :  { %2156 = vst.msk [vmem:[%s4031_s6 + $0xe4] sm:$0xf] %vm2098_vm2, %v2482_v4 }
 0x176   :  { %v3004_v47 = vpop.eup %3003  ;;  %v2487_v38 = vpack.c.bf16 %v1840_v17, %v1840_v17 }
 0x177   :  { %v3006_v25 = vpop.eup %3005  ;;  %v1838_v43 = vmul.f32 %v3004_v47, %v3914_v13 }
 0x178   :  { %2161 = vst.msk [vmem:[%s4031_s6 + $0xf8] sm:$0xf] %vm2098_vm2, %v2487_v38  ;;  %v1841_v21 = vmul.f32 %v3006_v25, %v3929_v3 }
 0x179   :  { %v2485_v18 = vpack.c.bf16 %v1838_v43, %v1838_v43 }
 0x17a   :  { %v3008_v35 = vpop.eup %3007  ;;  %v2488_v8 = vpack.c.bf16 %v1841_v21, %v1841_v21 }
 0x17b   :  { %2159 = vst.msk [vmem:[%s4031_s6 + $0xf0] sm:$0xf] %vm2098_vm2, %v2485_v18  ;;  %v1839_v12 = vmul.f32 %v3008_v35, %v3933_v27 }
 0x17c   :  { %2162 = vst.msk [vmem:[%s4031_s6 + $0xfc] sm:$0xf] %vm2098_vm2, %v2488_v8 }
 0x17d   :  { %v2486_v13 = vpack.c.bf16 %v1839_v12, %v1839_v12 }
 0x17f   :  { %2160 = vst.msk [vmem:[%s4031_s6 + $0xf4] sm:$0xf] %vm2098_vm2, %v2486_v13 }

// kernel: gelan_forward.43
= control target key start
LH: loop header
LB: loop body
LE: loop exit
PB: predicated region body
PF: predicated region fallthrough
CT: control target
= control target key end

     0   :  { %vm423_vm0 = vcmask 1041408   ;;  %vm326_vm1 = vcmask 31744   ;;  %vm3464_vm2 = vcmask 60416   ;;  %s6370_s5 = inlined_call_operand.vmem [shape: bf16[4,8], index: 5, kind: input, shape index: {}]   ;;  %s6371_s4 = inlined_call_operand.vmem [shape: bf16[4,8], index: 4, kind: input, shape index: {}]   ;;  %s6372_s1 = inlined_call_operand.vmem [shape: bf16[512,4], index: 1, kind: input, shape index: {}]   ;;  %s6373_s0 = inlined_call_operand.vmem [shape: bf16[512,4], index: 0, kind: input, shape index: {}]   ;;  %s6374_s6 = inlined_call_operand.vmem [shape: bf16[4,8], index: 6, kind: input, shape index: {}]   ;;  %s6375_s7 = inlined_call_operand.vmem [shape: bf16[4,8], index: 7, kind: input, shape index: {}]   ;;  %s6376_s2 = inlined_call_operand.vmem [shape: bf16[512,4], index: 2, kind: input, shape index: {}]   ;;  %s6377_s3 = inlined_call_operand.vmem [shape: bf16[512,4], index: 3, kind: input, shape index: {}]   ;;  %s6378_s8 = inlined_call_operand.vmem [shape: f32[1,8], index: 8, kind: input, shape index: {}]   ;;  %s6379_s9 = inlined_call_operand.vmem [shape: f32[1,8], index: 9, kind: input, shape index: {}]   ;;  %s6380_s10 = inlined_call_operand.vmem [shape: bf16[512,8], index: 10, kind: output, shape index: {}]  }
   0x1   :  { %v165_v0 = vld [vmem:[%s6370_s5] sm:$0x3]  ;;  %v4385_v6 = vld [vmem:[%s6372_s1 + $0x8] sm:$0xff]   ;;  %v4387_v11 = vld [vmem:[%s6372_s1 + $0x10] sm:$0xff]  }
   0x2   :  { %v100_v1 = vld [vmem:[%s6371_s4] sm:$0x3]  ;;  %4379 = vmatprep.subr.msk.bf16.mxu0 %vm423_vm0, %v165_v0  ;;  %v425_v2 = vsel %vm423_vm0, %v165_v0, 0  ;;  %v4386_v7 = vld [vmem:[%s6373_s0 + $0x8] sm:$0xff]   ;;  %v4388_v13 = vld [vmem:[%s6373_s0 + $0x10] sm:$0xff]  }
   0x3   :  { %4380 = vmatprep.subr.msk.bf16.mxu1 %vm423_vm0, %v100_v1  ;;  %v973_v3 = vsel %vm423_vm0, %v100_v1, 0  ;;  %v4383_v4 = vld [vmem:[%s6372_s1] sm:$0xff]   ;;  %4116 = vmatpush3.bf16.msra.mxu0 %v425_v2  ;;  %v4389_v14 = vld [vmem:[%s6372_s1 + $0x18] sm:$0xff]   ;;  %v4393_v18 = vld [vmem:[%s6372_s1 + $0x28] sm:$0xff]  }
   0x4   :  { %v4384_v5 = vld [vmem:[%s6373_s0] sm:$0xff]   ;;  %4182 = vmatpush3.bf16.msra.mxu1 %v973_v3  ;;  %4117 = vmatprep.mubr.msk.bf16.mxu0 %vm326_vm1, %v4383_v4  ;;  %v4390_v15 = vld [vmem:[%s6373_s0 + $0x18] sm:$0xff]   ;;  %v4394_v19 = vld [vmem:[%s6373_s0 + $0x28] sm:$0xff]  }
   0x5   :  { %4183 = vmatprep.mubr.msk.bf16.mxu1 %vm326_vm1, %v4384_v5  ;;  %v1328_v8 = vld [vmem:[%s6374_s6] sm:$0x3]  ;;  %v4395_v20 = vld [vmem:[%s6372_s1 + $0x30] sm:$0xff]   ;;  %v4397_v22 = vld [vmem:[%s6372_s1 + $0x38] sm:$0xff]  }
   0x6   :  { %4118 = vmatmul.mubr.msk.bf16.vlgmr.msra.gmra.mxu0 %vm326_vm1, %v4385_v6  ;;  %4381 = vmatprep.subr.msk.bf16.mxu0 %vm423_vm0, %v1328_v8  ;;  %v1586_v9 = vsel %vm423_vm0, %v1328_v8, 0  ;;  %v2005_v10 = vld [vmem:[%s6375_s7] sm:$0x3]  ;;  %v4396_v21 = vld [vmem:[%s6373_s0 + $0x30] sm:$0xff]   ;;  %v4398_v23 = vld [vmem:[%s6373_s0 + $0x38] sm:$0xff]  }
   0x7   :  { %4184 = vmatmul.mubr.msk.bf16.vlgmr.msra.gmra.mxu1 %vm326_vm1, %v4386_v7  ;;  %4248 = vmatpush3.bf16.msra.mxu0 %v1586_v9  ;;  %v2263_v12 = vsel %vm423_vm0, %v2005_v10, 0  ;;  %v4391_v16 = vld [vmem:[%s6372_s1 + $0x20] sm:$0xff]   ;;  %v4401_v26 = vld [vmem:[%s6372_s1 + $0x48] sm:$0xff]   ;;  %v4403_v28 = vld [vmem:[%s6372_s1 + $0x50] sm:$0xff]  }
   0x8   :  { %4382 = vmatprep.subr.msk.bf16.mxu1 %vm423_vm0, %v2005_v10  ;;  %4121 = vmatprep.mubr.msk.bf16.mxu0 %vm326_vm1, %v4387_v11  ;;  %v4392_v17 = vld [vmem:[%s6373_s0 + $0x20] sm:$0xff]   ;;  %v4402_v27 = vld [vmem:[%s6373_s0 + $0x48] sm:$0xff]   ;;  %v4404_v29 = vld [vmem:[%s6373_s0 + $0x50] sm:$0xff]  }
   0x9   :  { %4314 = vmatpush3.bf16.msra.mxu1 %v2263_v12  ;;  %4187 = vmatprep.mubr.msk.bf16.mxu1 %vm326_vm1, %v4388_v13  ;;  %v4399_v24 = vld [vmem:[%s6372_s1 + $0x40] sm:$0xff]   ;;  %v4405_v30 = vld [vmem:[%s6372_s1 + $0x58] sm:$0xff]   ;;  %v4409_v34 = vld [vmem:[%s6372_s1 + $0x68] sm:$0xff]  }
   0xa   :  { %v4400_v25 = vld [vmem:[%s6373_s0 + $0x40] sm:$0xff]   ;;  %v4406_v31 = vld [vmem:[%s6373_s0 + $0x58] sm:$0xff]   ;;  %v4410_v35 = vld [vmem:[%s6373_s0 + $0x68] sm:$0xff]  }
   0xb   :  { %v4407_v32 = vld [vmem:[%s6372_s1 + $0x60] sm:$0xff]   ;;  %v4411_v36 = vld [vmem:[%s6372_s1 + $0x70] sm:$0xff]   ;;  %v4413_v38 = vld [vmem:[%s6372_s1 + $0x78] sm:$0xff]  }
   0xc   :  { %v4408_v33 = vld [vmem:[%s6373_s0 + $0x60] sm:$0xff]   ;;  %v4412_v37 = vld [vmem:[%s6373_s0 + $0x70] sm:$0xff]   ;;  %v4414_v39 = vld [vmem:[%s6373_s0 + $0x78] sm:$0xff]  }
   0xd   :  { %v4415_v40 = vld [vmem:[%s6372_s1 + $0x80] sm:$0xff]   ;;  %v4417_v42 = vld [vmem:[%s6372_s1 + $0x88] sm:$0xff]   ;;  %v4419_v44 = vld [vmem:[%s6372_s1 + $0x90] sm:$0xff]  }
   0xe   :  { %4122 = vmatmul.mubr.msk.bf16.gmra.mxu0 %vm326_vm1, %v4389_v14  ;;  %v4416_v41 = vld [vmem:[%s6373_s0 + $0x80] sm:$0xff]   ;;  %v4418_v43 = vld [vmem:[%s6373_s0 + $0x88] sm:$0xff]   ;;  %v4420_v45 = vld [vmem:[%s6373_s0 + $0x90] sm:$0xff]  }
   0xf   :  { %4188 = vmatmul.mubr.msk.bf16.gmra.mxu1 %vm326_vm1, %v4390_v15  ;;  %4125 = vmatprep.mubr.msk.bf16.mxu0 %vm326_vm1, %v4391_v16  ;;  %v4421_v46 = vld [vmem:[%s6372_s1 + $0x98] sm:$0xff]   ;;  %v4423_v48 = vld [vmem:[%s6372_s1 + $0xa0] sm:$0xff]   ;;  %v4425_v50 = vld [vmem:[%s6372_s1 + $0xa8] sm:$0xff]  }
  0x10   :  { %4191 = vmatprep.mubr.msk.bf16.mxu1 %vm326_vm1, %v4392_v17  ;;  %v4422_v47 = vld [vmem:[%s6373_s0 + $0x98] sm:$0xff]   ;;  %v4424_v49 = vld [vmem:[%s6373_s0 + $0xa0] sm:$0xff]   ;;  %v4426_v51 = vld [vmem:[%s6373_s0 + $0xa8] sm:$0xff]  }
  0x11   :  { %v4427_v52 = vld [vmem:[%s6372_s1 + $0xb0] sm:$0xff]   ;;  %v4429_v54 = vld [vmem:[%s6372_s1 + $0xb8] sm:$0xff]   ;;  %v4431_v56 = vld [vmem:[%s6372_s1 + $0xc0] sm:$0xff]  }
  0x12   :  { %v4428_v53 = vld [vmem:[%s6373_s0 + $0xb0] sm:$0xff]   ;;  %v4430_v55 = vld [vmem:[%s6373_s0 + $0xb8] sm:$0xff]   ;;  %v4432_v57 = vld [vmem:[%s6373_s0 + $0xc0] sm:$0xff]  }
  0x13   :  { %v4433_v58 = vld [vmem:[%s6372_s1 + $0xc8] sm:$0xff]   ;;  %v4435_v60 = vld [vmem:[%s6372_s1 + $0xd0] sm:$0xff]   ;;  %v4437_v62 = vld [vmem:[%s6372_s1 + $0xd8] sm:$0xff]  }
  0x14   :  { %v4434_v59 = vld [vmem:[%s6373_s0 + $0xc8] sm:$0xff]   ;;  %v4436_v61 = vld [vmem:[%s6373_s0 + $0xd0] sm:$0xff]   ;;  %v4438_v63 = vld [vmem:[%s6373_s0 + $0xd8] sm:$0xff]  }
  0x15   :  { %v4439_v0 = vld [vmem:[%s6372_s1 + $0xe0] sm:$0xff]   ;;  %v4441_v2 = vld [vmem:[%s6372_s1 + $0xe8] sm:$0xff]   ;;  %v4443_v4 = vld [vmem:[%s6372_s1 + $0xf0] sm:$0xff]  }
  0x16   :  { %4126 = vmatmul.mubr.msk.bf16.gmra.mxu0 %vm326_vm1, %v4393_v18  ;;  %v4440_v1 = vld [vmem:[%s6373_s0 + $0xe0] sm:$0xff]   ;;  %v4442_v3 = vld [vmem:[%s6373_s0 + $0xe8] sm:$0xff]   ;;  %v4444_v5 = vld [vmem:[%s6373_s0 + $0xf0] sm:$0xff]  }
  0x17   :  { %4192 = vmatmul.mubr.msk.bf16.gmra.mxu1 %vm326_vm1, %v4394_v19  ;;  %4129 = vmatprep.mubr.msk.bf16.mxu0 %vm326_vm1, %v4395_v20  ;;  %v4445_v6 = vld [vmem:[%s6372_s1 + $0xf8] sm:$0xff]   ;;  %v4447_v8 = vld [vmem:[%s6376_s2] sm:$0xff]   ;;  %v4449_v10 = vld [vmem:[%s6376_s2 + $0x8] sm:$0xff]  }
  0x18   :  { %4195 = vmatprep.mubr.msk.bf16.mxu1 %vm326_vm1, %v4396_v21  ;;  %v4446_v7 = vld [vmem:[%s6373_s0 + $0xf8] sm:$0xff]   ;;  %v4448_v9 = vld [vmem:[%s6377_s3] sm:$0xff]   ;;  %v4450_v11 = vld [vmem:[%s6377_s3 + $0x8] sm:$0xff]  }
  0x19   :  { %v4451_v12 = vld [vmem:[%s6376_s2 + $0x10] sm:$0xff]   ;;  %v4453_v14 = vld [vmem:[%s6376_s2 + $0x18] sm:$0xff]   ;;  %v4455_v16 = vld [vmem:[%s6376_s2 + $0x20] sm:$0xff]  }
  0x1a   :  { %v4452_v13 = vld [vmem:[%s6377_s3 + $0x10] sm:$0xff]   ;;  %v4454_v15 = vld [vmem:[%s6377_s3 + $0x18] sm:$0xff]   ;;  %v4456_v17 = vld [vmem:[%s6377_s3 + $0x20] sm:$0xff]  }
  0x1b   :  { %v4457_v18 = vld [vmem:[%s6376_s2 + $0x28] sm:$0xff]   ;;  %v4459_v20 = vld [vmem:[%s6376_s2 + $0x30] sm:$0xff]  }
  0x1c   :  { %v4458_v19 = vld [vmem:[%s6377_s3 + $0x28] sm:$0xff]   ;;  %v4460_v21 = vld [vmem:[%s6377_s3 + $0x30] sm:$0xff]  }
  0x1e   :  { %4130 = vmatmul.mubr.msk.bf16.gmra.mxu0 %vm326_vm1, %v4397_v22  ;;  %v4461_v22 = vld [vmem:[%s6376_s2 + $0x38] sm:$0xff]  }
  0x1f   :  { %4196 = vmatmul.mubr.msk.bf16.gmra.mxu1 %vm326_vm1, %v4398_v23  ;;  %4133 = vmatprep.mubr.msk.bf16.mxu0 %vm326_vm1, %v4399_v24  ;;  %v4462_v23 = vld [vmem:[%s6377_s3 + $0x38] sm:$0xff]   ;;  %v4463_v24 = vld [vmem:[%s6376_s2 + $0x40] sm:$0xff]  }
  0x20   :  { %4199 = vmatprep.mubr.msk.bf16.mxu1 %vm326_vm1, %v4400_v25  ;;  %v4464_v25 = vld [vmem:[%s6377_s3 + $0x40] sm:$0xff]  }
  0x26   :  { %4134 = vmatmul.mubr.msk.bf16.gmra.mxu0 %vm326_vm1, %v4401_v26  ;;  %v4465_v26 = vld [vmem:[%s6376_s2 + $0x48] sm:$0xff]  }
  0x27   :  { %4200 = vmatmul.mubr.msk.bf16.gmra.mxu1 %vm326_vm1, %v4402_v27  ;;  %4137 = vmatprep.mubr.msk.bf16.mxu0 %vm326_vm1, %v4403_v28  ;;  %v4466_v27 = vld [vmem:[%s6377_s3 + $0x48] sm:$0xff]   ;;  %v4467_v28 = vld [vmem:[%s6376_s2 + $0x50] sm:$0xff]  }
  0x28   :  { %4203 = vmatprep.mubr.msk.bf16.mxu1 %vm326_vm1, %v4404_v29  ;;  %v4468_v29 = vld [vmem:[%s6377_s3 + $0x50] sm:$0xff]  }
  0x2e   :  { %4138 = vmatmul.mubr.msk.bf16.gmra.mxu0 %vm326_vm1, %v4405_v30  ;;  %v4469_v30 = vld [vmem:[%s6376_s2 + $0x58] sm:$0xff]  }
  0x2f   :  { %4204 = vmatmul.mubr.msk.bf16.gmra.mxu1 %vm326_vm1, %v4406_v31  ;;  %4141 = vmatprep.mubr.msk.bf16.mxu0 %vm326_vm1, %v4407_v32  ;;  %v4470_v31 = vld [vmem:[%s6377_s3 + $0x58] sm:$0xff]   ;;  %v4471_v32 = vld [vmem:[%s6376_s2 + $0x60] sm:$0xff]  }
  0x30   :  { %4207 = vmatprep.mubr.msk.bf16.mxu1 %vm326_vm1, %v4408_v33  ;;  %v4472_v33 = vld [vmem:[%s6377_s3 + $0x60] sm:$0xff]  }
  0x36   :  { %4142 = vmatmul.mubr.msk.bf16.gmra.mxu0 %vm326_vm1, %v4409_v34  ;;  %v4473_v34 = vld [vmem:[%s6376_s2 + $0x68] sm:$0xff]  }
  0x37   :  { %4208 = vmatmul.mubr.msk.bf16.gmra.mxu1 %vm326_vm1, %v4410_v35  ;;  %4145 = vmatprep.mubr.msk.bf16.mxu0 %vm326_vm1, %v4411_v36  ;;  %v4474_v35 = vld [vmem:[%s6377_s3 + $0x68] sm:$0xff]   ;;  %v4475_v36 = vld [vmem:[%s6376_s2 + $0x70] sm:$0xff]  }
  0x38   :  { %4211 = vmatprep.mubr.msk.bf16.mxu1 %vm326_vm1, %v4412_v37  ;;  %v4476_v37 = vld [vmem:[%s6377_s3 + $0x70] sm:$0xff]  }
  0x3e   :  { %4146 = vmatmul.mubr.msk.bf16.gmra.mxu0 %vm326_vm1, %v4413_v38  ;;  %v4477_v38 = vld [vmem:[%s6376_s2 + $0x78] sm:$0xff]  }
  0x3f   :  { %4212 = vmatmul.mubr.msk.bf16.gmra.mxu1 %vm326_vm1, %v4414_v39  ;;  %4149 = vmatprep.mubr.msk.bf16.mxu0 %vm326_vm1, %v4415_v40  ;;  %v4478_v39 = vld [vmem:[%s6377_s3 + $0x78] sm:$0xff]   ;;  %v4479_v40 = vld [vmem:[%s6376_s2 + $0x80] sm:$0xff]  }
  0x40   :  { %4215 = vmatprep.mubr.msk.bf16.mxu1 %vm326_vm1, %v4416_v41  ;;  %v4480_v41 = vld [vmem:[%s6377_s3 + $0x80] sm:$0xff]  }
  0x46   :  { %4150 = vmatmul.mubr.msk.bf16.gmra.mxu0 %vm326_vm1, %v4417_v42  ;;  %v4481_v42 = vld [vmem:[%s6376_s2 + $0x88] sm:$0xff]  }
  0x47   :  { %4216 = vmatmul.mubr.msk.bf16.gmra.mxu1 %vm326_vm1, %v4418_v43  ;;  %4153 = vmatprep.mubr.msk.bf16.mxu0 %vm326_vm1, %v4419_v44  ;;  %v4482_v43 = vld [vmem:[%s6377_s3 + $0x88] sm:$0xff]   ;;  %v4483_v44 = vld [vmem:[%s6376_s2 + $0x90] sm:$0xff]  }
  0x48   :  { %4219 = vmatprep.mubr.msk.bf16.mxu1 %vm326_vm1, %v4420_v45  ;;  %v4484_v45 = vld [vmem:[%s6377_s3 + $0x90] sm:$0xff]  }
  0x4e   :  { %4154 = vmatmul.mubr.msk.bf16.gmra.mxu0 %vm326_vm1, %v4421_v46 }
  0x4f   :  { %4220 = vmatmul.mubr.msk.bf16.gmra.mxu1 %vm326_vm1, %v4422_v47  ;;  %4157 = vmatprep.mubr.msk.bf16.mxu0 %vm326_vm1, %v4423_v48 }
  0x50   :  { %4223 = vmatprep.mubr.msk.bf16.mxu1 %vm326_vm1, %v4424_v49 }
  0x56   :  { %4158 = vmatmul.mubr.msk.bf16.gmra.mxu0 %vm326_vm1, %v4425_v50 }
  0x57   :  { %4224 = vmatmul.mubr.msk.bf16.gmra.mxu1 %vm326_vm1, %v4426_v51  ;;  %4161 = vmatprep.mubr.msk.bf16.mxu0 %vm326_vm1, %v4427_v52 }
  0x58   :  { %4227 = vmatprep.mubr.msk.bf16.mxu1 %vm326_vm1, %v4428_v53  ;;  %v4485_v53 = vld [vmem:[%s6376_s2 + $0x98] sm:$0xff]  }
  0x5e   :  { %4162 = vmatmul.mubr.msk.bf16.gmra.mxu0 %vm326_vm1, %v4429_v54 }
  0x5f   :  { %4228 = vmatmul.mubr.msk.bf16.gmra.mxu1 %vm326_vm1, %v4430_v55  ;;  %4165 = vmatprep.mubr.msk.bf16.mxu0 %vm326_vm1, %v4431_v56  ;;  %v4486_v55 = vld [vmem:[%s6377_s3 + $0x98] sm:$0xff]   ;;  %v4487_v56 = vld [vmem:[%s6376_s2 + $0xa0] sm:$0xff]  }
  0x60   :  { %4231 = vmatprep.mubr.msk.bf16.mxu1 %vm326_vm1, %v4432_v57 }
  0x66   :  { %4166 = vmatmul.mubr.msk.bf16.gmra.mxu0 %vm326_vm1, %v4433_v58 }
  0x67   :  { %4232 = vmatmul.mubr.msk.bf16.gmra.mxu1 %vm326_vm1, %v4434_v59  ;;  %4169 = vmatprep.mubr.msk.bf16.mxu0 %vm326_vm1, %v4435_v60  ;;  %v4488_v59 = vld [vmem:[%s6377_s3 + $0xa0] sm:$0xff]  }
  0x68   :  { %4235 = vmatprep.mubr.msk.bf16.mxu1 %vm326_vm1, %v4436_v61 }
  0x6e   :  { %4170 = vmatmul.mubr.msk.bf16.gmra.mxu0 %vm326_vm1, %v4437_v62 }
  0x6f   :  { %4236 = vmatmul.mubr.msk.bf16.gmra.mxu1 %vm326_vm1, %v4438_v63  ;;  %4173 = vmatprep.mubr.msk.bf16.mxu0 %vm326_vm1, %v4439_v0 }
  0x70   :  { %4239 = vmatprep.mubr.msk.bf16.mxu1 %vm326_vm1, %v4440_v1 }
  0x76   :  { %4174 = vmatmul.mubr.msk.bf16.gmra.mxu0 %vm326_vm1, %v4441_v2 }
  0x77   :  { %4240 = vmatmul.mubr.msk.bf16.gmra.mxu1 %vm326_vm1, %v4442_v3  ;;  %4177 = vmatprep.mubr.msk.bf16.mxu0 %vm326_vm1, %v4443_v4 }
  0x78   :  { %4243 = vmatprep.mubr.msk.bf16.mxu1 %vm326_vm1, %v4444_v5  ;;  %v4489_v5 = vld [vmem:[%s6376_s2 + $0xa8] sm:$0xff]  }
  0x7e   :  { %4178 = vmatmul.mubr.msk.bf16.gmra.mxu0 %vm326_vm1, %v4445_v6 }
  0x7f   :  { %4244 = vmatmul.mubr.msk.bf16.gmra.mxu1 %vm326_vm1, %v4446_v7  ;;  %4249 = vmatprep.mubr.msk.bf16.mxu0 %vm326_vm1, %v4447_v8  ;;  %v4490_v7 = vld [vmem:[%s6377_s3 + $0xa8] sm:$0xff]   ;;  %v4491_v8 = vld [vmem:[%s6376_s2 + $0xb0] sm:$0xff]  }
  0x80   :  { %4315 = vmatprep.mubr.msk.bf16.mxu1 %vm326_vm1, %v4448_v9 }
  0x86   :  { %4250 = vmatmul.mubr.msk.bf16.vlgmr.msra.gmra.mxu0 %vm326_vm1, %v4449_v10 }
  0x87   :  { %4316 = vmatmul.mubr.msk.bf16.vlgmr.msra.gmra.mxu1 %vm326_vm1, %v4450_v11  ;;  %4253 = vmatprep.mubr.msk.bf16.mxu0 %vm326_vm1, %v4451_v12  ;;  %v4492_v11 = vld [vmem:[%s6377_s3 + $0xb0] sm:$0xff]  }
  0x88   :  { %4319 = vmatprep.mubr.msk.bf16.mxu1 %vm326_vm1, %v4452_v13 }
  0x8e   :  { %4254 = vmatmul.mubr.msk.bf16.gmra.mxu0 %vm326_vm1, %v4453_v14 }
  0x8f   :  { %4320 = vmatmul.mubr.msk.bf16.gmra.mxu1 %vm326_vm1, %v4454_v15  ;;  %4257 = vmatprep.mubr.msk.bf16.mxu0 %vm326_vm1, %v4455_v16 }
  0x90   :  { %4323 = vmatprep.mubr.msk.bf16.mxu1 %vm326_vm1, %v4456_v17 }
  0x96   :  { %4258 = vmatmul.mubr.msk.bf16.gmra.mxu0 %vm326_vm1, %v4457_v18 }
  0x97   :  { %4324 = vmatmul.mubr.msk.bf16.gmra.mxu1 %vm326_vm1, %v4458_v19  ;;  %4261 = vmatprep.mubr.msk.bf16.mxu0 %vm326_vm1, %v4459_v20 }
  0x98   :  { %4327 = vmatprep.mubr.msk.bf16.mxu1 %vm326_vm1, %v4460_v21  ;;  %v4493_v21 = vld [vmem:[%s6376_s2 + $0xb8] sm:$0xff]  }
  0x9e   :  { %4262 = vmatmul.mubr.msk.bf16.gmra.mxu0 %vm326_vm1, %v4461_v22 }
  0x9f   :  { %4328 = vmatmul.mubr.msk.bf16.gmra.mxu1 %vm326_vm1, %v4462_v23  ;;  %4265 = vmatprep.mubr.msk.bf16.mxu0 %vm326_vm1, %v4463_v24  ;;  %v4494_v23 = vld [vmem:[%s6377_s3 + $0xb8] sm:$0xff]   ;;  %v4495_v24 = vld [vmem:[%s6376_s2 + $0xc0] sm:$0xff]  }
  0xa0   :  { %4331 = vmatprep.mubr.msk.bf16.mxu1 %vm326_vm1, %v4464_v25 }
  0xa6   :  { %4266 = vmatmul.mubr.msk.bf16.gmra.mxu0 %vm326_vm1, %v4465_v26 }
  0xa7   :  { %4332 = vmatmul.mubr.msk.bf16.gmra.mxu1 %vm326_vm1, %v4466_v27  ;;  %4269 = vmatprep.mubr.msk.bf16.mxu0 %vm326_vm1, %v4467_v28  ;;  %v4496_v27 = vld [vmem:[%s6377_s3 + $0xc0] sm:$0xff]  }
  0xa8   :  { %4335 = vmatprep.mubr.msk.bf16.mxu1 %vm326_vm1, %v4468_v29 }
  0xae   :  { %4270 = vmatmul.mubr.msk.bf16.gmra.mxu0 %vm326_vm1, %v4469_v30 }
  0xaf   :  { %4336 = vmatmul.mubr.msk.bf16.gmra.mxu1 %vm326_vm1, %v4470_v31  ;;  %4273 = vmatprep.mubr.msk.bf16.mxu0 %vm326_vm1, %v4471_v32 }
  0xb0   :  { %4339 = vmatprep.mubr.msk.bf16.mxu1 %vm326_vm1, %v4472_v33 }
  0xb6   :  { %4274 = vmatmul.mubr.msk.bf16.gmra.mxu0 %vm326_vm1, %v4473_v34 }
  0xb7   :  { %4340 = vmatmul.mubr.msk.bf16.gmra.mxu1 %vm326_vm1, %v4474_v35  ;;  %4277 = vmatprep.mubr.msk.bf16.mxu0 %vm326_vm1, %v4475_v36 }
  0xb8   :  { %4343 = vmatprep.mubr.msk.bf16.mxu1 %vm326_vm1, %v4476_v37  ;;  %v4497_v37 = vld [vmem:[%s6376_s2 + $0xc8] sm:$0xff]  }
  0xbe   :  { %4278 = vmatmul.mubr.msk.bf16.gmra.mxu0 %vm326_vm1, %v4477_v38 }
  0xbf   :  { %4344 = vmatmul.mubr.msk.bf16.gmra.mxu1 %vm326_vm1, %v4478_v39  ;;  %4281 = vmatprep.mubr.msk.bf16.mxu0 %vm326_vm1, %v4479_v40  ;;  %v4498_v39 = vld [vmem:[%s6377_s3 + $0xc8] sm:$0xff]   ;;  %v4499_v40 = vld [vmem:[%s6376_s2 + $0xd0] sm:$0xff]  }
  0xc0   :  { %4347 = vmatprep.mubr.msk.bf16.mxu1 %vm326_vm1, %v4480_v41 }
  0xc6   :  { %v4119_v46 = vpop.f32.mrf.mxu0  ;;  %4282 = vmatmul.mubr.msk.bf16.gmra.mxu0 %vm326_vm1, %v4481_v42 }
  0xc7   :  { %v4185_v47 = vpop.f32.mrf.mxu1  ;;  %4348 = vmatmul.mubr.msk.bf16.gmra.mxu1 %vm326_vm1, %v4482_v43  ;;  %4285 = vmatprep.mubr.msk.bf16.mxu0 %vm326_vm1, %v4483_v44  ;;  %v4500_v43 = vld [vmem:[%s6377_s3 + $0xd0] sm:$0xff]  }
  0xc8   :  { %v5251_v48 = vadd.f32 %v4185_v47, %v4119_v46  ;;  %v461_v49 = vpop.f32.mrf.mxu0  ;;  %4351 = vmatprep.mubr.msk.bf16.mxu1 %vm326_vm1, %v4484_v45 }
  0xc9   :  { %v1009_v50 = vpop.f32.mrf.mxu1 }
  0xca   :  { %v5254_v51 = vadd.f32 %v1009_v50, %v461_v49  ;;  %v4120_v52 = vpop.f32.mrf.mxu0 }
  0xcb   :  { %v4186_v54 = vpop.f32.mrf.mxu1 }
  0xcc   :  { %v5265_v57 = vadd.f32 %v4186_v54, %v4120_v52  ;;  %v464_v58 = vpop.f32.mrf.mxu0 }
  0xcd   :  { %v1012_v60 = vpop.f32.mrf.mxu1 }
  0xce   :  { %v5270_v61 = vadd.f32 %v1012_v60, %v464_v58  ;;  %v4123_v62 = vpop.f32.mrf.mxu0  ;;  %4286 = vmatmul.mubr.msk.bf16.gmra.mxu0 %vm326_vm1, %v4485_v53  ;;  %v4502_v58 = vld [vmem:[%s6377_s3 + $0xd8] sm:$0xff]  }
  0xcf   :  { %v4189_v63 = vpop.f32.mrf.mxu1  ;;  %4352 = vmatmul.mubr.msk.bf16.gmra.mxu1 %vm326_vm1, %v4486_v55  ;;  %4289 = vmatprep.mubr.msk.bf16.mxu0 %vm326_vm1, %v4487_v56  ;;  %v4501_v55 = vld [vmem:[%s6376_s2 + $0xd8] sm:$0xff]  }
  0xd0   :  { %v5275_v0 = vadd.f32 %v4189_v63, %v4123_v62  ;;  %v477_v1 = vpop.f32.mrf.mxu0  ;;  %4355 = vmatprep.mubr.msk.bf16.mxu1 %vm326_vm1, %v4488_v59  ;;  %v4503_v59 = vld [vmem:[%s6376_s2 + $0xe0] sm:$0xff]  }
  0xd1   :  { %v1025_v2 = vpop.f32.mrf.mxu1  ;;  %v4504_v63 = vld [vmem:[%s6377_s3 + $0xe0] sm:$0xff]  }
  0xd2   :  { %v5278_v3 = vadd.f32 %v1025_v2, %v477_v1  ;;  %v4124_v4 = vpop.f32.mrf.mxu0 }
  0xd3   :  { %v4190_v6 = vpop.f32.mrf.mxu1 }
  0xd4   :  { %v5289_v9 = vadd.f32 %v4190_v6, %v4124_v4  ;;  %v480_v10 = vpop.f32.mrf.mxu0 }
  0xd5   :  { %v1028_v12 = vpop.f32.mrf.mxu1 }
  0xd6   :  { %v5294_v13 = vadd.f32 %v1028_v12, %v480_v10  ;;  %v4127_v14 = vpop.f32.mrf.mxu0  ;;  %4290 = vmatmul.mubr.msk.bf16.gmra.mxu0 %vm326_vm1, %v4489_v5  ;;  %v4505_v12 = vld [vmem:[%s6376_s2 + $0xe8] sm:$0xff]  }
  0xd7   :  { %v4193_v15 = vpop.f32.mrf.mxu1  ;;  %4356 = vmatmul.mubr.msk.bf16.gmra.mxu1 %vm326_vm1, %v4490_v7  ;;  %4293 = vmatprep.mubr.msk.bf16.mxu0 %vm326_vm1, %v4491_v8 }
  0xd8   :  { %v5299_v16 = vadd.f32 %v4193_v15, %v4127_v14  ;;  %v493_v17 = vpop.f32.mrf.mxu0  ;;  %4359 = vmatprep.mubr.msk.bf16.mxu1 %vm326_vm1, %v4492_v11  ;;  %v4506_v15 = vld [vmem:[%s6377_s3 + $0xe8] sm:$0xff]  }
  0xd9   :  { %v1041_v18 = vpop.f32.mrf.mxu1 }
  0xda   :  { %v5302_v19 = vadd.f32 %v1041_v18, %v493_v17  ;;  %v4128_v20 = vpop.f32.mrf.mxu0  ;;  %v4507_v17 = vld [vmem:[%s6376_s2 + $0xf0] sm:$0xff]  }
  0xdb   :  { %v4194_v22 = vpop.f32.mrf.mxu1 }
  0xdc   :  { %v5313_v25 = vadd.f32 %v4194_v22, %v4128_v20  ;;  %v496_v26 = vpop.f32.mrf.mxu0 }
  0xdd   :  { %v1044_v28 = vpop.f32.mrf.mxu1 }
  0xde   :  { %v5318_v29 = vadd.f32 %v1044_v28, %v496_v26  ;;  %v4131_v30 = vpop.f32.mrf.mxu0  ;;  %4294 = vmatmul.mubr.msk.bf16.gmra.mxu0 %vm326_vm1, %v4493_v21  ;;  %v4508_v21 = vld [vmem:[%s6377_s3 + $0xf0] sm:$0xff]  }
  0xdf   :  { %v4197_v31 = vpop.f32.mrf.mxu1  ;;  %4360 = vmatmul.mubr.msk.bf16.gmra.mxu1 %vm326_vm1, %v4494_v23  ;;  %4297 = vmatprep.mubr.msk.bf16.mxu0 %vm326_vm1, %v4495_v24 }
  0xe0   :  { %v5323_v32 = vadd.f32 %v4197_v31, %v4131_v30  ;;  %v509_v33 = vpop.f32.mrf.mxu0  ;;  %4363 = vmatprep.mubr.msk.bf16.mxu1 %vm326_vm1, %v4496_v27 }
  0xe1   :  { %v1057_v34 = vpop.f32.mrf.mxu1 }
  0xe2   :  { %v5326_v35 = vadd.f32 %v1057_v34, %v509_v33  ;;  %v4132_v36 = vpop.f32.mrf.mxu0  ;;  %v4509_v34 = vld [vmem:[%s6376_s2 + $0xf8] sm:$0xff]  }
  0xe3   :  { %v4198_v38 = vpop.f32.mrf.mxu1 }
  0xe4   :  { %v5337_v41 = vadd.f32 %v4198_v38, %v4132_v36  ;;  %v512_v42 = vpop.f32.mrf.mxu0 }
  0xe5   :  { %v1060_v44 = vpop.f32.mrf.mxu1 }
  0xe6   :  { %v5342_v45 = vadd.f32 %v1060_v44, %v512_v42  ;;  %v4135_v46 = vpop.f32.mrf.mxu0  ;;  %4298 = vmatmul.mubr.msk.bf16.gmra.mxu0 %vm326_vm1, %v4497_v37  ;;  %v4510_v37 = vld [vmem:[%s6377_s3 + $0xf8] sm:$0xff]  }
  0xe7   :  { %v4201_v47 = vpop.f32.mrf.mxu1  ;;  %4364 = vmatmul.mubr.msk.bf16.gmra.mxu1 %vm326_vm1, %v4498_v39  ;;  %4301 = vmatprep.mubr.msk.bf16.mxu0 %vm326_vm1, %v4499_v40 }
  0xe8   :  { %v5347_v49 = vadd.f32 %v4201_v47, %v4135_v46  ;;  %v525_v50 = vpop.f32.mrf.mxu0  ;;  %4367 = vmatprep.mubr.msk.bf16.mxu1 %vm326_vm1, %v4500_v43 }
  0xe9   :  { %v1073_v52 = vpop.f32.mrf.mxu1 }
  0xea   :  { %v5350_v53 = vadd.f32 %v1073_v52, %v525_v50  ;;  %v4136_v54 = vpop.f32.mrf.mxu0 }
  0xeb   :  { %v4202_v56 = vpop.f32.mrf.mxu1 }
  0xec   :  { %v5361_v60 = vadd.f32 %v4202_v56, %v4136_v54  ;;  %v528_v62 = vpop.f32.mrf.mxu0 }
  0xed   :  { %v1076_v1 = vpop.f32.mrf.mxu1 }
  0xee   :  { %v5366_v2 = vadd.f32 %v1076_v1, %v528_v62  ;;  %v4139_v4 = vpop.f32.mrf.mxu0  ;;  %4302 = vmatmul.mubr.msk.bf16.gmra.mxu0 %vm326_vm1, %v4501_v55 }
  0xef   :  { %v4205_v5 = vpop.f32.mrf.mxu1  ;;  %4368 = vmatmul.mubr.msk.bf16.gmra.mxu1 %vm326_vm1, %v4502_v58  ;;  %4305 = vmatprep.mubr.msk.bf16.mxu0 %vm326_vm1, %v4503_v59 }
  0xf0   :  { %v5371_v6 = vadd.f32 %v4205_v5, %v4139_v4  ;;  %v541_v7 = vpop.f32.mrf.mxu0  ;;  %4371 = vmatprep.mubr.msk.bf16.mxu1 %vm326_vm1, %v4504_v63 }
  0xf1   :  { %v1089_v8 = vpop.f32.mrf.mxu1 }
  0xf2   :  { %v5374_v10 = vadd.f32 %v1089_v8, %v541_v7  ;;  %v4140_v11 = vpop.f32.mrf.mxu0 }
  0xf3   :  { %v4206_v14 = vpop.f32.mrf.mxu1 }
  0xf4   :  { %v5385_v18 = vadd.f32 %v4206_v14, %v4140_v11  ;;  %v544_v20 = vpop.f32.mrf.mxu0 }
  0xf5   :  { %v1092_v22 = vpop.f32.mrf.mxu1 }
  0xf6   :  { %v5390_v23 = vadd.f32 %v1092_v22, %v544_v20  ;;  %v4143_v24 = vpop.f32.mrf.mxu0  ;;  %4306 = vmatmul.mubr.msk.bf16.gmra.mxu0 %vm326_vm1, %v4505_v12 }
  0xf7   :  { %v4209_v26 = vpop.f32.mrf.mxu1  ;;  %4372 = vmatmul.mubr.msk.bf16.gmra.mxu1 %vm326_vm1, %v4506_v15  ;;  %4309 = vmatprep.mubr.msk.bf16.mxu0 %vm326_vm1, %v4507_v17 }
  0xf8   :  { %v5395_v27 = vadd.f32 %v4209_v26, %v4143_v24  ;;  %v557_v28 = vpop.f32.mrf.mxu0  ;;  %4375 = vmatprep.mubr.msk.bf16.mxu1 %vm326_vm1, %v4508_v21 }
  0xf9   :  { %v1105_v30 = vpop.f32.mrf.mxu1 }
  0xfa   :  { %v5398_v31 = vadd.f32 %v1105_v30, %v557_v28  ;;  %v4144_v33 = vpop.f32.mrf.mxu0 }
  0xfb   :  { %v4210_v36 = vpop.f32.mrf.mxu1 }
  0xfc   :  { %v5406_v38 = vadd.f32 %v4210_v36, %v4144_v33  ;;  %v560_v39 = vpop.f32.mrf.mxu0 }
  0xfd   :  { %v1108_v40 = vpop.f32.mrf.mxu1 }
  0xfe   :  { %v5408_v42 = vadd.f32 %v1108_v40, %v560_v39  ;;  %v4147_v43 = vpop.f32.mrf.mxu0  ;;  %4310 = vmatmul.mubr.msk.bf16.gmra.mxu0 %vm326_vm1, %v4509_v34 }
  0xff   :  { %v4213_v44 = vpop.f32.mrf.mxu1  ;;  %4376 = vmatmul.mubr.msk.bf16.gmra.mxu1 %vm326_vm1, %v4510_v37 }
 0x100   :  { %v5412_v46 = vadd.f32 %v4213_v44, %v4147_v43  ;;  %v573_v47 = vpop.f32.mrf.mxu0 }
 0x101   :  { %v1121_v50 = vpop.f32.mrf.mxu1 }
 0x102   :  { %v5414_v52 = vadd.f32 %v1121_v50, %v573_v47  ;;  %v4148_v54 = vpop.f32.mrf.mxu0 }
 0x103   :  { %v4214_v55 = vpop.f32.mrf.mxu1 }
 0x104   :  { %v5416_v56 = vadd.f32 %v4214_v55, %v4148_v54  ;;  %v576_v58 = vpop.f32.mrf.mxu0 }
 0x105   :  { %v1124_v59 = vpop.f32.mrf.mxu1 }
 0x106   :  { %v5418_v62 = vadd.f32 %v1124_v59, %v576_v58  ;;  %v4151_v63 = vpop.f32.mrf.mxu0 }
 0x107   :  { %v4217_v1 = vpop.f32.mrf.mxu1 }
 0x108   :  { %v5420_v4 = vadd.f32 %v4217_v1, %v4151_v63  ;;  %v589_v5 = vpop.f32.mrf.mxu0 }
 0x109   :  { %v1137_v7 = vpop.f32.mrf.mxu1 }
 0x10a   :  { %v5422_v8 = vadd.f32 %v1137_v7, %v589_v5  ;;  %v4152_v11 = vpop.f32.mrf.mxu0 }
 0x10b   :  { %v4218_v12 = vpop.f32.mrf.mxu1 }
 0x10c   :  { %v5424_v14 = vadd.f32 %v4218_v12, %v4152_v11  ;;  %v592_v15 = vpop.f32.mrf.mxu0 }
 0x10d   :  { %v1140_v17 = vpop.f32.mrf.mxu1 }
 0x10e   :  { %v5426_v20 = vadd.f32 %v1140_v17, %v592_v15  ;;  %v4155_v21 = vpop.f32.mrf.mxu0 }
 0x10f   :  { %v4221_v22 = vpop.f32.mrf.mxu1 }
 0x110   :  { %v5428_v24 = vadd.f32 %v4221_v22, %v4155_v21  ;;  %v605_v26 = vpop.f32.mrf.mxu0 }
 0x111   :  { %v1153_v28 = vpop.f32.mrf.mxu1 }
 0x112   :  { %v5430_v30 = vadd.f32 %v1153_v28, %v605_v26  ;;  %v4156_v33 = vpop.f32.mrf.mxu0 }
 0x113   :  { %v4222_v34 = vpop.f32.mrf.mxu1 }
 0x114   :  { %v5432_v36 = vadd.f32 %v4222_v34, %v4156_v33  ;;  %v608_v37 = vpop.f32.mrf.mxu0 }
 0x115   :  { %v1156_v39 = vpop.f32.mrf.mxu1 }
 0x116   :  { %v5434_v40 = vadd.f32 %v1156_v39, %v608_v37  ;;  %v4159_v43 = vpop.f32.mrf.mxu0 }
 0x117   :  { %v4225_v44 = vpop.f32.mrf.mxu1 }
 0x118   :  { %v5436_v47 = vadd.f32 %v4225_v44, %v4159_v43  ;;  %v621_v50 = vpop.f32.mrf.mxu0 }
 0x119   :  { %v1169_v54 = vpop.f32.mrf.mxu1 }
 0x11a   :  { %v5438_v55 = vadd.f32 %v1169_v54, %v621_v50  ;;  %v4160_v58 = vpop.f32.mrf.mxu0 }
 0x11b   :  { %v4226_v59 = vpop.f32.mrf.mxu1 }
 0x11c   :  { %v5440_v63 = vadd.f32 %v4226_v59, %v4160_v58  ;;  %v624_v1 = vpop.f32.mrf.mxu0 }
 0x11d   :  { %v1172_v5 = vpop.f32.mrf.mxu1 }
 0x11e   :  { %6381 = vst [vmem:[#allocation2_spill] sm:$0xff] %v5440_v63  ;;  %v5442_v7 = vadd.f32 %v1172_v5, %v624_v1  ;;  %v4163_v11 = vpop.f32.mrf.mxu0 }
 0x11f   :  { %v4229_v12 = vpop.f32.mrf.mxu1 }
 0x120   :  { %6382 = vst [vmem:[#allocation3_spill] sm:$0xff] %v5442_v7  ;;  %v5444_v15 = vadd.f32 %v4229_v12, %v4163_v11  ;;  %v637_v17 = vpop.f32.mrf.mxu0 }
 0x121   :  { %v1185_v21 = vpop.f32.mrf.mxu1 }
 0x122   :  { %6383 = vst [vmem:[#allocation4_spill] sm:$0xff] %v5444_v15  ;;  %v5446_v22 = vadd.f32 %v1185_v21, %v637_v17  ;;  %v4164_v26 = vpop.f32.mrf.mxu0 }
 0x123   :  { %v4230_v28 = vpop.f32.mrf.mxu1 }
 0x124   :  { %6384 = vst [vmem:[#allocation5_spill] sm:$0xff] %v5446_v22  ;;  %v5448_v33 = vadd.f32 %v4230_v28, %v4164_v26  ;;  %v640_v34 = vpop.f32.mrf.mxu0 }
 0x125   :  { %v1188_v37 = vpop.f32.mrf.mxu1 }
 0x126   :  { %6385 = vst [vmem:[#allocation6_spill] sm:$0xff] %v5448_v33  ;;  %v5450_v39 = vadd.f32 %v1188_v37, %v640_v34  ;;  %v4167_v43 = vpop.f32.mrf.mxu0 }
 0x127   :  { %v4233_v44 = vpop.f32.mrf.mxu1 }
 0x128   :  { %6386 = vst [vmem:[#allocation7_spill] sm:$0xff] %v5450_v39  ;;  %v5452_v50 = vadd.f32 %v4233_v44, %v4167_v43  ;;  %v653_v54 = vpop.f32.mrf.mxu0 }
 0x129   :  { %v1201_v58 = vpop.f32.mrf.mxu1 }
 0x12a   :  { %6387 = vst [vmem:[#allocation8_spill] sm:$0xff] %v5452_v50  ;;  %v5454_v59 = vadd.f32 %v1201_v58, %v653_v54  ;;  %v4168_v1 = vpop.f32.mrf.mxu0 }
 0x12b   :  { %v4234_v5 = vpop.f32.mrf.mxu1 }
 0x12c   :  { %6388 = vst [vmem:[#allocation9_spill] sm:$0xff] %v5454_v59  ;;  %v5456_v11 = vadd.f32 %v4234_v5, %v4168_v1  ;;  %v656_v12 = vpop.f32.mrf.mxu0 }
 0x12d   :  { %v1204_v17 = vpop.f32.mrf.mxu1 }
 0x12e   :  { %6389 = vst [vmem:[#allocation10_spill] sm:$0xff] %v5456_v11  ;;  %v5458_v21 = vadd.f32 %v1204_v17, %v656_v12  ;;  %v4171_v26 = vpop.f32.mrf.mxu0 }
 0x12f   :  { %v4237_v28 = vpop.f32.mrf.mxu1 }
 0x130   :  { %6390 = vst [vmem:[#allocation11_spill] sm:$0xff] %v5458_v21  ;;  %v5460_v34 = vadd.f32 %v4237_v28, %v4171_v26  ;;  %v669_v37 = vpop.f32.mrf.mxu0 }
 0x131   :  { %v1217_v39 = vpop.f32.mrf.mxu1 }
 0x132   :  { %6391 = vst [vmem:[#allocation12_spill] sm:$0xff] %v5460_v34  ;;  %v5462_v43 = vadd.f32 %v1217_v39, %v669_v37  ;;  %v4172_v44 = vpop.f32.mrf.mxu0 }
 0x133   :  { %v4238_v50 = vpop.f32.mrf.mxu1 }
 0x134   :  { %6392 = vst [vmem:[#allocation13_spill] sm:$0xff] %v5462_v43  ;;  %v5464_v54 = vadd.f32 %v4238_v50, %v4172_v44  ;;  %v672_v58 = vpop.f32.mrf.mxu0 }
 0x135   :  { %v1220_v59 = vpop.f32.mrf.mxu1 }
 0x136   :  { %6393 = vst [vmem:[#allocation14_spill] sm:$0xff] %v5464_v54  ;;  %v5466_v1 = vadd.f32 %v1220_v59, %v672_v58  ;;  %v4175_v5 = vpop.f32.mrf.mxu0 }
 0x137   :  { %v4241_v11 = vpop.f32.mrf.mxu1 }
 0x138   :  { %6394 = vst [vmem:[#allocation15_spill] sm:$0xff] %v5466_v1  ;;  %v5468_v12 = vadd.f32 %v4241_v11, %v4175_v5  ;;  %v685_v17 = vpop.f32.mrf.mxu0 }
 0x139   :  { %v1233_v21 = vpop.f32.mrf.mxu1 }
 0x13a   :  { %6395 = vst [vmem:[#allocation16_spill] sm:$0xff] %v5468_v12  ;;  %v5470_v26 = vadd.f32 %v1233_v21, %v685_v17  ;;  %v4176_v28 = vpop.f32.mrf.mxu0 }
 0x13b   :  { %v4242_v34 = vpop.f32.mrf.mxu1 }
 0x13c   :  { %6396 = vst [vmem:[#allocation17_spill] sm:$0xff] %v5470_v26  ;;  %v5472_v39 = vadd.f32 %v4242_v34, %v4176_v28  ;;  %v688_v37 = vpop.f32.mrf.mxu0 }
 0x13d   :  { %v1236_v43 = vpop.f32.mrf.mxu1 }
 0x13e   :  { %6397 = vst [vmem:[#allocation18_spill] sm:$0xff] %v5472_v39  ;;  %v5474_v50 = vadd.f32 %v1236_v43, %v688_v37  ;;  %v4179_v44 = vpop.f32.mrf.mxu0 }
 0x13f   :  { %v4245_v54 = vpop.f32.mrf.mxu1 }
 0x140   :  { %6398 = vst [vmem:[#allocation19_spill] sm:$0xff] %v5474_v50  ;;  %v5476_v59 = vadd.f32 %v4245_v54, %v4179_v44  ;;  %v701_v58 = vpop.f32.mrf.mxu0  ;;  %v5488_v54 = vld [vmem:[%s6378_s8] ss:$0 sm:$0xff] }
 0x141   :  { %v1249_v1 = vpop.f32.mrf.mxu1 }
 0x142   :  { %6399 = vst [vmem:[#allocation20_spill] sm:$0xff] %v5476_v59  ;;  %v5478_v11 = vadd.f32 %v1249_v1, %v701_v58  ;;  %v4180_v5 = vpop.f32.mrf.mxu0 }
 0x143   :  { %v4246_v12 = vpop.f32.mrf.mxu1 }
 0x144   :  { %6400 = vst [vmem:[#allocation21_spill] sm:$0xff] %v5478_v11  ;;  %v5480_v21 = vadd.f32 %v4246_v12, %v4180_v5  ;;  %v704_v17 = vpop.f32.mrf.mxu0  ;;  %v5494_v12 = vld [vmem:[%s6379_s9] ss:$0 sm:$0xff] }
 0x145   :  { %v1252_v26 = vpop.f32.mrf.mxu1 }
 0x146   :  { %6401 = vst [vmem:[#allocation22_spill] sm:$0xff] %v5480_v21  ;;  %v5482_v34 = vadd.f32 %v1252_v26, %v704_v17  ;;  %v4251_v28 = vpop.f32.mrf.mxu0 }
 0x147   :  { %v1879_v43 = vadd.f32 %v4251_v28, %v5251_v48  ;;  %v4317_v37 = vpop.f32.mrf.mxu1 }
 0x148   :  { %6402 = vst [vmem:[#allocation23_spill] sm:$0xff] %v5482_v34  ;;  %v1622_v44 = vpop.f32.mrf.mxu0 }
 0x149   :  { %v2556_v1 = vadd.f32 %v4317_v37, %v1879_v43  ;;  %v1877_v58 = vadd.f32 %v1622_v44, %v5254_v51  ;;  %v2299_v11 = vpop.f32.mrf.mxu1 }
 0x14a   :  { %v4252_v26 = vpop.f32.mrf.mxu0 }
 0x14b   :  { %v2627_v5 = vmul.f32 %v5488_v54, %v2556_v1  ;;  %v2554_v48 = vadd.f32 %v2299_v11, %v1877_v58  ;;  %v1880_v17 = vadd.f32 %v4252_v26, %v5265_v57  ;;  %v4318_v28 = vpop.f32.mrf.mxu1 }
 0x14c   :  { %v1625_v34 = vpop.f32.mrf.mxu0 }
 0x14d   :  { %v5499_v21 = vadd.f32 %v5494_v12, %v2627_v5  ;;  %v2625_v43 = vmul.f32 %v5488_v54, %v2554_v48  ;;  %v2557_v51 = vadd.f32 %v4318_v28, %v1880_v17  ;;  %v1878_v37 = vadd.f32 %v1625_v34, %v5270_v61  ;;  %v2302_v44 = vpop.f32.mrf.mxu1 }
 0x14e   :  { %v4255_v59 = vpop.f32.mrf.mxu0 }
 0x14f   :  { %v3793_v50 = vmul.f32 -1.442695, %v5499_v21  ;;  %v5505_v39 = vadd.f32 %v5494_v12, %v2625_v43  ;;  %v2628_v11 = vmul.f32 %v5488_v54, %v2557_v51  ;;  %v2555_v57 = vadd.f32 %v2302_v44, %v1878_v37  ;;  %v4321_v1 = vpop.f32.mrf.mxu1 }
 0x150   :  { %v1883_v58 = vadd.f32 %v4255_v59, %v5275_v0  ;;  %v1638_v26 = vpop.f32.mrf.mxu0 }
 0x151   :  { %4511 = vpow2.f32 %v3793_v50  ;;  %v3791_v5 = vmul.f32 -1.442695, %v5505_v39  ;;  %v5511_v48 = vadd.f32 %v5494_v12, %v2628_v11  ;;  %v2626_v61 = vmul.f32 %v5488_v54, %v2555_v57  ;;  %v2315_v34 = vpop.f32.mrf.mxu1 }
 0x152   :  { %v2560_v17 = vadd.f32 %v4321_v1, %v1883_v58  ;;  %v1881_v28 = vadd.f32 %v1638_v26, %v5278_v3  ;;  %v4256_v43 = vpop.f32.mrf.mxu0 }
 0x153   :  { %4513 = vpow2.f32 %v3791_v5  ;;  %v3794_v51 = vmul.f32 -1.442695, %v5511_v48  ;;  %v5517_v37 = vadd.f32 %v5494_v12, %v2626_v61  ;;  %v1884_v0 = vadd.f32 %v4256_v43, %v5289_v9  ;;  %v4322_v50 = vpop.f32.mrf.mxu1 }
 0x154   :  { %v2631_v59 = vmul.f32 %v5488_v54, %v2560_v17  ;;  %v2558_v44 = vadd.f32 %v2315_v34, %v1881_v28  ;;  %v1641_v11 = vpop.f32.mrf.mxu0 }
 0x155   :  { %4515 = vpow2.f32 %v3794_v51  ;;  %v3792_v57 = vmul.f32 -1.442695, %v5517_v37  ;;  %v2561_v1 = vadd.f32 %v4322_v50, %v1884_v0  ;;  %v1882_v3 = vadd.f32 %v1641_v11, %v5294_v13  ;;  %v2318_v58 = vpop.f32.mrf.mxu1 }
 0x156   :  { %v5524_v26 = vadd.f32 %v5494_v12, %v2631_v59  ;;  %v2629_v5 = vmul.f32 %v5488_v54, %v2558_v44  ;;  %v4259_v61 = vpop.f32.mrf.mxu0 }
 0x157   :  { %4517 = vpow2.f32 %v3792_v57  ;;  %v2632_v9 = vmul.f32 %v5488_v54, %v2561_v1  ;;  %v2559_v43 = vadd.f32 %v2318_v58, %v1882_v3  ;;  %v1887_v34 = vadd.f32 %v4259_v61, %v5299_v16  ;;  %v4325_v17 = vpop.f32.mrf.mxu1 }
 0x158   :  { %v3797_v28 = vmul.f32 -1.442695, %v5524_v26  ;;  %v5531_v51 = vadd.f32 %v5494_v12, %v2629_v5  ;;  %v1654_v13 = vpop.f32.mrf.mxu0 }
 0x159   :  { %v5534_v0 = vadd.f32 %v5494_v12, %v2632_v9  ;;  %v2630_v50 = vmul.f32 %v5488_v54, %v2559_v43  ;;  %v2564_v59 = vadd.f32 %v4325_v17, %v1887_v34  ;;  %v1885_v44 = vadd.f32 %v1654_v13, %v5302_v19  ;;  %v2331_v11 = vpop.f32.mrf.mxu1 }
 0x15a   :  { %4519 = vpow2.f32 %v3797_v28  ;;  %v3795_v57 = vmul.f32 -1.442695, %v5531_v51  ;;  %v4260_v16 = vpop.f32.mrf.mxu0 }
 0x15b   :  { %v3798_v1 = vmul.f32 -1.442695, %v5534_v0  ;;  %v5541_v3 = vadd.f32 %v5494_v12, %v2630_v50  ;;  %v2635_v58 = vmul.f32 %v5488_v54, %v2564_v59  ;;  %v2562_v5 = vadd.f32 %v2331_v11, %v1885_v44  ;;  %v4326_v61 = vpop.f32.mrf.mxu1 }
 0x15c   :  { %4521 = vpow2.f32 %v3795_v57  ;;  %v1888_v9 = vadd.f32 %v4260_v16, %v5313_v25  ;;  %v1657_v43 = vpop.f32.mrf.mxu0 }
 0x15d   :  { %4523 = vpow2.f32 %v3798_v1  ;;  %v3796_v19 = vmul.f32 -1.442695, %v5541_v3  ;;  %v5547_v34 = vadd.f32 %v5494_v12, %v2635_v58  ;;  %v2633_v17 = vmul.f32 %v5488_v54, %v2562_v5  ;;  %v2334_v28 = vpop.f32.mrf.mxu1 }
 0x15e   :  { %v4512_v13 = vpop.eup %4511  ;;  %v2565_v50 = vadd.f32 %v4326_v61, %v1888_v9  ;;  %v1886_v33 = vadd.f32 %v1657_v43, %v5318_v29  ;;  %v4263_v59 = vpop.f32.mrf.mxu0 }
 0x15f   :  { %v2954_v44 = vadd.f32 1.0, %v4512_v13  ;;  %4525 = vpow2.f32 %v3796_v19  ;;  %v3801_v11 = vmul.f32 -1.442695, %v5547_v34  ;;  %v5553_v25 = vadd.f32 %v5494_v12, %v2633_v17  ;;  %v4329_v57 = vpop.f32.mrf.mxu1 }
 0x160   :  { %v4514_v16 = vpop.eup %4513  ;;  %v2636_v1 = vmul.f32 %v5488_v54, %v2565_v50  ;;  %v2563_v58 = vadd.f32 %v2334_v28, %v1886_v33  ;;  %v1891_v5 = vadd.f32 %v4263_v59, %v5323_v32  ;;  %v1670_v22 = vpop.f32.mrf.mxu0 }
 0x161   :  { %4527 = vrcp.f32 %v2954_v44  ;;  %v2952_v61 = vadd.f32 1.0, %v4514_v16  ;;  %v3799_v29 = vmul.f32 -1.442695, %v5553_v25  ;;  %v1889_v9 = vadd.f32 %v1670_v22, %v5326_v35  ;;  %v2347_v43 = vpop.f32.mrf.mxu1 }
 0x162   :  { %v4516_v19 = vpop.eup %4515  ;;  %4529 = vpow2.f32 %v3801_v11  ;;  %v5560_v17 = vadd.f32 %v5494_v12, %v2636_v1  ;;  %v2634_v13 = vmul.f32 %v5488_v54, %v2563_v58  ;;  %v2568_v15 = vadd.f32 %v4329_v57, %v1891_v5  ;;  %v4264_v50 = vpop.f32.mrf.mxu0 }
 0x163   :  { %4531 = vrcp.f32 %v2952_v61  ;;  %v2955_v33 = vadd.f32 1.0, %v4516_v19  ;;  %v2566_v32 = vadd.f32 %v2347_v43, %v1889_v9  ;;  %v1892_v28 = vadd.f32 %v4264_v50, %v5337_v41  ;;  %v4330_v59 = vpop.f32.mrf.mxu1 }
 0x164   :  { %v4518_v44 = vpop.eup %4517  ;;  %4533 = vpow2.f32 %v3799_v29  ;;  %v3802_v35 = vmul.f32 -1.442695, %v5560_v17  ;;  %v5566_v22 = vadd.f32 %v5494_v12, %v2634_v13  ;;  %v2639_v11 = vmul.f32 %v5488_v54, %v2568_v15  ;;  %v1673_v16 = vpop.f32.mrf.mxu0 }
 0x165   :  { %4535 = vrcp.f32 %v2955_v33  ;;  %v2953_v1 = vadd.f32 1.0, %v4518_v44  ;;  %v2637_v57 = vmul.f32 %v5488_v54, %v2566_v32  ;;  %v2569_v58 = vadd.f32 %v4330_v59, %v1892_v28  ;;  %v2350_v5 = vpop.f32.mrf.mxu1 }
 0x166   :  { %4537 = vpow2.f32 %v3802_v35  ;;  %v3800_v41 = vmul.f32 -1.442695, %v5566_v22  ;;  %v5572_v61 = vadd.f32 %v5494_v12, %v2639_v11  ;;  %v1890_v29 = vadd.f32 %v1673_v16, %v5342_v45  ;;  %v4267_v9 = vpop.f32.mrf.mxu0 }
 0x167   :  { %v4520_v43 = vpop.eup %4519  ;;  %4539 = vrcp.f32 %v2953_v1  ;;  %v5576_v15 = vadd.f32 %v5494_v12, %v2637_v57  ;;  %v2640_v19 = vmul.f32 %v5488_v54, %v2569_v58  ;;  %v1895_v13 = vadd.f32 %v4267_v9, %v5347_v49  ;;  %v4333_v50 = vpop.f32.mrf.mxu1 }
 0x168   :  { %v2958_v33 = vadd.f32 1.0, %v4520_v43  ;;  %4541 = vpow2.f32 %v3800_v41  ;;  %v3805_v32 = vmul.f32 -1.442695, %v5572_v61  ;;  %v2567_v28 = vadd.f32 %v2350_v5, %v1890_v29  ;;  %v1686_v59 = vpop.f32.mrf.mxu0 }
 0x169   :  { %v4522_v44 = vpop.eup %4521  ;;  %v5582_v45 = vadd.f32 %v5494_v12, %v2640_v19  ;;  %v2572_v35 = vadd.f32 %v4333_v50, %v1895_v13  ;;  %v1893_v11 = vadd.f32 %v1686_v59, %v5350_v53  ;;  %v2363_v16 = vpop.f32.mrf.mxu1  ;;  %v3803_v49 = vmul.f32 -1.442695, %v5576_v15 }
 0x16a   :  { %v4524_v1 = vpop.eup %4523  ;;  %4543 = vrcp.f32 %v2958_v33  ;;  %v2956_v57 = vadd.f32 1.0, %v4522_v44  ;;  %v2638_v58 = vmul.f32 %v5488_v54, %v2567_v28  ;;  %v4268_v41 = vpop.f32.mrf.mxu0 }
 0x16b   :  { %v2959_v9 = vadd.f32 1.0, %v4524_v1  ;;  %4545 = vpow2.f32 %v3805_v32  ;;  %v3806_v5 = vmul.f32 -1.442695, %v5582_v45  ;;  %v2643_v29 = vmul.f32 %v5488_v54, %v2572_v35  ;;  %v4334_v43 = vpop.f32.mrf.mxu1 }
 0x16c   :  { %v4526_v19 = vpop.eup %4525  ;;  %4547 = vrcp.f32 %v2956_v57  ;;  %v5590_v53 = vadd.f32 %v5494_v12, %v2638_v58  ;;  %v2570_v13 = vadd.f32 %v2363_v16, %v1893_v11  ;;  %v1896_v50 = vadd.f32 %v4268_v41, %v5361_v60  ;;  %v1689_v33 = vpop.f32.mrf.mxu0 }
 0x16d   :  { %4549 = vrcp.f32 %v2959_v9  ;;  %v2957_v59 = vadd.f32 1.0, %v4526_v19  ;;  %v5594_v28 = vadd.f32 %v5494_v12, %v2643_v29  ;;  %v1894_v32 = vadd.f32 %v1689_v33, %v5366_v2  ;;  %v2366_v44 = vpop.f32.mrf.mxu1 }
 0x16e   :  { %v4528_v1 = vpop.eup %4527  ;;  %4551 = vpow2.f32 %v3803_v49  ;;  %v3804_v35 = vmul.f32 -1.442695, %v5590_v53  ;;  %v2641_v57 = vmul.f32 %v5488_v54, %v2570_v13  ;;  %v2573_v58 = vadd.f32 %v4334_v43, %v1896_v50  ;;  %v4271_v7 = vpop.f32.mrf.mxu0 }
 0x16f   :  { %v4530_v11 = vpop.eup %4529  ;;  %v3146_v60 = vmul.f32 %v4528_v1, %v5499_v21  ;;  %4553 = vrcp.f32 %v2957_v59  ;;  %v3809_v16 = vmul.f32 -1.442695, %v5594_v28  ;;  %v2571_v41 = vadd.f32 %v2366_v44, %v1894_v32  ;;  %v4337_v9 = vpop.f32.mrf.mxu1 }
 0x170   :  { %v4532_v29 = vpop.eup %4531  ;;  %v2962_v19 = vadd.f32 1.0, %v4530_v11  ;;  %4555 = vpow2.f32 %v3806_v5  ;;  %v5602_v2 = vadd.f32 %v5494_v12, %v2641_v57  ;;  %v2644_v49 = vmul.f32 %v5488_v54, %v2573_v58  ;;  %v1702_v33 = vpop.f32.mrf.mxu0 }
 0x171   :  { %v4534_v13 = vpop.eup %4533  ;;  %v3921_v43 = vpack.c.bf16 %v3146_v60, %v3146_v60  ;;  %v3144_v50 = vmul.f32 %v4532_v29, %v5505_v39  ;;  %4557 = vpow2.f32 %v3804_v35  ;;  %v2642_v21 = vmul.f32 %v5488_v54, %v2571_v41  ;;  %v2379_v59 = vpop.f32.mrf.mxu1 }
 0x172   :  { %v4536_v1 = vpop.eup %4535  ;;  %4559 = vrcp.f32 %v2962_v19  ;;  %v2960_v32 = vadd.f32 1.0, %v4534_v13  ;;  %v3807_v44 = vmul.f32 -1.442695, %v5602_v2  ;;  %v5609_v5 = vadd.f32 %v5494_v12, %v2644_v49  ;;  %v4272_v57 = vpop.f32.mrf.mxu0 }
 0x173   :  { %v4538_v11 = vpop.eup %4537  ;;  %3467 = vst.msk [vmem:[%s6380_s10 + $0x8] sm:$0xf] %vm3464_vm2, %v3921_v43  ;;  %v3919_v39 = vpack.c.bf16 %v3144_v50, %v3144_v50  ;;  %v3147_v35 = vmul.f32 %v4536_v1, %v5511_v48  ;;  %4561 = vpow2.f32 %v3809_v16  ;;  %v5617_v58 = vadd.f32 %v5494_v12, %v2642_v21  ;;  %v4338_v60 = vpop.f32.mrf.mxu1 }
 0x174   :  { %v4540_v41 = vpop.eup %4539  ;;  %4563 = vrcp.f32 %v2960_v32  ;;  %v2963_v29 = vadd.f32 1.0, %v4538_v11  ;;  %v3810_v19 = vmul.f32 -1.442695, %v5609_v5  ;;  %v1899_v49 = vadd.f32 %v4271_v7, %v5371_v6  ;;  %v1705_v13 = vpop.f32.mrf.mxu0 }
 0x175   :  { %v4542_v63 = vpop.eup %4541  ;;  %3465 = vst.msk [vmem:[%s6380_s10] sm:$0xf] %vm3464_vm2, %v3919_v39  ;;  %v3922_v48 = vpack.c.bf16 %v3147_v35, %v3147_v35  ;;  %v3145_v16 = vmul.f32 %v4540_v41, %v5517_v37  ;;  %4565 = vpow2.f32 %v3807_v44  ;;  %v3808_v43 = vmul.f32 -1.442695, %v5617_v58  ;;  %v2382_v50 = vpop.f32.mrf.mxu1 }
 0x176   :  { %4567 = vrcp.f32 %v2963_v29  ;;  %v2961_v21 = vadd.f32 1.0, %v4542_v63  ;;  %v2576_v1 = vadd.f32 %v4337_v9, %v1899_v49  ;;  %v1897_v32 = vadd.f32 %v1702_v33, %v5374_v10  ;;  %v4275_v6 = vpop.f32.mrf.mxu0 }
 0x177   :  { %v4544_v7 = vpop.eup %4543  ;;  %3468 = vst.msk [vmem:[%s6380_s10 + $0xc] sm:$0xf] %vm3464_vm2, %v3922_v48  ;;  %v3920_v11 = vpack.c.bf16 %v3145_v16, %v3145_v16  ;;  %4569 = vpow2.f32 %v3810_v19  ;;  %v1900_v37 = vadd.f32 %v4272_v57, %v5385_v18  ;;  %v1898_v44 = vadd.f32 %v1705_v13, %v5390_v23  ;;  %v4341_v39 = vpop.f32.mrf.mxu1 }
 0x178   :  { %v4546_v35 = vpop.eup %4545  ;;  %v3150_v63 = vmul.f32 %v4544_v7, %v5524_v26  ;;  %4571 = vrcp.f32 %v2961_v21  ;;  %v2647_v10 = vmul.f32 %v5488_v54, %v2576_v1  ;;  %v2574_v9 = vadd.f32 %v2379_v59, %v1897_v32  ;;  %v1718_v33 = vpop.f32.mrf.mxu0 }
 0x179   :  { %v4548_v41 = vpop.eup %4547  ;;  %3466 = vst.msk [vmem:[%s6380_s10 + $0x4] sm:$0xf] %vm3464_vm2, %v3920_v11  ;;  %v2966_v29 = vadd.f32 1.0, %v4546_v35  ;;  %4573 = vpow2.f32 %v3808_v43  ;;  %v2577_v18 = vadd.f32 %v4338_v60, %v1900_v37  ;;  %v2575_v57 = vadd.f32 %v2382_v50, %v1898_v44  ;;  %v2395_v23 = vpop.f32.mrf.mxu1 }
 0x17a   :  { %v4550_v19 = vpop.eup %4549  ;;  %v3925_v49 = vpack.c.bf16 %v3150_v63, %v3150_v63  ;;  %v3148_v26 = vmul.f32 %v4548_v41, %v5531_v51  ;;  %v5642_v13 = vadd.f32 %v5494_v12, %v2647_v10  ;;  %v2645_v59 = vmul.f32 %v5488_v54, %v2574_v9  ;;  %v4276_v48 = vpop.f32.mrf.mxu0 }
 0x17b   :  { %v4552_v16 = vpop.eup %4551  ;;  %v3151_v21 = vmul.f32 %v4550_v19, %v5534_v0  ;;  %4575 = vrcp.f32 %v2966_v29  ;;  %v2648_v1 = vmul.f32 %v5488_v54, %v2577_v18  ;;  %v2646_v60 = vmul.f32 %v5488_v54, %v2575_v57  ;;  %v4342_v43 = vpop.f32.mrf.mxu1 }
 0x17c   :  { %v4554_v50 = vpop.eup %4553  ;;  %3471 = vst.msk [vmem:[%s6380_s10 + $0x18] sm:$0xf] %vm3464_vm2, %v3925_v49  ;;  %v3923_v51 = vpack.c.bf16 %v3148_v26, %v3148_v26  ;;  %v2964_v32 = vadd.f32 1.0, %v4552_v16  ;;  %v3813_v7 = vmul.f32 -1.442695, %v5642_v13  ;;  %v5654_v11 = vadd.f32 %v5494_v12, %v2645_v59  ;;  %v5656_v0 = vpop.f32.mrf.mxu0 }
 0x17d   :  { %v4556_v37 = vpop.eup %4555  ;;  %v3926_v44 = vpack.c.bf16 %v3151_v21, %v3151_v21  ;;  %v3149_v35 = vmul.f32 %v4554_v50, %v5541_v3  ;;  %v5660_v63 = vadd.f32 %v5494_v12, %v2648_v1  ;;  %v5663_v10 = vadd.f32 %v5494_v12, %v2646_v60  ;;  %v5665_v9 = vpop.f32.mrf.mxu1 }
 0x17e   :  { %v4558_v41 = vpop.eup %4557  ;;  %3469 = vst.msk [vmem:[%s6380_s10 + $0x10] sm:$0xf] %vm3464_vm2, %v3923_v51  ;;  %4577 = vrcp.f32 %v2964_v32  ;;  %v2967_v29 = vadd.f32 1.0, %v4556_v37  ;;  %v3811_v18 = vmul.f32 -1.442695, %v5654_v11  ;;  %v1903_v3 = vadd.f32 %v4275_v6, %v5395_v27  ;;  %v5673_v57 = vpop.f32.mrf.mxu0 }
 0x17f   :  { %v4560_v19 = vpop.eup %4559  ;;  %3472 = vst.msk [vmem:[%s6380_s10 + $0x1c] sm:$0xf] %vm3464_vm2, %v3926_v44  ;;  %v3924_v49 = vpack.c.bf16 %v3149_v35, %v3149_v35  ;;  %v2965_v26 = vadd.f32 1.0, %v4558_v41  ;;  %4579 = vpow2.f32 %v3813_v7  ;;  %v3814_v59 = vmul.f32 -1.442695, %v5660_v63  ;;  %v5680_v16 = vpop.f32.mrf.mxu1 }
 0x180   :  { %v4562_v21 = vpop.eup %4561  ;;  %v3154_v1 = vmul.f32 %v4560_v19, %v5547_v34  ;;  %4581 = vrcp.f32 %v2967_v29  ;;  %v3812_v27 = vmul.f32 -1.442695, %v5663_v10  ;;  %v2580_v6 = vadd.f32 %v4341_v39, %v1903_v3  ;;  %v1734_v60 = vpop.f32.mrf.mxu0 }
 0x181   :  { %v4564_v50 = vpop.eup %4563  ;;  %3470 = vst.msk [vmem:[%s6380_s10 + $0x14] sm:$0xf] %vm3464_vm2, %v3924_v49  ;;  %4583 = vrcp.f32 %v2965_v26  ;;  %v2970_v51 = vadd.f32 1.0, %v4562_v21  ;;  %v1901_v32 = vadd.f32 %v1718_v33, %v5398_v31  ;;  %v1904_v7 = vadd.f32 %v4276_v48, %v5406_v38  ;;  %v5690_v37 = vpop.f32.mrf.mxu1 }
 0x182   :  { %v4566_v34 = vpop.eup %4565  ;;  %v3929_v44 = vpack.c.bf16 %v3154_v1, %v3154_v1  ;;  %v3152_v35 = vmul.f32 %v4564_v50, %v5553_v25  ;;  %4585 = vpow2.f32 %v3811_v18  ;;  %v2651_v39 = vmul.f32 %v5488_v54, %v2580_v6  ;;  %v4280_v41 = vpop.f32.mrf.mxu0 }
 0x183   :  { %v4568_v29 = vpop.eup %4567  ;;  %4587 = vrcp.f32 %v2970_v51  ;;  %v2968_v3 = vadd.f32 1.0, %v4566_v34  ;;  %v2578_v19 = vadd.f32 %v2395_v23, %v1901_v32  ;;  %v2581_v49 = vadd.f32 %v4342_v43, %v1904_v7  ;;  %v4346_v26 = vpop.f32.mrf.mxu1 }
 0x184   :  { %v4570_v21 = vpop.eup %4569  ;;  %3475 = vst.msk [vmem:[%s6380_s10 + $0x28] sm:$0xf] %vm3464_vm2, %v3929_v44  ;;  %v3927_v31 = vpack.c.bf16 %v3152_v35, %v3152_v35  ;;  %v3155_v38 = vmul.f32 %v4568_v29, %v5560_v17  ;;  %4589 = vpow2.f32 %v3814_v59  ;;  %v5700_v25 = vadd.f32 %v5494_v12, %v2651_v39  ;;  %v1737_v33 = vpop.f32.mrf.mxu0 }
 0x185   :  { %v4572_v48 = vpop.eup %4571  ;;  %4591 = vrcp.f32 %v2968_v3  ;;  %v2971_v18 = vadd.f32 1.0, %v4570_v21  ;;  %v2649_v23 = vmul.f32 %v5488_v54, %v2578_v19  ;;  %v2652_v43 = vmul.f32 %v5488_v54, %v2581_v49  ;;  %v2414_v1 = vpop.f32.mrf.mxu1 }
 0x186   :  { %v4574_v6 = vpop.eup %4573  ;;  %3473 = vst.msk [vmem:[%s6380_s10 + $0x20] sm:$0xf] %vm3464_vm2, %v3927_v31  ;;  %v3930_v17 = vpack.c.bf16 %v3155_v38, %v3155_v38  ;;  %v3153_v59 = vmul.f32 %v4572_v48, %v5566_v22  ;;  %4593 = vpow2.f32 %v3812_v27  ;;  %v3817_v50 = vmul.f32 -1.442695, %v5700_v25  ;;  %v4283_v51 = vpop.f32.mrf.mxu0 }
 0x187   :  { %4595 = vrcp.f32 %v2971_v18  ;;  %v2969_v32 = vadd.f32 1.0, %v4574_v6  ;;  %v5711_v7 = vadd.f32 %v5494_v12, %v2649_v23  ;;  %v5714_v34 = vadd.f32 %v5494_v12, %v2652_v43  ;;  %v5716_v44 = vpop.f32.mrf.mxu1 }
 0x188   :  { %v4576_v35 = vpop.eup %4575  ;;  %3476 = vst.msk [vmem:[%s6380_s10 + $0x2c] sm:$0xf] %vm3464_vm2, %v3930_v17  ;;  %v3928_v22 = vpack.c.bf16 %v3153_v59, %v3153_v59  ;;  %4597 = vpow2.f32 %v3817_v50  ;;  %v1902_v27 = vadd.f32 %v5656_v0, %v5408_v42  ;;  %v1907_v39 = vadd.f32 %v5673_v57, %v5412_v46  ;;  %v5726_v29 = vpop.f32.mrf.mxu0 }
 0x189   :  { %v3158_v3 = vmul.f32 %v4576_v35, %v5572_v61  ;;  %4599 = vrcp.f32 %v2969_v32  ;;  %v3815_v19 = vmul.f32 -1.442695, %v5711_v7  ;;  %v3818_v49 = vmul.f32 -1.442695, %v5714_v34  ;;  %v5731_v21 = vpop.f32.mrf.mxu1 }
 0x18a   :  { %3474 = vst.msk [vmem:[%s6380_s10 + $0x24] sm:$0xf] %vm3464_vm2, %v3928_v22  ;;  %v2579_v42 = vadd.f32 %v5665_v9, %v1902_v27  ;;  %v2584_v46 = vadd.f32 %v5680_v16, %v1907_v39  ;;  %v1905_v0 = vadd.f32 %v1734_v60, %v5414_v52  ;;  %v1908_v61 = vadd.f32 %v4280_v41, %v5416_v56  ;;  %v5741_v57 = vpop.f32.mrf.mxu0 }
 0x18b   :  { %v4578_v31 = vpop.eup %4577  ;;  %v3933_v38 = vpack.c.bf16 %v3158_v3, %v3158_v3  ;;  %4601 = vpow2.f32 %v3815_v19  ;;  %v1906_v48 = vadd.f32 %v1737_v33, %v5418_v62  ;;  %v1911_v18 = vadd.f32 %v4283_v51, %v5420_v4  ;;  %v5745_v23 = vpop.f32.mrf.mxu1 }
 0x18c   :  { %v4580_v43 = vpop.eup %4579  ;;  %v3156_v9 = vmul.f32 %v4578_v31, %v5576_v15  ;;  %4603 = vpow2.f32 %v3818_v49  ;;  %v2650_v16 = vmul.f32 %v5488_v54, %v2579_v42  ;;  %v2655_v52 = vmul.f32 %v5488_v54, %v2584_v46  ;;  %v5750_v56 = vpop.f32.mrf.mxu0 }
 0x18d   :  { %v4582_v60 = vpop.eup %4581  ;;  %3479 = vst.msk [vmem:[%s6380_s10 + $0x38] sm:$0xf] %vm3464_vm2, %v3933_v38  ;;  %v2974_v62 = vadd.f32 1.0, %v4580_v43  ;;  %v2582_v4 = vadd.f32 %v5690_v37, %v1905_v0  ;;  %v2585_v41 = vadd.f32 %v4346_v26, %v1908_v61  ;;  %v2583_v33 = vadd.f32 %v2414_v1, %v1906_v48  ;;  %v5757_v6 = vpop.f32.mrf.mxu1 }
 0x18e   :  { %v4584_v15 = vpop.eup %4583  ;;  %v3931_v17 = vpack.c.bf16 %v3156_v9, %v3156_v9  ;;  %v3159_v59 = vmul.f32 %v4582_v60, %v5582_v45  ;;  %v5761_v50 = vadd.f32 %v5494_v12, %v2650_v16  ;;  %v5764_v51 = vadd.f32 %v5494_v12, %v2655_v52  ;;  %v5766_v32 = vpop.f32.mrf.mxu0 }
 0x18f   :  { %v4586_v35 = vpop.eup %4585  ;;  %v3157_v22 = vmul.f32 %v4584_v15, %v5590_v53  ;;  %4605 = vrcp.f32 %v2974_v62  ;;  %v2653_v37 = vmul.f32 %v5488_v54, %v2582_v4  ;;  %v2656_v26 = vmul.f32 %v5488_v54, %v2585_v41  ;;  %v5771_v1 = vpop.f32.mrf.mxu1 }
 0x190   :  { %v4588_v27 = vpop.eup %4587  ;;  %3477 = vst.msk [vmem:[%s6380_s10 + $0x30] sm:$0xf] %vm3464_vm2, %v3931_v17  ;;  %v3934_v45 = vpack.c.bf16 %v3159_v59, %v3159_v59  ;;  %v2972_v39 = vadd.f32 1.0, %v4586_v35  ;;  %v3816_v3 = vmul.f32 -1.442695, %v5761_v50  ;;  %v5779_v53 = vpop.f32.mrf.mxu0  ;;  %v2654_v43 = vmul.f32 %v5488_v54, %v2583_v33 }
 0x191   :  { %v3821_v19 = vmul.f32 -1.442695, %v5764_v51  ;;  %v4590_v49 = vpop.eup %4589  ;;  %v3932_v42 = vpack.c.bf16 %v3157_v22, %v3157_v22  ;;  %v3162_v46 = vmul.f32 %v4588_v27, %v5594_v28  ;;  %v5783_v0 = vadd.f32 %v5494_v12, %v2653_v37  ;;  %v5788_v31 = vpop.f32.mrf.mxu1 }
 0x192   :  { %v5786_v61 = vadd.f32 %v5494_v12, %v2656_v26  ;;  %v4592_v38 = vpop.eup %4591  ;;  %3480 = vst.msk [vmem:[%s6380_s10 + $0x3c] sm:$0xf] %vm3464_vm2, %v3934_v45  ;;  %4607 = vrcp.f32 %v2972_v39  ;;  %v2975_v48 = vadd.f32 1.0, %v4590_v49  ;;  %v2588_v28 = vadd.f32 %v5716_v44, %v1911_v18  ;;  %v4288_v9 = vpop.f32.mrf.mxu0 }
 0x193   :  { %v4594_v16 = vpop.eup %4593  ;;  %3478 = vst.msk [vmem:[%s6380_s10 + $0x34] sm:$0xf] %vm3464_vm2, %v3932_v42  ;;  %v3937_v52 = vpack.c.bf16 %v3162_v46, %v3162_v46  ;;  %v3160_v60 = vmul.f32 %v4592_v38, %v5602_v2  ;;  %4609 = vpow2.f32 %v3816_v3  ;;  %v3819_v62 = vmul.f32 -1.442695, %v5783_v0  ;;  %v5802_v4 = vpop.f32.mrf.mxu1 }
 0x194   :  { %v4596_v41 = vpop.eup %4595  ;;  %4611 = vrcp.f32 %v2975_v48  ;;  %v2973_v33 = vadd.f32 1.0, %v4594_v16  ;;  %v3822_v44 = vmul.f32 -1.442695, %v5786_v61  ;;  %v5806_v18 = vadd.f32 %v5494_v12, %v2654_v43  ;;  %v5808_v15 = vpop.f32.mrf.mxu0 }
 0x195   :  { %v4598_v17 = vpop.eup %4597  ;;  %3483 = vst.msk [vmem:[%s6380_s10 + $0x48] sm:$0xf] %vm3464_vm2, %v3937_v52  ;;  %v3935_v2 = vpack.c.bf16 %v3160_v60, %v3160_v60  ;;  %v3163_v59 = vmul.f32 %v4596_v41, %v5609_v5  ;;  %4613 = vpow2.f32 %v3821_v19  ;;  %v2659_v35 = vmul.f32 %v5488_v54, %v2588_v28  ;;  %v5816_v22 = vpop.f32.mrf.mxu1 }
 0x196   :  { %v4600_v37 = vpop.eup %4599  ;;  %4615 = vrcp.f32 %v2973_v33  ;;  %v2978_v26 = vadd.f32 1.0, %v4598_v17  ;;  %v3820_v27 = vmul.f32 -1.442695, %v5806_v18  ;;  %v1909_v45 = vadd.f32 %v5726_v29, %v5422_v8  ;;  %v5821_v39 = vpop.f32.mrf.mxu0 }
 0x197   :  { %3481 = vst.msk [vmem:[%s6380_s10 + $0x40] sm:$0xf] %vm3464_vm2, %v3935_v2  ;;  %v3938_v5 = vpack.c.bf16 %v3163_v59, %v3163_v59  ;;  %v3161_v3 = vmul.f32 %v4600_v37, %v5617_v58  ;;  %4617 = vpow2.f32 %v3819_v62  ;;  %v5829_v19 = vadd.f32 %v5494_v12, %v2659_v35  ;;  %v5831_v49 = vpop.f32.mrf.mxu1 }
 0x198   :  { %v4602_v42 = vpop.eup %4601  ;;  %4619 = vrcp.f32 %v2978_v26  ;;  %v2586_v8 = vadd.f32 %v5731_v21, %v1909_v45  ;;  %v1912_v29 = vadd.f32 %v5741_v57, %v5424_v14  ;;  %v1910_v46 = vadd.f32 %v5750_v56, %v5426_v20  ;;  %v5838_v38 = vpop.f32.mrf.mxu0 }
 0x199   :  { %v4604_v48 = vpop.eup %4603  ;;  %3484 = vst.msk [vmem:[%s6380_s10 + $0x4c] sm:$0xf] %vm3464_vm2, %v3938_v5  ;;  %v3936_v58 = vpack.c.bf16 %v3161_v3, %v3161_v3  ;;  %v2976_v43 = vadd.f32 1.0, %v4602_v42  ;;  %4621 = vpow2.f32 %v3822_v44  ;;  %v3825_v28 = vmul.f32 -1.442695, %v5829_v19  ;;  %v5845_v21 = vpop.f32.mrf.mxu1 }
 0x19a   :  { %v2979_v16 = vadd.f32 1.0, %v4604_v48  ;;  %4623 = vpow2.f32 %v3820_v27  ;;  %v2657_v14 = vmul.f32 %v5488_v54, %v2586_v8  ;;  %v2589_v20 = vadd.f32 %v5745_v23, %v1912_v29  ;;  %v5849_v57 = vpop.f32.mrf.mxu0 }
 0x19b   :  { %3482 = vst.msk [vmem:[%s6380_s10 + $0x44] sm:$0xf] %vm3464_vm2, %v3936_v58  ;;  %4625 = vrcp.f32 %v2976_v43  ;;  %v2587_v56 = vadd.f32 %v5757_v6, %v1910_v46  ;;  %v1915_v52 = vadd.f32 %v5766_v32, %v5428_v24  ;;  %v1913_v60 = vadd.f32 %v5779_v53, %v5430_v30  ;;  %v5860_v62 = vpop.f32.mrf.mxu1 }
 0x19c   :  { %v4606_v41 = vpop.eup %4605  ;;  %4627 = vrcp.f32 %v2979_v16  ;;  %v5863_v23 = vadd.f32 %v5494_v12, %v2657_v14  ;;  %v2660_v33 = vmul.f32 %v5488_v54, %v2589_v20  ;;  %v1916_v44 = vadd.f32 %v4288_v9, %v5432_v36  ;;  %v5867_v17 = vpop.f32.mrf.mxu0 }
 0x19d   :  { %v3166_v6 = vmul.f32 %v4606_v41, %v5642_v13  ;;  %4629 = vpow2.f32 %v3825_v28  ;;  %v2658_v24 = vmul.f32 %v5488_v54, %v2587_v56  ;;  %v2592_v30 = vadd.f32 %v5771_v1, %v1915_v52  ;;  %v5872_v32 = vpop.f32.mrf.mxu1 }
 0x19e   :  { %v3823_v53 = vmul.f32 -1.442695, %v5863_v23  ;;  %v5876_v2 = vadd.f32 %v5494_v12, %v2660_v33  ;;  %v2590_v59 = vadd.f32 %v5788_v31, %v1913_v60  ;;  %v2593_v36 = vadd.f32 %v5802_v4, %v1916_v44  ;;  %v5880_v9 = vpop.f32.mrf.mxu0 }
 0x19f   :  { %v4608_v35 = vpop.eup %4607  ;;  %v3941_v13 = vpack.c.bf16 %v3166_v6, %v3166_v6  ;;  %v5883_v37 = vadd.f32 %v5494_v12, %v2658_v24  ;;  %v2663_v1 = vmul.f32 %v5488_v54, %v2592_v30  ;;  %v1914_v26 = vadd.f32 %v5808_v15, %v5434_v40  ;;  %v5888_v27 = vpop.f32.mrf.mxu1 }
 0x1a0   :  { %v4610_v45 = vpop.eup %4609  ;;  %v3164_v5 = vmul.f32 %v4608_v35, %v5654_v11  ;;  %4631 = vpow2.f32 %v3823_v53  ;;  %v3826_v31 = vmul.f32 -1.442695, %v5876_v2  ;;  %v2661_v4 = vmul.f32 %v5488_v54, %v2590_v59  ;;  %v5893_v3 = vpop.f32.mrf.mxu0 }
 0x1a1   :  { %v4612_v42 = vpop.eup %4611  ;;  %3487 = vst.msk [vmem:[%s6380_s10 + $0x58] sm:$0xf] %vm3464_vm2, %v3941_v13  ;;  %v2977_v8 = vadd.f32 1.0, %v4610_v45  ;;  %v3824_v40 = vmul.f32 -1.442695, %v5883_v37  ;;  %v5901_v15 = vadd.f32 %v5494_v12, %v2663_v1  ;;  %v2664_v11 = vmul.f32 %v5488_v54, %v2593_v36  ;;  %v5904_v29 = vpop.f32.mrf.mxu1 }
 0x1a2   :  { %v4614_v46 = vpop.eup %4613  ;;  %v3939_v48 = vpack.c.bf16 %v3164_v5, %v3164_v5  ;;  %v3167_v58 = vmul.f32 %v4612_v42, %v5660_v63  ;;  %4633 = vpow2.f32 %v3826_v31  ;;  %v5908_v43 = vadd.f32 %v5494_v12, %v2661_v4  ;;  %v5910_v28 = vpop.f32.mrf.mxu0  ;;  %v5942_v1 = vld [vmem:[%s6378_s8] ss:$0 sm:$0xff] }
 0x1a3   :  { %v4616_v16 = vpop.eup %4615  ;;  %4635 = vrcp.f32 %v2977_v8  ;;  %v2982_v14 = vadd.f32 1.0, %v4614_v46  ;;  %v3829_v20 = vmul.f32 -1.442695, %v5901_v15  ;;  %v5914_v56 = vadd.f32 %v5494_v12, %v2664_v11  ;;  %v5916_v54 = vpop.f32.mrf.mxu1 }
 0x1a4   :  { %v4618_v52 = vpop.eup %4617  ;;  %3485 = vst.msk [vmem:[%s6380_s10 + $0x50] sm:$0xf] %vm3464_vm2, %v3939_v48  ;;  %v3942_v63 = vpack.c.bf16 %v3167_v58, %v3167_v58  ;;  %v3165_v60 = vmul.f32 %v4616_v16, %v5663_v10  ;;  %4637 = vpow2.f32 %v3824_v40  ;;  %v3827_v41 = vmul.f32 -1.442695, %v5908_v43  ;;  %v5924_v33 = vpop.f32.mrf.mxu0  ;;  %v6403_v48 = vld [vmem:[#allocation2_spill] sm:$0xff] }
 0x1a5   :  { %v4620_v44 = vpop.eup %4619  ;;  %4639 = vrcp.f32 %v2982_v14  ;;  %v2980_v12 = vadd.f32 1.0, %v4618_v52  ;;  %v3830_v6 = vmul.f32 -1.442695, %v5914_v56  ;;  %v2591_v24 = vadd.f32 %v5816_v22, %v1914_v26  ;;  %v5928_v30 = vpop.f32.mrf.mxu1 }
 0x1a6   :  { %v4622_v53 = vpop.eup %4621  ;;  %3488 = vst.msk [vmem:[%s6380_s10 + $0x5c] sm:$0xf] %vm3464_vm2, %v3942_v63  ;;  %v3940_v10 = vpack.c.bf16 %v3165_v60, %v3165_v60  ;;  %v3170_v59 = vmul.f32 %v4620_v44, %v5700_v25  ;;  %4641 = vpow2.f32 %v3829_v20  ;;  %v1919_v36 = vadd.f32 %v5821_v39, %v5436_v47  ;;  %v5937_v35 = vpop.f32.mrf.mxu0 }
 0x1a7   :  { %v4624_v13 = vpop.eup %4623  ;;  %4643 = vrcp.f32 %v2980_v12  ;;  %v2983_v22 = vadd.f32 1.0, %v4622_v53  ;;  %v2662_v26 = vmul.f32 %v5942_v1, %v2591_v24  ;;  %v1917_v45 = vadd.f32 %v5838_v38, %v5438_v55  ;;  %v5947_v25 = vpop.f32.mrf.mxu1  ;;  %v5960_v55 = vld [vmem:[%s6379_s9] ss:$0 sm:$0xff]  ;;  %v6404_v12 = vld [vmem:[#allocation3_spill] sm:$0xff]  ;;  %v6405_v24 = vld [vmem:[#allocation4_spill] sm:$0xff] }
 0x1a8   :  { %v4626_v5 = vpop.eup %4625  ;;  %3486 = vst.msk [vmem:[%s6380_s10 + $0x54] sm:$0xf] %vm3464_vm2, %v3940_v10  ;;  %v3945_v47 = vpack.c.bf16 %v3170_v59, %v3170_v59  ;;  %v2981_v39 = vadd.f32 1.0, %v4624_v13  ;;  %4645 = vpow2.f32 %v3827_v41  ;;  %v2596_v31 = vadd.f32 %v5831_v49, %v1919_v36  ;;  %v5954_v4 = vpop.f32.mrf.mxu0  ;;  %v6406_v10 = vld [vmem:[#allocation5_spill] sm:$0xff] }
 0x1a9   :  { %v4628_v42 = vpop.eup %4627  ;;  %v3168_v8 = vmul.f32 %v4626_v5, %v5711_v7  ;;  %4647 = vrcp.f32 %v2983_v22  ;;  %v5963_v38 = vadd.f32 %v5960_v55, %v2662_v26  ;;  %v2594_v40 = vadd.f32 %v5845_v21, %v1917_v45  ;;  %v5966_v11 = vpop.f32.mrf.mxu1 }
 0x1aa   :  { %v4630_v46 = vpop.eup %4629  ;;  %3491 = vst.msk [vmem:[%s6380_s10 + $0x68] sm:$0xf] %vm3464_vm2, %v3945_v47  ;;  %v3171_v7 = vmul.f32 %v4628_v42, %v5714_v34  ;;  %4649 = vrcp.f32 %v2981_v39  ;;  %v2667_v49 = vmul.f32 %v5942_v1, %v2596_v31  ;;  %v1920_v58 = vadd.f32 %v5849_v57, %v6403_v48  ;;  %v5976_v16 = vpop.f32.mrf.mxu0  ;;  %v6407_v42 = vld [vmem:[#allocation6_spill] sm:$0xff] }
 0x1ab   :  { %v3943_v14 = vpack.c.bf16 %v3168_v8, %v3168_v8  ;;  %v2986_v21 = vadd.f32 1.0, %v4630_v46  ;;  %4651 = vpow2.f32 %v3830_v6  ;;  %v3828_v20 = vmul.f32 -1.442695, %v5963_v38  ;;  %v5979_v52 = vpop.f32.mrf.mxu1 }
 0x1ac   :  { %v3946_v63 = vpack.c.bf16 %v3171_v7, %v3171_v7  ;;  %v5982_v60 = vadd.f32 %v5960_v55, %v2667_v49  ;;  %v2665_v34 = vmul.f32 %v5942_v1, %v2594_v40  ;;  %v2597_v41 = vadd.f32 %v5860_v62, %v1920_v58  ;;  %v5986_v44 = vpop.f32.mrf.mxu0 }
 0x1ad   :  { %v4632_v57 = vpop.eup %4631  ;;  %3489 = vst.msk [vmem:[%s6380_s10 + $0x60] sm:$0xf] %vm3464_vm2, %v3943_v14  ;;  %4653 = vrcp.f32 %v2986_v21  ;;  %v1918_v6 = vadd.f32 %v5867_v17, %v6404_v12  ;;  %v1923_v53 = vadd.f32 %v5880_v9, %v6405_v24  ;;  %v1921_v59 = vadd.f32 %v5893_v3, %v6406_v10  ;;  %v6012_v5 = vpop.f32.mrf.mxu1 }
 0x1ae   :  { %3492 = vst.msk [vmem:[%s6380_s10 + $0x6c] sm:$0xf] %vm3464_vm2, %v3946_v63  ;;  %v2984_v62 = vadd.f32 1.0, %v4632_v57  ;;  %4655 = vpow2.f32 %v3828_v20  ;;  %v3833_v36 = vmul.f32 -1.442695, %v5982_v60  ;;  %v6004_v13 = vadd.f32 %v5960_v55, %v2665_v34  ;;  %v6006_v22 = vpop.f32.mrf.mxu0 }
 0x1af   :  { %v4634_v17 = vpop.eup %4633  ;;  %v2668_v9 = vmul.f32 %v5942_v1, %v2597_v41  ;;  %v2595_v26 = vadd.f32 %v5872_v32, %v1918_v6  ;;  %v2600_v3 = vadd.f32 %v5888_v27, %v1923_v53  ;;  %v2598_v45 = vadd.f32 %v5904_v29, %v1921_v59  ;;  %v6028_v20 = vpop.f32.mrf.mxu1 }
 0x1b0   :  { %v4636_v47 = vpop.eup %4635  ;;  %4657 = vrcp.f32 %v2984_v62  ;;  %v2987_v39 = vadd.f32 1.0, %v4634_v17  ;;  %v3831_v31 = vmul.f32 -1.442695, %v6004_v13  ;;  %v1924_v8 = vadd.f32 %v5910_v28, %v6407_v42  ;;  %v6022_v29 = vpop.f32.mrf.mxu0 }
 0x1b1   :  { %v4638_v40 = vpop.eup %4637  ;;  %v3169_v46 = vmul.f32 %v4636_v47, %v5761_v50  ;;  %4659 = vpow2.f32 %v3833_v36  ;;  %v6019_v32 = vadd.f32 %v5960_v55, %v2668_v9  ;;  %v2666_v27 = vmul.f32 %v5942_v1, %v2595_v26 }
 0x1b2   :  { %v4640_v7 = vpop.eup %4639  ;;  %4661 = vrcp.f32 %v2987_v39  ;;  %v2985_v49 = vadd.f32 1.0, %v4638_v40  ;;  %v2671_v48 = vmul.f32 %v5942_v1, %v2600_v3  ;;  %v2669_v58 = vmul.f32 %v5942_v1, %v2598_v45  ;;  %v6044_v53 = vpop.f32.mrf.mxu0  ;;  %v6409_v40 = vld [vmem:[#allocation8_spill] sm:$0xff] }
 0x1b3   :  { %v4642_v14 = vpop.eup %4641  ;;  %v3944_v28 = vpack.c.bf16 %v3169_v46, %v3169_v46  ;;  %v3174_v21 = vmul.f32 %v4640_v7, %v5764_v51  ;;  %4663 = vpow2.f32 %v3831_v31  ;;  %v3834_v50 = vmul.f32 -1.442695, %v6019_v32  ;;  %v6055_v45 = vpop.f32.mrf.mxu1  ;;  %v6408_v31 = vld [vmem:[#allocation7_spill] sm:$0xff] }
 0x1b4   :  { %v4644_v63 = vpop.eup %4643  ;;  %4665 = vrcp.f32 %v2985_v49  ;;  %v2990_v34 = vadd.f32 1.0, %v4642_v14  ;;  %v6031_v41 = vadd.f32 %v5960_v55, %v2666_v27  ;;  %v6034_v57 = vadd.f32 %v5960_v55, %v2671_v48  ;;  %v6410_v14 = vld [vmem:[#allocation9_spill] sm:$0xff] }
 0x1b5   :  { %v4646_v12 = vpop.eup %4645  ;;  %3490 = vst.msk [vmem:[%s6380_s10 + $0x64] sm:$0xf] %vm3464_vm2, %v3944_v28  ;;  %v3949_v51 = vpack.c.bf16 %v3174_v21, %v3174_v21  ;;  %v3172_v6 = vmul.f32 %v4644_v63, %v5783_v0  ;;  %4667 = vpow2.f32 %v3834_v50  ;;  %v6042_v24 = vadd.f32 %v5960_v55, %v2669_v58  ;;  %v6081_v21 = vpop.f32.mrf.mxu1 }
 0x1b6   :  { %v4648_v10 = vpop.eup %4647  ;;  %4669 = vrcp.f32 %v2990_v34  ;;  %v2988_v59 = vadd.f32 1.0, %v4646_v12  ;;  %v3832_v62 = vmul.f32 -1.442695, %v6031_v41  ;;  %v3837_v36 = vmul.f32 -1.442695, %v6034_v57 }
 0x1b7   :  { %v4650_v17 = vpop.eup %4649  ;;  %3495 = vst.msk [vmem:[%s6380_s10 + $0x78] sm:$0xf] %vm3464_vm2, %v3949_v51  ;;  %v3947_v0 = vpack.c.bf16 %v3172_v6, %v3172_v6  ;;  %v3175_v9 = vmul.f32 %v4648_v10, %v5786_v61  ;;  %v3835_v26 = vmul.f32 -1.442695, %v6042_v24  ;;  %v2601_v3 = vadd.f32 %v5916_v54, %v1924_v8  ;;  %v6067_v8 = vpop.f32.mrf.mxu0 }
 0x1b8   :  { %v4652_v47 = vpop.eup %4651  ;;  %v3173_v39 = vmul.f32 %v4650_v17, %v5806_v18  ;;  %4671 = vrcp.f32 %v2988_v59  ;;  %v1922_v42 = vadd.f32 %v5924_v33, %v6408_v31  ;;  %v1927_v46 = vadd.f32 %v5937_v35, %v6409_v40 }
 0x1b9   :  { %3493 = vst.msk [vmem:[%s6380_s10 + $0x70] sm:$0xf] %vm3464_vm2, %v3947_v0  ;;  %v3950_v61 = vpack.c.bf16 %v3175_v9, %v3175_v9  ;;  %v2991_v27 = vadd.f32 1.0, %v4652_v47  ;;  %4673 = vpow2.f32 %v3832_v62  ;;  %v2672_v54 = vmul.f32 %v5942_v1, %v2601_v3  ;;  %v6093_v6 = vpop.f32.mrf.mxu0 }
 0x1ba   :  { %v4654_v18 = vpop.eup %4653  ;;  %v3948_v7 = vpack.c.bf16 %v3173_v39, %v3173_v39  ;;  %4675 = vpow2.f32 %v3837_v36  ;;  %v2599_v33 = vadd.f32 %v5928_v30, %v1922_v42  ;;  %v2604_v49 = vadd.f32 %v5947_v25, %v1927_v46 }
 0x1bb   :  { %v4656_v35 = vpop.eup %4655  ;;  %3496 = vst.msk [vmem:[%s6380_s10 + $0x7c] sm:$0xf] %vm3464_vm2, %v3950_v61  ;;  %v3178_v48 = vmul.f32 %v4654_v18, %v5829_v19  ;;  %4677 = vrcp.f32 %v2991_v27  ;;  %v6077_v58 = vadd.f32 %v5960_v55, %v2672_v54  ;;  %v1925_v28 = vadd.f32 %v5954_v4, %v6410_v14  ;;  %v6411_v4 = vld [vmem:[#allocation10_spill] sm:$0xff]  ;;  %v6117_v61 = vpop.f32.mrf.mxu0  ;;  %v6412_v54 = vld [vmem:[#allocation11_spill] sm:$0xff] }
 0x1bc   :  { %3494 = vst.msk [vmem:[%s6380_s10 + $0x74] sm:$0xf] %vm3464_vm2, %v3948_v7  ;;  %v2989_v30 = vadd.f32 1.0, %v4656_v35  ;;  %4679 = vpow2.f32 %v3835_v26  ;;  %v2670_v25 = vmul.f32 %v5942_v1, %v2599_v33  ;;  %v2675_v19 = vmul.f32 %v5942_v1, %v2604_v49 }
 0x1bd   :  { %v4658_v50 = vpop.eup %4657  ;;  %v3953_v63 = vpack.c.bf16 %v3178_v48, %v3178_v48  ;;  %v3838_v34 = vmul.f32 -1.442695, %v6077_v58  ;;  %v2602_v12 = vadd.f32 %v5966_v11, %v1925_v28  ;;  %v1928_v51 = vadd.f32 %v5976_v16, %v6411_v4 }
 0x1be   :  { %v4660_v10 = vpop.eup %4659  ;;  %v3176_v59 = vmul.f32 %v4658_v50, %v5863_v23  ;;  %4681 = vrcp.f32 %v2989_v30  ;;  %v6097_v62 = vadd.f32 %v5960_v55, %v2670_v25  ;;  %v6100_v36 = vadd.f32 %v5960_v55, %v2675_v19  ;;  %v6108_v23 = vpop.f32.mrf.mxu1  ;;  %v6413_v25 = vld [vmem:[#allocation12_spill] sm:$0xff]  ;;  %v6414_v50 = vld [vmem:[#allocation13_spill] sm:$0xff] }
 0x1bf   :  { %v4662_v17 = vpop.eup %4661  ;;  %3499 = vst.msk [vmem:[%s6380_s10 + $0x88] sm:$0xf] %vm3464_vm2, %v3953_v63  ;;  %v2994_v11 = vadd.f32 1.0, %v4660_v10  ;;  %4683 = vpow2.f32 %v3838_v34  ;;  %v2673_v16 = vmul.f32 %v5942_v1, %v2602_v12  ;;  %v2605_v0 = vadd.f32 %v5979_v52, %v1928_v51  ;;  %v4308_v34 = vpop.f32.mrf.mxu0 }
 0x1c0   :  { %v4664_v9 = vpop.eup %4663  ;;  %v3951_v26 = vpack.c.bf16 %v3176_v59, %v3176_v59  ;;  %v3179_v3 = vmul.f32 %v4662_v17, %v5876_v2  ;;  %v3836_v47 = vmul.f32 -1.442695, %v6097_v62  ;;  %v3841_v39 = vmul.f32 -1.442695, %v6100_v36  ;;  %v4373_v48 = vpop.f32.mrf.mxu1 }
 0x1c1   :  { %v4666_v31 = vpop.eup %4665  ;;  %4685 = vrcp.f32 %v2994_v11  ;;  %v2992_v42 = vadd.f32 1.0, %v4664_v9  ;;  %v6114_v40 = vadd.f32 %v5960_v55, %v2673_v16  ;;  %v2676_v46 = vmul.f32 %v5942_v1, %v2605_v0  ;;  %v6415_v0 = vld [vmem:[#allocation14_spill] sm:$0xff] }
 0x1c2   :  { %v4668_v52 = vpop.eup %4667  ;;  %3497 = vst.msk [vmem:[%s6380_s10 + $0x80] sm:$0xf] %vm3464_vm2, %v3951_v26  ;;  %v3954_v2 = vpack.c.bf16 %v3179_v3, %v3179_v3  ;;  %v3177_v27 = vmul.f32 %v4666_v31, %v5883_v37  ;;  %4687 = vpow2.f32 %v3836_v47  ;;  %v1926_v18 = vadd.f32 %v5986_v44, %v6412_v54  ;;  %v2523_v59 = vpop.f32.mrf.mxu1 }
 0x1c3   :  { %v4670_v7 = vpop.eup %4669  ;;  %4689 = vrcp.f32 %v2992_v42  ;;  %v2995_v33 = vadd.f32 1.0, %v4668_v52  ;;  %v3839_v49 = vmul.f32 -1.442695, %v6114_v40  ;;  %v6128_v35 = vadd.f32 %v5960_v55, %v2676_v46  ;;  %v6161_v47 = vpop.f32.mrf.mxu0 }
 0x1c4   :  { %3500 = vst.msk [vmem:[%s6380_s10 + $0x8c] sm:$0xf] %vm3464_vm2, %v3954_v2  ;;  %v3952_v14 = vpack.c.bf16 %v3177_v27, %v3177_v27  ;;  %v3182_v37 = vmul.f32 %v4670_v7, %v5901_v15  ;;  %4691 = vpow2.f32 %v3841_v39  ;;  %v2603_v44 = vadd.f32 %v6012_v5, %v1926_v18  ;;  %v6416_v2 = vld [vmem:[#allocation15_spill] sm:$0xff]  ;;  %v4374_v54 = vpop.f32.mrf.mxu1 }
 0x1c5   :  { %v4672_v28 = vpop.eup %4671  ;;  %4693 = vrcp.f32 %v2995_v33  ;;  %v3842_v30 = vmul.f32 -1.442695, %v6128_v35  ;;  %v1931_v19 = vadd.f32 %v6006_v22, %v6413_v25  ;;  %v1929_v63 = vadd.f32 %v6022_v29, %v6414_v50 }
 0x1c6   :  { %v4674_v12 = vpop.eup %4673  ;;  %3498 = vst.msk [vmem:[%s6380_s10 + $0x84] sm:$0xf] %vm3464_vm2, %v3952_v14  ;;  %v3957_v15 = vpack.c.bf16 %v3182_v37, %v3182_v37  ;;  %v3180_v5 = vmul.f32 %v4672_v28, %v5908_v43  ;;  %4695 = vpow2.f32 %v3839_v49  ;;  %v2674_v4 = vmul.f32 %v5942_v1, %v2603_v44  ;;  %v6417_v49 = vld [vmem:[#allocation16_spill] sm:$0xff]  ;;  %v4311_v44 = vpop.f32.mrf.mxu0 }
 0x1c7   :  { %v4676_v51 = vpop.eup %4675  ;;  %v2993_v10 = vadd.f32 1.0, %v4674_v12  ;;  %4697 = vpow2.f32 %v3842_v30  ;;  %v2608_v22 = vadd.f32 %v6028_v20, %v1931_v19  ;;  %v2606_v29 = vadd.f32 %v6055_v45, %v1929_v63  ;;  %v6418_v63 = vld [vmem:[#allocation17_spill] sm:$0xff] }
 0x1c8   :  { %v4678_v17 = vpop.eup %4677  ;;  %3503 = vst.msk [vmem:[%s6380_s10 + $0x98] sm:$0xf] %vm3464_vm2, %v3957_v15  ;;  %v3955_v11 = vpack.c.bf16 %v3180_v5, %v3180_v5  ;;  %v2998_v16 = vadd.f32 1.0, %v4676_v51  ;;  %v6154_v43 = vadd.f32 %v5960_v55, %v2674_v4  ;;  %v1932_v9 = vadd.f32 %v6044_v53, %v6415_v0  ;;  %v6419_v15 = vld [vmem:[#allocation18_spill] sm:$0xff]  ;;  %v2526_v4 = vpop.f32.mrf.mxu1 }
 0x1c9   :  { %v4680_v26 = vpop.eup %4679  ;;  %v3183_v20 = vmul.f32 %v4678_v17, %v5914_v56  ;;  %4699 = vrcp.f32 %v2993_v10  ;;  %v2679_v45 = vmul.f32 %v5942_v1, %v2608_v22  ;;  %v2677_v3 = vmul.f32 %v5942_v1, %v2606_v29 }
 0x1ca   :  { %3501 = vst.msk [vmem:[%s6380_s10 + $0x90] sm:$0xf] %vm3464_vm2, %v3955_v11  ;;  %4701 = vrcp.f32 %v2998_v16  ;;  %v2996_v39 = vadd.f32 1.0, %v4680_v26  ;;  %v3840_v31 = vmul.f32 -1.442695, %v6154_v43  ;;  %v2609_v53 = vadd.f32 %v6081_v21, %v1932_v9 }
 0x1cb   :  { %v4682_v42 = vpop.eup %4681  ;;  %v3958_v56 = vpack.c.bf16 %v3183_v20, %v3183_v20  ;;  %v6170_v46 = vadd.f32 %v5960_v55, %v2679_v45  ;;  %v6173_v52 = vadd.f32 %v5960_v55, %v2677_v3  ;;  %v1930_v27 = vadd.f32 %v6067_v8, %v6416_v2  ;;  %v4377_v45 = vpop.f32.mrf.mxu1 }
 0x1cc   :  { %v4684_v18 = vpop.eup %4683  ;;  %v3181_v7 = vmul.f32 %v4682_v42, %v5963_v38  ;;  %4703 = vrcp.f32 %v2996_v39  ;;  %v2680_v33 = vmul.f32 %v5942_v1, %v2609_v53  ;;  %v1935_v21 = vadd.f32 %v6093_v6, %v6417_v49  ;;  %v6421_v49 = vld [vmem:[#allocation20_spill] sm:$0xff] }
 0x1cd   :  { %3504 = vst.msk [vmem:[%s6380_s10 + $0x9c] sm:$0xf] %vm3464_vm2, %v3958_v56  ;;  %v2999_v14 = vadd.f32 1.0, %v4684_v18  ;;  %4705 = vpow2.f32 %v3840_v31  ;;  %v3845_v37 = vmul.f32 -1.442695, %v6170_v46  ;;  %v2607_v25 = vadd.f32 %v6108_v23, %v1930_v27 }
 0x1ce   :  { %v3843_v8 = vmul.f32 -1.442695, %v6173_v52  ;;  %v4686_v28 = vpop.eup %4685  ;;  %v3956_v38 = vpack.c.bf16 %v3181_v7, %v3181_v7  ;;  %v6188_v30 = vadd.f32 %v5960_v55, %v2680_v33  ;;  %v2612_v6 = vadd.f32 %v4373_v48, %v1935_v21  ;;  %v6420_v7 = vld [vmem:[#allocation19_spill] sm:$0xff] }
 0x1cf   :  { %v4688_v19 = vpop.eup %4687  ;;  %v3186_v50 = vmul.f32 %v4686_v28, %v5982_v60  ;;  %4707 = vrcp.f32 %v2999_v14  ;;  %v1933_v12 = vadd.f32 %v6117_v61, %v6418_v63  ;;  %v1936_v5 = vadd.f32 %v4308_v34, %v6419_v15  ;;  %v1862_v34 = vpop.f32.mrf.mxu0 }
 0x1d0   :  { %v4690_v51 = vpop.eup %4689  ;;  %3502 = vst.msk [vmem:[%s6380_s10 + $0x94] sm:$0xf] %vm3464_vm2, %v3956_v38  ;;  %v2997_v10 = vadd.f32 1.0, %v4688_v19  ;;  %4709 = vpow2.f32 %v3845_v37  ;;  %v3846_v23 = vmul.f32 -1.442695, %v6188_v30  ;;  %v2678_v48 = vmul.f32 %v5942_v1, %v2607_v25  ;;  %v2539_v38 = vpop.f32.mrf.mxu1 }
 0x1d1   :  { %v4692_v60 = vpop.eup %4691  ;;  %v3961_v22 = vpack.c.bf16 %v3186_v50, %v3186_v50  ;;  %v3184_v29 = vmul.f32 %v4690_v51, %v6004_v13  ;;  %4711 = vpow2.f32 %v3843_v8  ;;  %v2683_v61 = vmul.f32 %v5942_v1, %v2612_v6  ;;  %v4312_v2 = vpop.f32.mrf.mxu0  ;;  %v6422_v8 = vld [vmem:[#allocation21_spill] sm:$0xff] }
 0x1d2   :  { %v4694_v17 = vpop.eup %4693  ;;  %4713 = vrcp.f32 %v2997_v10  ;;  %v3002_v11 = vadd.f32 1.0, %v4692_v60  ;;  %v6204_v16 = vadd.f32 %v5960_v55, %v2678_v48  ;;  %v2610_v0 = vadd.f32 %v2523_v59, %v1933_v12  ;;  %v4378_v48 = vpop.f32.mrf.mxu1 }
 0x1d3   :  { %v4696_v9 = vpop.eup %4695  ;;  %3507 = vst.msk [vmem:[%s6380_s10 + $0xa8] sm:$0xf] %vm3464_vm2, %v3961_v22  ;;  %v3959_v26 = vpack.c.bf16 %v3184_v29, %v3184_v29  ;;  %v3187_v13 = vmul.f32 %v4694_v17, %v6019_v32  ;;  %4715 = vpow2.f32 %v3846_v23  ;;  %v6212_v20 = vadd.f32 %v5960_v55, %v2683_v61  ;;  %v6423_v29 = vld [vmem:[#allocation22_spill] sm:$0xff] }
 0x1d4   :  { %v4698_v3 = vpop.eup %4697  ;;  %4717 = vrcp.f32 %v3002_v11  ;;  %v3000_v39 = vadd.f32 1.0, %v4696_v9  ;;  %v3844_v31 = vmul.f32 -1.442695, %v6204_v16  ;;  %v2681_v59 = vmul.f32 %v5942_v1, %v2610_v0 }
 0x1d5   :  { %3505 = vst.msk [vmem:[%s6380_s10 + $0xa0] sm:$0xf] %vm3464_vm2, %v3959_v26  ;;  %v3962_v53 = vpack.c.bf16 %v3187_v13, %v3187_v13  ;;  %v3003_v42 = vadd.f32 1.0, %v4698_v3  ;;  %v3849_v32 = vmul.f32 -1.442695, %v6212_v20  ;;  %v2613_v56 = vadd.f32 %v4374_v54, %v1936_v5 }
 0x1d6   :  { %v4700_v27 = vpop.eup %4699  ;;  %4719 = vrcp.f32 %v3000_v39  ;;  %v6222_v18 = vadd.f32 %v5960_v55, %v2681_v59  ;;  %v1934_v33 = vadd.f32 %v6161_v47, %v6420_v7  ;;  %v1939_v21 = vadd.f32 %v4311_v44, %v6421_v49 }
 0x1d7   :  { %v4702_v14 = vpop.eup %4701  ;;  %3508 = vst.msk [vmem:[%s6380_s10 + $0xac] sm:$0xf] %vm3464_vm2, %v3962_v53  ;;  %v3185_v37 = vmul.f32 %v4700_v27, %v6031_v41  ;;  %4721 = vrcp.f32 %v3003_v42  ;;  %v2684_v54 = vmul.f32 %v5942_v1, %v2613_v56  ;;  %v1937_v28 = vadd.f32 %v1862_v34, %v6422_v8  ;;  %v1865_v41 = vpop.f32.mrf.mxu0  ;;  %v6424_v34 = vld [vmem:[#allocation23_spill] sm:$0xff] }
 0x1d8   :  { %v3190_v25 = vmul.f32 %v4702_v14, %v6034_v57  ;;  %4723 = vpow2.f32 %v3844_v31  ;;  %v3847_v47 = vmul.f32 -1.442695, %v6222_v18  ;;  %v2611_v44 = vadd.f32 %v2526_v4, %v1934_v33 }
 0x1d9   :  { %v4704_v6 = vpop.eup %4703  ;;  %v3960_v19 = vpack.c.bf16 %v3185_v37, %v3185_v37  ;;  %4725 = vpow2.f32 %v3849_v32  ;;  %v6237_v50 = vadd.f32 %v5960_v55, %v2684_v54  ;;  %v2616_v63 = vadd.f32 %v4377_v45, %v1939_v21  ;;  %v2542_v32 = vpop.f32.mrf.mxu1 }
 0x1da   :  { %v4706_v12 = vpop.eup %4705  ;;  %v3965_v15 = vpack.c.bf16 %v3190_v25, %v3190_v25  ;;  %v3188_v5 = vmul.f32 %v4704_v6, %v6042_v24  ;;  %4727 = vpow2.f32 %v3847_v47  ;;  %v2682_v51 = vmul.f32 %v5942_v1, %v2611_v44 }
 0x1db   :  { %3506 = vst.msk [vmem:[%s6380_s10 + $0xa4] sm:$0xf] %vm3464_vm2, %v3960_v19  ;;  %v3001_v57 = vadd.f32 1.0, %v4706_v12  ;;  %v3850_v4 = vmul.f32 -1.442695, %v6237_v50  ;;  %v2687_v10 = vmul.f32 %v5942_v1, %v2616_v63  ;;  %v2614_v23 = vadd.f32 %v2539_v38, %v1937_v28 }
 0x1dc   :  { %v4708_v60 = vpop.eup %4707  ;;  %3511 = vst.msk [vmem:[%s6380_s10 + $0xb8] sm:$0xf] %vm3464_vm2, %v3965_v15  ;;  %v3963_v24 = vpack.c.bf16 %v3188_v5, %v3188_v5  ;;  %v6252_v22 = vadd.f32 %v5960_v55, %v2682_v51  ;;  %v1940_v61 = vadd.f32 %v4312_v2, %v6423_v29  ;;  %v1938_v17 = vadd.f32 %v1865_v41, %v6424_v34 }
 0x1dd   :  { %v4710_v11 = vpop.eup %4709  ;;  %v3191_v0 = vmul.f32 %v4708_v60, %v6077_v58  ;;  %4729 = vrcp.f32 %v3001_v57  ;;  %v6258_v9 = vadd.f32 %v5960_v55, %v2687_v10  ;;  %v2685_v26 = vmul.f32 %v5942_v1, %v2614_v23 }
 0x1de   :  { %v4712_v13 = vpop.eup %4711  ;;  %3509 = vst.msk [vmem:[%s6380_s10 + $0xb0] sm:$0xf] %vm3464_vm2, %v3963_v24  ;;  %v3006_v45 = vadd.f32 1.0, %v4710_v11  ;;  %4731 = vpow2.f32 %v3850_v4  ;;  %v3848_v3 = vmul.f32 -1.442695, %v6252_v22  ;;  %v2617_v39 = vadd.f32 %v4378_v48, %v1940_v61 }
 0x1df   :  { %v4714_v31 = vpop.eup %4713  ;;  %v3966_v59 = vpack.c.bf16 %v3191_v0, %v3191_v0  ;;  %v3004_v58 = vadd.f32 1.0, %v4712_v13  ;;  %v3853_v53 = vmul.f32 -1.442695, %v6258_v9  ;;  %v6268_v42 = vadd.f32 %v5960_v55, %v2685_v26 }
 0x1e0   :  { %v4716_v56 = vpop.eup %4715  ;;  %v3189_v2 = vmul.f32 %v4714_v31, %v6097_v62  ;;  %4733 = vrcp.f32 %v3006_v45  ;;  %v2688_v27 = vmul.f32 %v5942_v1, %v2617_v39  ;;  %v2615_v7 = vadd.f32 %v2542_v32, %v1938_v17 }
 0x1e1   :  { %v4718_v33 = vpop.eup %4717  ;;  %3512 = vst.msk [vmem:[%s6380_s10 + $0xbc] sm:$0xf] %vm3464_vm2, %v3966_v59  ;;  %4735 = vrcp.f32 %v3004_v58  ;;  %v3007_v49 = vadd.f32 1.0, %v4716_v56  ;;  %v3851_v21 = vmul.f32 -1.442695, %v6268_v42 }
 0x1e2   :  { %v3964_v14 = vpack.c.bf16 %v3189_v2, %v3189_v2  ;;  %v3194_v37 = vmul.f32 %v4718_v33, %v6100_v36  ;;  %4737 = vpow2.f32 %v3848_v3  ;;  %v6279_v62 = vadd.f32 %v5960_v55, %v2688_v27 }
 0x1e3   :  { %v4720_v54 = vpop.eup %4719  ;;  %4739 = vrcp.f32 %v3007_v49  ;;  %v2686_v8 = vmul.f32 %v5942_v1, %v2615_v7 }
 0x1e4   :  { %v4722_v28 = vpop.eup %4721  ;;  %3510 = vst.msk [vmem:[%s6380_s10 + $0xb4] sm:$0xf] %vm3464_vm2, %v3964_v14  ;;  %v3969_v38 = vpack.c.bf16 %v3194_v37, %v3194_v37  ;;  %v3192_v25 = vmul.f32 %v4720_v54, %v6114_v40  ;;  %4741 = vpow2.f32 %v3853_v53  ;;  %v3854_v36 = vmul.f32 -1.442695, %v6279_v62 }
 0x1e5   :  { %v4724_v47 = vpop.eup %4723  ;;  %v3195_v44 = vmul.f32 %v4722_v28, %v6128_v35  ;;  %4743 = vpow2.f32 %v3851_v21  ;;  %v6290_v6 = vadd.f32 %v5960_v55, %v2686_v8 }
 0x1e6   :  { %v4726_v1 = vpop.eup %4725  ;;  %3515 = vst.msk [vmem:[%s6380_s10 + $0xc8] sm:$0xf] %vm3464_vm2, %v3969_v38  ;;  %v3967_v19 = vpack.c.bf16 %v3192_v25, %v3192_v25  ;;  %v3005_v63 = vadd.f32 1.0, %v4724_v47  ;;  %4745 = vpow2.f32 %v3854_v36 }
 0x1e7   :  { %v4728_v40 = vpop.eup %4727  ;;  %v3970_v41 = vpack.c.bf16 %v3195_v44, %v3195_v44  ;;  %v3010_v12 = vadd.f32 1.0, %v4726_v1  ;;  %v3852_v15 = vmul.f32 -1.442695, %v6290_v6 }
 0x1e8   :  { %3513 = vst.msk [vmem:[%s6380_s10 + $0xc0] sm:$0xf] %vm3464_vm2, %v3967_v19  ;;  %4747 = vrcp.f32 %v3005_v63  ;;  %v3008_v55 = vadd.f32 1.0, %v4728_v40 }
 0x1e9   :  { %3516 = vst.msk [vmem:[%s6380_s10 + $0xcc] sm:$0xf] %vm3464_vm2, %v3970_v41  ;;  %4749 = vrcp.f32 %v3010_v12 }
 0x1ea   :  { %v4730_v35 = vpop.eup %4729  ;;  %4751 = vrcp.f32 %v3008_v55 }
 0x1eb   :  { %v4732_v5 = vpop.eup %4731  ;;  %v3193_v51 = vmul.f32 %v4730_v35, %v6154_v43  ;;  %4753 = vpow2.f32 %v3852_v15 }
 0x1ec   :  { %v3011_v57 = vadd.f32 1.0, %v4732_v5 }
 0x1ed   :  { %v4734_v4 = vpop.eup %4733  ;;  %v3968_v10 = vpack.c.bf16 %v3193_v51, %v3193_v51 }
 0x1ee   :  { %v4736_v23 = vpop.eup %4735  ;;  %v3198_v48 = vmul.f32 %v4734_v4, %v6170_v46  ;;  %4755 = vrcp.f32 %v3011_v57 }
 0x1ef   :  { %v4738_v60 = vpop.eup %4737  ;;  %3514 = vst.msk [vmem:[%s6380_s10 + $0xc4] sm:$0xf] %vm3464_vm2, %v3968_v10  ;;  %v3196_v24 = vmul.f32 %v4736_v23, %v6173_v52 }
 0x1f0   :  { %v4740_v29 = vpop.eup %4739  ;;  %v3973_v61 = vpack.c.bf16 %v3198_v48, %v3198_v48  ;;  %v3009_v34 = vadd.f32 1.0, %v4738_v60 }
 0x1f1   :  { %v4742_v43 = vpop.eup %4741  ;;  %v3971_v17 = vpack.c.bf16 %v3196_v24, %v3196_v24  ;;  %v3199_v11 = vmul.f32 %v4740_v29, %v6188_v30 }
 0x1f2   :  { %v4744_v0 = vpop.eup %4743  ;;  %3519 = vst.msk [vmem:[%s6380_s10 + $0xd8] sm:$0xf] %vm3464_vm2, %v3973_v61  ;;  %4757 = vrcp.f32 %v3009_v34  ;;  %v3014_v46 = vadd.f32 1.0, %v4742_v43 }
 0x1f3   :  { %v4746_v26 = vpop.eup %4745  ;;  %3517 = vst.msk [vmem:[%s6380_s10 + $0xd0] sm:$0xf] %vm3464_vm2, %v3971_v17  ;;  %v3974_v52 = vpack.c.bf16 %v3199_v11, %v3199_v11  ;;  %v3012_v13 = vadd.f32 1.0, %v4744_v0 }
 0x1f4   :  { %4759 = vrcp.f32 %v3014_v46  ;;  %v3015_v45 = vadd.f32 1.0, %v4746_v26 }
 0x1f5   :  { %v4748_v3 = vpop.eup %4747  ;;  %3520 = vst.msk [vmem:[%s6380_s10 + $0xdc] sm:$0xf] %vm3464_vm2, %v3974_v52  ;;  %4761 = vrcp.f32 %v3012_v13 }
 0x1f6   :  { %v4750_v30 = vpop.eup %4749  ;;  %v3197_v39 = vmul.f32 %v4748_v3, %v6204_v16  ;;  %4763 = vrcp.f32 %v3015_v45 }
 0x1f7   :  { %v4752_v31 = vpop.eup %4751  ;;  %v3202_v59 = vmul.f32 %v4750_v30, %v6212_v20 }
 0x1f8   :  { %v4754_v58 = vpop.eup %4753  ;;  %v3972_v53 = vpack.c.bf16 %v3197_v39, %v3197_v39  ;;  %v3200_v32 = vmul.f32 %v4752_v31, %v6222_v18 }
 0x1f9   :  { %v3977_v56 = vpack.c.bf16 %v3202_v59, %v3202_v59  ;;  %v3013_v2 = vadd.f32 1.0, %v4754_v58 }
 0x1fa   :  { %3518 = vst.msk [vmem:[%s6380_s10 + $0xd4] sm:$0xf] %vm3464_vm2, %v3972_v53  ;;  %v3975_v27 = vpack.c.bf16 %v3200_v32, %v3200_v32 }
 0x1fb   :  { %v4756_v7 = vpop.eup %4755  ;;  %3523 = vst.msk [vmem:[%s6380_s10 + $0xe8] sm:$0xf] %vm3464_vm2, %v3977_v56  ;;  %4765 = vrcp.f32 %v3013_v2 }
 0x1fc   :  { %3521 = vst.msk [vmem:[%s6380_s10 + $0xe0] sm:$0xf] %vm3464_vm2, %v3975_v27  ;;  %v3203_v16 = vmul.f32 %v4756_v7, %v6237_v50 }
 0x1fe   :  { %v3978_v20 = vpack.c.bf16 %v3203_v16, %v3203_v16 }
 0x1ff   :  { %v4758_v18 = vpop.eup %4757 }
 0x200   :  { %3524 = vst.msk [vmem:[%s6380_s10 + $0xec] sm:$0xf] %vm3464_vm2, %v3978_v20  ;;  %v3201_v33 = vmul.f32 %v4758_v18, %v6252_v22 }
 0x201   :  { %v4760_v49 = vpop.eup %4759 }
 0x202   :  { %v4762_v21 = vpop.eup %4761  ;;  %v3976_v14 = vpack.c.bf16 %v3201_v33, %v3201_v33  ;;  %v3206_v37 = vmul.f32 %v4760_v49, %v6258_v9 }
 0x203   :  { %v4764_v54 = vpop.eup %4763  ;;  %v3204_v8 = vmul.f32 %v4762_v21, %v6268_v42 }
 0x204   :  { %3522 = vst.msk [vmem:[%s6380_s10 + $0xe4] sm:$0xf] %vm3464_vm2, %v3976_v14  ;;  %v3981_v50 = vpack.c.bf16 %v3206_v37, %v3206_v37  ;;  %v3207_v28 = vmul.f32 %v4764_v54, %v6279_v62 }
 0x205   :  { %v3979_v38 = vpack.c.bf16 %v3204_v8, %v3204_v8 }
 0x206   :  { %3527 = vst.msk [vmem:[%s6380_s10 + $0xf8] sm:$0xf] %vm3464_vm2, %v3981_v50  ;;  %v3982_v22 = vpack.c.bf16 %v3207_v28, %v3207_v28 }
 0x207   :  { %3525 = vst.msk [vmem:[%s6380_s10 + $0xf0] sm:$0xf] %vm3464_vm2, %v3979_v38 }
 0x208   :  { %v4766_v9 = vpop.eup %4765  ;;  %3528 = vst.msk [vmem:[%s6380_s10 + $0xfc] sm:$0xf] %vm3464_vm2, %v3982_v22 }
 0x209   :  { %v3205_v42 = vmul.f32 %v4766_v9, %v6290_v6 }
 0x20b   :  { %v3980_v62 = vpack.c.bf16 %v3205_v42, %v3205_v42 }
 0x20d   :  { %3526 = vst.msk [vmem:[%s6380_s10 + $0xf4] sm:$0xf] %vm3464_vm2, %v3980_v62 }

</bundles_post_ra>
